<compile_context>
chip_gen: v6e
topology: v6e:2x2x1
jax: 0.10.0
libtpu: 0.0.40
codegen_flags: <defaults>
</compile_context>

<pallas_src>
import functools
import math

import jax
import jax.numpy as jnp
from jax.experimental import pallas as pl
from jax.experimental.pallas import tpu as pltpu

_VMEM = pl.BlockSpec(memory_space=pltpu.MemorySpace.VMEM)
_LN_EPS = 1e-5


def _ln(x, g, b, eps=_LN_EPS):
    """LayerNorm over the last (lane) axis, f32 math."""
    mu = jnp.mean(x, axis=-1, keepdims=True)
    var = jnp.mean(jnp.square(x - mu), axis=-1, keepdims=True)
    return (x - mu) * jax.lax.rsqrt(var + eps) * g + b


def _pick_block(n, maxb=8):
    """Largest divisor of n that is <= maxb (samples per grid step)."""
    bb = min(n, maxb)
    while n % bb:
        bb -= 1
    return bb


_BLOCK_PARAM_ORDER = ("ln1_g", "ln1_b", "qkv_w", "qkv_b", "out_w", "out_b",
                      "ln2_g", "ln2_b", "fc_w", "fc_b", "proj_w", "proj_b")


# ------------------- layer-stacked fused transformer kernel -----------------

def _transformer_stack_kernel(x_ref, ln1_g, ln1_b, qkv_w, qkv_b, out_w, out_b,
                              ln2_g, ln2_b, fc_w, fc_b, proj_w, proj_b,
                              o_ref, x_scr, attn_scr, *, num_heads, valid_len):
    """One grid step = one pre-LN residual attention block (layer `l`) applied
    to a (Bt, S, D) batch of samples.  The residual stream is kept in the
    x_scr VMEM scratch across the (arbitrary) layer grid axis."""
    layer = pl.program_id(1)

    @pl.when(layer == 0)
    def _():
        x_scr[...] = x_ref[...]           # load residual stream once per i

    bt, s, d = o_ref.shape
    nh = num_heads
    dh = d // nh

    x = x_scr[...].astype(jnp.float32)                   # (Bt, S, D)
    xf = x.reshape(bt * s, d)                            # S is a mult. of 8

    # ---- LN1 + fused QKV projection (softmax scale pre-folded into Q) ----
    h = _ln(xf, ln1_g[0], ln1_b[0])
    qkv = jnp.dot(h.astype(jnp.bfloat16), qkv_w[0],
                  preferred_element_type=jnp.float32) + qkv_b[0]
    qkv = qkv.reshape(bt, s, 3 * d).astype(jnp.bfloat16)  # cast once

    # mask padded key tokens (token axis was padded up to a sublane multiple)
    key_mask = jax.lax.broadcasted_iota(jnp.int32, (bt, s, s), 2) < valid_len

    # ---- multi-head attention: sample-batched einsums, per-head outputs
    #      written to lane slices of a VMEM scratch (no concat) ----
    for hh in range(nh):
        lo = hh * dh
        qh = qkv[:, :, lo:lo + dh]
        kh = qkv[:, :, d + lo:d + lo + dh]
        vh = qkv[:, :, 2 * d + lo:2 * d + lo + dh]
        sc = jnp.einsum("bqd,bkd->bqk", qh, kh,
                        preferred_element_type=jnp.float32)       # (Bt, S, S)
        sc = jnp.where(key_mask, sc, -1e30)
        m = jnp.max(sc, axis=-1, keepdims=True)
        p = jnp.exp(sc - m)
        denom = jnp.sum(p, axis=-1, keepdims=True)
        oh = jnp.einsum("bqk,bkd->bqd", p.astype(jnp.bfloat16), vh,
                        preferred_element_type=jnp.float32)       # (Bt, S, dh)
        attn_scr[:, :, lo:lo + dh] = oh * pl.reciprocal(denom, approx=True)

    o_attn = attn_scr[...].reshape(bt * s, d)
    attn = jnp.dot(o_attn.astype(jnp.bfloat16), out_w[0],
                   preferred_element_type=jnp.float32) + out_b[0]
    xf = xf + attn

    # ---- LN2 + QuickGELU MLP ----
    h = _ln(xf, ln2_g[0], ln2_b[0])
    ff = jnp.dot(h.astype(jnp.bfloat16), fc_w[0],
                 preferred_element_type=jnp.float32) + fc_b[0]
    ff = ff * jax.nn.sigmoid(1.702 * ff)                 # QuickGELU, f32
    ff2 = jnp.dot(ff.astype(jnp.bfloat16), proj_w[0],
                  preferred_element_type=jnp.float32) + proj_b[0]
    xf = xf + ff2

    new_x = xf.reshape(bt, s, d)
    x_scr[...] = new_x
    o_ref[...] = new_x.astype(o_ref.dtype)


def transformer_stack(x, stacked, *, num_heads, valid_len):
    """x: (N, S_pad, D).  Runs ALL layers of the stacked block params in one
    pallas_call; grid = (sample_blocks, layers) with layers innermost."""
    n, s, d = x.shape
    num_layers = stacked["qkv_w"].shape[0]
    bt = _pick_block(n)                                  # samples per step

    def w_spec(arr):
        zeros = (0,) * (arr.ndim - 1)
        return pl.BlockSpec((1,) + arr.shape[1:],
                            lambda i, l, _z=zeros: (l,) + _z)

    params = [stacked[k] for k in _BLOCK_PARAM_ORDER]
    return pl.pallas_call(
        functools.partial(_transformer_stack_kernel,
                          num_heads=num_heads, valid_len=valid_len),
        grid=(n // bt, num_layers),
        in_specs=[pl.BlockSpec((bt, s, d), lambda i, l: (i, 0, 0))]
                 + [w_spec(a) for a in params],
        out_specs=pl.BlockSpec((bt, s, d), lambda i, l: (i, 0, 0)),
        out_shape=jax.ShapeDtypeStruct((n, s, d), x.dtype),
        scratch_shapes=[pltpu.VMEM((bt, s, d), jnp.float32),   # residual
                        pltpu.VMEM((bt, s, d), jnp.float32)],  # attn heads
        compiler_params=pltpu.CompilerParams(
            dimension_semantics=("parallel", "arbitrary"),
            vmem_limit_bytes=64 * 1024 * 1024),
    )(x, *params)


# --------------------- fused embed / post / pool kernels --------------------

def _patch_embed_kernel(p_ref, conv_w, cls_emb, pos_cls, pos_patch, g, b,
                        o_ref):
    """patch matmul + positional embedding + ln_pre, written straight into the
    padded (Fb, S_pad, D) activation block with tile-aligned ref stores.
    Token layout: rows [0, P) are patch tokens, row P is the CLS token,
    rows (P, S_pad) are zero padding (CLS-last is equivalent to the reference
    since attention has no positional prior beyond the added embeddings)."""
    fb, np_, pdim = p_ref.shape
    s_pad, d = o_ref.shape[1], o_ref.shape[2]

    emb = jnp.dot(p_ref[...].reshape(fb * np_, pdim), conv_w[...],
                  preferred_element_type=jnp.float32).reshape(fb, np_, d)
    emb = _ln(emb + pos_patch[...][None], g[...], b[...])
    cls = _ln(cls_emb[...].astype(jnp.float32) + pos_cls[...], g[...], b[...])

    o_ref[:, 0:np_, :] = emb.astype(o_ref.dtype)
    o_ref[:, np_:s_pad, :] = jnp.zeros((fb, s_pad - np_, d), o_ref.dtype)
    o_ref[:, np_:np_ + 1, :] = jnp.broadcast_to(
        cls[None], (fb, 1, d)).astype(o_ref.dtype)


def _vision_post_kernel(x_ref, g, b, proj, o_ref):
    """ln_post + visual projection applied to the 8-token block that contains
    the CLS row (the wrapper picks the CLS row out of the result)."""
    nb, r, d = x_ref.shape
    y = _ln(x_ref[...].astype(jnp.float32), g[...], b[...])
    out = jnp.dot(y.reshape(nb * r, d).astype(jnp.bfloat16), proj[...],
                  preferred_element_type=jnp.float32)
    o_ref[...] = out.reshape(nb, r, out.shape[-1]).astype(o_ref.dtype)


def _mit_pool_kernel(x_ref, ori_ref, o_ref, *, valid_len):
    """MIT tail: add original cls features, temporal mean, L2 normalize."""
    x = x_ref[...].astype(jnp.float32)[:, :valid_len, :]  # (B, T, E)
    ori = ori_ref[...].astype(jnp.float32)                 # (B, T, E)
    v = jnp.mean(x + ori, axis=1)                          # (B, E)
    n2 = jnp.sum(v * v, axis=-1, keepdims=True)
    o_ref[...] = (v * jax.lax.rsqrt(n2 + 1e-12)).astype(o_ref.dtype)


# ------------------------------ model forward -------------------------------

def patchify(image, patch, pdim_pad):
    """NCHW frames -> (N, num_patches, pdim_pad) bf16, matching
    Conv2d(kernel=patch, stride=patch); the patch-feature axis is zero-padded
    to a lane multiple (the matching conv_w rows are zero)."""
    n, c, h, w = image.shape
    gh, gw = h // patch, w // patch
    x = image.reshape(n, c, gh, patch, gw, patch)
    x = x.transpose(0, 2, 4, 1, 3, 5).reshape(n, gh * gw, c * patch * patch)
    # TODO(synk): at real sizes the patch gather could be expressed through a
    # BlockSpec index_map instead of this XLA transpose copy.
    pad = pdim_pad - c * patch * patch
    if pad:
        x = jnp.pad(x, ((0, 0), (0, 0), (0, pad)))
    return x.astype(jnp.bfloat16)


def encode_image(image_flat, vp, cfg):
    patches = patchify(image_flat, cfg["patch"], cfg["patch_dim_pad"])
    n, num_patches, pdim = patches.shape
    d, e, s_pad = cfg["vision_width"], cfg["embed_dim"], cfg["seq_pad"]
    fb = _pick_block(n)

    def const_spec(arr):
        zeros = (0,) * arr.ndim
        return pl.BlockSpec(arr.shape, lambda i, _z=zeros: _z)

    embed_w = (vp["conv_w"], vp["cls_emb"], vp["pos_cls"], vp["pos_patch"],
               vp["ln_pre_g"], vp["ln_pre_b"])
    x = pl.pallas_call(
        _patch_embed_kernel,
        grid=(n // fb,),
        in_specs=[pl.BlockSpec((fb, num_patches, pdim), lambda i: (i, 0, 0))]
                 + [const_spec(a) for a in embed_w],
        out_specs=pl.BlockSpec((fb, s_pad, d), lambda i: (i, 0, 0)),
        out_shape=jax.ShapeDtypeStruct((n, s_pad, d), jnp.float32),
        compiler_params=pltpu.CompilerParams(
            dimension_semantics=("parallel",)),
    )(patches, *embed_w)

    x = transformer_stack(x, vp["blocks"], num_heads=cfg["vision_heads"],
                          valid_len=num_patches + 1)

    # ln_post + visual projection: fetch only the 8-token block holding CLS.
    cls_blk, cls_off = divmod(num_patches, 8)      # CLS token row = num_patches
    nb = 8 if n % 8 == 0 else n
    post_w = (vp["ln_post_g"], vp["ln_post_b"], vp["visual_proj"])
    post = pl.pallas_call(
        _vision_post_kernel,
        grid=(n // nb,),
        in_specs=[pl.BlockSpec((nb, 8, d), lambda i, _b=cls_blk: (i, _b, 0))]
                 + [const_spec(a) for a in post_w],
        out_specs=pl.BlockSpec((nb, 8, e), lambda i: (i, 0, 0)),
        out_shape=jax.ShapeDtypeStruct((n, 8, e), jnp.float32),
        compiler_params=pltpu.CompilerParams(
            dimension_semantics=("parallel",)),
    )(x, *post_w)
    return post[:, cls_off, :]                     # (N, E) CLS features


def image_transformer_encoder_forward(params, image, cfg):
    b, t, c, h, w = image.shape
    image_flat = image.reshape(b * t, c, h, w)

    # ---- visual encoder over all frames ----
    cls_features = encode_image(image_flat, params["visual"], cfg)   # (b*t, E)
    e = cls_features.shape[-1]
    cls_bt = cls_features.reshape(b, t, e)

    # NOTE: the torch forward also runs prompts_visual_ln/proj over the patch
    # tokens and img_features.mean(dim=1); that path never feeds the returned
    # video_features, so it is dropped (XLA would DCE it anyway).

    # ---- MIT (Multiframe Integration Transformer) ----
    mp = params["mit"]
    ori = cls_bt
    x = cls_bt + mp["pos_emb"][None]
    t_pad = cfg["t_pad"]
    if t_pad > t:
        x = jnp.concatenate([x, jnp.zeros((b, t_pad - t, e), x.dtype)], axis=1)
    x = transformer_stack(x, mp["blocks"], num_heads=cfg["mit_heads"],
                          valid_len=t)

    video_features = pl.pallas_call(
        functools.partial(_mit_pool_kernel, valid_len=t),
        out_shape=jax.ShapeDtypeStruct((b, e), jnp.float32),
        in_specs=[_VMEM, _VMEM],
        out_specs=_VMEM,
    )(x, ori)
    return video_features


# ------------------------- deterministic parameters -------------------------

def _init_stacked_blocks(key, num_layers, d, d_ff, num_heads):
    ks = jax.random.split(key, 4)
    f32, bf16 = jnp.float32, jnp.bfloat16
    scale_q = 1.0 / math.sqrt(d // num_heads)
    qkv_w = 0.02 * jax.random.normal(ks[0], (num_layers, d, 3 * d), f32)
    # fold the softmax 1/sqrt(dh) scale into the Q third of the QKV projection
    # (the Q third of qkv_b would be scaled too; it is zero here).
    qkv_w = qkv_w.at[:, :, :d].multiply(scale_q)
    return dict(
        ln1_g=jnp.ones((num_layers, 1, d), f32),
        ln1_b=jnp.zeros((num_layers, 1, d), f32),
        qkv_w=qkv_w.astype(bf16),
        qkv_b=jnp.zeros((num_layers, 1, 3 * d), f32),
        out_w=(0.02 * jax.random.normal(ks[1], (num_layers, d, d), f32)
               ).astype(bf16),
        out_b=jnp.zeros((num_layers, 1, d), f32),
        ln2_g=jnp.ones((num_layers, 1, d), f32),
        ln2_b=jnp.zeros((num_layers, 1, d), f32),
        fc_w=(0.02 * jax.random.normal(ks[2], (num_layers, d, d_ff), f32)
              ).astype(bf16),
        fc_b=jnp.zeros((num_layers, 1, d_ff), f32),
        proj_w=(0.02 * jax.random.normal(ks[3], (num_layers, d_ff, d), f32)
                ).astype(bf16),
        proj_b=jnp.zeros((num_layers, 1, d), f32),
    )


def init_params(key, cfg):
    f32, bf16 = jnp.float32, jnp.bfloat16
    d, e = cfg["vision_width"], cfg["embed_dim"]
    patch_dim = cfg["channels"] * cfg["patch"] * cfg["patch"]
    grid_hw = cfg["image_size"] // cfg["patch"]
    num_patches = grid_hw * grid_hw
    keys = jax.random.split(key, 8)

    conv_w = 0.02 * jax.random.normal(keys[0], (patch_dim, d), f32)
    conv_w = jnp.concatenate(
        [conv_w, jnp.zeros((cfg["patch_dim_pad"] - patch_dim, d), f32)], axis=0)
    pos_emb = 0.02 * jax.random.normal(keys[2], (num_patches + 1, d), f32)

    visual = dict(
        conv_w=conv_w.astype(bf16),
        cls_emb=0.02 * jax.random.normal(keys[1], (1, d), f32),
        # positional embedding split into CLS / patch rows so the kernel never
        # slices it at an unaligned sublane offset.
        pos_cls=pos_emb[0:1],
        pos_patch=pos_emb[1:],
        ln_pre_g=jnp.ones((1, d), f32), ln_pre_b=jnp.zeros((1, d), f32),
        blocks=_init_stacked_blocks(keys[3], cfg["vision_layers"], d,
                                    cfg["vision_mlp"], cfg["vision_heads"]),
        ln_post_g=jnp.ones((1, d), f32), ln_post_b=jnp.zeros((1, d), f32),
        visual_proj=(0.02 * jax.random.normal(keys[4], (d, e), f32)
                     ).astype(bf16),
    )
    mit = dict(
        pos_emb=0.02 * jax.random.normal(keys[5], (cfg["T"], e), f32),
        blocks=_init_stacked_blocks(keys[6], cfg["mit_layers"], e,
                                    cfg["mit_mlp"], cfg["mit_heads"]),
    )
    return dict(visual=visual, mit=mit)


# ----------------------------------- main ------------------------------------

if __name__ == "__main__":
    # TODO(synk): the original module loads a pretrained ViT-B/32 via xsum.load;
    # here the same architecture runs at a small, lane-dense synthetic size
    # with deterministic random weights instead of a checkpoint.
    cfg = dict(
        image_size=16, patch=4, channels=3,
        vision_width=128, vision_layers=2, vision_heads=4, vision_mlp=256,
        embed_dim=128,
        T=4, mit_layers=1, mit_heads=4, mit_mlp=256,
    )
    grid_hw = cfg["image_size"] // cfg["patch"]
    num_patches = grid_hw * grid_hw                       # 16 (sublane mult.)
    cfg["seq_pad"] = -(-(num_patches + 1) // 8) * 8       # 24 tokens
    cfg["t_pad"] = -(-cfg["T"] // 8) * 8                  # 8
    cfg["patch_dim_pad"] = -(-(cfg["channels"] * cfg["patch"] ** 2) // 128) * 128

    key = jax.random.PRNGKey(0)
    pkey, xkey = jax.random.split(key)
    params = init_params(pkey, cfg)

    # image: (b, t, c, h, w) — PyTorch NCHW frames stacked over time
    image = jax.random.normal(
        xkey, (2, cfg["T"], cfg["channels"], cfg["image_size"],
               cfg["image_size"]), jnp.float32)

    forward = jax.jit(functools.partial(image_transformer_encoder_forward,
                                        cfg=cfg))
    video_features = jax.block_until_ready(forward(params, image))

    assert video_features.shape == (2, cfg["embed_dim"])
    assert bool(jnp.all(jnp.isfinite(video_features)))
    norms = jnp.linalg.norm(video_features, axis=-1)
    assert bool(jnp.allclose(norms, 1.0, atol=1e-4))
    print("KERNEL_OK")
</pallas_src>

<mosaic_0001>
module attributes {stable_mosaic.version = 11 : i64} {
  func.func @_patch_embed_kernel(%arg0: i32, %arg1: memref<8x16x128xbf16, #tpu.memory_space<vmem>>, %arg2: memref<128x128xbf16, #tpu.memory_space<vmem>>, %arg3: memref<1x128xf32, #tpu.memory_space<vmem>>, %arg4: memref<1x128xf32, #tpu.memory_space<vmem>>, %arg5: memref<16x128xf32, #tpu.memory_space<vmem>>, %arg6: memref<1x128xf32, #tpu.memory_space<vmem>>, %arg7: memref<1x128xf32, #tpu.memory_space<vmem>>, %arg8: memref<8x24x128xf32, #tpu.memory_space<vmem>>) attributes {dimension_semantics = [#tpu.dimension_semantics<parallel>], iteration_bounds = array<i64: 1>, scalar_prefetch = 0 : i64, scratch_operands = 0 : i64, tpu.core_type = #tpu.core_type<tc>, window_params = [{transform_indices = @transform_0, window_bounds = array<i64: 8, 16, 128>}, {pipeline_mode = #tpu.pipeline_mode<synchronous>, transform_indices = @transform_1, window_bounds = array<i64: 128, 128>}, {pipeline_mode = #tpu.pipeline_mode<synchronous>, transform_indices = @transform_2, window_bounds = array<i64: 1, 128>}, {pipeline_mode = #tpu.pipeline_mode<synchronous>, transform_indices = @transform_3, window_bounds = array<i64: 1, 128>}, {pipeline_mode = #tpu.pipeline_mode<synchronous>, transform_indices = @transform_4, window_bounds = array<i64: 16, 128>}, {pipeline_mode = #tpu.pipeline_mode<synchronous>, transform_indices = @transform_5, window_bounds = array<i64: 1, 128>}, {pipeline_mode = #tpu.pipeline_mode<synchronous>, transform_indices = @transform_6, window_bounds = array<i64: 1, 128>}, {transform_indices = @transform_7, window_bounds = array<i64: 8, 24, 128>}]} {
    %c0 = arith.constant 0 : index
    %c0_0 = arith.constant 0 : index
    %c0_1 = arith.constant 0 : index
    %0 = vector.load %arg1[%c0, %c0_0, %c0_1] : memref<8x16x128xbf16, #tpu.memory_space<vmem>>, vector<8x16x128xbf16>
    %1 = vector.shape_cast %0 : vector<8x16x128xbf16> to vector<128x128xbf16>
    %c0_2 = arith.constant 0 : index
    %c0_3 = arith.constant 0 : index
    %2 = vector.load %arg2[%c0_2, %c0_3] : memref<128x128xbf16, #tpu.memory_space<vmem>>, vector<128x128xbf16>
    %cst = arith.constant dense<0.000000e+00> : vector<128x128xf32>
    %3 = tpu.matmul %1, %2, %cst {dimension_numbers = #tpu.dot_dimension_numbers<[1], [0], [0], [1], [0, 0, 1, 1], [], []>} : vector<128x128xbf16>, vector<128x128xbf16>, vector<128x128xf32> -> vector<128x128xf32>
    %4 = vector.shape_cast %3 : vector<128x128xf32> to vector<8x16x128xf32>
    %c0_4 = arith.constant 0 : index
    %c0_5 = arith.constant 0 : index
    %5 = vector.load %arg5[%c0_4, %c0_5] : memref<16x128xf32, #tpu.memory_space<vmem>>, vector<16x128xf32>
    %6 = vector.shape_cast %5 : vector<16x128xf32> to vector<1x16x128xf32>
    %7 = vector.broadcast %6 : vector<1x16x128xf32> to vector<8x16x128xf32>
    %8 = arith.addf %4, %7 : vector<8x16x128xf32>
    %c0_6 = arith.constant 0 : index
    %c0_7 = arith.constant 0 : index
    %9 = vector.load %arg6[%c0_6, %c0_7] : memref<1x128xf32, #tpu.memory_space<vmem>>, vector<1x128xf32>
    %c0_8 = arith.constant 0 : index
    %c0_9 = arith.constant 0 : index
    %10 = vector.load %arg7[%c0_8, %c0_9] : memref<1x128xf32, #tpu.memory_space<vmem>>, vector<1x128xf32>
    %cst_10 = arith.constant dense<0.000000e+00> : vector<8x16xf32>
    %11 = vector.multi_reduction <add>, %8, %cst_10 [2] : vector<8x16x128xf32> to vector<8x16xf32>
    %12 = vector.shape_cast %11 : vector<8x16xf32> to vector<8x16x1xf32>
    %cst_11 = arith.constant 1.280000e+02 : f32
    %13 = vector.broadcast %cst_11 : f32 to vector<8x16x1xf32>
    %14 = arith.divf %12, %13 : vector<8x16x1xf32>
    %15 = vector.broadcast %14 : vector<8x16x1xf32> to vector<8x16x128xf32>
    %16 = arith.subf %8, %15 : vector<8x16x128xf32>
    %17 = arith.mulf %16, %16 : vector<8x16x128xf32>
    %cst_12 = arith.constant dense<0.000000e+00> : vector<8x16xf32>
    %18 = vector.multi_reduction <add>, %17, %cst_12 [2] : vector<8x16x128xf32> to vector<8x16xf32>
    %19 = vector.shape_cast %18 : vector<8x16xf32> to vector<8x16x1xf32>
    %cst_13 = arith.constant 1.280000e+02 : f32
    %20 = vector.broadcast %cst_13 : f32 to vector<8x16x1xf32>
    %21 = arith.divf %19, %20 : vector<8x16x1xf32>
    %22 = vector.broadcast %14 : vector<8x16x1xf32> to vector<8x16x128xf32>
    %23 = arith.subf %8, %22 : vector<8x16x128xf32>
    %cst_14 = arith.constant 9.99999974E-6 : f32
    %24 = vector.broadcast %cst_14 : f32 to vector<8x16x1xf32>
    %25 = arith.addf %21, %24 : vector<8x16x1xf32>
    %26 = math.rsqrt %25 : vector<8x16x1xf32>
    %27 = vector.broadcast %26 : vector<8x16x1xf32> to vector<8x16x128xf32>
    %28 = arith.mulf %23, %27 : vector<8x16x128xf32>
    %29 = vector.shape_cast %9 : vector<1x128xf32> to vector<1x1x128xf32>
    %30 = vector.broadcast %29 : vector<1x1x128xf32> to vector<8x16x128xf32>
    %31 = arith.mulf %28, %30 : vector<8x16x128xf32>
    %32 = vector.shape_cast %10 : vector<1x128xf32> to vector<1x1x128xf32>
    %33 = vector.broadcast %32 : vector<1x1x128xf32> to vector<8x16x128xf32>
    %34 = arith.addf %31, %33 : vector<8x16x128xf32>
    %c0_15 = arith.constant 0 : index
    %c0_16 = arith.constant 0 : index
    %35 = vector.load %arg3[%c0_15, %c0_16] : memref<1x128xf32, #tpu.memory_space<vmem>>, vector<1x128xf32>
    %c0_17 = arith.constant 0 : index
    %c0_18 = arith.constant 0 : index
    %36 = vector.load %arg4[%c0_17, %c0_18] : memref<1x128xf32, #tpu.memory_space<vmem>>, vector<1x128xf32>
    %37 = arith.addf %35, %36 : vector<1x128xf32>
    %c0_19 = arith.constant 0 : index
    %c0_20 = arith.constant 0 : index
    %38 = vector.load %arg6[%c0_19, %c0_20] : memref<1x128xf32, #tpu.memory_space<vmem>>, vector<1x128xf32>
    %c0_21 = arith.constant 0 : index
    %c0_22 = arith.constant 0 : index
    %39 = vector.load %arg7[%c0_21, %c0_22] : memref<1x128xf32, #tpu.memory_space<vmem>>, vector<1x128xf32>
    %cst_23 = arith.constant dense<0.000000e+00> : vector<1xf32>
    %40 = vector.multi_reduction <add>, %37, %cst_23 [1] : vector<1x128xf32> to vector<1xf32>
    %41 = vector.shape_cast %40 : vector<1xf32> to vector<1x1xf32>
    %cst_24 = arith.constant 1.280000e+02 : f32
    %42 = vector.broadcast %cst_24 : f32 to vector<1x1xf32>
    %43 = arith.divf %41, %42 : vector<1x1xf32>
    %44 = vector.broadcast %43 : vector<1x1xf32> to vector<1x128xf32>
    %45 = arith.subf %37, %44 : vector<1x128xf32>
    %46 = arith.mulf %45, %45 : vector<1x128xf32>
    %cst_25 = arith.constant dense<0.000000e+00> : vector<1xf32>
    %47 = vector.multi_reduction <add>, %46, %cst_25 [1] : vector<1x128xf32> to vector<1xf32>
    %48 = vector.shape_cast %47 : vector<1xf32> to vector<1x1xf32>
    %cst_26 = arith.constant 1.280000e+02 : f32
    %49 = vector.broadcast %cst_26 : f32 to vector<1x1xf32>
    %50 = arith.divf %48, %49 : vector<1x1xf32>
    %51 = vector.broadcast %43 : vector<1x1xf32> to vector<1x128xf32>
    %52 = arith.subf %37, %51 : vector<1x128xf32>
    %cst_27 = arith.constant 9.99999974E-6 : f32
    %53 = vector.broadcast %cst_27 : f32 to vector<1x1xf32>
    %54 = arith.addf %50, %53 : vector<1x1xf32>
    %55 = math.rsqrt %54 : vector<1x1xf32>
    %56 = vector.broadcast %55 : vector<1x1xf32> to vector<1x128xf32>
    %57 = arith.mulf %52, %56 : vector<1x128xf32>
    %58 = arith.mulf %57, %38 : vector<1x128xf32>
    %59 = arith.addf %58, %39 : vector<1x128xf32>
    %c0_28 = arith.constant 0 : index
    %c0_29 = arith.constant 0 : index
    %c0_30 = arith.constant 0 : index
    %60 = vector.load %arg8[%c0_28, %c0_29, %c0_30] : memref<8x24x128xf32, #tpu.memory_space<vmem>>, vector<8x16x128xf32>
    tpu.vector_store %arg8[%c0_28, %c0_29, %c0_30], %34 {strides = array<i32>} : memref<8x24x128xf32, #tpu.memory_space<vmem>>, vector<8x16x128xf32>,
    %cst_31 = arith.constant 0.000000e+00 : f32
    %61 = vector.broadcast %cst_31 : f32 to vector<8x8x128xf32>
    %c0_32 = arith.constant 0 : index
    %c16 = arith.constant 16 : index
    %c0_33 = arith.constant 0 : index
    %62 = vector.load %arg8[%c0_32, %c16, %c0_33] : memref<8x24x128xf32, #tpu.memory_space<vmem>>, vector<8x8x128xf32>
    tpu.vector_store %arg8[%c0_32, %c16, %c0_33], %61 {strides = array<i32>} : memref<8x24x128xf32, #tpu.memory_space<vmem>>, vector<8x8x128xf32>,
    %63 = vector.shape_cast %59 : vector<1x128xf32> to vector<1x1x128xf32>
    %64 = vector.shape_cast %63 : vector<1x1x128xf32> to vector<1x1x128xf32>
    %65 = vector.broadcast %64 : vector<1x1x128xf32> to vector<8x1x128xf32>
    %c0_34 = arith.constant 0 : index
    %c16_35 = arith.constant 16 : index
    %c0_36 = arith.constant 0 : index
    %66 = vector.load %arg8[%c0_34, %c16_35, %c0_36] : memref<8x24x128xf32, #tpu.memory_space<vmem>>, vector<8x1x128xf32>
    tpu.vector_store %arg8[%c0_34, %c16_35, %c0_36], %65 {strides = array<i32>} : memref<8x24x128xf32, #tpu.memory_space<vmem>>, vector<8x1x128xf32>,
    return
  }
  func.func @transform_0(%arg0: i32) -> (i32, i32, i32) {
    %c0_i32 = arith.constant 0 : i32
    %c0_i32_0 = arith.constant 0 : i32
    %c0_i32_1 = arith.constant 0 : i32
    return %arg0, %c0_i32, %c0_i32_0 : i32, i32, i32
  }
  func.func @transform_1(%arg0: i32) -> (i32, i32) {
    %c0_i32 = arith.constant 0 : i32
    %c0_i32_0 = arith.constant 0 : i32
    %c0_i32_1 = arith.constant 0 : i32
    return %c0_i32, %c0_i32_0 : i32, i32
  }
  func.func @transform_2(%arg0: i32) -> (i32, i32) {
    %c0_i32 = arith.constant 0 : i32
    %c0_i32_0 = arith.constant 0 : i32
    %c0_i32_1 = arith.constant 0 : i32
    return %c0_i32, %c0_i32_0 : i32, i32
  }
  func.func @transform_3(%arg0: i32) -> (i32, i32) {
    %c0_i32 = arith.constant 0 : i32
    %c0_i32_0 = arith.constant 0 : i32
    %c0_i32_1 = arith.constant 0 : i32
    return %c0_i32, %c0_i32_0 : i32, i32
  }
  func.func @transform_4(%arg0: i32) -> (i32, i32) {
    %c0_i32 = arith.constant 0 : i32
    %c0_i32_0 = arith.constant 0 : i32
    %c0_i32_1 = arith.constant 0 : i32
    return %c0_i32, %c0_i32_0 : i32, i32
  }
  func.func @transform_5(%arg0: i32) -> (i32, i32) {
    %c0_i32 = arith.constant 0 : i32
    %c0_i32_0 = arith.constant 0 : i32
    %c0_i32_1 = arith.constant 0 : i32
    return %c0_i32, %c0_i32_0 : i32, i32
  }
  func.func @transform_6(%arg0: i32) -> (i32, i32) {
    %c0_i32 = arith.constant 0 : i32
    %c0_i32_0 = arith.constant 0 : i32
    %c0_i32_1 = arith.constant 0 : i32
    return %c0_i32, %c0_i32_0 : i32, i32
  }
  func.func @transform_7(%arg0: i32) -> (i32, i32, i32) {
    %c0_i32 = arith.constant 0 : i32
    %c0_i32_0 = arith.constant 0 : i32
    %c0_i32_1 = arith.constant 0 : i32
    return %arg0, %c0_i32, %c0_i32_0 : i32, i32, i32
  }
}

module attributes {stable_mosaic.version = 11 : i64} {
  func.func @_transformer_stack_kernel(%arg0: i32, %arg1: i32, %arg2: memref<8x24x128xf32, #tpu.memory_space<vmem>>, %arg3: memref<1x1x128xf32, #tpu.memory_space<vmem>>, %arg4: memref<1x1x128xf32, #tpu.memory_space<vmem>>, %arg5: memref<1x128x384xbf16, #tpu.memory_space<vmem>>, %arg6: memref<1x1x384xf32, #tpu.memory_space<vmem>>, %arg7: memref<1x128x128xbf16, #tpu.memory_space<vmem>>, %arg8: memref<1x1x128xf32, #tpu.memory_space<vmem>>, %arg9: memref<1x1x128xf32, #tpu.memory_space<vmem>>, %arg10: memref<1x1x128xf32, #tpu.memory_space<vmem>>, %arg11: memref<1x128x256xbf16, #tpu.memory_space<vmem>>, %arg12: memref<1x1x256xf32, #tpu.memory_space<vmem>>, %arg13: memref<1x256x128xbf16, #tpu.memory_space<vmem>>, %arg14: memref<1x1x128xf32, #tpu.memory_space<vmem>>, %arg15: memref<8x24x128xf32, #tpu.memory_space<vmem>>, %arg16: memref<8x24x128xf32, #tpu.memory_space<vmem>>, %arg17: memref<8x24x128xf32, #tpu.memory_space<vmem>>) attributes {dimension_semantics = [#tpu.dimension_semantics<parallel>, #tpu.dimension_semantics<arbitrary>], iteration_bounds = array<i64: 1, 2>, scalar_prefetch = 0 : i64, scratch_operands = 2 : i64, tpu.core_type = #tpu.core_type<tc>, window_params = [{transform_indices = @transform_0, window_bounds = array<i64: 8, 24, 128>}, {transform_indices = @transform_1, window_bounds = array<i64: 1, 1, 128>}, {transform_indices = @transform_2, window_bounds = array<i64: 1, 1, 128>}, {transform_indices = @transform_3, window_bounds = array<i64: 1, 128, 384>}, {transform_indices = @transform_4, window_bounds = array<i64: 1, 1, 384>}, {transform_indices = @transform_5, window_bounds = array<i64: 1, 128, 128>}, {transform_indices = @transform_6, window_bounds = array<i64: 1, 1, 128>}, {transform_indices = @transform_7, window_bounds = array<i64: 1, 1, 128>}, {transform_indices = @transform_8, window_bounds = array<i64: 1, 1, 128>}, {transform_indices = @transform_9, window_bounds = array<i64: 1, 128, 256>}, {transform_indices = @transform_10, window_bounds = array<i64: 1, 1, 256>}, {transform_indices = @transform_11, window_bounds = array<i64: 1, 256, 128>}, {transform_indices = @transform_12, window_bounds = array<i64: 1, 1, 128>}, {transform_indices = @transform_13, window_bounds = array<i64: 8, 24, 128>}]} {
    %c0_i32 = arith.constant 0 : i32
    %0 = arith.cmpi eq, %arg1, %c0_i32 : i32
    %1 = arith.extui %0 : i1 to i32
    %c0_i32_0 = arith.constant 0 : i32
    %2 = arith.cmpi ne, %1, %c0_i32_0 : i32
    scf.if %2 {
      %c0_92 = arith.constant 0 : index
      %c0_93 = arith.constant 0 : index
      %c0_94 = arith.constant 0 : index
      %185 = vector.load %arg2[%c0_92, %c0_93, %c0_94] : memref<8x24x128xf32, #tpu.memory_space<vmem>>, vector<8x24x128xf32>
      %c0_95 = arith.constant 0 : index
      %c0_96 = arith.constant 0 : index
      %c0_97 = arith.constant 0 : index
      %186 = vector.load %arg16[%c0_95, %c0_96, %c0_97] : memref<8x24x128xf32, #tpu.memory_space<vmem>>, vector<8x24x128xf32>
      tpu.vector_store %arg16[%c0_95, %c0_96, %c0_97], %185 {strides = array<i32>} : memref<8x24x128xf32, #tpu.memory_space<vmem>>, vector<8x24x128xf32>,
    } else {
    }
    %c0 = arith.constant 0 : index
    %c0_1 = arith.constant 0 : index
    %c0_2 = arith.constant 0 : index
    %3 = vector.load %arg16[%c0, %c0_1, %c0_2] : memref<8x24x128xf32, #tpu.memory_space<vmem>>, vector<8x24x128xf32>
    %4 = vector.shape_cast %3 : vector<8x24x128xf32> to vector<192x128xf32>
    %c0_3 = arith.constant 0 : index
    %c0_4 = arith.constant 0 : index
    %c0_5 = arith.constant 0 : index
    %5 = vector.load %arg3[%c0_3, %c0_4, %c0_5] : memref<1x1x128xf32, #tpu.memory_space<vmem>>, vector<1x1x128xf32>
    %6 = vector.shape_cast %5 : vector<1x1x128xf32> to vector<1x128xf32>
    %c0_6 = arith.constant 0 : index
    %c0_7 = arith.constant 0 : index
    %c0_8 = arith.constant 0 : index
    %7 = vector.load %arg4[%c0_6, %c0_7, %c0_8] : memref<1x1x128xf32, #tpu.memory_space<vmem>>, vector<1x1x128xf32>
    %8 = vector.shape_cast %7 : vector<1x1x128xf32> to vector<1x128xf32>
    %cst = arith.constant dense<0.000000e+00> : vector<192xf32>
    %9 = vector.multi_reduction <add>, %4, %cst [1] : vector<192x128xf32> to vector<192xf32>
    %10 = vector.shape_cast %9 : vector<192xf32> to vector<192x1xf32>
    %cst_9 = arith.constant 1.280000e+02 : f32
    %11 = vector.broadcast %cst_9 : f32 to vector<192x1xf32>
    %12 = arith.divf %10, %11 : vector<192x1xf32>
    %13 = vector.broadcast %12 : vector<192x1xf32> to vector<192x128xf32>
    %14 = arith.subf %4, %13 : vector<192x128xf32>
    %15 = arith.mulf %14, %14 : vector<192x128xf32>
    %cst_10 = arith.constant dense<0.000000e+00> : vector<192xf32>
    %16 = vector.multi_reduction <add>, %15, %cst_10 [1] : vector<192x128xf32> to vector<192xf32>
    %17 = vector.shape_cast %16 : vector<192xf32> to vector<192x1xf32>
    %cst_11 = arith.constant 1.280000e+02 : f32
    %18 = vector.broadcast %cst_11 : f32 to vector<192x1xf32>
    %19 = arith.divf %17, %18 : vector<192x1xf32>
    %20 = vector.broadcast %12 : vector<192x1xf32> to vector<192x128xf32>
    %21 = arith.subf %4, %20 : vector<192x128xf32>
    %cst_12 = arith.constant 9.99999974E-6 : f32
    %22 = vector.broadcast %cst_12 : f32 to vector<192x1xf32>
    %23 = arith.addf %19, %22 : vector<192x1xf32>
    %24 = math.rsqrt %23 : vector<192x1xf32>
    %25 = vector.broadcast %24 : vector<192x1xf32> to vector<192x128xf32>
    %26 = arith.mulf %21, %25 : vector<192x128xf32>
    %27 = vector.broadcast %6 : vector<1x128xf32> to vector<192x128xf32>
    %28 = arith.mulf %26, %27 : vector<192x128xf32>
    %29 = vector.broadcast %8 : vector<1x128xf32> to vector<192x128xf32>
    %30 = arith.addf %28, %29 : vector<192x128xf32>
    %31 = arith.truncf %30 : vector<192x128xf32> to vector<192x128xbf16>
    %c0_13 = arith.constant 0 : index
    %c0_14 = arith.constant 0 : index
    %c0_15 = arith.constant 0 : index
    %32 = vector.load %arg5[%c0_13, %c0_14, %c0_15] : memref<1x128x384xbf16, #tpu.memory_space<vmem>>, vector<1x128x384xbf16>
    %33 = vector.shape_cast %32 : vector<1x128x384xbf16> to vector<128x384xbf16>
    %cst_16 = arith.constant dense<0.000000e+00> : vector<192x384xf32>
    %34 = tpu.matmul %31, %33, %cst_16 {dimension_numbers = #tpu.dot_dimension_numbers<[1], [0], [0], [1], [0, 0, 1, 1], [], []>} : vector<192x128xbf16>, vector<128x384xbf16>, vector<192x384xf32> -> vector<192x384xf32>
    %c0_17 = arith.constant 0 : index
    %c0_18 = arith.constant 0 : index
    %c0_19 = arith.constant 0 : index
    %35 = vector.load %arg6[%c0_17, %c0_18, %c0_19] : memref<1x1x384xf32, #tpu.memory_space<vmem>>, vector<1x1x384xf32>
    %36 = vector.shape_cast %35 : vector<1x1x384xf32> to vector<1x384xf32>
    %37 = vector.broadcast %36 : vector<1x384xf32> to vector<192x384xf32>
    %38 = arith.addf %34, %37 : vector<192x384xf32>
    %39 = vector.shape_cast %38 : vector<192x384xf32> to vector<8x24x384xf32>
    %40 = arith.truncf %39 : vector<8x24x384xf32> to vector<8x24x384xbf16>
    %41 = tpu.iota {dimensions = array<i32: 2>} : vector<8x24x24xi32>
    %c17_i32 = arith.constant 17 : i32
    %42 = vector.broadcast %c17_i32 : i32 to vector<8x24x24xi32>
    %43 = arith.cmpi slt, %41, %42 : vector<8x24x24xi32>
    %44 = vector.extract_strided_slice %40 {offsets = [0, 0, 0], sizes = [8, 24, 32], strides = [1, 1, 1]} : vector<8x24x384xbf16> to vector<8x24x32xbf16>
    %45 = vector.extract_strided_slice %40 {offsets = [0, 0, 128], sizes = [8, 24, 32], strides = [1, 1, 1]} : vector<8x24x384xbf16> to vector<8x24x32xbf16>
    %46 = vector.extract_strided_slice %40 {offsets = [0, 0, 256], sizes = [8, 24, 32], strides = [1, 1, 1]} : vector<8x24x384xbf16> to vector<8x24x32xbf16>
    "tpu.trace_start"() <{level = 10 : i32, message = "bqd,bkd->bqk"}> : () -> ()
    %cst_20 = arith.constant dense<0.000000e+00> : vector<8x24x24xf32>
    %47 = tpu.matmul %44, %45, %cst_20 {dimension_numbers = #tpu.dot_dimension_numbers<[2], [2], [1], [1], [0, 0, 0, 1, 1, 1], [0], [0]>} : vector<8x24x32xbf16>, vector<8x24x32xbf16>, vector<8x24x24xf32> -> vector<8x24x24xf32>
    %cst_21 = arith.constant -1.000000e+30 : f32
    "tpu.trace_stop"() : () -> ()
    %48 = vector.broadcast %cst_21 : f32 to vector<8x24x24xf32>
    %49 = arith.select %43, %47, %48 : vector<8x24x24xi1>, vector<8x24x24xf32>
    %cst_22 = arith.constant dense<0xFF800000> : vector<8x24xf32>
    %50 = vector.multi_reduction <maximumf>, %49, %cst_22 [2] : vector<8x24x24xf32> to vector<8x24xf32>
    %51 = vector.shape_cast %50 : vector<8x24xf32> to vector<8x24x1xf32>
    %52 = vector.broadcast %51 : vector<8x24x1xf32> to vector<8x24x24xf32>
    %53 = arith.subf %49, %52 : vector<8x24x24xf32>
    %54 = math.exp %53 : vector<8x24x24xf32>
    %cst_23 = arith.constant dense<0.000000e+00> : vector<8x24xf32>
    %55 = vector.multi_reduction <add>, %54, %cst_23 [2] : vector<8x24x24xf32> to vector<8x24xf32>
    %56 = vector.shape_cast %55 : vector<8x24xf32> to vector<8x24x1xf32>
    %57 = arith.truncf %54 : vector<8x24x24xf32> to vector<8x24x24xbf16>
    "tpu.trace_start"() <{level = 10 : i32, message = "bqk,bkd->bqd"}> : () -> ()
    %cst_24 = arith.constant dense<0.000000e+00> : vector<8x24x32xf32>
    %58 = tpu.matmul %57, %46, %cst_24 {dimension_numbers = #tpu.dot_dimension_numbers<[2], [1], [1], [2], [0, 0, 0, 1, 1, 2], [0], [0]>} : vector<8x24x24xbf16>, vector<8x24x32xbf16>, vector<8x24x32xf32> -> vector<8x24x32xf32>
    "tpu.trace_stop"() : () -> ()
    %59 = tpu.reciprocal %56 {approx = true} : vector<8x24x1xf32> -> vector<8x24x1xf32>
    %60 = vector.broadcast %59 : vector<8x24x1xf32> to vector<8x24x32xf32>
    %61 = arith.mulf %58, %60 : vector<8x24x32xf32>
    %c0_25 = arith.constant 0 : index
    %c0_26 = arith.constant 0 : index
    %c0_27 = arith.constant 0 : index
    %62 = vector.load %arg17[%c0_25, %c0_26, %c0_27] : memref<8x24x128xf32, #tpu.memory_space<vmem>>, vector<8x24x32xf32>
    tpu.vector_store %arg17[%c0_25, %c0_26, %c0_27], %61 {strides = array<i32>} : memref<8x24x128xf32, #tpu.memory_space<vmem>>, vector<8x24x32xf32>,
    %63 = vector.extract_strided_slice %40 {offsets = [0, 0, 32], sizes = [8, 24, 32], strides = [1, 1, 1]} : vector<8x24x384xbf16> to vector<8x24x32xbf16>
    %64 = vector.extract_strided_slice %40 {offsets = [0, 0, 160], sizes = [8, 24, 32], strides = [1, 1, 1]} : vector<8x24x384xbf16> to vector<8x24x32xbf16>
    %65 = vector.extract_strided_slice %40 {offsets = [0, 0, 288], sizes = [8, 24, 32], strides = [1, 1, 1]} : vector<8x24x384xbf16> to vector<8x24x32xbf16>
    "tpu.trace_start"() <{level = 10 : i32, message = "bqd,bkd->bqk"}> : () -> ()
    %cst_28 = arith.constant dense<0.000000e+00> : vector<8x24x24xf32>
    %66 = tpu.matmul %63, %64, %cst_28 {dimension_numbers = #tpu.dot_dimension_numbers<[2], [2], [1], [1], [0, 0, 0, 1, 1, 1], [0], [0]>} : vector<8x24x32xbf16>, vector<8x24x32xbf16>, vector<8x24x24xf32> -> vector<8x24x24xf32>
    %cst_29 = arith.constant -1.000000e+30 : f32
    "tpu.trace_stop"() : () -> ()
    %67 = vector.broadcast %cst_29 : f32 to vector<8x24x24xf32>
    %68 = arith.select %43, %66, %67 : vector<8x24x24xi1>, vector<8x24x24xf32>
    %cst_30 = arith.constant dense<0xFF800000> : vector<8x24xf32>
    %69 = vector.multi_reduction <maximumf>, %68, %cst_30 [2] : vector<8x24x24xf32> to vector<8x24xf32>
    %70 = vector.shape_cast %69 : vector<8x24xf32> to vector<8x24x1xf32>
    %71 = vector.broadcast %70 : vector<8x24x1xf32> to vector<8x24x24xf32>
    %72 = arith.subf %68, %71 : vector<8x24x24xf32>
    %73 = math.exp %72 : vector<8x24x24xf32>
    %cst_31 = arith.constant dense<0.000000e+00> : vector<8x24xf32>
    %74 = vector.multi_reduction <add>, %73, %cst_31 [2] : vector<8x24x24xf32> to vector<8x24xf32>
    %75 = vector.shape_cast %74 : vector<8x24xf32> to vector<8x24x1xf32>
    %76 = arith.truncf %73 : vector<8x24x24xf32> to vector<8x24x24xbf16>
    "tpu.trace_start"() <{level = 10 : i32, message = "bqk,bkd->bqd"}> : () -> ()
    %cst_32 = arith.constant dense<0.000000e+00> : vector<8x24x32xf32>
    %77 = tpu.matmul %76, %65, %cst_32 {dimension_numbers = #tpu.dot_dimension_numbers<[2], [1], [1], [2], [0, 0, 0, 1, 1, 2], [0], [0]>} : vector<8x24x24xbf16>, vector<8x24x32xbf16>, vector<8x24x32xf32> -> vector<8x24x32xf32>
    "tpu.trace_stop"() : () -> ()
    %78 = tpu.reciprocal %75 {approx = true} : vector<8x24x1xf32> -> vector<8x24x1xf32>
    %79 = vector.broadcast %78 : vector<8x24x1xf32> to vector<8x24x32xf32>
    %80 = arith.mulf %77, %79 : vector<8x24x32xf32>
    %c0_33 = arith.constant 0 : index
    %c0_34 = arith.constant 0 : index
    %c32 = arith.constant 32 : index
    %81 = vector.load %arg17[%c0_33, %c0_34, %c32] : memref<8x24x128xf32, #tpu.memory_space<vmem>>, vector<8x24x32xf32>
    tpu.vector_store %arg17[%c0_33, %c0_34, %c32], %80 {strides = array<i32>} : memref<8x24x128xf32, #tpu.memory_space<vmem>>, vector<8x24x32xf32>,
    %82 = vector.extract_strided_slice %40 {offsets = [0, 0, 64], sizes = [8, 24, 32], strides = [1, 1, 1]} : vector<8x24x384xbf16> to vector<8x24x32xbf16>
    %83 = vector.extract_strided_slice %40 {offsets = [0, 0, 192], sizes = [8, 24, 32], strides = [1, 1, 1]} : vector<8x24x384xbf16> to vector<8x24x32xbf16>
    %84 = vector.extract_strided_slice %40 {offsets = [0, 0, 320], sizes = [8, 24, 32], strides = [1, 1, 1]} : vector<8x24x384xbf16> to vector<8x24x32xbf16>
    "tpu.trace_start"() <{level = 10 : i32, message = "bqd,bkd->bqk"}> : () -> ()
    %cst_35 = arith.constant dense<0.000000e+00> : vector<8x24x24xf32>
    %85 = tpu.matmul %82, %83, %cst_35 {dimension_numbers = #tpu.dot_dimension_numbers<[2], [2], [1], [1], [0, 0, 0, 1, 1, 1], [0], [0]>} : vector<8x24x32xbf16>, vector<8x24x32xbf16>, vector<8x24x24xf32> -> vector<8x24x24xf32>
    %cst_36 = arith.constant -1.000000e+30 : f32
    "tpu.trace_stop"() : () -> ()
    %86 = vector.broadcast %cst_36 : f32 to vector<8x24x24xf32>
    %87 = arith.select %43, %85, %86 : vector<8x24x24xi1>, vector<8x24x24xf32>
    %cst_37 = arith.constant dense<0xFF800000> : vector<8x24xf32>
    %88 = vector.multi_reduction <maximumf>, %87, %cst_37 [2] : vector<8x24x24xf32> to vector<8x24xf32>
    %89 = vector.shape_cast %88 : vector<8x24xf32> to vector<8x24x1xf32>
    %90 = vector.broadcast %89 : vector<8x24x1xf32> to vector<8x24x24xf32>
    %91 = arith.subf %87, %90 : vector<8x24x24xf32>
    %92 = math.exp %91 : vector<8x24x24xf32>
    %cst_38 = arith.constant dense<0.000000e+00> : vector<8x24xf32>
    %93 = vector.multi_reduction <add>, %92, %cst_38 [2] : vector<8x24x24xf32> to vector<8x24xf32>
    %94 = vector.shape_cast %93 : vector<8x24xf32> to vector<8x24x1xf32>
    %95 = arith.truncf %92 : vector<8x24x24xf32> to vector<8x24x24xbf16>
    "tpu.trace_start"() <{level = 10 : i32, message = "bqk,bkd->bqd"}> : () -> ()
    %cst_39 = arith.constant dense<0.000000e+00> : vector<8x24x32xf32>
    %96 = tpu.matmul %95, %84, %cst_39 {dimension_numbers = #tpu.dot_dimension_numbers<[2], [1], [1], [2], [0, 0, 0, 1, 1, 2], [0], [0]>} : vector<8x24x24xbf16>, vector<8x24x32xbf16>, vector<8x24x32xf32> -> vector<8x24x32xf32>
    "tpu.trace_stop"() : () -> ()
    %97 = tpu.reciprocal %94 {approx = true} : vector<8x24x1xf32> -> vector<8x24x1xf32>
    %98 = vector.broadcast %97 : vector<8x24x1xf32> to vector<8x24x32xf32>
    %99 = arith.mulf %96, %98 : vector<8x24x32xf32>
    %c0_40 = arith.constant 0 : index
    %c0_41 = arith.constant 0 : index
    %c64 = arith.constant 64 : index
    %100 = vector.load %arg17[%c0_40, %c0_41, %c64] : memref<8x24x128xf32, #tpu.memory_space<vmem>>, vector<8x24x32xf32>
    tpu.vector_store %arg17[%c0_40, %c0_41, %c64], %99 {strides = array<i32>} : memref<8x24x128xf32, #tpu.memory_space<vmem>>, vector<8x24x32xf32>,
    %101 = vector.extract_strided_slice %40 {offsets = [0, 0, 96], sizes = [8, 24, 32], strides = [1, 1, 1]} : vector<8x24x384xbf16> to vector<8x24x32xbf16>
    %102 = vector.extract_strided_slice %40 {offsets = [0, 0, 224], sizes = [8, 24, 32], strides = [1, 1, 1]} : vector<8x24x384xbf16> to vector<8x24x32xbf16>
    %103 = vector.extract_strided_slice %40 {offsets = [0, 0, 352], sizes = [8, 24, 32], strides = [1, 1, 1]} : vector<8x24x384xbf16> to vector<8x24x32xbf16>
    "tpu.trace_start"() <{level = 10 : i32, message = "bqd,bkd->bqk"}> : () -> ()
    %cst_42 = arith.constant dense<0.000000e+00> : vector<8x24x24xf32>
    %104 = tpu.matmul %101, %102, %cst_42 {dimension_numbers = #tpu.dot_dimension_numbers<[2], [2], [1], [1], [0, 0, 0, 1, 1, 1], [0], [0]>} : vector<8x24x32xbf16>, vector<8x24x32xbf16>, vector<8x24x24xf32> -> vector<8x24x24xf32>
    %cst_43 = arith.constant -1.000000e+30 : f32
    "tpu.trace_stop"() : () -> ()
    %105 = vector.broadcast %cst_43 : f32 to vector<8x24x24xf32>
    %106 = arith.select %43, %104, %105 : vector<8x24x24xi1>, vector<8x24x24xf32>
    %cst_44 = arith.constant dense<0xFF800000> : vector<8x24xf32>
    %107 = vector.multi_reduction <maximumf>, %106, %cst_44 [2] : vector<8x24x24xf32> to vector<8x24xf32>
    %108 = vector.shape_cast %107 : vector<8x24xf32> to vector<8x24x1xf32>
    %109 = vector.broadcast %108 : vector<8x24x1xf32> to vector<8x24x24xf32>
    %110 = arith.subf %106, %109 : vector<8x24x24xf32>
    %111 = math.exp %110 : vector<8x24x24xf32>
    %cst_45 = arith.constant dense<0.000000e+00> : vector<8x24xf32>
    %112 = vector.multi_reduction <add>, %111, %cst_45 [2] : vector<8x24x24xf32> to vector<8x24xf32>
    %113 = vector.shape_cast %112 : vector<8x24xf32> to vector<8x24x1xf32>
    %114 = arith.truncf %111 : vector<8x24x24xf32> to vector<8x24x24xbf16>
    "tpu.trace_start"() <{level = 10 : i32, message = "bqk,bkd->bqd"}> : () -> ()
    %cst_46 = arith.constant dense<0.000000e+00> : vector<8x24x32xf32>
    %115 = tpu.matmul %114, %103, %cst_46 {dimension_numbers = #tpu.dot_dimension_numbers<[2], [1], [1], [2], [0, 0, 0, 1, 1, 2], [0], [0]>} : vector<8x24x24xbf16>, vector<8x24x32xbf16>, vector<8x24x32xf32> -> vector<8x24x32xf32>
    "tpu.trace_stop"() : () -> ()
    %116 = tpu.reciprocal %113 {approx = true} : vector<8x24x1xf32> -> vector<8x24x1xf32>
    %117 = vector.broadcast %116 : vector<8x24x1xf32> to vector<8x24x32xf32>
    %118 = arith.mulf %115, %117 : vector<8x24x32xf32>
    %c0_47 = arith.constant 0 : index
    %c0_48 = arith.constant 0 : index
    %c96 = arith.constant 96 : index
    %119 = vector.load %arg17[%c0_47, %c0_48, %c96] : memref<8x24x128xf32, #tpu.memory_space<vmem>>, vector<8x24x32xf32>
    tpu.vector_store %arg17[%c0_47, %c0_48, %c96], %118 {strides = array<i32>} : memref<8x24x128xf32, #tpu.memory_space<vmem>>, vector<8x24x32xf32>,
    %c0_49 = arith.constant 0 : index
    %c0_50 = arith.constant 0 : index
    %c0_51 = arith.constant 0 : index
    %120 = vector.load %arg17[%c0_49, %c0_50, %c0_51] : memref<8x24x128xf32, #tpu.memory_space<vmem>>, vector<8x24x128xf32>
    %121 = vector.shape_cast %120 : vector<8x24x128xf32> to vector<192x128xf32>
    %122 = arith.truncf %121 : vector<192x128xf32> to vector<192x128xbf16>
    %c0_52 = arith.constant 0 : index
    %c0_53 = arith.constant 0 : index
    %c0_54 = arith.constant 0 : index
    %123 = vector.load %arg7[%c0_52, %c0_53, %c0_54] : memref<1x128x128xbf16, #tpu.memory_space<vmem>>, vector<1x128x128xbf16>
    %124 = vector.shape_cast %123 : vector<1x128x128xbf16> to vector<128x128xbf16>
    %cst_55 = arith.constant dense<0.000000e+00> : vector<192x128xf32>
    %125 = tpu.matmul %122, %124, %cst_55 {dimension_numbers = #tpu.dot_dimension_numbers<[1], [0], [0], [1], [0, 0, 1, 1], [], []>} : vector<192x128xbf16>, vector<128x128xbf16>, vector<192x128xf32> -> vector<192x128xf32>
    %c0_56 = arith.constant 0 : index
    %c0_57 = arith.constant 0 : index
    %c0_58 = arith.constant 0 : index
    %126 = vector.load %arg8[%c0_56, %c0_57, %c0_58] : memref<1x1x128xf32, #tpu.memory_space<vmem>>, vector<1x1x128xf32>
    %127 = vector.shape_cast %126 : vector<1x1x128xf32> to vector<1x128xf32>
    %128 = vector.broadcast %127 : vector<1x128xf32> to vector<192x128xf32>
    %129 = arith.addf %125, %128 : vector<192x128xf32>
    %130 = arith.addf %4, %129 : vector<192x128xf32>
    %c0_59 = arith.constant 0 : index
    %c0_60 = arith.constant 0 : index
    %c0_61 = arith.constant 0 : index
    %131 = vector.load %arg9[%c0_59, %c0_60, %c0_61] : memref<1x1x128xf32, #tpu.memory_space<vmem>>, vector<1x1x128xf32>
    %132 = vector.shape_cast %131 : vector<1x1x128xf32> to vector<1x128xf32>
    %c0_62 = arith.constant 0 : index
    %c0_63 = arith.constant 0 : index
    %c0_64 = arith.constant 0 : index
    %133 = vector.load %arg10[%c0_62, %c0_63, %c0_64] : memref<1x1x128xf32, #tpu.memory_space<vmem>>, vector<1x1x128xf32>
    %134 = vector.shape_cast %133 : vector<1x1x128xf32> to vector<1x128xf32>
    %cst_65 = arith.constant dense<0.000000e+00> : vector<192xf32>
    %135 = vector.multi_reduction <add>, %130, %cst_65 [1] : vector<192x128xf32> to vector<192xf32>
    %136 = vector.shape_cast %135 : vector<192xf32> to vector<192x1xf32>
    %cst_66 = arith.constant 1.280000e+02 : f32
    %137 = vector.broadcast %cst_66 : f32 to vector<192x1xf32>
    %138 = arith.divf %136, %137 : vector<192x1xf32>
    %139 = vector.broadcast %138 : vector<192x1xf32> to vector<192x128xf32>
    %140 = arith.subf %130, %139 : vector<192x128xf32>
    %141 = arith.mulf %140, %140 : vector<192x128xf32>
    %cst_67 = arith.constant dense<0.000000e+00> : vector<192xf32>
    %142 = vector.multi_reduction <add>, %141, %cst_67 [1] : vector<192x128xf32> to vector<192xf32>
    %143 = vector.shape_cast %142 : vector<192xf32> to vector<192x1xf32>
    %cst_68 = arith.constant 1.280000e+02 : f32
    %144 = vector.broadcast %cst_68 : f32 to vector<192x1xf32>
    %145 = arith.divf %143, %144 : vector<192x1xf32>
    %146 = vector.broadcast %138 : vector<192x1xf32> to vector<192x128xf32>
    %147 = arith.subf %130, %146 : vector<192x128xf32>
    %cst_69 = arith.constant 9.99999974E-6 : f32
    %148 = vector.broadcast %cst_69 : f32 to vector<192x1xf32>
    %149 = arith.addf %145, %148 : vector<192x1xf32>
    %150 = math.rsqrt %149 : vector<192x1xf32>
    %151 = vector.broadcast %150 : vector<192x1xf32> to vector<192x128xf32>
    %152 = arith.mulf %147, %151 : vector<192x128xf32>
    %153 = vector.broadcast %132 : vector<1x128xf32> to vector<192x128xf32>
    %154 = arith.mulf %152, %153 : vector<192x128xf32>
    %155 = vector.broadcast %134 : vector<1x128xf32> to vector<192x128xf32>
    %156 = arith.addf %154, %155 : vector<192x128xf32>
    %157 = arith.truncf %156 : vector<192x128xf32> to vector<192x128xbf16>
    %c0_70 = arith.constant 0 : index
    %c0_71 = arith.constant 0 : index
    %c0_72 = arith.constant 0 : index
    %158 = vector.load %arg11[%c0_70, %c0_71, %c0_72] : memref<1x128x256xbf16, #tpu.memory_space<vmem>>, vector<1x128x256xbf16>
    %159 = vector.shape_cast %158 : vector<1x128x256xbf16> to vector<128x256xbf16>
    %cst_73 = arith.constant dense<0.000000e+00> : vector<192x256xf32>
    %160 = tpu.matmul %157, %159, %cst_73 {dimension_numbers = #tpu.dot_dimension_numbers<[1], [0], [0], [1], [0, 0, 1, 1], [], []>} : vector<192x128xbf16>, vector<128x256xbf16>, vector<192x256xf32> -> vector<192x256xf32>
    %c0_74 = arith.constant 0 : index
    %c0_75 = arith.constant 0 : index
    %c0_76 = arith.constant 0 : index
    %161 = vector.load %arg12[%c0_74, %c0_75, %c0_76] : memref<1x1x256xf32, #tpu.memory_space<vmem>>, vector<1x1x256xf32>
    %162 = vector.shape_cast %161 : vector<1x1x256xf32> to vector<1x256xf32>
    %163 = vector.broadcast %162 : vector<1x256xf32> to vector<192x256xf32>
    %164 = arith.addf %160, %163 : vector<192x256xf32>
    %cst_77 = arith.constant 1.702000e+00 : f32
    %165 = vector.broadcast %cst_77 : f32 to vector<192x256xf32>
    %166 = arith.mulf %165, %164 : vector<192x256xf32>
    %167 = arith.negf %166 : vector<192x256xf32>
    %168 = math.exp %167 : vector<192x256xf32>
    %cst_78 = arith.constant 1.000000e+00 : f32
    %169 = vector.broadcast %cst_78 : f32 to vector<192x256xf32>
    %170 = arith.addf %169, %168 : vector<192x256xf32>
    %171 = arith.divf %169, %170 : vector<192x256xf32>
    %172 = arith.mulf %164, %171 : vector<192x256xf32>
    %173 = arith.truncf %172 : vector<192x256xf32> to vector<192x256xbf16>
    %c0_79 = arith.constant 0 : index
    %c0_80 = arith.constant 0 : index
    %c0_81 = arith.constant 0 : index
    %174 = vector.load %arg13[%c0_79, %c0_80, %c0_81] : memref<1x256x128xbf16, #tpu.memory_space<vmem>>, vector<1x256x128xbf16>
    %175 = vector.shape_cast %174 : vector<1x256x128xbf16> to vector<256x128xbf16>
    %cst_82 = arith.constant dense<0.000000e+00> : vector<192x128xf32>
    %176 = tpu.matmul %173, %175, %cst_82 {dimension_numbers = #tpu.dot_dimension_numbers<[1], [0], [0], [1], [0, 0, 1, 1], [], []>} : vector<192x256xbf16>, vector<256x128xbf16>, vector<192x128xf32> -> vector<192x128xf32>
    %c0_83 = arith.constant 0 : index
    %c0_84 = arith.constant 0 : index
    %c0_85 = arith.constant 0 : index
    %177 = vector.load %arg14[%c0_83, %c0_84, %c0_85] : memref<1x1x128xf32, #tpu.memory_space<vmem>>, vector<1x1x128xf32>
    %178 = vector.shape_cast %177 : vector<1x1x128xf32> to vector<1x128xf32>
    %179 = vector.broadcast %178 : vector<1x128xf32> to vector<192x128xf32>
    %180 = arith.addf %176, %179 : vector<192x128xf32>
    %181 = arith.addf %130, %180 : vector<192x128xf32>
    %182 = vector.shape_cast %181 : vector<192x128xf32> to vector<8x24x128xf32>
    %c0_86 = arith.constant 0 : index
    %c0_87 = arith.constant 0 : index
    %c0_88 = arith.constant 0 : index
    %183 = vector.load %arg16[%c0_86, %c0_87, %c0_88] : memref<8x24x128xf32, #tpu.memory_space<vmem>>, vector<8x24x128xf32>
    tpu.vector_store %arg16[%c0_86, %c0_87, %c0_88], %182 {strides = array<i32>} : memref<8x24x128xf32, #tpu.memory_space<vmem>>, vector<8x24x128xf32>,
    %c0_89 = arith.constant 0 : index
    %c0_90 = arith.constant 0 : index
    %c0_91 = arith.constant 0 : index
    %184 = vector.load %arg15[%c0_89, %c0_90, %c0_91] : memref<8x24x128xf32, #tpu.memory_space<vmem>>, vector<8x24x128xf32>
    tpu.vector_store %arg15[%c0_89, %c0_90, %c0_91], %182 {strides = array<i32>} : memref<8x24x128xf32, #tpu.memory_space<vmem>>, vector<8x24x128xf32>,
    return
  }
  func.func @transform_0(%arg0: i32, %arg1: i32) -> (i32, i32, i32) {
    %c0_i32 = arith.constant 0 : i32
    %c0_i32_0 = arith.constant 0 : i32
    %c0_i32_1 = arith.constant 0 : i32
    return %arg0, %c0_i32, %c0_i32_0 : i32, i32, i32
  }
  func.func @transform_1(%arg0: i32, %arg1: i32) -> (i32, i32, i32) {
    %c0_i32 = arith.constant 0 : i32
    %c0_i32_0 = arith.constant 0 : i32
    %c0_i32_1 = arith.constant 0 : i32
    return %arg1, %c0_i32, %c0_i32_0 : i32, i32, i32
  }
  func.func @transform_2(%arg0: i32, %arg1: i32) -> (i32, i32, i32) {
    %c0_i32 = arith.constant 0 : i32
    %c0_i32_0 = arith.constant 0 : i32
    %c0_i32_1 = arith.constant 0 : i32
    return %arg1, %c0_i32, %c0_i32_0 : i32, i32, i32
  }
  func.func @transform_3(%arg0: i32, %arg1: i32) -> (i32, i32, i32) {
    %c0_i32 = arith.constant 0 : i32
    %c0_i32_0 = arith.constant 0 : i32
    %c0_i32_1 = arith.constant 0 : i32
    return %arg1, %c0_i32, %c0_i32_0 : i32, i32, i32
  }
  func.func @transform_4(%arg0: i32, %arg1: i32) -> (i32, i32, i32) {
    %c0_i32 = arith.constant 0 : i32
    %c0_i32_0 = arith.constant 0 : i32
    %c0_i32_1 = arith.constant 0 : i32
    return %arg1, %c0_i32, %c0_i32_0 : i32, i32, i32
  }
  func.func @transform_5(%arg0: i32, %arg1: i32) -> (i32, i32, i32) {
    %c0_i32 = arith.constant 0 : i32
    %c0_i32_0 = arith.constant 0 : i32
    %c0_i32_1 = arith.constant 0 : i32
    return %arg1, %c0_i32, %c0_i32_0 : i32, i32, i32
  }
  func.func @transform_6(%arg0: i32, %arg1: i32) -> (i32, i32, i32) {
    %c0_i32 = arith.constant 0 : i32
    %c0_i32_0 = arith.constant 0 : i32
    %c0_i32_1 = arith.constant 0 : i32
    return %arg1, %c0_i32, %c0_i32_0 : i32, i32, i32
  }
  func.func @transform_7(%arg0: i32, %arg1: i32) -> (i32, i32, i32) {
    %c0_i32 = arith.constant 0 : i32
    %c0_i32_0 = arith.constant 0 : i32
    %c0_i32_1 = arith.constant 0 : i32
    return %arg1, %c0_i32, %c0_i32_0 : i32, i32, i32
  }
  func.func @transform_8(%arg0: i32, %arg1: i32) -> (i32, i32, i32) {
    %c0_i32 = arith.constant 0 : i32
    %c0_i32_0 = arith.constant 0 : i32
    %c0_i32_1 = arith.constant 0 : i32
    return %arg1, %c0_i32, %c0_i32_0 : i32, i32, i32
  }
  func.func @transform_9(%arg0: i32, %arg1: i32) -> (i32, i32, i32) {
    %c0_i32 = arith.constant 0 : i32
    %c0_i32_0 = arith.constant 0 : i32
    %c0_i32_1 = arith.constant 0 : i32
    return %arg1, %c0_i32, %c0_i32_0 : i32, i32, i32
  }
  func.func @transform_10(%arg0: i32, %arg1: i32) -> (i32, i32, i32) {
    %c0_i32 = arith.constant 0 : i32
    %c0_i32_0 = arith.constant 0 : i32
    %c0_i32_1 = arith.constant 0 : i32
    return %arg1, %c0_i32, %c0_i32_0 : i32, i32, i32
  }
  func.func @transform_11(%arg0: i32, %arg1: i32) -> (i32, i32, i32) {
    %c0_i32 = arith.constant 0 : i32
    %c0_i32_0 = arith.constant 0 : i32
    %c0_i32_1 = arith.constant 0 : i32
    return %arg1, %c0_i32, %c0_i32_0 : i32, i32, i32
  }
  func.func @transform_12(%arg0: i32, %arg1: i32) -> (i32, i32, i32) {
    %c0_i32 = arith.constant 0 : i32
    %c0_i32_0 = arith.constant 0 : i32
    %c0_i32_1 = arith.constant 0 : i32
    return %arg1, %c0_i32, %c0_i32_0 : i32, i32, i32
  }
  func.func @transform_13(%arg0: i32, %arg1: i32) -> (i32, i32, i32) {
    %c0_i32 = arith.constant 0 : i32
    %c0_i32_0 = arith.constant 0 : i32
    %c0_i32_1 = arith.constant 0 : i32
    return %arg0, %c0_i32, %c0_i32_0 : i32, i32, i32
  }
}

module attributes {stable_mosaic.version = 11 : i64} {
  func.func @_vision_post_kernel(%arg0: i32, %arg1: memref<8x8x128xf32, #tpu.memory_space<vmem>>, %arg2: memref<1x128xf32, #tpu.memory_space<vmem>>, %arg3: memref<1x128xf32, #tpu.memory_space<vmem>>, %arg4: memref<128x128xbf16, #tpu.memory_space<vmem>>, %arg5: memref<8x8x128xf32, #tpu.memory_space<vmem>>) attributes {dimension_semantics = [#tpu.dimension_semantics<parallel>], iteration_bounds = array<i64: 1>, scalar_prefetch = 0 : i64, scratch_operands = 0 : i64, tpu.core_type = #tpu.core_type<tc>, window_params = [{transform_indices = @transform_0, window_bounds = array<i64: 8, 8, 128>}, {pipeline_mode = #tpu.pipeline_mode<synchronous>, transform_indices = @transform_1, window_bounds = array<i64: 1, 128>}, {pipeline_mode = #tpu.pipeline_mode<synchronous>, transform_indices = @transform_2, window_bounds = array<i64: 1, 128>}, {pipeline_mode = #tpu.pipeline_mode<synchronous>, transform_indices = @transform_3, window_bounds = array<i64: 128, 128>}, {transform_indices = @transform_4, window_bounds = array<i64: 8, 8, 128>}]} {
    %c0 = arith.constant 0 : index
    %c0_0 = arith.constant 0 : index
    %c0_1 = arith.constant 0 : index
    %0 = vector.load %arg1[%c0, %c0_0, %c0_1] : memref<8x8x128xf32, #tpu.memory_space<vmem>>, vector<8x8x128xf32>
    %c0_2 = arith.constant 0 : index
    %c0_3 = arith.constant 0 : index
    %1 = vector.load %arg2[%c0_2, %c0_3] : memref<1x128xf32, #tpu.memory_space<vmem>>, vector<1x128xf32>
    %c0_4 = arith.constant 0 : index
    %c0_5 = arith.constant 0 : index
    %2 = vector.load %arg3[%c0_4, %c0_5] : memref<1x128xf32, #tpu.memory_space<vmem>>, vector<1x128xf32>
    %cst = arith.constant dense<0.000000e+00> : vector<8x8xf32>
    %3 = vector.multi_reduction <add>, %0, %cst [2] : vector<8x8x128xf32> to vector<8x8xf32>
    %4 = vector.shape_cast %3 : vector<8x8xf32> to vector<8x8x1xf32>
    %cst_6 = arith.constant 1.280000e+02 : f32
    %5 = vector.broadcast %cst_6 : f32 to vector<8x8x1xf32>
    %6 = arith.divf %4, %5 : vector<8x8x1xf32>
    %7 = vector.broadcast %6 : vector<8x8x1xf32> to vector<8x8x128xf32>
    %8 = arith.subf %0, %7 : vector<8x8x128xf32>
    %9 = arith.mulf %8, %8 : vector<8x8x128xf32>
    %cst_7 = arith.constant dense<0.000000e+00> : vector<8x8xf32>
    %10 = vector.multi_reduction <add>, %9, %cst_7 [2] : vector<8x8x128xf32> to vector<8x8xf32>
    %11 = vector.shape_cast %10 : vector<8x8xf32> to vector<8x8x1xf32>
    %cst_8 = arith.constant 1.280000e+02 : f32
    %12 = vector.broadcast %cst_8 : f32 to vector<8x8x1xf32>
    %13 = arith.divf %11, %12 : vector<8x8x1xf32>
    %14 = vector.broadcast %6 : vector<8x8x1xf32> to vector<8x8x128xf32>
    %15 = arith.subf %0, %14 : vector<8x8x128xf32>
    %cst_9 = arith.constant 9.99999974E-6 : f32
    %16 = vector.broadcast %cst_9 : f32 to vector<8x8x1xf32>
    %17 = arith.addf %13, %16 : vector<8x8x1xf32>
    %18 = math.rsqrt %17 : vector<8x8x1xf32>
    %19 = vector.broadcast %18 : vector<8x8x1xf32> to vector<8x8x128xf32>
    %20 = arith.mulf %15, %19 : vector<8x8x128xf32>
    %21 = vector.shape_cast %1 : vector<1x128xf32> to vector<1x1x128xf32>
    %22 = vector.broadcast %21 : vector<1x1x128xf32> to vector<8x8x128xf32>
    %23 = arith.mulf %20, %22 : vector<8x8x128xf32>
    %24 = vector.shape_cast %2 : vector<1x128xf32> to vector<1x1x128xf32>
    %25 = vector.broadcast %24 : vector<1x1x128xf32> to vector<8x8x128xf32>
    %26 = arith.addf %23, %25 : vector<8x8x128xf32>
    %27 = vector.shape_cast %26 : vector<8x8x128xf32> to vector<64x128xf32>
    %28 = arith.truncf %27 : vector<64x128xf32> to vector<64x128xbf16>
    %c0_10 = arith.constant 0 : index
    %c0_11 = arith.constant 0 : index
    %29 = vector.load %arg4[%c0_10, %c0_11] : memref<128x128xbf16, #tpu.memory_space<vmem>>, vector<128x128xbf16>
    %cst_12 = arith.constant dense<0.000000e+00> : vector<64x128xf32>
    %30 = tpu.matmul %28, %29, %cst_12 {dimension_numbers = #tpu.dot_dimension_numbers<[1], [0], [0], [1], [0, 0, 1, 1], [], []>} : vector<64x128xbf16>, vector<128x128xbf16>, vector<64x128xf32> -> vector<64x128xf32>
    %31 = vector.shape_cast %30 : vector<64x128xf32> to vector<8x8x128xf32>
    %c0_13 = arith.constant 0 : index
    %c0_14 = arith.constant 0 : index
    %c0_15 = arith.constant 0 : index
    %32 = vector.load %arg5[%c0_13, %c0_14, %c0_15] : memref<8x8x128xf32, #tpu.memory_space<vmem>>, vector<8x8x128xf32>
    tpu.vector_store %arg5[%c0_13, %c0_14, %c0_15], %31 {strides = array<i32>} : memref<8x8x128xf32, #tpu.memory_space<vmem>>, vector<8x8x128xf32>,
    return
  }
  func.func @transform_0(%arg0: i32) -> (i32, i32, i32) {
    %c2_i32 = arith.constant 2 : i32
    %c0_i32 = arith.constant 0 : i32
    %c0_i32_0 = arith.constant 0 : i32
    return %arg0, %c2_i32, %c0_i32 : i32, i32, i32
  }
  func.func @transform_1(%arg0: i32) -> (i32, i32) {
    %c0_i32 = arith.constant 0 : i32
    %c0_i32_0 = arith.constant 0 : i32
    %c0_i32_1 = arith.constant 0 : i32
    return %c0_i32, %c0_i32_0 : i32, i32
  }
  func.func @transform_2(%arg0: i32) -> (i32, i32) {
    %c0_i32 = arith.constant 0 : i32
    %c0_i32_0 = arith.constant 0 : i32
    %c0_i32_1 = arith.constant 0 : i32
    return %c0_i32, %c0_i32_0 : i32, i32
  }
  func.func @transform_3(%arg0: i32) -> (i32, i32) {
    %c0_i32 = arith.constant 0 : i32
    %c0_i32_0 = arith.constant 0 : i32
    %c0_i32_1 = arith.constant 0 : i32
    return %c0_i32, %c0_i32_0 : i32, i32
  }
  func.func @transform_4(%arg0: i32) -> (i32, i32, i32) {
    %c0_i32 = arith.constant 0 : i32
    %c0_i32_0 = arith.constant 0 : i32
    %c0_i32_1 = arith.constant 0 : i32
    return %arg0, %c0_i32, %c0_i32_0 : i32, i32, i32
  }
}

module attributes {stable_mosaic.version = 11 : i64} {
  func.func @_mit_pool_kernel(%arg0: memref<2x8x128xf32, #tpu.memory_space<vmem>>, %arg1: memref<2x4x128xf32, #tpu.memory_space<vmem>>, %arg2: memref<2x128xf32, #tpu.memory_space<vmem>>) attributes {dimension_semantics = [], scalar_prefetch = 0 : i64, scratch_operands = 0 : i64, tpu.core_type = #tpu.core_type<tc>} {
    %c0 = arith.constant 0 : index
    %c0_0 = arith.constant 0 : index
    %c0_1 = arith.constant 0 : index
    %0 = vector.load %arg0[%c0, %c0_0, %c0_1] : memref<2x8x128xf32, #tpu.memory_space<vmem>>, vector<2x8x128xf32>
    %1 = vector.extract_strided_slice %0 {offsets = [0, 0, 0], sizes = [2, 4, 128], strides = [1, 1, 1]} : vector<2x8x128xf32> to vector<2x4x128xf32>
    %c0_2 = arith.constant 0 : index
    %c0_3 = arith.constant 0 : index
    %c0_4 = arith.constant 0 : index
    %2 = vector.load %arg1[%c0_2, %c0_3, %c0_4] : memref<2x4x128xf32, #tpu.memory_space<vmem>>, vector<2x4x128xf32>
    %3 = arith.addf %1, %2 : vector<2x4x128xf32>
    %cst = arith.constant dense<0.000000e+00> : vector<2x128xf32>
    %4 = vector.multi_reduction <add>, %3, %cst [1] : vector<2x4x128xf32> to vector<2x128xf32>
    %cst_5 = arith.constant 4.000000e+00 : f32
    %5 = vector.broadcast %cst_5 : f32 to vector<2x128xf32>
    %6 = arith.divf %4, %5 : vector<2x128xf32>
    %7 = arith.mulf %6, %6 : vector<2x128xf32>
    %cst_6 = arith.constant dense<0.000000e+00> : vector<2xf32>
    %8 = vector.multi_reduction <add>, %7, %cst_6 [1] : vector<2x128xf32> to vector<2xf32>
    %9 = vector.shape_cast %8 : vector<2xf32> to vector<2x1xf32>
    %cst_7 = arith.constant 9.99999996E-13 : f32
    %10 = vector.broadcast %cst_7 : f32 to vector<2x1xf32>
    %11 = arith.addf %9, %10 : vector<2x1xf32>
    %12 = math.rsqrt %11 : vector<2x1xf32>
    %13 = vector.broadcast %12 : vector<2x1xf32> to vector<2x128xf32>
    %14 = arith.mulf %6, %13 : vector<2x128xf32>
    %c0_8 = arith.constant 0 : index
    %c0_9 = arith.constant 0 : index
    %15 = vector.load %arg2[%c0_8, %c0_9] : memref<2x128xf32, #tpu.memory_space<vmem>>, vector<2x128xf32>
    tpu.vector_store %arg2[%c0_8, %c0_9], %14 {strides = array<i32>} : memref<2x128xf32, #tpu.memory_space<vmem>>, vector<2x128xf32>,
    return
  }
}

module attributes {stable_mosaic.version = 11 : i64} {
  func.func @_transformer_stack_kernel(%arg0: i32, %arg1: i32, %arg2: memref<2x8x128xf32, #tpu.memory_space<vmem>>, %arg3: memref<1x1x128xf32, #tpu.memory_space<vmem>>, %arg4: memref<1x1x128xf32, #tpu.memory_space<vmem>>, %arg5: memref<1x128x384xbf16, #tpu.memory_space<vmem>>, %arg6: memref<1x1x384xf32, #tpu.memory_space<vmem>>, %arg7: memref<1x128x128xbf16, #tpu.memory_space<vmem>>, %arg8: memref<1x1x128xf32, #tpu.memory_space<vmem>>, %arg9: memref<1x1x128xf32, #tpu.memory_space<vmem>>, %arg10: memref<1x1x128xf32, #tpu.memory_space<vmem>>, %arg11: memref<1x128x256xbf16, #tpu.memory_space<vmem>>, %arg12: memref<1x1x256xf32, #tpu.memory_space<vmem>>, %arg13: memref<1x256x128xbf16, #tpu.memory_space<vmem>>, %arg14: memref<1x1x128xf32, #tpu.memory_space<vmem>>, %arg15: memref<2x8x128xf32, #tpu.memory_space<vmem>>, %arg16: memref<2x8x128xf32, #tpu.memory_space<vmem>>, %arg17: memref<2x8x128xf32, #tpu.memory_space<vmem>>) attributes {dimension_semantics = [#tpu.dimension_semantics<parallel>, #tpu.dimension_semantics<arbitrary>], iteration_bounds = array<i64: 1, 1>, scalar_prefetch = 0 : i64, scratch_operands = 2 : i64, tpu.core_type = #tpu.core_type<tc>, window_params = [{transform_indices = @transform_0, window_bounds = array<i64: 2, 8, 128>}, {transform_indices = @transform_1, window_bounds = array<i64: 1, 1, 128>}, {transform_indices = @transform_2, window_bounds = array<i64: 1, 1, 128>}, {transform_indices = @transform_3, window_bounds = array<i64: 1, 128, 384>}, {transform_indices = @transform_4, window_bounds = array<i64: 1, 1, 384>}, {transform_indices = @transform_5, window_bounds = array<i64: 1, 128, 128>}, {transform_indices = @transform_6, window_bounds = array<i64: 1, 1, 128>}, {transform_indices = @transform_7, window_bounds = array<i64: 1, 1, 128>}, {transform_indices = @transform_8, window_bounds = array<i64: 1, 1, 128>}, {transform_indices = @transform_9, window_bounds = array<i64: 1, 128, 256>}, {transform_indices = @transform_10, window_bounds = array<i64: 1, 1, 256>}, {transform_indices = @transform_11, window_bounds = array<i64: 1, 256, 128>}, {transform_indices = @transform_12, window_bounds = array<i64: 1, 1, 128>}, {transform_indices = @transform_13, window_bounds = array<i64: 2, 8, 128>}]} {
    %c0_i32 = arith.constant 0 : i32
    %0 = arith.cmpi eq, %arg1, %c0_i32 : i32
    %1 = arith.extui %0 : i1 to i32
    %c0_i32_0 = arith.constant 0 : i32
    %2 = arith.cmpi ne, %1, %c0_i32_0 : i32
    scf.if %2 {
      %c0_92 = arith.constant 0 : index
      %c0_93 = arith.constant 0 : index
      %c0_94 = arith.constant 0 : index
      %185 = vector.load %arg2[%c0_92, %c0_93, %c0_94] : memref<2x8x128xf32, #tpu.memory_space<vmem>>, vector<2x8x128xf32>
      %c0_95 = arith.constant 0 : index
      %c0_96 = arith.constant 0 : index
      %c0_97 = arith.constant 0 : index
      %186 = vector.load %arg16[%c0_95, %c0_96, %c0_97] : memref<2x8x128xf32, #tpu.memory_space<vmem>>, vector<2x8x128xf32>
      tpu.vector_store %arg16[%c0_95, %c0_96, %c0_97], %185 {strides = array<i32>} : memref<2x8x128xf32, #tpu.memory_space<vmem>>, vector<2x8x128xf32>,
    } else {
    }
    %c0 = arith.constant 0 : index
    %c0_1 = arith.constant 0 : index
    %c0_2 = arith.constant 0 : index
    %3 = vector.load %arg16[%c0, %c0_1, %c0_2] : memref<2x8x128xf32, #tpu.memory_space<vmem>>, vector<2x8x128xf32>
    %4 = vector.shape_cast %3 : vector<2x8x128xf32> to vector<16x128xf32>
    %c0_3 = arith.constant 0 : index
    %c0_4 = arith.constant 0 : index
    %c0_5 = arith.constant 0 : index
    %5 = vector.load %arg3[%c0_3, %c0_4, %c0_5] : memref<1x1x128xf32, #tpu.memory_space<vmem>>, vector<1x1x128xf32>
    %6 = vector.shape_cast %5 : vector<1x1x128xf32> to vector<1x128xf32>
    %c0_6 = arith.constant 0 : index
    %c0_7 = arith.constant 0 : index
    %c0_8 = arith.constant 0 : index
    %7 = vector.load %arg4[%c0_6, %c0_7, %c0_8] : memref<1x1x128xf32, #tpu.memory_space<vmem>>, vector<1x1x128xf32>
    %8 = vector.shape_cast %7 : vector<1x1x128xf32> to vector<1x128xf32>
    %cst = arith.constant dense<0.000000e+00> : vector<16xf32>
    %9 = vector.multi_reduction <add>, %4, %cst [1] : vector<16x128xf32> to vector<16xf32>
    %10 = vector.shape_cast %9 : vector<16xf32> to vector<16x1xf32>
    %cst_9 = arith.constant 1.280000e+02 : f32
    %11 = vector.broadcast %cst_9 : f32 to vector<16x1xf32>
    %12 = arith.divf %10, %11 : vector<16x1xf32>
    %13 = vector.broadcast %12 : vector<16x1xf32> to vector<16x128xf32>
    %14 = arith.subf %4, %13 : vector<16x128xf32>
    %15 = arith.mulf %14, %14 : vector<16x128xf32>
    %cst_10 = arith.constant dense<0.000000e+00> : vector<16xf32>
    %16 = vector.multi_reduction <add>, %15, %cst_10 [1] : vector<16x128xf32> to vector<16xf32>
    %17 = vector.shape_cast %16 : vector<16xf32> to vector<16x1xf32>
    %cst_11 = arith.constant 1.280000e+02 : f32
    %18 = vector.broadcast %cst_11 : f32 to vector<16x1xf32>
    %19 = arith.divf %17, %18 : vector<16x1xf32>
    %20 = vector.broadcast %12 : vector<16x1xf32> to vector<16x128xf32>
    %21 = arith.subf %4, %20 : vector<16x128xf32>
    %cst_12 = arith.constant 9.99999974E-6 : f32
    %22 = vector.broadcast %cst_12 : f32 to vector<16x1xf32>
    %23 = arith.addf %19, %22 : vector<16x1xf32>
    %24 = math.rsqrt %23 : vector<16x1xf32>
    %25 = vector.broadcast %24 : vector<16x1xf32> to vector<16x128xf32>
    %26 = arith.mulf %21, %25 : vector<16x128xf32>
    %27 = vector.broadcast %6 : vector<1x128xf32> to vector<16x128xf32>
    %28 = arith.mulf %26, %27 : vector<16x128xf32>
    %29 = vector.broadcast %8 : vector<1x128xf32> to vector<16x128xf32>
    %30 = arith.addf %28, %29 : vector<16x128xf32>
    %31 = arith.truncf %30 : vector<16x128xf32> to vector<16x128xbf16>
    %c0_13 = arith.constant 0 : index
    %c0_14 = arith.constant 0 : index
    %c0_15 = arith.constant 0 : index
    %32 = vector.load %arg5[%c0_13, %c0_14, %c0_15] : memref<1x128x384xbf16, #tpu.memory_space<vmem>>, vector<1x128x384xbf16>
    %33 = vector.shape_cast %32 : vector<1x128x384xbf16> to vector<128x384xbf16>
    %cst_16 = arith.constant dense<0.000000e+00> : vector<16x384xf32>
    %34 = tpu.matmul %31, %33, %cst_16 {dimension_numbers = #tpu.dot_dimension_numbers<[1], [0], [0], [1], [0, 0, 1, 1], [], []>} : vector<16x128xbf16>, vector<128x384xbf16>, vector<16x384xf32> -> vector<16x384xf32>
    %c0_17 = arith.constant 0 : index
    %c0_18 = arith.constant 0 : index
    %c0_19 = arith.constant 0 : index
    %35 = vector.load %arg6[%c0_17, %c0_18, %c0_19] : memref<1x1x384xf32, #tpu.memory_space<vmem>>, vector<1x1x384xf32>
    %36 = vector.shape_cast %35 : vector<1x1x384xf32> to vector<1x384xf32>
    %37 = vector.broadcast %36 : vector<1x384xf32> to vector<16x384xf32>
    %38 = arith.addf %34, %37 : vector<16x384xf32>
    %39 = vector.shape_cast %38 : vector<16x384xf32> to vector<2x8x384xf32>
    %40 = arith.truncf %39 : vector<2x8x384xf32> to vector<2x8x384xbf16>
    %41 = tpu.iota {dimensions = array<i32: 2>} : vector<2x8x8xi32>
    %c4_i32 = arith.constant 4 : i32
    %42 = vector.broadcast %c4_i32 : i32 to vector<2x8x8xi32>
    %43 = arith.cmpi slt, %41, %42 : vector<2x8x8xi32>
    %44 = vector.extract_strided_slice %40 {offsets = [0, 0, 0], sizes = [2, 8, 32], strides = [1, 1, 1]} : vector<2x8x384xbf16> to vector<2x8x32xbf16>
    %45 = vector.extract_strided_slice %40 {offsets = [0, 0, 128], sizes = [2, 8, 32], strides = [1, 1, 1]} : vector<2x8x384xbf16> to vector<2x8x32xbf16>
    %46 = vector.extract_strided_slice %40 {offsets = [0, 0, 256], sizes = [2, 8, 32], strides = [1, 1, 1]} : vector<2x8x384xbf16> to vector<2x8x32xbf16>
    "tpu.trace_start"() <{level = 10 : i32, message = "bqd,bkd->bqk"}> : () -> ()
    %cst_20 = arith.constant dense<0.000000e+00> : vector<2x8x8xf32>
    %47 = tpu.matmul %44, %45, %cst_20 {dimension_numbers = #tpu.dot_dimension_numbers<[2], [2], [1], [1], [0, 0, 0, 1, 1, 1], [0], [0]>} : vector<2x8x32xbf16>, vector<2x8x32xbf16>, vector<2x8x8xf32> -> vector<2x8x8xf32>
    %cst_21 = arith.constant -1.000000e+30 : f32
    "tpu.trace_stop"() : () -> ()
    %48 = vector.broadcast %cst_21 : f32 to vector<2x8x8xf32>
    %49 = arith.select %43, %47, %48 : vector<2x8x8xi1>, vector<2x8x8xf32>
    %cst_22 = arith.constant dense<0xFF800000> : vector<2x8xf32>
    %50 = vector.multi_reduction <maximumf>, %49, %cst_22 [2] : vector<2x8x8xf32> to vector<2x8xf32>
    %51 = vector.shape_cast %50 : vector<2x8xf32> to vector<2x8x1xf32>
    %52 = vector.broadcast %51 : vector<2x8x1xf32> to vector<2x8x8xf32>
    %53 = arith.subf %49, %52 : vector<2x8x8xf32>
    %54 = math.exp %53 : vector<2x8x8xf32>
    %cst_23 = arith.constant dense<0.000000e+00> : vector<2x8xf32>
    %55 = vector.multi_reduction <add>, %54, %cst_23 [2] : vector<2x8x8xf32> to vector<2x8xf32>
    %56 = vector.shape_cast %55 : vector<2x8xf32> to vector<2x8x1xf32>
    %57 = arith.truncf %54 : vector<2x8x8xf32> to vector<2x8x8xbf16>
    "tpu.trace_start"() <{level = 10 : i32, message = "bqk,bkd->bqd"}> : () -> ()
    %cst_24 = arith.constant dense<0.000000e+00> : vector<2x8x32xf32>
    %58 = tpu.matmul %57, %46, %cst_24 {dimension_numbers = #tpu.dot_dimension_numbers<[2], [1], [1], [2], [0, 0, 0, 1, 1, 2], [0], [0]>} : vector<2x8x8xbf16>, vector<2x8x32xbf16>, vector<2x8x32xf32> -> vector<2x8x32xf32>
    "tpu.trace_stop"() : () -> ()
    %59 = tpu.reciprocal %56 {approx = true} : vector<2x8x1xf32> -> vector<2x8x1xf32>
    %60 = vector.broadcast %59 : vector<2x8x1xf32> to vector<2x8x32xf32>
    %61 = arith.mulf %58, %60 : vector<2x8x32xf32>
    %c0_25 = arith.constant 0 : index
    %c0_26 = arith.constant 0 : index
    %c0_27 = arith.constant 0 : index
    %62 = vector.load %arg17[%c0_25, %c0_26, %c0_27] : memref<2x8x128xf32, #tpu.memory_space<vmem>>, vector<2x8x32xf32>
    tpu.vector_store %arg17[%c0_25, %c0_26, %c0_27], %61 {strides = array<i32>} : memref<2x8x128xf32, #tpu.memory_space<vmem>>, vector<2x8x32xf32>,
    %63 = vector.extract_strided_slice %40 {offsets = [0, 0, 32], sizes = [2, 8, 32], strides = [1, 1, 1]} : vector<2x8x384xbf16> to vector<2x8x32xbf16>
    %64 = vector.extract_strided_slice %40 {offsets = [0, 0, 160], sizes = [2, 8, 32], strides = [1, 1, 1]} : vector<2x8x384xbf16> to vector<2x8x32xbf16>
    %65 = vector.extract_strided_slice %40 {offsets = [0, 0, 288], sizes = [2, 8, 32], strides = [1, 1, 1]} : vector<2x8x384xbf16> to vector<2x8x32xbf16>
    "tpu.trace_start"() <{level = 10 : i32, message = "bqd,bkd->bqk"}> : () -> ()
    %cst_28 = arith.constant dense<0.000000e+00> : vector<2x8x8xf32>
    %66 = tpu.matmul %63, %64, %cst_28 {dimension_numbers = #tpu.dot_dimension_numbers<[2], [2], [1], [1], [0, 0, 0, 1, 1, 1], [0], [0]>} : vector<2x8x32xbf16>, vector<2x8x32xbf16>, vector<2x8x8xf32> -> vector<2x8x8xf32>
    %cst_29 = arith.constant -1.000000e+30 : f32
    "tpu.trace_stop"() : () -> ()
    %67 = vector.broadcast %cst_29 : f32 to vector<2x8x8xf32>
    %68 = arith.select %43, %66, %67 : vector<2x8x8xi1>, vector<2x8x8xf32>
    %cst_30 = arith.constant dense<0xFF800000> : vector<2x8xf32>
    %69 = vector.multi_reduction <maximumf>, %68, %cst_30 [2] : vector<2x8x8xf32> to vector<2x8xf32>
    %70 = vector.shape_cast %69 : vector<2x8xf32> to vector<2x8x1xf32>
    %71 = vector.broadcast %70 : vector<2x8x1xf32> to vector<2x8x8xf32>
    %72 = arith.subf %68, %71 : vector<2x8x8xf32>
    %73 = math.exp %72 : vector<2x8x8xf32>
    %cst_31 = arith.constant dense<0.000000e+00> : vector<2x8xf32>
    %74 = vector.multi_reduction <add>, %73, %cst_31 [2] : vector<2x8x8xf32> to vector<2x8xf32>
    %75 = vector.shape_cast %74 : vector<2x8xf32> to vector<2x8x1xf32>
    %76 = arith.truncf %73 : vector<2x8x8xf32> to vector<2x8x8xbf16>
    "tpu.trace_start"() <{level = 10 : i32, message = "bqk,bkd->bqd"}> : () -> ()
    %cst_32 = arith.constant dense<0.000000e+00> : vector<2x8x32xf32>
    %77 = tpu.matmul %76, %65, %cst_32 {dimension_numbers = #tpu.dot_dimension_numbers<[2], [1], [1], [2], [0, 0, 0, 1, 1, 2], [0], [0]>} : vector<2x8x8xbf16>, vector<2x8x32xbf16>, vector<2x8x32xf32> -> vector<2x8x32xf32>
    "tpu.trace_stop"() : () -> ()
    %78 = tpu.reciprocal %75 {approx = true} : vector<2x8x1xf32> -> vector<2x8x1xf32>
    %79 = vector.broadcast %78 : vector<2x8x1xf32> to vector<2x8x32xf32>
    %80 = arith.mulf %77, %79 : vector<2x8x32xf32>
    %c0_33 = arith.constant 0 : index
    %c0_34 = arith.constant 0 : index
    %c32 = arith.constant 32 : index
    %81 = vector.load %arg17[%c0_33, %c0_34, %c32] : memref<2x8x128xf32, #tpu.memory_space<vmem>>, vector<2x8x32xf32>
    tpu.vector_store %arg17[%c0_33, %c0_34, %c32], %80 {strides = array<i32>} : memref<2x8x128xf32, #tpu.memory_space<vmem>>, vector<2x8x32xf32>,
    %82 = vector.extract_strided_slice %40 {offsets = [0, 0, 64], sizes = [2, 8, 32], strides = [1, 1, 1]} : vector<2x8x384xbf16> to vector<2x8x32xbf16>
    %83 = vector.extract_strided_slice %40 {offsets = [0, 0, 192], sizes = [2, 8, 32], strides = [1, 1, 1]} : vector<2x8x384xbf16> to vector<2x8x32xbf16>
    %84 = vector.extract_strided_slice %40 {offsets = [0, 0, 320], sizes = [2, 8, 32], strides = [1, 1, 1]} : vector<2x8x384xbf16> to vector<2x8x32xbf16>
    "tpu.trace_start"() <{level = 10 : i32, message = "bqd,bkd->bqk"}> : () -> ()
    %cst_35 = arith.constant dense<0.000000e+00> : vector<2x8x8xf32>
    %85 = tpu.matmul %82, %83, %cst_35 {dimension_numbers = #tpu.dot_dimension_numbers<[2], [2], [1], [1], [0, 0, 0, 1, 1, 1], [0], [0]>} : vector<2x8x32xbf16>, vector<2x8x32xbf16>, vector<2x8x8xf32> -> vector<2x8x8xf32>
    %cst_36 = arith.constant -1.000000e+30 : f32
    "tpu.trace_stop"() : () -> ()
    %86 = vector.broadcast %cst_36 : f32 to vector<2x8x8xf32>
    %87 = arith.select %43, %85, %86 : vector<2x8x8xi1>, vector<2x8x8xf32>
    %cst_37 = arith.constant dense<0xFF800000> : vector<2x8xf32>
    %88 = vector.multi_reduction <maximumf>, %87, %cst_37 [2] : vector<2x8x8xf32> to vector<2x8xf32>
    %89 = vector.shape_cast %88 : vector<2x8xf32> to vector<2x8x1xf32>
    %90 = vector.broadcast %89 : vector<2x8x1xf32> to vector<2x8x8xf32>
    %91 = arith.subf %87, %90 : vector<2x8x8xf32>
    %92 = math.exp %91 : vector<2x8x8xf32>
    %cst_38 = arith.constant dense<0.000000e+00> : vector<2x8xf32>
    %93 = vector.multi_reduction <add>, %92, %cst_38 [2] : vector<2x8x8xf32> to vector<2x8xf32>
    %94 = vector.shape_cast %93 : vector<2x8xf32> to vector<2x8x1xf32>
    %95 = arith.truncf %92 : vector<2x8x8xf32> to vector<2x8x8xbf16>
    "tpu.trace_start"() <{level = 10 : i32, message = "bqk,bkd->bqd"}> : () -> ()
    %cst_39 = arith.constant dense<0.000000e+00> : vector<2x8x32xf32>
    %96 = tpu.matmul %95, %84, %cst_39 {dimension_numbers = #tpu.dot_dimension_numbers<[2], [1], [1], [2], [0, 0, 0, 1, 1, 2], [0], [0]>} : vector<2x8x8xbf16>, vector<2x8x32xbf16>, vector<2x8x32xf32> -> vector<2x8x32xf32>
    "tpu.trace_stop"() : () -> ()
    %97 = tpu.reciprocal %94 {approx = true} : vector<2x8x1xf32> -> vector<2x8x1xf32>
    %98 = vector.broadcast %97 : vector<2x8x1xf32> to vector<2x8x32xf32>
    %99 = arith.mulf %96, %98 : vector<2x8x32xf32>
    %c0_40 = arith.constant 0 : index
    %c0_41 = arith.constant 0 : index
    %c64 = arith.constant 64 : index
    %100 = vector.load %arg17[%c0_40, %c0_41, %c64] : memref<2x8x128xf32, #tpu.memory_space<vmem>>, vector<2x8x32xf32>
    tpu.vector_store %arg17[%c0_40, %c0_41, %c64], %99 {strides = array<i32>} : memref<2x8x128xf32, #tpu.memory_space<vmem>>, vector<2x8x32xf32>,
    %101 = vector.extract_strided_slice %40 {offsets = [0, 0, 96], sizes = [2, 8, 32], strides = [1, 1, 1]} : vector<2x8x384xbf16> to vector<2x8x32xbf16>
    %102 = vector.extract_strided_slice %40 {offsets = [0, 0, 224], sizes = [2, 8, 32], strides = [1, 1, 1]} : vector<2x8x384xbf16> to vector<2x8x32xbf16>
    %103 = vector.extract_strided_slice %40 {offsets = [0, 0, 352], sizes = [2, 8, 32], strides = [1, 1, 1]} : vector<2x8x384xbf16> to vector<2x8x32xbf16>
    "tpu.trace_start"() <{level = 10 : i32, message = "bqd,bkd->bqk"}> : () -> ()
    %cst_42 = arith.constant dense<0.000000e+00> : vector<2x8x8xf32>
    %104 = tpu.matmul %101, %102, %cst_42 {dimension_numbers = #tpu.dot_dimension_numbers<[2], [2], [1], [1], [0, 0, 0, 1, 1, 1], [0], [0]>} : vector<2x8x32xbf16>, vector<2x8x32xbf16>, vector<2x8x8xf32> -> vector<2x8x8xf32>
    %cst_43 = arith.constant -1.000000e+30 : f32
    "tpu.trace_stop"() : () -> ()
    %105 = vector.broadcast %cst_43 : f32 to vector<2x8x8xf32>
    %106 = arith.select %43, %104, %105 : vector<2x8x8xi1>, vector<2x8x8xf32>
    %cst_44 = arith.constant dense<0xFF800000> : vector<2x8xf32>
    %107 = vector.multi_reduction <maximumf>, %106, %cst_44 [2] : vector<2x8x8xf32> to vector<2x8xf32>
    %108 = vector.shape_cast %107 : vector<2x8xf32> to vector<2x8x1xf32>
    %109 = vector.broadcast %108 : vector<2x8x1xf32> to vector<2x8x8xf32>
    %110 = arith.subf %106, %109 : vector<2x8x8xf32>
    %111 = math.exp %110 : vector<2x8x8xf32>
    %cst_45 = arith.constant dense<0.000000e+00> : vector<2x8xf32>
    %112 = vector.multi_reduction <add>, %111, %cst_45 [2] : vector<2x8x8xf32> to vector<2x8xf32>
    %113 = vector.shape_cast %112 : vector<2x8xf32> to vector<2x8x1xf32>
    %114 = arith.truncf %111 : vector<2x8x8xf32> to vector<2x8x8xbf16>
    "tpu.trace_start"() <{level = 10 : i32, message = "bqk,bkd->bqd"}> : () -> ()
    %cst_46 = arith.constant dense<0.000000e+00> : vector<2x8x32xf32>
    %115 = tpu.matmul %114, %103, %cst_46 {dimension_numbers = #tpu.dot_dimension_numbers<[2], [1], [1], [2], [0, 0, 0, 1, 1, 2], [0], [0]>} : vector<2x8x8xbf16>, vector<2x8x32xbf16>, vector<2x8x32xf32> -> vector<2x8x32xf32>
    "tpu.trace_stop"() : () -> ()
    %116 = tpu.reciprocal %113 {approx = true} : vector<2x8x1xf32> -> vector<2x8x1xf32>
    %117 = vector.broadcast %116 : vector<2x8x1xf32> to vector<2x8x32xf32>
    %118 = arith.mulf %115, %117 : vector<2x8x32xf32>
    %c0_47 = arith.constant 0 : index
    %c0_48 = arith.constant 0 : index
    %c96 = arith.constant 96 : index
    %119 = vector.load %arg17[%c0_47, %c0_48, %c96] : memref<2x8x128xf32, #tpu.memory_space<vmem>>, vector<2x8x32xf32>
    tpu.vector_store %arg17[%c0_47, %c0_48, %c96], %118 {strides = array<i32>} : memref<2x8x128xf32, #tpu.memory_space<vmem>>, vector<2x8x32xf32>,
    %c0_49 = arith.constant 0 : index
    %c0_50 = arith.constant 0 : index
    %c0_51 = arith.constant 0 : index
    %120 = vector.load %arg17[%c0_49, %c0_50, %c0_51] : memref<2x8x128xf32, #tpu.memory_space<vmem>>, vector<2x8x128xf32>
    %121 = vector.shape_cast %120 : vector<2x8x128xf32> to vector<16x128xf32>
    %122 = arith.truncf %121 : vector<16x128xf32> to vector<16x128xbf16>
    %c0_52 = arith.constant 0 : index
    %c0_53 = arith.constant 0 : index
    %c0_54 = arith.constant 0 : index
    %123 = vector.load %arg7[%c0_52, %c0_53, %c0_54] : memref<1x128x128xbf16, #tpu.memory_space<vmem>>, vector<1x128x128xbf16>
    %124 = vector.shape_cast %123 : vector<1x128x128xbf16> to vector<128x128xbf16>
    %cst_55 = arith.constant dense<0.000000e+00> : vector<16x128xf32>
    %125 = tpu.matmul %122, %124, %cst_55 {dimension_numbers = #tpu.dot_dimension_numbers<[1], [0], [0], [1], [0, 0, 1, 1], [], []>} : vector<16x128xbf16>, vector<128x128xbf16>, vector<16x128xf32> -> vector<16x128xf32>
    %c0_56 = arith.constant 0 : index
    %c0_57 = arith.constant 0 : index
    %c0_58 = arith.constant 0 : index
    %126 = vector.load %arg8[%c0_56, %c0_57, %c0_58] : memref<1x1x128xf32, #tpu.memory_space<vmem>>, vector<1x1x128xf32>
    %127 = vector.shape_cast %126 : vector<1x1x128xf32> to vector<1x128xf32>
    %128 = vector.broadcast %127 : vector<1x128xf32> to vector<16x128xf32>
    %129 = arith.addf %125, %128 : vector<16x128xf32>
    %130 = arith.addf %4, %129 : vector<16x128xf32>
    %c0_59 = arith.constant 0 : index
    %c0_60 = arith.constant 0 : index
    %c0_61 = arith.constant 0 : index
    %131 = vector.load %arg9[%c0_59, %c0_60, %c0_61] : memref<1x1x128xf32, #tpu.memory_space<vmem>>, vector<1x1x128xf32>
    %132 = vector.shape_cast %131 : vector<1x1x128xf32> to vector<1x128xf32>
    %c0_62 = arith.constant 0 : index
    %c0_63 = arith.constant 0 : index
    %c0_64 = arith.constant 0 : index
    %133 = vector.load %arg10[%c0_62, %c0_63, %c0_64] : memref<1x1x128xf32, #tpu.memory_space<vmem>>, vector<1x1x128xf32>
    %134 = vector.shape_cast %133 : vector<1x1x128xf32> to vector<1x128xf32>
    %cst_65 = arith.constant dense<0.000000e+00> : vector<16xf32>
    %135 = vector.multi_reduction <add>, %130, %cst_65 [1] : vector<16x128xf32> to vector<16xf32>
    %136 = vector.shape_cast %135 : vector<16xf32> to vector<16x1xf32>
    %cst_66 = arith.constant 1.280000e+02 : f32
    %137 = vector.broadcast %cst_66 : f32 to vector<16x1xf32>
    %138 = arith.divf %136, %137 : vector<16x1xf32>
    %139 = vector.broadcast %138 : vector<16x1xf32> to vector<16x128xf32>
    %140 = arith.subf %130, %139 : vector<16x128xf32>
    %141 = arith.mulf %140, %140 : vector<16x128xf32>
    %cst_67 = arith.constant dense<0.000000e+00> : vector<16xf32>
    %142 = vector.multi_reduction <add>, %141, %cst_67 [1] : vector<16x128xf32> to vector<16xf32>
    %143 = vector.shape_cast %142 : vector<16xf32> to vector<16x1xf32>
    %cst_68 = arith.constant 1.280000e+02 : f32
    %144 = vector.broadcast %cst_68 : f32 to vector<16x1xf32>
    %145 = arith.divf %143, %144 : vector<16x1xf32>
    %146 = vector.broadcast %138 : vector<16x1xf32> to vector<16x128xf32>
    %147 = arith.subf %130, %146 : vector<16x128xf32>
    %cst_69 = arith.constant 9.99999974E-6 : f32
    %148 = vector.broadcast %cst_69 : f32 to vector<16x1xf32>
    %149 = arith.addf %145, %148 : vector<16x1xf32>
    %150 = math.rsqrt %149 : vector<16x1xf32>
    %151 = vector.broadcast %150 : vector<16x1xf32> to vector<16x128xf32>
    %152 = arith.mulf %147, %151 : vector<16x128xf32>
    %153 = vector.broadcast %132 : vector<1x128xf32> to vector<16x128xf32>
    %154 = arith.mulf %152, %153 : vector<16x128xf32>
    %155 = vector.broadcast %134 : vector<1x128xf32> to vector<16x128xf32>
    %156 = arith.addf %154, %155 : vector<16x128xf32>
    %157 = arith.truncf %156 : vector<16x128xf32> to vector<16x128xbf16>
    %c0_70 = arith.constant 0 : index
    %c0_71 = arith.constant 0 : index
    %c0_72 = arith.constant 0 : index
    %158 = vector.load %arg11[%c0_70, %c0_71, %c0_72] : memref<1x128x256xbf16, #tpu.memory_space<vmem>>, vector<1x128x256xbf16>
    %159 = vector.shape_cast %158 : vector<1x128x256xbf16> to vector<128x256xbf16>
    %cst_73 = arith.constant dense<0.000000e+00> : vector<16x256xf32>
    %160 = tpu.matmul %157, %159, %cst_73 {dimension_numbers = #tpu.dot_dimension_numbers<[1], [0], [0], [1], [0, 0, 1, 1], [], []>} : vector<16x128xbf16>, vector<128x256xbf16>, vector<16x256xf32> -> vector<16x256xf32>
    %c0_74 = arith.constant 0 : index
    %c0_75 = arith.constant 0 : index
    %c0_76 = arith.constant 0 : index
    %161 = vector.load %arg12[%c0_74, %c0_75, %c0_76] : memref<1x1x256xf32, #tpu.memory_space<vmem>>, vector<1x1x256xf32>
    %162 = vector.shape_cast %161 : vector<1x1x256xf32> to vector<1x256xf32>
    %163 = vector.broadcast %162 : vector<1x256xf32> to vector<16x256xf32>
    %164 = arith.addf %160, %163 : vector<16x256xf32>
    %cst_77 = arith.constant 1.702000e+00 : f32
    %165 = vector.broadcast %cst_77 : f32 to vector<16x256xf32>
    %166 = arith.mulf %165, %164 : vector<16x256xf32>
    %167 = arith.negf %166 : vector<16x256xf32>
    %168 = math.exp %167 : vector<16x256xf32>
    %cst_78 = arith.constant 1.000000e+00 : f32
    %169 = vector.broadcast %cst_78 : f32 to vector<16x256xf32>
    %170 = arith.addf %169, %168 : vector<16x256xf32>
    %171 = arith.divf %169, %170 : vector<16x256xf32>
    %172 = arith.mulf %164, %171 : vector<16x256xf32>
    %173 = arith.truncf %172 : vector<16x256xf32> to vector<16x256xbf16>
    %c0_79 = arith.constant 0 : index
    %c0_80 = arith.constant 0 : index
    %c0_81 = arith.constant 0 : index
    %174 = vector.load %arg13[%c0_79, %c0_80, %c0_81] : memref<1x256x128xbf16, #tpu.memory_space<vmem>>, vector<1x256x128xbf16>
    %175 = vector.shape_cast %174 : vector<1x256x128xbf16> to vector<256x128xbf16>
    %cst_82 = arith.constant dense<0.000000e+00> : vector<16x128xf32>
    %176 = tpu.matmul %173, %175, %cst_82 {dimension_numbers = #tpu.dot_dimension_numbers<[1], [0], [0], [1], [0, 0, 1, 1], [], []>} : vector<16x256xbf16>, vector<256x128xbf16>, vector<16x128xf32> -> vector<16x128xf32>
    %c0_83 = arith.constant 0 : index
    %c0_84 = arith.constant 0 : index
    %c0_85 = arith.constant 0 : index
    %177 = vector.load %arg14[%c0_83, %c0_84, %c0_85] : memref<1x1x128xf32, #tpu.memory_space<vmem>>, vector<1x1x128xf32>
    %178 = vector.shape_cast %177 : vector<1x1x128xf32> to vector<1x128xf32>
    %179 = vector.broadcast %178 : vector<1x128xf32> to vector<16x128xf32>
    %180 = arith.addf %176, %179 : vector<16x128xf32>
    %181 = arith.addf %130, %180 : vector<16x128xf32>
    %182 = vector.shape_cast %181 : vector<16x128xf32> to vector<2x8x128xf32>
    %c0_86 = arith.constant 0 : index
    %c0_87 = arith.constant 0 : index
    %c0_88 = arith.constant 0 : index
    %183 = vector.load %arg16[%c0_86, %c0_87, %c0_88] : memref<2x8x128xf32, #tpu.memory_space<vmem>>, vector<2x8x128xf32>
    tpu.vector_store %arg16[%c0_86, %c0_87, %c0_88], %182 {strides = array<i32>} : memref<2x8x128xf32, #tpu.memory_space<vmem>>, vector<2x8x128xf32>,
    %c0_89 = arith.constant 0 : index
    %c0_90 = arith.constant 0 : index
    %c0_91 = arith.constant 0 : index
    %184 = vector.load %arg15[%c0_89, %c0_90, %c0_91] : memref<2x8x128xf32, #tpu.memory_space<vmem>>, vector<2x8x128xf32>
    tpu.vector_store %arg15[%c0_89, %c0_90, %c0_91], %182 {strides = array<i32>} : memref<2x8x128xf32, #tpu.memory_space<vmem>>, vector<2x8x128xf32>,
    return
  }
  func.func @transform_0(%arg0: i32, %arg1: i32) -> (i32, i32, i32) {
    %c0_i32 = arith.constant 0 : i32
    %c0_i32_0 = arith.constant 0 : i32
    %c0_i32_1 = arith.constant 0 : i32
    return %arg0, %c0_i32, %c0_i32_0 : i32, i32, i32
  }
  func.func @transform_1(%arg0: i32, %arg1: i32) -> (i32, i32, i32) {
    %c0_i32 = arith.constant 0 : i32
    %c0_i32_0 = arith.constant 0 : i32
    %c0_i32_1 = arith.constant 0 : i32
    return %arg1, %c0_i32, %c0_i32_0 : i32, i32, i32
  }
  func.func @transform_2(%arg0: i32, %arg1: i32) -> (i32, i32, i32) {
    %c0_i32 = arith.constant 0 : i32
    %c0_i32_0 = arith.constant 0 : i32
    %c0_i32_1 = arith.constant 0 : i32
    return %arg1, %c0_i32, %c0_i32_0 : i32, i32, i32
  }
  func.func @transform_3(%arg0: i32, %arg1: i32) -> (i32, i32, i32) {
    %c0_i32 = arith.constant 0 : i32
    %c0_i32_0 = arith.constant 0 : i32
    %c0_i32_1 = arith.constant 0 : i32
    return %arg1, %c0_i32, %c0_i32_0 : i32, i32, i32
  }
  func.func @transform_4(%arg0: i32, %arg1: i32) -> (i32, i32, i32) {
    %c0_i32 = arith.constant 0 : i32
    %c0_i32_0 = arith.constant 0 : i32
    %c0_i32_1 = arith.constant 0 : i32
    return %arg1, %c0_i32, %c0_i32_0 : i32, i32, i32
  }
  func.func @transform_5(%arg0: i32, %arg1: i32) -> (i32, i32, i32) {
    %c0_i32 = arith.constant 0 : i32
    %c0_i32_0 = arith.constant 0 : i32
    %c0_i32_1 = arith.constant 0 : i32
    return %arg1, %c0_i32, %c0_i32_0 : i32, i32, i32
  }
  func.func @transform_6(%arg0: i32, %arg1: i32) -> (i32, i32, i32) {
    %c0_i32 = arith.constant 0 : i32
    %c0_i32_0 = arith.constant 0 : i32
    %c0_i32_1 = arith.constant 0 : i32
    return %arg1, %c0_i32, %c0_i32_0 : i32, i32, i32
  }
  func.func @transform_7(%arg0: i32, %arg1: i32) -> (i32, i32, i32) {
    %c0_i32 = arith.constant 0 : i32
    %c0_i32_0 = arith.constant 0 : i32
    %c0_i32_1 = arith.constant 0 : i32
    return %arg1, %c0_i32, %c0_i32_0 : i32, i32, i32
  }
  func.func @transform_8(%arg0: i32, %arg1: i32) -> (i32, i32, i32) {
    %c0_i32 = arith.constant 0 : i32
    %c0_i32_0 = arith.constant 0 : i32
    %c0_i32_1 = arith.constant 0 : i32
    return %arg1, %c0_i32, %c0_i32_0 : i32, i32, i32
  }
  func.func @transform_9(%arg0: i32, %arg1: i32) -> (i32, i32, i32) {
    %c0_i32 = arith.constant 0 : i32
    %c0_i32_0 = arith.constant 0 : i32
    %c0_i32_1 = arith.constant 0 : i32
    return %arg1, %c0_i32, %c0_i32_0 : i32, i32, i32
  }
  func.func @transform_10(%arg0: i32, %arg1: i32) -> (i32, i32, i32) {
    %c0_i32 = arith.constant 0 : i32
    %c0_i32_0 = arith.constant 0 : i32
    %c0_i32_1 = arith.constant 0 : i32
    return %arg1, %c0_i32, %c0_i32_0 : i32, i32, i32
  }
  func.func @transform_11(%arg0: i32, %arg1: i32) -> (i32, i32, i32) {
    %c0_i32 = arith.constant 0 : i32
    %c0_i32_0 = arith.constant 0 : i32
    %c0_i32_1 = arith.constant 0 : i32
    return %arg1, %c0_i32, %c0_i32_0 : i32, i32, i32
  }
  func.func @transform_12(%arg0: i32, %arg1: i32) -> (i32, i32, i32) {
    %c0_i32 = arith.constant 0 : i32
    %c0_i32_0 = arith.constant 0 : i32
    %c0_i32_1 = arith.constant 0 : i32
    return %arg1, %c0_i32, %c0_i32_0 : i32, i32, i32
  }
  func.func @transform_13(%arg0: i32, %arg1: i32) -> (i32, i32, i32) {
    %c0_i32 = arith.constant 0 : i32
    %c0_i32_0 = arith.constant 0 : i32
    %c0_i32_1 = arith.constant 0 : i32
    return %arg0, %c0_i32, %c0_i32_0 : i32, i32, i32
  }
}

</mosaic_0001>

<bundles_post_ra>
// kernel: image_transformer_encoder_forward.5
= control target key start
LH: loop header
LB: loop body
LE: loop exit
PB: predicated region body
PF: predicated region fallthrough
CT: control target
= control target key end

     0   :  { %vm496_vm0 = vcmask 1040384   ;;  %s1048_s1 = inlined_call_operand.vmem [shape: bf16[128,128], index: 1, kind: input, shape index: {}]   ;;  %s1049_s0 = inlined_call_operand.vmem [shape: bf16[8,16,128], index: 0, kind: input, shape index: {}]   ;;  %s1050_s2 = inlined_call_operand.vmem [shape: f32[1,128], index: 2, kind: input, shape index: {}]   ;;  %s1051_s3 = inlined_call_operand.vmem [shape: f32[1,128], index: 3, kind: input, shape index: {}]   ;;  %s1052_s4 = inlined_call_operand.vmem [shape: f32[16,128], index: 4, kind: input, shape index: {}]   ;;  %s1053_s7 = inlined_call_operand.vmem [shape: f32[8,24,128], index: 7, kind: output, shape index: {}]   ;;  %s1054_s5 = inlined_call_operand.vmem [shape: f32[1,128], index: 5, kind: input, shape index: {}]   ;;  %s1055_s6 = inlined_call_operand.vmem [shape: f32[1,128], index: 6, kind: input, shape index: {}]  }
   0x1   :  { %v629_v0 = vld [vmem:[%s1048_s1 + $0x38] sm:$0xff]   ;;  %v630_v1 = vld [vmem:[%s1048_s1 + $0x30] sm:$0xff]   ;;  %v631_v2 = vld [vmem:[%s1048_s1 + $0x28] sm:$0xff]  }
   0x2   :  { %580 = vmatprep.subr.bf16.mxu0 %v629_v0  ;;  %612 = vmatprep.subr.bf16.mxu1 %v629_v0  ;;  %v632_v3 = vld [vmem:[%s1048_s1 + $0x20] sm:$0xff]   ;;  %v633_v6 = vld [vmem:[%s1048_s1 + $0x18] sm:$0xff]   ;;  %v634_v7 = vld [vmem:[%s1048_s1 + $0x10] sm:$0xff]  }
   0x3   :  { %581 = vmatpush3.bf16.msra.mxu0 %v629_v0  ;;  %620 = vmatpush3.bf16.msra.mxu1 %v629_v0  ;;  %v637_v4 = vld [vmem:[%s1049_s0] sm:$0xff]   ;;  %v635_v8 = vld [vmem:[%s1048_s1 + $0x8] sm:$0xff]   ;;  %v641_v12 = vld [vmem:[%s1049_s0 + $0x10] sm:$0xff]  }
   0x4   :  { %582 = vmatprep.subr.bf16.mxu0 %v630_v1  ;;  %613 = vmatprep.subr.bf16.mxu1 %v630_v1  ;;  %v638_v5 = vld [vmem:[%s1049_s0 + $0x20] sm:$0xff]   ;;  %v639_v10 = vld [vmem:[%s1049_s0 + $0x8] sm:$0xff]   ;;  %v643_v13 = vld [vmem:[%s1049_s0 + $0x30] sm:$0xff]  }
   0x5   :  { %596 = vmatprep.mubr.bf16.mxu0 %v637_v4  ;;  %604 = vmatprep.mubr.bf16.mxu1 %v638_v5  ;;  %v636_v9 = vld [vmem:[%s1048_s1] sm:$0xff]   ;;  %v640_v11 = vld [vmem:[%s1049_s0 + $0x28] sm:$0xff]   ;;  %v642_v14 = vld [vmem:[%s1049_s0 + $0x18] sm:$0xff]  }
   0x6   :  { %v644_v15 = vld [vmem:[%s1049_s0 + $0x38] sm:$0xff]   ;;  %v493_v16 = vld [vmem:[%s1050_s2] sm:$0x1]  ;;  %v253_v29 = vld [vmem:[%s1052_s4 + $0x8] sm:$0xff] }
   0x7   :  { %583 = vmatpush3.bf16.msra.mxu0 %v630_v1  ;;  %621 = vmatpush3.bf16.msra.mxu1 %v630_v1  ;;  %v494_v17 = vld [vmem:[%s1051_s3] sm:$0x1] }
   0x8   :  { %584 = vmatprep.subr.bf16.mxu0 %v631_v2  ;;  %614 = vmatprep.subr.bf16.mxu1 %v631_v2  ;;  %v774_v18 = vadd.f32 %v494_v17, %v493_v16  ;;  %v252_v20 = vld [vmem:[%s1052_s4] sm:$0xff] }
   0xa   :  { %v497_v19 = vsel %vm496_vm0, %v774_v18, 0.0 }
   0xb   :  { %585 = vmatpush3.bf16.msra.mxu0 %v631_v2  ;;  %622 = vmatpush3.bf16.msra.mxu1 %v631_v2 }
   0xc   :  { %586 = vmatprep.subr.bf16.mxu0 %v632_v3  ;;  %615 = vmatprep.subr.bf16.mxu1 %v632_v3 }
   0xd   :  { %498 = vadd.xlane.f32.xlu0 %v497_v19 }
   0xf   :  { %587 = vmatpush3.bf16.msra.mxu0 %v632_v3  ;;  %623 = vmatpush3.bf16.msra.mxu1 %v632_v3 }
  0x10   :  { %588 = vmatprep.subr.bf16.mxu0 %v633_v6  ;;  %616 = vmatprep.subr.bf16.mxu1 %v633_v6 }
  0x13   :  { %589 = vmatpush3.bf16.msra.mxu0 %v633_v6  ;;  %624 = vmatpush3.bf16.msra.mxu1 %v633_v6 }
  0x14   :  { %590 = vmatprep.subr.bf16.mxu0 %v634_v7  ;;  %617 = vmatprep.subr.bf16.mxu1 %v634_v7 }
  0x17   :  { %591 = vmatpush3.bf16.msra.mxu0 %v634_v7  ;;  %625 = vmatpush3.bf16.msra.mxu1 %v634_v7 }
  0x18   :  { %592 = vmatprep.subr.bf16.mxu0 %v635_v8  ;;  %618 = vmatprep.subr.bf16.mxu1 %v635_v8 }
  0x1b   :  { %593 = vmatpush3.bf16.msra.mxu0 %v635_v8  ;;  %626 = vmatpush3.bf16.msra.mxu1 %v635_v8 }
  0x1c   :  { %594 = vmatprep.subr.bf16.mxu0 %v636_v9  ;;  %619 = vmatprep.subr.bf16.mxu1 %v636_v9 }
  0x1f   :  { %595 = vmatpush3.bf16.msra.mxu0 %v636_v9  ;;  %627 = vmatpush3.bf16.msra.mxu1 %v636_v9 }
  0x22   :  { %597 = vmatmul.mubr.bf16.vlgmr.msra.gmra.mxu0 %v639_v10  ;;  %605 = vmatmul.mubr.bf16.vlgmr.msra.gmra.mxu1 %v640_v11 }
  0x23   :  { %600 = vmatprep.mubr.bf16.mxu0 %v641_v12  ;;  %608 = vmatprep.mubr.bf16.mxu1 %v643_v13 }
  0x2a   :  { %601 = vmatmul.mubr.bf16.gmra.mxu0 %v642_v14  ;;  %609 = vmatmul.mubr.bf16.gmra.mxu1 %v644_v15 }
  0x96   :  { %v805_v54 = vpop.xlane.xlu0 %498 }
  0xe2   :  { %v598_v21 = vpop.f32.mrf.mxu0  ;;  %v606_v22 = vpop.f32.mrf.mxu1 }
  0xe3   :  { %v256_v23 = vadd.f32 %v598_v21, %v252_v20  ;;  %v264_v26 = vadd.f32 %v606_v22, %v252_v20 }
  0xe4   :  { %v189_v24 = vpop.f32.mrf.mxu0  ;;  %v221_v25 = vpop.f32.mrf.mxu1 }
  0xe5   :  { %v254_v27 = vadd.f32 %v252_v20, %v189_v24  ;;  %276 = vadd.xlane.f32.xlu1 %v256_v23  ;;  %v262_v34 = vadd.f32 %v252_v20, %v221_v25 }
  0xe6   :  { %v599_v28 = vpop.f32.mrf.mxu0  ;;  %v607_v30 = vpop.f32.mrf.mxu1 }
  0xe7   :  { %272 = vadd.xlane.f32.xlu0 %v254_v27  ;;  %v257_v32 = vadd.f32 %v599_v28, %v253_v29  ;;  %v265_v36 = vadd.f32 %v607_v30, %v253_v29 }
  0xe8   :  { %v192_v31 = vpop.f32.mrf.mxu0  ;;  %v224_v35 = vpop.f32.mrf.mxu1 }
  0xe9   :  { %292 = vadd.xlane.f32.xlu1 %v264_v26  ;;  %v255_v39 = vadd.f32 %v253_v29, %v192_v31  ;;  %v263_v40 = vadd.f32 %v253_v29, %v224_v35 }
  0xea   :  { %v602_v33 = vpop.f32.mrf.mxu0  ;;  %v610_v38 = vpop.f32.mrf.mxu1 }
  0xeb   :  { %278 = vadd.xlane.f32.xlu0 %v257_v32  ;;  %v260_v41 = vadd.f32 %v602_v33, %v252_v20  ;;  %v798_v52 = vadd.f32 %v610_v38, %v252_v20 }
  0xec   :  { %v205_v37 = vpop.f32.mrf.mxu0  ;;  %v237_v43 = vpop.f32.mrf.mxu1 }
  0xed   :  { %288 = vadd.xlane.f32.xlu1 %v262_v34  ;;  %v786_v47 = vadd.f32 %v252_v20, %v205_v37  ;;  %v792_v50 = vadd.f32 %v252_v20, %v237_v43 }
  0xee   :  { %v603_v42 = vpop.f32.mrf.mxu0  ;;  %v611_v46 = vpop.f32.mrf.mxu1 }
  0xef   :  { %294 = vadd.xlane.f32.xlu0 %v265_v36  ;;  %v784_v44 = vadd.f32 %v603_v42, %v253_v29  ;;  %v801_v53 = vadd.f32 %v611_v46, %v253_v29 }
  0xf0   :  { %v208_v45 = vpop.f32.mrf.mxu0  ;;  %v240_v49 = vpop.f32.mrf.mxu1 }
  0xf1   :  { %274 = vadd.xlane.f32.xlu1 %v255_v39  ;;  %v789_v48 = vadd.f32 %v253_v29, %v208_v45  ;;  %v795_v51 = vadd.f32 %v253_v29, %v240_v49 }
  0xf3   :  { %290 = vadd.xlane.f32.xlu0 %v263_v40 }
  0xf5   :  { %284 = vadd.xlane.f32.xlu1 %v260_v41 }
  0xf7   :  { %286 = vadd.xlane.f32.xlu0 %v784_v44 }
  0xf9   :  { %280 = vadd.xlane.f32.xlu1 %v786_v47 }
  0xfb   :  { %282 = vadd.xlane.f32.xlu0 %v789_v48 }
  0xfd   :  { %296 = vadd.xlane.f32.xlu1 %v792_v50 }
  0xff   :  { %298 = vadd.xlane.f32.xlu0 %v795_v51 }
 0x101   :  { %300 = vadd.xlane.f32.xlu1 %v798_v52 }
 0x103   :  { %302 = vadd.xlane.f32.xlu0 %v801_v53 }
 0x16e   :  { %v277_v55 = vpop.xlane.xlu1 %276 }
 0x16f   :  { %v307_v56 = vmul.f32 0.0078125, %v277_v55 }
 0x170   :  { %v273_v57 = vpop.xlane.xlu0 %272 }
 0x171   :  { %v807_v58 = vsub.f32 %v256_v23, %v307_v56  ;;  %v305_v60 = vmul.f32 0.0078125, %v273_v57  ;;  %v500_v56 = vmul.f32 0.0078125, %v805_v54 }
 0x172   :  { %v293_v59 = vpop.xlane.xlu1 %292 }
 0x173   :  { %v315_v61 = vmul.f32 0.0078125, %v293_v59  ;;  %v339_v62 = vmul.f32 %v807_v58, %v807_v58  ;;  %v813_v3 = vsub.f32 %v254_v27, %v305_v60  ;;  %v876_v59 = vsub.f32 %v774_v18, %v500_v56 }
 0x174   :  { %v279_v63 = vpop.xlane.xlu0 %278 }
 0x175   :  { %v811_v0 = vsub.f32 %v264_v26, %v315_v61  ;;  %v308_v1 = vmul.f32 0.0078125, %v279_v63  ;;  %357 = vadd.xlane.f32.xlu1 %v339_v62  ;;  %v337_v14 = vmul.f32 %v813_v3, %v813_v3  ;;  %v502_v60 = vmul.f32 %v876_v59, %v876_v59 }
 0x176   :  { %v289_v2 = vpop.xlane.xlu1 %288  ;;  %v679_v61 = vmov 0.0  }
 0x177   :  { %v815_v4 = vsub.f32 %v257_v32, %v308_v1  ;;  %v313_v5 = vmul.f32 0.0078125, %v289_v2  ;;  %v347_v6 = vmul.f32 %v811_v0, %v811_v0  ;;  %528 = vst [vmem:[%s1053_s7 + $0x10] sm:$0xff] %v679_v61  ;;  %529 = vst [vmem:[%s1053_s7 + $0x28] sm:$0xff] %v679_v61  ;;  %v450_v2 = vlaneseq }
 0x178   :  { %v295_v7 = vpop.xlane.xlu0 %294  ;;  %530 = vst [vmem:[%s1053_s7 + $0x40] sm:$0xff] %v679_v61  ;;  %531 = vst [vmem:[%s1053_s7 + $0x58] sm:$0xff] %v679_v61 }
 0x179   :  { %v316_v8 = vmul.f32 0.0078125, %v295_v7  ;;  %373 = vadd.xlane.f32.xlu1 %v347_v6  ;;  %v340_v9 = vmul.f32 %v815_v4, %v815_v4  ;;  %v821_v11 = vsub.f32 %v262_v34, %v313_v5  ;;  %532 = vst [vmem:[%s1053_s7 + $0x70] sm:$0xff] %v679_v61  ;;  %533 = vst [vmem:[%s1053_s7 + $0x88] sm:$0xff] %v679_v61 }
 0x17a   :  { %v275_v10 = vpop.xlane.xlu1 %274  ;;  %534 = vst [vmem:[%s1053_s7 + $0xa0] sm:$0xff] %v679_v61  ;;  %535 = vst [vmem:[%s1053_s7 + $0xb8] sm:$0xff] %v679_v61 }
 0x17b   :  { %v823_v12 = vsub.f32 %v265_v36, %v316_v8  ;;  %v306_v13 = vmul.f32 0.0078125, %v275_v10  ;;  %359 = vadd.xlane.f32.xlu0 %v340_v9  ;;  %v345_v22 = vmul.f32 %v821_v11, %v821_v11  ;;  %v451_v10 = vshrl.u32 %v450_v2, 7 }
 0x17c   :  { %v291_v15 = vpop.xlane.xlu0 %290 }
 0x17d   :  { %v827_v16 = vsub.f32 %v255_v39, %v306_v13  ;;  %v314_v17 = vmul.f32 0.0078125, %v291_v15  ;;  %353 = vadd.xlane.f32.xlu1 %v337_v14  ;;  %v348_v19 = vmul.f32 %v823_v12, %v823_v12 }
 0x17e   :  { %v285_v20 = vpop.xlane.xlu1 %284 }
 0x17f   :  { %v311_v21 = vmul.f32 0.0078125, %v285_v20  ;;  %375 = vadd.xlane.f32.xlu0 %v348_v19  ;;  %v833_v24 = vsub.f32 %v263_v40, %v314_v17  ;;  %v338_v27 = vmul.f32 %v827_v16, %v827_v16 }
 0x180   :  { %v287_v23 = vpop.xlane.xlu0 %286 }
 0x181   :  { %v835_v25 = vsub.f32 %v260_v41, %v311_v21  ;;  %v312_v26 = vmul.f32 0.0078125, %v287_v23  ;;  %369 = vadd.xlane.f32.xlu1 %v345_v22  ;;  %v346_v33 = vmul.f32 %v833_v24, %v833_v24  ;;  %v452_v21 = vsub.s32 0, %v451_v10 }
 0x182   :  { %v281_v28 = vpop.xlane.xlu1 %280 }
 0x183   :  { %355 = vadd.xlane.f32.xlu0 %v338_v27  ;;  %v343_v29 = vmul.f32 %v835_v25, %v835_v25  ;;  %v842_v31 = vsub.f32 %v784_v44, %v312_v26  ;;  %v309_v40 = vmul.f32 0.0078125, %v281_v28  ;;  %v912_v26 = vld [vmem:[%s1054_s5] sm:$0x1] }
 0x184   :  { %v283_v30 = vpop.xlane.xlu0 %282  ;;  %v917_v28 = vld [vmem:[%s1055_s6] sm:$0x1] }
 0x185   :  { %v310_v32 = vmul.f32 0.0078125, %v283_v30  ;;  %365 = vadd.xlane.f32.xlu1 %v343_v29  ;;  %v344_v38 = vmul.f32 %v842_v31, %v842_v31 }
 0x186   :  { %v297_v34 = vpop.xlane.xlu1 %296 }
 0x187   :  { %371 = vadd.xlane.f32.xlu0 %v346_v33  ;;  %v847_v36 = vsub.f32 %v789_v48, %v310_v32  ;;  %v860_v48 = vsub.f32 %v786_v47, %v309_v40  ;;  %v317_v49 = vmul.f32 0.0078125, %v297_v34  ;;  %v920_v33 = vrot.slane %v912_v26, %v452_v21 }
 0x188   :  { %v299_v35 = vpop.xlane.xlu0 %298 }
 0x189   :  { %v318_v37 = vmul.f32 0.0078125, %v299_v35  ;;  %v342_v46 = vmul.f32 %v847_v36, %v847_v36  ;;  %v871_v57 = vsub.f32 %v792_v50, %v317_v49  ;;  %v341_v47 = vmul.f32 %v860_v48, %v860_v48 }
 0x18a   :  { %v301_v39 = vpop.xlane.xlu1 %300  ;;  %v503_v50 = vsel %vm496_vm0, %v502_v60, 0.0 }
 0x18b   :  { %v319_v41 = vmul.f32 0.0078125, %v301_v39  ;;  %367 = vadd.xlane.f32.xlu0 %v344_v38  ;;  %v852_v43 = vsub.f32 %v795_v51, %v318_v37  ;;  %v923_v38 = vrot.slane %v917_v28, %v452_v21 }
 0x18c   :  { %v303_v42 = vpop.xlane.xlu0 %302 }
 0x18d   :  { %v855_v44 = vsub.f32 %v798_v52, %v319_v41  ;;  %v320_v45 = vmul.f32 0.0078125, %v303_v42  ;;  %v350_v52 = vmul.f32 %v852_v43, %v852_v43 }
 0x18f   :  { %363 = vadd.xlane.f32.xlu0 %v342_v46  ;;  %v351_v55 = vmul.f32 %v855_v44, %v855_v44  ;;  %v866_v51 = vsub.f32 %v801_v53, %v320_v45  ;;  %v349_v53 = vmul.f32 %v871_v57, %v871_v57 }
 0x191   :  { %381 = vadd.xlane.f32.xlu1 %v351_v55  ;;  %v352_v54 = vmul.f32 %v866_v51, %v866_v51 }
 0x193   :  { %379 = vadd.xlane.f32.xlu0 %v350_v52 }
 0x195   :  { %361 = vadd.xlane.f32.xlu1 %v341_v47 }
 0x197   :  { %383 = vadd.xlane.f32.xlu0 %v352_v54 }
 0x199   :  { %377 = vadd.xlane.f32.xlu1 %v349_v53 }
 0x19d   :  { %504 = vadd.xlane.f32.xlu1 %v503_v50 }
 0x1fe   :  { %v358_v18 = vpop.xlane.xlu1 %357 }
 0x1ff   :  { %v387_v62 = vmul.f32 0.0078125, %v358_v18 }
 0x201   :  { %v403_v63 = vadd.f32 1e-05, %v387_v62 }
 0x202   :  { %v374_v1 = vpop.xlane.xlu1 %373 }
 0x203   :  { %645 = vrsqrt.f32 %v403_v63  ;;  %v395_v5 = vmul.f32 0.0078125, %v374_v1 }
 0x204   :  { %v360_v6 = vpop.xlane.xlu0 %359 }
 0x205   :  { %v411_v7 = vadd.f32 1e-05, %v395_v5  ;;  %v388_v8 = vmul.f32 0.0078125, %v360_v6 }
 0x206   :  { %v354_v9 = vpop.xlane.xlu1 %353 }
 0x207   :  { %647 = vrsqrt.f32 %v411_v7  ;;  %v404_v13 = vadd.f32 1e-05, %v388_v8  ;;  %v385_v14 = vmul.f32 0.0078125, %v354_v9 }
 0x208   :  { %v376_v15 = vpop.xlane.xlu0 %375 }
 0x209   :  { %649 = vrsqrt.f32 %v404_v13  ;;  %v401_v17 = vadd.f32 1e-05, %v385_v14  ;;  %v396_v19 = vmul.f32 0.0078125, %v376_v15 }
 0x20a   :  { %v370_v20 = vpop.xlane.xlu1 %369 }
 0x20b   :  { %651 = vrsqrt.f32 %v401_v17  ;;  %v412_v22 = vadd.f32 1e-05, %v396_v19  ;;  %v393_v23 = vmul.f32 0.0078125, %v370_v20 }
 0x20c   :  { %v356_v27 = vpop.xlane.xlu0 %355 }
 0x20d   :  { %653 = vrsqrt.f32 %v412_v22  ;;  %v409_v29 = vadd.f32 1e-05, %v393_v23  ;;  %v386_v30 = vmul.f32 0.0078125, %v356_v27 }
 0x20e   :  { %v366_v32 = vpop.xlane.xlu1 %365 }
 0x20f   :  { %655 = vrsqrt.f32 %v409_v29  ;;  %v402_v34 = vadd.f32 1e-05, %v386_v30  ;;  %v391_v35 = vmul.f32 0.0078125, %v366_v32 }
 0x210   :  { %v646_v37 = vpop.eup %645  ;;  %v372_v39 = vpop.xlane.xlu0 %371 }
 0x211   :  { %v435_v40 = vmul.f32 %v646_v37, %v807_v58  ;;  %657 = vrsqrt.f32 %v402_v34  ;;  %v407_v41 = vadd.f32 1e-05, %v391_v35  ;;  %v394_v42 = vmul.f32 0.0078125, %v372_v39 }
 0x213   :  { %v457_v45 = vmul.f32 %v920_v33, %v435_v40  ;;  %659 = vrsqrt.f32 %v407_v41  ;;  %v410_v46 = vadd.f32 1e-05, %v394_v42 }
 0x214   :  { %v648_v49 = vpop.eup %647  ;;  %v368_v55 = vpop.xlane.xlu0 %367 }
 0x215   :  { %v479_v56 = vadd.f32 %v923_v38, %v457_v45  ;;  %v443_v52 = vmul.f32 %v648_v49, %v811_v0  ;;  %661 = vrsqrt.f32 %v410_v46  ;;  %v392_v47 = vmul.f32 0.0078125, %v368_v55 }
 0x216   :  { %v650_v54 = vpop.eup %649 }
 0x217   :  { %514 = vst [vmem:[%s1053_s7 + $0x18] sm:$0xff] %v479_v56  ;;  %v465_v58 = vmul.f32 %v920_v33, %v443_v52  ;;  %v436_v53 = vmul.f32 %v650_v54, %v815_v4  ;;  %v408_v60 = vadd.f32 1e-05, %v392_v47 }
 0x218   :  { %v652_v50 = vpop.eup %651  ;;  %v364_v61 = vpop.xlane.xlu0 %363 }
 0x219   :  { %v487_v18 = vadd.f32 %v923_v38, %v465_v58  ;;  %v458_v62 = vmul.f32 %v920_v33, %v436_v53  ;;  %v433_v0 = vmul.f32 %v652_v50, %v813_v3  ;;  %663 = vrsqrt.f32 %v408_v60 }
 0x21a   :  { %v654_v63 = vpop.eup %653  ;;  %v390_v1 = vmul.f32 0.0078125, %v364_v61  ;;  %v382_v2 = vpop.xlane.xlu1 %381 }
 0x21b   :  { %522 = vst [vmem:[%s1053_s7 + $0x78] sm:$0xff] %v487_v18  ;;  %v480_v5 = vadd.f32 %v923_v38, %v458_v62  ;;  %v455_v4 = vmul.f32 %v920_v33, %v433_v0  ;;  %v444_v6 = vmul.f32 %v654_v63, %v823_v12  ;;  %v399_v7 = vmul.f32 0.0078125, %v382_v2 }
 0x21c   :  { %v656_v8 = vpop.eup %655  ;;  %v406_v9 = vadd.f32 1e-05, %v390_v1  ;;  %v380_v10 = vpop.xlane.xlu0 %379 }
 0x21d   :  { %515 = vst [vmem:[%s1053_s7 + $0x20] sm:$0xff] %v480_v5  ;;  %v477_v3 = vadd.f32 %v923_v38, %v455_v4  ;;  %v466_v13 = vmul.f32 %v920_v33, %v444_v6  ;;  %v441_v14 = vmul.f32 %v656_v8, %v821_v11  ;;  %v415_v15 = vadd.f32 1e-05, %v399_v7 }
 0x21e   :  { %v658_v17 = vpop.eup %657  ;;  %665 = vrsqrt.f32 %v406_v9  ;;  %v398_v19 = vmul.f32 0.0078125, %v380_v10  ;;  %v362_v20 = vpop.xlane.xlu1 %361 }
 0x21f   :  { %512 = vst [vmem:[%s1053_s7] sm:$0xff] %v477_v3  ;;  %v488_v12 = vadd.f32 %v923_v38, %v466_v13  ;;  %v463_v21 = vmul.f32 %v920_v33, %v441_v14  ;;  %v434_v22 = vmul.f32 %v658_v17, %v827_v16  ;;  %667 = vrsqrt.f32 %v415_v15 }
 0x220   :  { %v660_v23 = vpop.eup %659  ;;  %v414_v27 = vadd.f32 1e-05, %v398_v19  ;;  %v389_v29 = vmul.f32 0.0078125, %v362_v20  ;;  %v384_v11 = vpop.xlane.xlu0 %383 }
 0x221   :  { %523 = vst [vmem:[%s1053_s7 + $0x80] sm:$0xff] %v488_v12  ;;  %v485_v30 = vadd.f32 %v923_v38, %v463_v21  ;;  %v456_v32 = vmul.f32 %v920_v33, %v434_v22  ;;  %v439_v34 = vmul.f32 %v660_v23, %v835_v25  ;;  %v400_v35 = vmul.f32 0.0078125, %v384_v11 }
 0x222   :  { %v662_v37 = vpop.eup %661  ;;  %669 = vrsqrt.f32 %v414_v27  ;;  %v405_v39 = vadd.f32 1e-05, %v389_v29  ;;  %v378_v16 = vpop.xlane.xlu1 %377 }
 0x223   :  { %520 = vst [vmem:[%s1053_s7 + $0x60] sm:$0xff] %v485_v30  ;;  %v478_v40 = vadd.f32 %v923_v38, %v456_v32  ;;  %v461_v41 = vmul.f32 %v920_v33, %v439_v34  ;;  %v442_v42 = vmul.f32 %v662_v37, %v833_v24  ;;  %v416_v45 = vadd.f32 1e-05, %v400_v35 }
 0x224   :  { %671 = vrsqrt.f32 %v405_v39  ;;  %v397_v46 = vmul.f32 0.0078125, %v378_v16 }
 0x225   :  { %513 = vst [vmem:[%s1053_s7 + $0x8] sm:$0xff] %v478_v40  ;;  %v483_v25 = vadd.f32 %v923_v38, %v461_v41  ;;  %v464_v49 = vmul.f32 %v920_v33, %v442_v42  ;;  %673 = vrsqrt.f32 %v416_v45 }
 0x226   :  { %v664_v55 = vpop.eup %663  ;;  %v413_v56 = vadd.f32 1e-05, %v397_v46  ;;  %v505_v52 = vpop.xlane.xlu1 %504 }
 0x227   :  { %518 = vst [vmem:[%s1053_s7 + $0x48] sm:$0xff] %v483_v25  ;;  %v486_v24 = vadd.f32 %v923_v38, %v464_v49  ;;  %v440_v47 = vmul.f32 %v664_v55, %v842_v31  ;;  %v506_v54 = vmul.f32 0.0078125, %v505_v52 }
 0x228   :  { %675 = vrsqrt.f32 %v413_v56 }
 0x229   :  { %521 = vst [vmem:[%s1053_s7 + $0x68] sm:$0xff] %v486_v24  ;;  %v462_v58 = vmul.f32 %v920_v33, %v440_v47  ;;  %v507_v53 = vadd.f32 1e-05, %v506_v54 }
 0x22b   :  { %v666_v60 = vpop.eup %665  ;;  %v484_v50 = vadd.f32 %v923_v38, %v462_v58  ;;  %677 = vrsqrt.f32 %v507_v53 }
 0x22c   :  { %v668_v61 = vpop.eup %667  ;;  %v438_v18 = vmul.f32 %v666_v60, %v847_v36 }
 0x22d   :  { %519 = vst [vmem:[%s1053_s7 + $0x50] sm:$0xff] %v484_v50  ;;  %v447_v31 = vmul.f32 %v668_v61, %v855_v44 }
 0x22e   :  { %v460_v62 = vmul.f32 %v920_v33, %v438_v18 }
 0x22f   :  { %v670_v0 = vpop.eup %669  ;;  %v469_v63 = vmul.f32 %v920_v33, %v447_v31 }
 0x230   :  { %v482_v1 = vadd.f32 %v923_v38, %v460_v62  ;;  %v446_v2 = vmul.f32 %v670_v0, %v852_v43 }
 0x231   :  { %v672_v5 = vpop.eup %671  ;;  %v491_v4 = vadd.f32 %v923_v38, %v469_v63 }
 0x232   :  { %v674_v6 = vpop.eup %673  ;;  %517 = vst [vmem:[%s1053_s7 + $0x38] sm:$0xff] %v482_v1  ;;  %v468_v36 = vmul.f32 %v920_v33, %v446_v2  ;;  %v437_v44 = vmul.f32 %v672_v5, %v860_v48 }
 0x233   :  { %526 = vst [vmem:[%s1053_s7 + $0xa8] sm:$0xff] %v491_v4  ;;  %v448_v7 = vmul.f32 %v674_v6, %v866_v51 }
 0x234   :  { %v490_v43 = vadd.f32 %v923_v38, %v468_v36  ;;  %v459_v8 = vmul.f32 %v920_v33, %v437_v44 }
 0x235   :  { %v676_v9 = vpop.eup %675  ;;  %v470_v10 = vmul.f32 %v920_v33, %v448_v7 }
 0x236   :  { %525 = vst [vmem:[%s1053_s7 + $0x98] sm:$0xff] %v490_v43  ;;  %v481_v3 = vadd.f32 %v923_v38, %v459_v8  ;;  %v445_v48 = vmul.f32 %v676_v9, %v871_v57 }
 0x237   :  { %v492_v13 = vadd.f32 %v923_v38, %v470_v10 }
 0x238   :  { %v678_v14 = vpop.eup %677  ;;  %516 = vst [vmem:[%s1053_s7 + $0x30] sm:$0xff] %v481_v3  ;;  %v467_v51 = vmul.f32 %v920_v33, %v445_v48 }
 0x239   :  { %527 = vst [vmem:[%s1053_s7 + $0xb0] sm:$0xff] %v492_v13  ;;  %v509_v15 = vmul.f32 %v678_v14, %v876_v59 }
 0x23a   :  { %v489_v17 = vadd.f32 %v923_v38, %v467_v51 }
 0x23b   :  { %v510_v19 = vmul.f32 %v509_v15, %v912_v26 }
 0x23c   :  { %524 = vst [vmem:[%s1053_s7 + $0x90] sm:$0xff] %v489_v17 }
 0x23d   :  { %v511_v57 = vadd.f32 %v510_v19, %v917_v28 }
 0x23f   :  { %536 = vst [vmem:[%s1053_s7 + $0x10] sm:$0x1] %v511_v57  ;;  %537 = vst [vmem:[%s1053_s7 + $0x28] sm:$0x1] %v511_v57 }
 0x240   :  { %538 = vst [vmem:[%s1053_s7 + $0x40] sm:$0x1] %v511_v57  ;;  %539 = vst [vmem:[%s1053_s7 + $0x58] sm:$0x1] %v511_v57 }
 0x241   :  { %540 = vst [vmem:[%s1053_s7 + $0x70] sm:$0x1] %v511_v57  ;;  %541 = vst [vmem:[%s1053_s7 + $0x88] sm:$0x1] %v511_v57 }
 0x242   :  { %542 = vst [vmem:[%s1053_s7 + $0xa0] sm:$0x1] %v511_v57  ;;  %543 = vst [vmem:[%s1053_s7 + $0xb8] sm:$0x1] %v511_v57 }

// kernel: image_transformer_encoder_forward.7
= control target key start
LH: loop header
LB: loop body
LE: loop exit
PB: predicated region body
PF: predicated region fallthrough
CT: control target
= control target key end

     0   :  { %s595_s0 = inlined_call_operand.vmem [shape: f32[8,24,128], index: 0, kind: input, shape index: {}]   ;;  %s596_s1 = inlined_call_operand.vmem [shape: f32[1,128], index: 1, kind: input, shape index: {}]   ;;  %s597_s2 = inlined_call_operand.vmem [shape: f32[1,128], index: 2, kind: input, shape index: {}]   ;;  %s598_s3 = inlined_call_operand.vmem [shape: bf16[128,128], index: 3, kind: input, shape index: {}]   ;;  %s599_s4 = inlined_call_operand.vmem [shape: f32[8,8,128], index: 4, kind: output, shape index: {}]  }
   0x1   :  { %v358_v0 = vld [vmem:[%s595_s0 + $0x10] sm:$0xff]  ;;  %v359_v2 = vld [vmem:[%s595_s0 + $0x28] sm:$0xff]  ;;  %v360_v4 = vld [vmem:[%s595_s0 + $0x40] sm:$0xff] }
   0x2   :  { %v362_v1 = vld [vmem:[%s595_s0 + $0x70] sm:$0xff]  ;;  %92 = vadd.xlane.f32.xlu0 %v358_v0  ;;  %v363_v3 = vld [vmem:[%s595_s0 + $0x88] sm:$0xff]  ;;  %v361_v5 = vld [vmem:[%s595_s0 + $0x58] sm:$0xff] }
   0x3   :  { %100 = vadd.xlane.f32.xlu1 %v362_v1  ;;  %v364_v6 = vld [vmem:[%s595_s0 + $0xa0] sm:$0xff]  ;;  %v365_v7 = vld [vmem:[%s595_s0 + $0xb8] sm:$0xff]  ;;  %v429_v41 = vld [vmem:[%s598_s3 + $0x30] sm:$0xff]  }
   0x4   :  { %v428_v40 = vld [vmem:[%s598_s3 + $0x38] sm:$0xff]   ;;  %v430_v42 = vld [vmem:[%s598_s3 + $0x28] sm:$0xff]   ;;  %v431_v43 = vld [vmem:[%s598_s3 + $0x20] sm:$0xff]  }
   0x5   :  { %388 = vmatprep.subr.bf16.mxu0 %v428_v40  ;;  %412 = vmatprep.subr.bf16.mxu1 %v428_v40  ;;  %v432_v44 = vld [vmem:[%s598_s3 + $0x18] sm:$0xff]   ;;  %v433_v45 = vld [vmem:[%s598_s3 + $0x10] sm:$0xff]   ;;  %v434_v46 = vld [vmem:[%s598_s3 + $0x8] sm:$0xff]  }
   0x6   :  { %94 = vadd.xlane.f32.xlu0 %v359_v2  ;;  %389 = vmatpush3.bf16.msra.mxu0 %v428_v40  ;;  %v435_v47 = vld [vmem:[%s598_s3] sm:$0xff]  }
   0x7   :  { %102 = vadd.xlane.f32.xlu1 %v363_v3  ;;  %420 = vmatpush3.bf16.msra.mxu1 %v428_v40 }
   0x8   :  { %390 = vmatprep.subr.bf16.mxu0 %v429_v41  ;;  %413 = vmatprep.subr.bf16.mxu1 %v429_v41 }
   0xa   :  { %96 = vadd.xlane.f32.xlu0 %v360_v4  ;;  %391 = vmatpush3.bf16.msra.mxu0 %v429_v41 }
   0xb   :  { %98 = vadd.xlane.f32.xlu1 %v361_v5  ;;  %421 = vmatpush3.bf16.msra.mxu1 %v429_v41 }
   0xc   :  { %392 = vmatprep.subr.bf16.mxu0 %v430_v42  ;;  %414 = vmatprep.subr.bf16.mxu1 %v430_v42 }
   0xe   :  { %104 = vadd.xlane.f32.xlu0 %v364_v6  ;;  %393 = vmatpush3.bf16.msra.mxu0 %v430_v42 }
   0xf   :  { %106 = vadd.xlane.f32.xlu1 %v365_v7  ;;  %422 = vmatpush3.bf16.msra.mxu1 %v430_v42 }
  0x10   :  { %394 = vmatprep.subr.bf16.mxu0 %v431_v43  ;;  %415 = vmatprep.subr.bf16.mxu1 %v431_v43 }
  0x12   :  { %395 = vmatpush3.bf16.msra.mxu0 %v431_v43 }
  0x13   :  { %423 = vmatpush3.bf16.msra.mxu1 %v431_v43  ;;  %396 = vmatprep.subr.bf16.mxu0 %v432_v44 }
  0x14   :  { %416 = vmatprep.subr.bf16.mxu1 %v432_v44 }
  0x16   :  { %397 = vmatpush3.bf16.msra.mxu0 %v432_v44 }
  0x17   :  { %424 = vmatpush3.bf16.msra.mxu1 %v432_v44  ;;  %398 = vmatprep.subr.bf16.mxu0 %v433_v45 }
  0x18   :  { %417 = vmatprep.subr.bf16.mxu1 %v433_v45 }
  0x1a   :  { %399 = vmatpush3.bf16.msra.mxu0 %v433_v45 }
  0x1b   :  { %425 = vmatpush3.bf16.msra.mxu1 %v433_v45  ;;  %400 = vmatprep.subr.bf16.mxu0 %v434_v46 }
  0x1c   :  { %418 = vmatprep.subr.bf16.mxu1 %v434_v46 }
  0x1e   :  { %401 = vmatpush3.bf16.msra.mxu0 %v434_v46 }
  0x1f   :  { %426 = vmatpush3.bf16.msra.mxu1 %v434_v46  ;;  %402 = vmatprep.subr.bf16.mxu0 %v435_v47 }
  0x20   :  { %419 = vmatprep.subr.bf16.mxu1 %v435_v47 }
  0x22   :  { %403 = vmatpush3.bf16.msra.mxu0 %v435_v47 }
  0x23   :  { %427 = vmatpush3.bf16.msra.mxu1 %v435_v47 }
  0x8b   :  { %v93_v8 = vpop.xlane.xlu0 %92 }
  0x8c   :  { %v101_v9 = vpop.xlane.xlu1 %100  ;;  %v109_v10 = vmul.f32 0.0078125, %v93_v8 }
  0x8d   :  { %v113_v11 = vmul.f32 0.0078125, %v101_v9 }
  0x8e   :  { %v501_v12 = vsub.f32 %v358_v0, %v109_v10  ;;  %v366_v10 = vld [vmem:[%s596_s1] ss:$0 sm:$0xff] }
  0x8f   :  { %v503_v13 = vsub.f32 %v362_v1, %v113_v11  ;;  %v95_v14 = vpop.xlane.xlu0 %94 }
  0x90   :  { %v103_v15 = vpop.xlane.xlu1 %102  ;;  %v110_v16 = vmul.f32 0.0078125, %v95_v14  ;;  %v125_v17 = vmul.f32 %v501_v12, %v501_v12 }
  0x91   :  { %v114_v18 = vmul.f32 0.0078125, %v103_v15  ;;  %v129_v21 = vmul.f32 %v503_v13, %v503_v13 }
  0x92   :  { %v507_v19 = vsub.f32 %v359_v2, %v110_v16  ;;  %133 = vadd.xlane.f32.xlu0 %v125_v17  ;;  %v367_v17 = vld [vmem:[%s597_s2] ss:$0 sm:$0xff] }
  0x93   :  { %v509_v20 = vsub.f32 %v363_v3, %v114_v18  ;;  %v97_v22 = vpop.xlane.xlu0 %96 }
  0x94   :  { %v99_v23 = vpop.xlane.xlu1 %98  ;;  %v111_v24 = vmul.f32 0.0078125, %v97_v22  ;;  %v126_v25 = vmul.f32 %v507_v19, %v507_v19 }
  0x95   :  { %v112_v26 = vmul.f32 0.0078125, %v99_v23  ;;  %v130_v29 = vmul.f32 %v509_v20, %v509_v20 }
  0x96   :  { %v515_v27 = vsub.f32 %v360_v4, %v111_v24  ;;  %141 = vadd.xlane.f32.xlu0 %v129_v21  ;;  %135 = vadd.xlane.f32.xlu1 %v126_v25 }
  0x97   :  { %v517_v28 = vsub.f32 %v361_v5, %v112_v26  ;;  %v105_v30 = vpop.xlane.xlu0 %104 }
  0x98   :  { %v107_v31 = vpop.xlane.xlu1 %106  ;;  %v115_v32 = vmul.f32 0.0078125, %v105_v30  ;;  %v127_v33 = vmul.f32 %v515_v27, %v515_v27 }
  0x99   :  { %v116_v34 = vmul.f32 0.0078125, %v107_v31  ;;  %v128_v37 = vmul.f32 %v517_v28, %v517_v28 }
  0x9a   :  { %v523_v35 = vsub.f32 %v364_v6, %v115_v32  ;;  %143 = vadd.xlane.f32.xlu1 %v130_v29  ;;  %137 = vadd.xlane.f32.xlu0 %v127_v33 }
  0x9b   :  { %v525_v36 = vsub.f32 %v365_v7, %v116_v34 }
  0x9c   :  { %v131_v38 = vmul.f32 %v523_v35, %v523_v35 }
  0x9d   :  { %v132_v39 = vmul.f32 %v525_v36, %v525_v36 }
  0x9e   :  { %139 = vadd.xlane.f32.xlu1 %v128_v37  ;;  %145 = vadd.xlane.f32.xlu0 %v131_v38 }
  0xa2   :  { %147 = vadd.xlane.f32.xlu1 %v132_v39 }
 0x11b   :  { %v134_v48 = vpop.xlane.xlu0 %133 }
 0x11c   :  { %v149_v49 = vmul.f32 0.0078125, %v134_v48 }
 0x11e   :  { %v157_v50 = vadd.f32 1e-05, %v149_v49 }
 0x11f   :  { %v136_v51 = vpop.xlane.xlu1 %135  ;;  %v142_v52 = vpop.xlane.xlu0 %141 }
 0x120   :  { %436 = vrsqrt.f32 %v157_v50  ;;  %v150_v53 = vmul.f32 0.0078125, %v136_v51  ;;  %v153_v54 = vmul.f32 0.0078125, %v142_v52 }
 0x122   :  { %v158_v55 = vadd.f32 1e-05, %v150_v53  ;;  %v161_v56 = vadd.f32 1e-05, %v153_v54 }
 0x123   :  { %v144_v57 = vpop.xlane.xlu1 %143  ;;  %v138_v58 = vpop.xlane.xlu0 %137 }
 0x124   :  { %438 = vrsqrt.f32 %v158_v55  ;;  %v154_v59 = vmul.f32 0.0078125, %v144_v57  ;;  %v151_v60 = vmul.f32 0.0078125, %v138_v58 }
 0x125   :  { %440 = vrsqrt.f32 %v161_v56 }
 0x126   :  { %v162_v61 = vadd.f32 1e-05, %v154_v59  ;;  %v159_v62 = vadd.f32 1e-05, %v151_v60 }
 0x127   :  { %v140_v63 = vpop.xlane.xlu1 %139  ;;  %v146_v0 = vpop.xlane.xlu0 %145 }
 0x128   :  { %442 = vrsqrt.f32 %v162_v61  ;;  %v152_v1 = vmul.f32 0.0078125, %v140_v63  ;;  %v155_v2 = vmul.f32 0.0078125, %v146_v0 }
 0x129   :  { %444 = vrsqrt.f32 %v159_v62 }
 0x12a   :  { %v160_v3 = vadd.f32 1e-05, %v152_v1  ;;  %v163_v4 = vadd.f32 1e-05, %v155_v2 }
 0x12b   :  { %v148_v5 = vpop.xlane.xlu1 %147 }
 0x12c   :  { %446 = vrsqrt.f32 %v160_v3  ;;  %v156_v6 = vmul.f32 0.0078125, %v148_v5 }
 0x12d   :  { %v437_v7 = vpop.eup %436  ;;  %448 = vrsqrt.f32 %v163_v4 }
 0x12e   :  { %v164_v8 = vadd.f32 1e-05, %v156_v6  ;;  %v173_v9 = vmul.f32 %v437_v7, %v501_v12 }
 0x130   :  { %450 = vrsqrt.f32 %v164_v8  ;;  %v187_v16 = vmul.f32 %v366_v10, %v173_v9 }
 0x131   :  { %v439_v11 = vpop.eup %438 }
 0x132   :  { %v441_v14 = vpop.eup %440  ;;  %v174_v15 = vmul.f32 %v439_v11, %v507_v19  ;;  %v201_v12 = vadd.f32 %v367_v17, %v187_v16 }
 0x133   :  { %v177_v18 = vmul.f32 %v441_v14, %v503_v13 }
 0x134   :  { %v188_v21 = vmul.f32 %v366_v10, %v174_v15 }
 0x135   :  { %v443_v22 = vpop.eup %442  ;;  %v191_v26 = vmul.f32 %v366_v10, %v177_v18 }
 0x136   :  { %v445_v23 = vpop.eup %444  ;;  %v202_v24 = vadd.f32 %v367_v17, %v188_v21  ;;  %v178_v25 = vmul.f32 %v443_v22, %v509_v20 }
 0x137   :  { %v175_v29 = vmul.f32 %v445_v23, %v515_v27  ;;  %v205_v33 = vadd.f32 %v367_v17, %v191_v26 }
 0x138   :  { %v209_v30 = vpack.c.bf16 %v202_v24, %v201_v12  ;;  %v192_v31 = vmul.f32 %v366_v10, %v178_v25 }
 0x139   :  { %v447_v19 = vpop.eup %446  ;;  %v189_v13 = vmul.f32 %v366_v10, %v175_v29 }
 0x13a   :  { %v449_v32 = vpop.eup %448  ;;  %404 = vmatprep.mubr.bf16.mxu0 %v209_v30  ;;  %v206_v34 = vadd.f32 %v367_v17, %v192_v31  ;;  %v176_v37 = vmul.f32 %v447_v19, %v517_v28 }
 0x13b   :  { %v179_v38 = vmul.f32 %v449_v32, %v523_v35  ;;  %v203_v20 = vadd.f32 %v367_v17, %v189_v13 }
 0x13c   :  { %v211_v39 = vpack.c.bf16 %v206_v34, %v205_v33  ;;  %v190_v40 = vmul.f32 %v366_v10, %v176_v37 }
 0x13d   :  { %v451_v41 = vpop.eup %450  ;;  %v193_v43 = vmul.f32 %v366_v10, %v179_v38 }
 0x13e   :  { %408 = vmatprep.mubr.bf16.mxu1 %v211_v39  ;;  %v204_v42 = vadd.f32 %v367_v17, %v190_v40  ;;  %v180_v27 = vmul.f32 %v451_v41, %v525_v36 }
 0x13f   :  { %v207_v46 = vadd.f32 %v367_v17, %v193_v43 }
 0x140   :  { %v210_v44 = vpack.c.bf16 %v204_v42, %v203_v20  ;;  %v194_v45 = vmul.f32 %v366_v10, %v180_v27 }
 0x142   :  { %405 = vmatmul.mubr.bf16.vlgmr.msra.gmra.mxu0 %v210_v44  ;;  %v208_v47 = vadd.f32 %v367_v17, %v194_v45 }
 0x144   :  { %v212_v48 = vpack.c.bf16 %v208_v47, %v207_v46 }
 0x146   :  { %409 = vmatmul.mubr.bf16.vlgmr.msra.gmra.mxu1 %v212_v48 }
 0x202   :  { %v406_v28 = vpop.f32.mrf.mxu0 }
 0x203   :  { %344 = vst [vmem:[%s599_s4 + $0x10] sm:$0xff] %v406_v28 }
 0x204   :  { %v311_v35 = vpop.f32.mrf.mxu0 }
 0x205   :  { %342 = vst [vmem:[%s599_s4] sm:$0xff] %v311_v35 }
 0x206   :  { %v407_v49 = vpop.f32.mrf.mxu0  ;;  %v410_v36 = vpop.f32.mrf.mxu1 }
 0x207   :  { %345 = vst [vmem:[%s599_s4 + $0x18] sm:$0xff] %v407_v49  ;;  %348 = vst [vmem:[%s599_s4 + $0x30] sm:$0xff] %v410_v36 }
 0x208   :  { %v314_v50 = vpop.f32.mrf.mxu0  ;;  %v327_v51 = vpop.f32.mrf.mxu1 }
 0x209   :  { %343 = vst [vmem:[%s599_s4 + $0x8] sm:$0xff] %v314_v50  ;;  %346 = vst [vmem:[%s599_s4 + $0x20] sm:$0xff] %v327_v51 }
 0x20a   :  { %v411_v52 = vpop.f32.mrf.mxu1 }
 0x20b   :  { %349 = vst [vmem:[%s599_s4 + $0x38] sm:$0xff] %v411_v52 }
 0x20c   :  { %v330_v53 = vpop.f32.mrf.mxu1 }
 0x20d   :  { %347 = vst [vmem:[%s599_s4 + $0x28] sm:$0xff] %v330_v53 }

// kernel: image_transformer_encoder_forward.9
= control target key start
LH: loop header
LB: loop body
LE: loop exit
PB: predicated region body
PF: predicated region fallthrough
CT: control target
= control target key end

     0   :  { %vm18_vm0 = vcmask 1043456   ;;  %s133_s0 = inlined_call_operand.vmem [shape: f32[2,8,128], index: 0, kind: input, shape index: {}]   ;;  %s134_s1 = inlined_call_operand.vmem [shape: f32[2,4,128], index: 1, kind: input, shape index: {}]   ;;  %s135_s2 = inlined_call_operand.hbm [shape: f32[2,128], index: 2, kind: output, shape index: {}]  }
   0x1   :  { %v12_v0 = vld [vmem:[%s133_s0] sm:$0xff]  ;;  %v13_v1 = vld [vmem:[%s133_s0 + $0x8] sm:$0xff] }
   0x2   :  { %v14_v2 = vld [vmem:[%s134_s1] sm:$0xf]  ;;  %v15_v3 = vld [vmem:[%s134_s1 + $0x4] sm:$0xf] }
   0x3   :  { %v16_v4 = vadd.f32 %v14_v2, %v12_v0 }
   0x4   :  { %7 = vsyncpa [#allocation3], 0  ;;  %v17_v5 = vadd.f32 %v15_v3, %v13_v1  ;;  %vm40_vm1 = vcmask 1041409   ;;  %vm43_vm2 = vcmask 1041408   ;;  %s100_s0 = smov [#allocation2]  }
   0x5   :  { %v19_v6 = vsel %vm18_vm0, %v16_v4, 0.0  ;;  %s67_s1 = sshll.u32 %s100_s0, 4  ;;  %s68_s1 = int_to_ptr.vmem [resolvable:$true] %s67_s1 }
   0x6   :  { %v20_v7 = vrot.slane %v19_v6, 4  ;;  %v26_v8 = vsel %vm18_vm0, %v17_v5, 0.0  ;;  %s78_s17 = scalar_lea.vmem %s68_s1, 32  ;;  %p83_p1 = scmp.lt.s32.totalorder %s68_s1, %s68_s1 }
   0x7   :  { %v27_v9 = vrot.slane %v26_v8, 4  ;;  %p79_p0 = scmp.ne.s32.totalorder %s68_s1, %s78_s17  ;;  %p84_p2 = scmp.lt.s32.totalorder %s78_s17, %s78_s17 }
   0x8   :  { %v21_v10 = vadd.f32 %v20_v7, %v19_v6 }
   0x9   :  { %v28_v11 = vadd.f32 %v27_v9, %v26_v8  ;;  %p85_p3 = por %p84_p2, %p83_p1 }
   0xa   :  { %v22_v12 = vrot.slane %v21_v10, 2 }
   0xb   :  { %v29_v13 = vrot.slane %v28_v11, 2  ;;  %p86_p4 = pnand %p85_p3, %p79_p0 }
   0xc   :  { %v23_v14 = vadd.f32 %v22_v12, %v21_v10 }
   0xd   :  { %v30_v15 = vadd.f32 %v29_v13, %v28_v11 }
   0xe   :  { %v24_v16 = vrot.slane %v23_v14, 1 }
   0xf   :  { %v31_v17 = vrot.slane %v30_v15, 1 }
  0x10   :  { %v25_v18 = vadd.f32 %v24_v16, %v23_v14 }
  0x11   :  { %v32_v19 = vadd.f32 %v31_v17, %v30_v15 }
  0x12   :  { %v34_v20 = vmul.f32 0.25, %v25_v18 }
  0x13   :  { %v35_v21 = vmul.f32 0.25, %v32_v19 }
  0x14   :  { %v36_v22 = vmul.f32 %v34_v20, %v34_v20 }
  0x15   :  { %v37_v23 = vmul.f32 %v35_v21, %v35_v21 }
  0x17   :  { %v41_v24 = vsel %vm40_vm1, %v37_v23, %v36_v22 }
  0x18   :  { %v44_v25 = vsel %vm43_vm2, %v41_v24, 0.0 }
  0x19   :  { %45 = vadd.xlane.f32.xlu0 %v44_v25 }
  0xa2   :  { %v46_v26 = vpop.xlane.xlu0 %45 }
  0xa3   :  { %v47_v27 = vadd.f32 1e-12, %v46_v26 }
  0xa5   :  { %76 = vrsqrt.f32 %v47_v27 }
  0xb2   :  { %v77_v28 = vpop.eup %76 }
  0xb3   :  { %v50_v29 = vrot.slane %v77_v28, 1  ;;  %v53_v31 = vmul.f32 %v77_v28, %v34_v20 }
  0xb5   :  { %v54_v30 = vmul.f32 %v50_v29, %v35_v21 }
  0xb7   :  { %v57_v32 = vrot.slane %v54_v30, 7 }
  0xb9   :  { %v58_v33 = vsel %vm40_vm1, %v57_v32, %v53_v31 }
  0xba   :  { %60 = vst [vmem:[#allocation2] sm:$0x3] %v58_v33 }
  0xbb   :  { %89 = shalt.err (!%p86_p4)
}
  0xbc   :  { %70 = dma.vmem_to_hbm [thread:$0]  %s68_s1, 32, %s135_s2, [#allocation3]  }
  0xbd   :  { %98 = dma.done.wait [#allocation3], 32  }
  0xbe   :  { %99 = vsyncadd [#allocation3], 4294967264 }
  0xbf   :  { %74 = vsyncpa [#allocation3], 1 }

// kernel: image_transformer_encoder_forward.8
= control target key start
LH: loop header
LB: loop body
LE: loop exit
PB: predicated region body
PF: predicated region fallthrough
CT: control target
= control target key end

     0   :  { %v2258_v3 = vmov 0.0   ;;  %v2259_v27 = vmov 0   ;;  %vm2260_vm0 = vmmov 0   ;;  %v131_v53 = vlaneseq  ;;  %s2263_s30 = smov 32   ;;  %s2838_s0 = inlined_call_operand.vmem [shape: f32[2,8,128], index: 0, kind: input, shape index: {}]   ;;  %s2839_s3 = inlined_call_operand.vmem [shape: bf16[1,128,384], index: 3, kind: input, shape index: {}]   ;;  %s2840_s1 = inlined_call_operand.vmem [shape: f32[1,1,128], index: 1, kind: input, shape index: {}]   ;;  %s2841_s2 = inlined_call_operand.vmem [shape: f32[1,1,128], index: 2, kind: input, shape index: {}]   ;;  %s2842_s4 = inlined_call_operand.vmem [shape: f32[1,1,384], index: 4, kind: input, shape index: {}]   ;;  %s2843_s5 = inlined_call_operand.vmem [shape: bf16[1,128,128], index: 5, kind: input, shape index: {}]   ;;  %s2844_s6 = inlined_call_operand.vmem [shape: f32[1,1,128], index: 6, kind: input, shape index: {}]   ;;  %s2845_s9 = inlined_call_operand.vmem [shape: bf16[1,128,256], index: 9, kind: input, shape index: {}]   ;;  %s2846_s7 = inlined_call_operand.vmem [shape: f32[1,1,128], index: 7, kind: input, shape index: {}]   ;;  %s2847_s8 = inlined_call_operand.vmem [shape: f32[1,1,128], index: 8, kind: input, shape index: {}]   ;;  %s2848_s11 = inlined_call_operand.vmem [shape: bf16[1,256,128], index: 11, kind: input, shape index: {}]   ;;  %s2849_s10 = inlined_call_operand.vmem [shape: f32[1,1,256], index: 10, kind: input, shape index: {}]   ;;  %s2850_s12 = inlined_call_operand.vmem [shape: f32[1,1,128], index: 12, kind: input, shape index: {}]   ;;  %s2851_s13 = inlined_call_operand.vmem [shape: f32[2,8,128], index: 13, kind: output, shape index: {}]  }
   0x1   :  { %v49_v0 = vld [vmem:[%s2838_s0] sm:$0xff]  ;;  %v50_v1 = vld [vmem:[%s2838_s0 + $0x8] sm:$0xff]  ;;  %1978 = vmatprep.subr.bf16.mxu1 %v2258_v3  ;;  %v2123_v5 = vld [vmem:[%s2839_s3 + $0xb0] ss:$12 sps:$4 sm:$0xff]   ;;  %306 = vmatprep.mubr.bf16.mxu0 %v2259_v27  ;;  %vm367_vm1 = vcmask 261120   ;;  %vm486_vm2 = vcmask 1043456  }
   0x2   :  { %57 = vadd.xlane.f32.xlu0 %v49_v0  ;;  %v2120_v2 = vld [vmem:[%s2839_s3 + $0xac] ss:$12 sps:$4 sm:$0xff]   ;;  %v2122_v4 = vld [vmem:[%s2839_s3 + $0xa8] ss:$12 sps:$4 sm:$0xff]   ;;  %1979 = vmatpush3.bf16.msra.mxu1 %v2123_v5  ;;  %v2126_v15 = vld [vmem:[%s2839_s3 + $0x90] ss:$12 sps:$4 sm:$0xff]  }
   0x3   :  { %274 = vmatprep.subr.bf16.mxu0 %v2120_v2  ;;  %1980 = vmatprep.subr.bf16.mxu1 %v2258_v3  ;;  %v2124_v14 = vld [vmem:[%s2839_s3 + $0x94] ss:$12 sps:$4 sm:$0xff]   ;;  %v2127_v16 = vld [vmem:[%s2839_s3 + $0x98] ss:$12 sps:$4 sm:$0xff]   ;;  %v2128_v17 = vld [vmem:[%s2839_s3 + $0x7c] ss:$12 sps:$4 sm:$0xff]  }
   0x4   :  { %275 = vmatpush1.bf16.msra.mxu0 %v2122_v4  ;;  %v2130_v18 = vld [vmem:[%s2839_s3 + $0x78] ss:$12 sps:$4 sm:$0xff]   ;;  %v2131_v19 = vld [vmem:[%s2839_s3 + $0x80] ss:$12 sps:$4 sm:$0xff]   ;;  %v2135_v22 = vld [vmem:[%s2839_s3 + $0x68] ss:$12 sps:$4 sm:$0xff]   ;;  %1994 = vmatprep.mubr.msk.bf16.mxu1 %vm2260_vm0, %v2258_v3 }
   0x5   :  { %276 = vmatprep.subr.bf16.mxu0 %v2124_v14  ;;  %v2132_v20 = vld [vmem:[%s2839_s3 + $0x64] ss:$12 sps:$4 sm:$0xff]   ;;  %v2134_v21 = vld [vmem:[%s2839_s3 + $0x60] ss:$12 sps:$4 sm:$0xff]   ;;  %v2138_v24 = vld [vmem:[%s2839_s3 + $0x48] ss:$12 sps:$4 sm:$0xff]  }
   0x6   :  { %59 = vadd.xlane.f32.xlu0 %v50_v1  ;;  %1981 = vmatpush3.bf16.msra.mxu1 %v2127_v16  ;;  %v2136_v23 = vld [vmem:[%s2839_s3 + $0x4c] ss:$12 sps:$4 sm:$0xff]   ;;  %v2139_v25 = vld [vmem:[%s2839_s3 + $0x50] ss:$12 sps:$4 sm:$0xff]   ;;  %v2140_v26 = vld [vmem:[%s2839_s3 + $0x34] ss:$12 sps:$4 sm:$0xff]  }
   0x7   :  { %1982 = vmatprep.subr.bf16.mxu1 %v2258_v3  ;;  %v2142_v28 = vld [vmem:[%s2839_s3 + $0x30] ss:$12 sps:$4 sm:$0xff]   ;;  %v2143_v29 = vld [vmem:[%s2839_s3 + $0x38] ss:$12 sps:$4 sm:$0xff]   ;;  %v2147_v32 = vld [vmem:[%s2839_s3 + $0x20] ss:$12 sps:$4 sm:$0xff]  }
   0x8   :  { %277 = vmatpush1.bf16.msra.mxu0 %v2126_v15  ;;  %v2144_v30 = vld [vmem:[%s2839_s3 + $0x1c] ss:$12 sps:$4 sm:$0xff]   ;;  %v2146_v31 = vld [vmem:[%s2839_s3 + $0x18] ss:$12 sps:$4 sm:$0xff]   ;;  %v2150_v34 = vld [vmem:[%s2839_s3] ss:$12 sps:$4 sm:$0xff]  }
   0x9   :  { %278 = vmatprep.subr.bf16.mxu0 %v2128_v17  ;;  %v2148_v33 = vld [vmem:[%s2839_s3 + $0x4] ss:$12 sps:$4 sm:$0xff]   ;;  %v2151_v35 = vld [vmem:[%s2839_s3 + $0x8] ss:$12 sps:$4 sm:$0xff]   ;;  %v1816_v44 = vld [vmem:[%s2840_s1] ss:$0 sm:$0xff] }
   0xa   :  { %1983 = vmatpush3.bf16.msra.mxu1 %v2131_v19  ;;  %v1817_v48 = vld [vmem:[%s2841_s2] ss:$0 sm:$0xff]  ;;  %v2445_v54 = vshrl.u32 %v131_v53, 7  ;;  %s2261_s2 = smov 96   ;;  %vm462_vm4 = vcmask 64512   ;;  %vm818_vm5 = vcmask 523520  }
   0xb   :  { %1984 = vmatprep.subr.bf16.mxu1 %v2258_v3  ;;  %v129_v56 = vld [vmem:[%s2842_s4] sm:$0x7]  ;;  %s2262_s4 = smov 64   ;;  %vm1051_vm6 = vcmask 785920   ;;  %vm1284_vm7 = vcmask 1048320  }
   0xc   :  { %279 = vmatpush1.bf16.msra.mxu0 %v2130_v18  ;;  %v137_v55 = vsub.s32 1, %v2445_v54  ;;  %v141_v57 = vsub.s32 2, %v2445_v54  ;;  %v133_v61 = vsub.s32 0, %v2445_v54 }
   0xd   :  { %280 = vmatprep.subr.bf16.mxu0 %v2132_v20 }
   0xe   :  { %1985 = vmatpush3.bf16.msra.mxu1 %v2135_v22  ;;  %v138_v58 = vrot.slane %v129_v56, %v137_v55  ;;  %v134_v5 = vrot.slane %v129_v56, %v133_v61 }
   0xf   :  { %1986 = vmatprep.subr.bf16.mxu1 %v2258_v3 }
  0x10   :  { %281 = vmatpush1.bf16.msra.mxu0 %v2134_v21  ;;  %v2486_v21 = vand.u32 127, %v131_v53 }
  0x11   :  { %282 = vmatprep.subr.bf16.mxu0 %v2136_v23 }
  0x12   :  { %1987 = vmatpush3.bf16.msra.mxu1 %v2139_v25  ;;  %vm366_vm3 = vcmp.lt.s32.totalorder %v2486_v21, 4 }
  0x13   :  { %1988 = vmatprep.subr.bf16.mxu1 %v2258_v3 }
  0x14   :  { %283 = vmatpush1.bf16.msra.mxu0 %v2138_v24 }
  0x15   :  { %284 = vmatprep.subr.bf16.mxu0 %v2140_v26 }
  0x16   :  { %1989 = vmatpush3.bf16.msra.mxu1 %v2143_v29 }
  0x17   :  { %1990 = vmatprep.subr.bf16.mxu1 %v2258_v3 }
  0x18   :  { %285 = vmatpush1.bf16.msra.mxu0 %v2142_v28 }
  0x19   :  { %286 = vmatprep.subr.bf16.mxu0 %v2144_v30 }
  0x1a   :  { %1991 = vmatpush3.bf16.msra.mxu1 %v2147_v32 }
  0x1b   :  { %1992 = vmatprep.subr.bf16.mxu1 %v2258_v3 }
  0x1c   :  { %287 = vmatpush1.bf16.msra.mxu0 %v2146_v31 }
  0x1d   :  { %288 = vmatprep.subr.bf16.mxu0 %v2148_v33 }
  0x1e   :  { %1993 = vmatpush3.bf16.msra.mxu1 %v2151_v35 }
  0x1f   :  { %1998 = vmatprep.subr.bf16.mxu1 %v2258_v3 }
  0x20   :  { %289 = vmatpush1.bf16.msra.mxu0 %v2150_v34 }
  0x21   :  { %2022 = vmatprep.subr.bf16.mxu0 %v2258_v3 }
  0x8b   :  { %v58_v6 = vpop.xlane.xlu0 %57 }
  0x8c   :  { %v62_v7 = vmul.f32 0.0078125, %v58_v6 }
  0x8e   :  { %v2351_v8 = vsub.f32 %v49_v0, %v62_v7  ;;  %v142_v0 = vrot.slane %v129_v56, %v141_v57 }
  0x8f   :  { %v60_v9 = vpop.xlane.xlu0 %59 }
  0x90   :  { %v63_v10 = vmul.f32 0.0078125, %v60_v9  ;;  %v66_v11 = vmul.f32 %v2351_v8, %v2351_v8 }
  0x92   :  { %v2355_v12 = vsub.f32 %v50_v1, %v63_v10  ;;  %68 = vadd.xlane.f32.xlu1 %v66_v11 }
  0x94   :  { %v67_v13 = vmul.f32 %v2355_v12, %v2355_v12 }
  0x96   :  { %70 = vadd.xlane.f32.xlu1 %v67_v13 }
 0x11b   :  { %v69_v36 = vpop.xlane.xlu1 %68 }
 0x11c   :  { %v72_v37 = vmul.f32 0.0078125, %v69_v36 }
 0x11e   :  { %v74_v38 = vadd.f32 1e-05, %v72_v37 }
 0x11f   :  { %v71_v39 = vpop.xlane.xlu1 %70 }
 0x120   :  { %2200 = vrsqrt.f32 %v74_v38  ;;  %v73_v40 = vmul.f32 0.0078125, %v71_v39 }
 0x122   :  { %v75_v41 = vadd.f32 1e-05, %v73_v40 }
 0x124   :  { %2202 = vrsqrt.f32 %v75_v41 }
 0x12d   :  { %v2201_v42 = vpop.eup %2200 }
 0x12e   :  { %v78_v43 = vmul.f32 %v2201_v42, %v2351_v8 }
 0x130   :  { %v86_v47 = vmul.f32 %v1816_v44, %v78_v43 }
 0x131   :  { %v2203_v45 = vpop.eup %2202 }
 0x132   :  { %v79_v46 = vmul.f32 %v2203_v45, %v2355_v12  ;;  %v94_v50 = vadd.f32 %v1817_v48, %v86_v47 }
 0x134   :  { %v87_v49 = vmul.f32 %v1816_v44, %v79_v46 }
 0x136   :  { %v95_v51 = vadd.f32 %v1817_v48, %v87_v49 }
 0x138   :  { %v96_v52 = vpack.c.bf16 %v95_v51, %v94_v50 }
 0x13a   :  { %307 = vmatmul.mubr.bf16.vlgmr.msra.gmra.mxu0 %v96_v52  ;;  %1995 = vmatmul.mubr.bf16.vlgmr.msra.gmra.mxu1 %v96_v52 }
 0x13b   :  { %2000 = vmatprep.mubr.msk.bf16.mxu1 %vm2260_vm0, %v2258_v3  ;;  %2024 = vmatprep.mubr.msk.bf16.mxu0 %vm2260_vm0, %v2258_v3 }
 0x1fa   :  { %v308_v59 = vpop.f32.mrf.mxu0  ;;  %v351_v60 = vpop.f32.mrf.mxu1 }
 0x1fb   :  { %v309_v12 = vadd.f32 %v308_v59, %v134_v5  ;;  %v352_v15 = vadd.f32 %v351_v60, %v142_v0 }
 0x1fc   :  { %v310_v62 = vpop.f32.mrf.mxu0  ;;  %v1996_v63 = vpop.f32.mrf.mxu1 }
 0x1fd   :  { %v311_v1 = vadd.f32 %v310_v62, %v138_v58  ;;  %v2466_v14 = vpack.c.bf16 %v309_v12, %v309_v12  ;;  %v2475_v18 = vpack.c.bf16 %v352_v15, %v352_v15 }
 0x1fe   :  { %v312_v2 = vpop.f32.mrf.mxu0  ;;  %v354_v4 = vpop.f32.mrf.mxu1 }
 0x1ff   :  { %v2457_v6 = vpack.c.bf16 %v311_v1, %v311_v1  ;;  %v355_v7 = vadd.f32 %v354_v4, %v142_v0  ;;  %v313_v17 = vadd.f32 %v312_v2, %v134_v5  ;;  %v488_v20 = vsel %vm486_vm2, %v2475_v18, 0 }
 0x200   :  { %v314_v8 = vpop.f32.mrf.mxu0  ;;  %v1997_v9 = vpop.f32.mrf.mxu1 }
 0x201   :  { %v315_v10 = vadd.f32 %v314_v8, %v138_v58  ;;  %v372_v11 = vsel %vm367_vm1, %v2457_v6, 0  ;;  %v2477_v19 = vpack.c.bf16 %v313_v17, %v313_v17  ;;  %v2501_v35 = vpack.c.bf16 %v355_v7, %v355_v7 }
 0x202   :  { %1999 = vmatpush3.bf16.xpose.msra.mxu1 %v372_v11 }
 0x203   :  { %v2461_v13 = vpack.c.bf16 %v315_v10, %v315_v10  ;;  %2004 = vmatprep.subr.bf16.mxu1 %v2258_v3  ;;  %v534_v48 = vsel %vm486_vm2, %v2501_v35, 0 }
 0x205   :  { %638 = vrot.lane.b32.xlu1 %v2461_v13, %s2261_s2  ;;  %v418_v16 = vsel %vm367_vm1, %v2461_v13, 0 }
 0x209   :  { %2001 = vmatmul.mubr.msk.bf16.vlgmr.msra.gmra.mxu1 %vm367_vm1, %v2466_v14 }
 0x20a   :  { %2005 = vmatpush3.bf16.xpose.msra.mxu1 %v418_v16  ;;  %2006 = vmatprep.mubr.msk.bf16.mxu1 %vm2260_vm0, %v2258_v3 }
 0x20b   :  { %2010 = vmatprep.subr.bf16.mxu1 %v2258_v3 }
 0x211   :  { %2007 = vmatmul.mubr.msk.bf16.vlgmr.msra.gmra.mxu1 %vm367_vm1, %v2477_v19 }
 0x212   :  { %2011 = vmatpush3.bf16.msra.mxu1 %v488_v20  ;;  %2012 = vmatprep.mubr.msk.bf16.mxu1 %vm2260_vm0, %v2258_v3 }
 0x213   :  { %2016 = vmatprep.subr.bf16.mxu1 %v2258_v3 }
 0x277   :  { %v639_v39 = vpop.permute.xlu1 %638 }
 0x278   :  { %v644_v52 = vsel %vm367_vm1, %v639_v39, 0 }
 0x2c9   :  { %v408_v22 = vpop.f32.mrf.mxu1 }
 0x2ca   :  { %v460_v23 = vsel %vm366_vm3, %v408_v22, -1e+30 }
 0x2cb   :  { %v2002_v24 = vpop.f32.mrf.mxu1  ;;  %v463_v25 = vsel %vm462_vm4, %v460_v23, -inf }
 0x2cc   :  { %464 = vmax.xlane.f32.xlu0 %v463_v25 }
 0x2cd   :  { %v411_v26 = vpop.f32.mrf.mxu1 }
 0x2cf   :  { %v2003_v28 = vpop.f32.mrf.mxu1 }
 0x2d1   :  { %v454_v29 = vpop.f32.mrf.mxu1 }
 0x2d2   :  { %v461_v30 = vsel %vm366_vm3, %v454_v29, -1e+30 }
 0x2d3   :  { %v2008_v31 = vpop.f32.mrf.mxu1  ;;  %v466_v32 = vsel %vm462_vm4, %v461_v30, -inf }
 0x2d4   :  { %467 = vmax.xlane.f32.xlu1 %v466_v32 }
 0x2d5   :  { %v457_v33 = vpop.f32.mrf.mxu1 }
 0x2d7   :  { %v2009_v34 = vpop.f32.mrf.mxu1 }
 0x2e2   :  { %586 = vrot.lane.b32.xlu0 %v2457_v6, %s2261_s2 }
 0x2e5   :  { %583 = vrot.lane.b32.xlu1 %v2466_v14, %s2261_s2 }
 0x2e9   :  { %635 = vrot.lane.b32.xlu1 %v2477_v19, %s2261_s2 }
 0x2ed   :  { %758 = vrot.lane.b32.xlu1 %v2501_v35, %s2261_s2 }
 0x355   :  { %v465_v36 = vpop.xlane.xlu0 %464 }
 0x356   :  { %v469_v37 = vsub.f32 %v460_v23, %v465_v36 }
 0x358   :  { %v471_v38 = vmul.f32 1.442695, %v469_v37 }
 0x359   :  { %v587_v40 = vpop.permute.xlu0 %586 }
 0x35a   :  { %2204 = vpow2.f32 %v471_v38  ;;  %v592_v41 = vsel %vm367_vm1, %v587_v40, 0 }
 0x35b   :  { %2023 = vmatpush3.bf16.xpose.msra.mxu0 %v592_v41 }
 0x35c   :  { %2034 = vmatprep.subr.bf16.mxu0 %v2258_v3 }
 0x35d   :  { %v468_v42 = vpop.xlane.xlu1 %467 }
 0x35e   :  { %v470_v43 = vsub.f32 %v461_v30, %v468_v42 }
 0x360   :  { %v473_v44 = vmul.f32 1.442695, %v470_v43 }
 0x361   :  { %v584_v45 = vpop.permute.xlu1 %583 }
 0x362   :  { %2206 = vpow2.f32 %v473_v44  ;;  %2025 = vmatmul.mubr.msk.bf16.vlgmr.msra.gmra.mxu0 %vm367_vm1, %v584_v45 }
 0x363   :  { %2036 = vmatprep.mubr.msk.bf16.mxu0 %vm2260_vm0, %v2258_v3 }
 0x365   :  { %v636_v51 = vpop.permute.xlu1 %635 }
 0x367   :  { %v2510_v46 = vpop.eup %2204 }
 0x368   :  { %v481_v47 = vpack.c.bf16 %v2510_v46, %v2510_v46 }
 0x369   :  { %v759_v53 = vpop.permute.xlu1 %758 }
 0x36a   :  { %2013 = vmatmul.mubr.msk.bf16.vlgmr.msra.gmra.mxu1 %vm462_vm4, %v481_v47  ;;  %v764_v56 = vsel %vm486_vm2, %v759_v53, 0 }
 0x36b   :  { %2017 = vmatpush3.bf16.msra.mxu1 %v534_v48  ;;  %2018 = vmatprep.mubr.msk.bf16.mxu1 %vm2260_vm0, %v2258_v3 }
 0x36c   :  { %2028 = vmatprep.subr.bf16.mxu1 %v2258_v3 }
 0x36f   :  { %v2520_v49 = vpop.eup %2206 }
 0x370   :  { %v482_v50 = vpack.c.bf16 %v2520_v49, %v2520_v49 }
 0x372   :  { %2019 = vmatmul.mubr.msk.bf16.vlgmr.msra.gmra.mxu1 %vm462_vm4, %v482_v50 }
 0x373   :  { %2029 = vmatpush3.bf16.xpose.msra.mxu1 %v644_v52  ;;  %2030 = vmatprep.mubr.msk.bf16.mxu1 %vm2260_vm0, %v2258_v3 }
 0x374   :  { %2040 = vmatprep.subr.bf16.mxu1 %v2258_v3 }
 0x37a   :  { %2031 = vmatmul.mubr.msk.bf16.vlgmr.msra.gmra.mxu1 %vm367_vm1, %v636_v51 }
 0x37b   :  { %2041 = vmatpush3.bf16.msra.mxu1 %v764_v56  ;;  %2042 = vmatprep.mubr.msk.bf16.mxu1 %vm2260_vm0, %v2258_v3 }
 0x37c   :  { %2052 = vmatprep.subr.bf16.mxu1 %v2258_v3 }
 0x422   :  { %v628_v57 = vpop.f32.mrf.mxu0 }
 0x423   :  { %v686_v58 = vsel %vm366_vm3, %v628_v57, -1e+30 }
 0x424   :  { %v2026_v59 = vpop.f32.mrf.mxu0  ;;  %v688_v60 = vsel %vm462_vm4, %v686_v58, -inf }
 0x425   :  { %689 = vmax.xlane.f32.xlu0 %v688_v60 }
 0x426   :  { %v631_v62 = vpop.f32.mrf.mxu0 }
 0x428   :  { %v2027_v63 = vpop.f32.mrf.mxu0 }
 0x42a   :  { %v2537_v0 = vpop.f32.mrf.mxu1 }
 0x42c   :  { %v2014_v1 = vpop.f32.mrf.mxu1 }
 0x42e   :  { %v527_v2 = vpop.f32.mrf.mxu1 }
 0x430   :  { %v2015_v4 = vpop.f32.mrf.mxu1 }
 0x432   :  { %v2539_v5 = vpop.f32.mrf.mxu1 }
 0x434   :  { %v2020_v7 = vpop.f32.mrf.mxu1 }
 0x436   :  { %v573_v8 = vpop.f32.mrf.mxu1 }
 0x438   :  { %v2021_v9 = vpop.f32.mrf.mxu1 }
 0x43a   :  { %v680_v10 = vpop.f32.mrf.mxu1 }
 0x43b   :  { %v687_v11 = vsel %vm366_vm3, %v680_v10, -1e+30  ;;  %709 = vrot.lane.b32.xlu0 %v2475_v18, %s2261_s2 }
 0x43c   :  { %v2032_v12 = vpop.f32.mrf.mxu1  ;;  %v691_v15 = vsel %vm462_vm4, %v687_v11, -inf }
 0x43d   :  { %692 = vmax.xlane.f32.xlu1 %v691_v15 }
 0x43e   :  { %v683_v16 = vpop.f32.mrf.mxu1 }
 0x43f   :  { %823 = vrot.lane.b32.xlu0 %v2457_v6, %s2262_s4 }
 0x440   :  { %v2033_v17 = vpop.f32.mrf.mxu1 }
 0x443   :  { %821 = vrot.lane.b32.xlu0 %v2466_v14, %s2262_s4 }
 0x44e   :  { %873 = vrot.lane.b32.xlu1 %v2461_v13, %s2262_s4 }
 0x452   :  { %871 = vrot.lane.b32.xlu1 %v2477_v19, %s2262_s4 }
 0x456   :  { %991 = vrot.lane.b32.xlu1 %v2501_v35, %s2262_s4 }
 0x4ae   :  { %v690_v20 = vpop.xlane.xlu0 %689 }
 0x4af   :  { %v694_v22 = vsub.f32 %v686_v58, %v690_v20 }
 0x4b1   :  { %v696_v23 = vmul.f32 1.442695, %v694_v22 }
 0x4b2   :  { %v710_v24 = vpop.permute.xlu0 %709 }
 0x4b3   :  { %2208 = vpow2.f32 %v696_v23  ;;  %v715_v25 = vsel %vm486_vm2, %v710_v24, 0 }
 0x4b4   :  { %2035 = vmatpush3.bf16.msra.mxu0 %v715_v25 }
 0x4b5   :  { %2046 = vmatprep.subr.bf16.mxu0 %v2258_v3 }
 0x4b6   :  { %v824_v28 = vpop.permute.xlu0 %823 }
 0x4b7   :  { %v829_v30 = vsel %vm367_vm1, %v824_v28, 0 }
 0x4ba   :  { %v822_v34 = vpop.permute.xlu0 %821 }
 0x4c0   :  { %v2558_v26 = vpop.eup %2208 }
 0x4c1   :  { %v706_v29 = vpack.c.bf16 %v2558_v26, %v2558_v26 }
 0x4c3   :  { %2037 = vmatmul.mubr.msk.bf16.vlgmr.msra.gmra.mxu0 %vm462_vm4, %v706_v29 }
 0x4c4   :  { %2047 = vmatpush3.bf16.xpose.msra.mxu0 %v829_v30  ;;  %2048 = vmatprep.mubr.msk.bf16.mxu0 %vm2260_vm0, %v2258_v3 }
 0x4c5   :  { %2058 = vmatprep.subr.bf16.mxu0 %v2258_v3 }
 0x4c6   :  { %v693_v31 = vpop.xlane.xlu1 %692 }
 0x4c7   :  { %v695_v32 = vsub.f32 %v687_v11, %v693_v31 }
 0x4c9   :  { %v698_v33 = vmul.f32 1.442695, %v695_v32 }
 0x4ca   :  { %v874_v36 = vpop.permute.xlu1 %873 }
 0x4cb   :  { %2210 = vpow2.f32 %v698_v33  ;;  %2049 = vmatmul.mubr.msk.bf16.vlgmr.msra.gmra.mxu0 %vm367_vm1, %v822_v34  ;;  %v879_v40 = vsel %vm367_vm1, %v874_v36, 0 }
 0x4cc   :  { %2060 = vmatprep.mubr.msk.bf16.mxu0 %vm2260_vm0, %v2258_v3 }
 0x4ce   :  { %v872_v39 = vpop.permute.xlu1 %871 }
 0x4d2   :  { %v992_v41 = vpop.permute.xlu1 %991 }
 0x4d3   :  { %v997_v42 = vsel %vm486_vm2, %v992_v41, 0 }
 0x4d8   :  { %v2570_v37 = vpop.eup %2210 }
 0x4d9   :  { %v707_v38 = vpack.c.bf16 %v2570_v37, %v2570_v37 }
 0x4db   :  { %2043 = vmatmul.mubr.msk.bf16.vlgmr.msra.gmra.mxu1 %vm462_vm4, %v707_v38 }
 0x4dc   :  { %2053 = vmatpush3.bf16.xpose.msra.mxu1 %v879_v40  ;;  %2054 = vmatprep.mubr.msk.bf16.mxu1 %vm2260_vm0, %v2258_v3 }
 0x4dd   :  { %2064 = vmatprep.subr.bf16.mxu1 %v2258_v3 }
 0x4e3   :  { %2055 = vmatmul.mubr.msk.bf16.vlgmr.msra.gmra.mxu1 %vm367_vm1, %v872_v39 }
 0x4e4   :  { %2065 = vmatpush3.bf16.msra.mxu1 %v997_v42  ;;  %2066 = vmatprep.mubr.msk.bf16.mxu1 %vm2260_vm0, %v2258_v3 }
 0x4e5   :  { %2076 = vmatprep.subr.bf16.mxu1 %v2258_v3 }
 0x583   :  { %v2584_v43 = vpop.f32.mrf.mxu0 }
 0x585   :  { %v2038_v44 = vpop.f32.mrf.mxu0 }
 0x587   :  { %v754_v45 = vpop.f32.mrf.mxu0 }
 0x589   :  { %v2039_v47 = vpop.f32.mrf.mxu0 }
 0x58b   :  { %v865_v48 = vpop.f32.mrf.mxu0 }
 0x58c   :  { %v921_v50 = vsel %vm366_vm3, %v865_v48, -1e+30 }
 0x58d   :  { %v2050_v51 = vpop.f32.mrf.mxu0  ;;  %v923_v52 = vsel %vm462_vm4, %v921_v50, -inf }
 0x58e   :  { %924 = vmax.xlane.f32.xlu0 %v923_v52 }
 0x58f   :  { %v868_v53 = vpop.f32.mrf.mxu0 }
 0x591   :  { %v2051_v56 = vpop.f32.mrf.mxu0 }
 0x592   :  { %v700_v56 = vsel %vm462_vm4, %v2558_v26, 0.0 }
 0x59b   :  { %v2589_v57 = vpop.f32.mrf.mxu1 }
 0x59d   :  { %v2044_v58 = vpop.f32.mrf.mxu1 }
 0x59f   :  { %v803_v59 = vpop.f32.mrf.mxu1 }
 0x5a1   :  { %v2045_v60 = vpop.f32.mrf.mxu1 }
 0x5a3   :  { %v915_v62 = vpop.f32.mrf.mxu1 }
 0x5a4   :  { %v922_v63 = vsel %vm366_vm3, %v915_v62, -1e+30  ;;  %943 = vrot.lane.b32.xlu0 %v2475_v18, %s2262_s4 }
 0x5a5   :  { %v2056_v1 = vpop.f32.mrf.mxu1  ;;  %v926_v2 = vsel %vm462_vm4, %v922_v63, -inf }
 0x5a6   :  { %927 = vmax.xlane.f32.xlu1 %v926_v2 }
 0x5a7   :  { %v918_v4 = vpop.f32.mrf.mxu1 }
 0x5a8   :  { %1056 = vrot.lane.b32.xlu0 %v2457_v6, %s2263_s30 }
 0x5a9   :  { %v2057_v7 = vpop.f32.mrf.mxu1 }
 0x5ac   :  { %1054 = vrot.lane.b32.xlu0 %v2466_v14, %s2263_s30 }
 0x5b7   :  { %1106 = vrot.lane.b32.xlu1 %v2461_v13, %s2263_s30 }
 0x5bb   :  { %1104 = vrot.lane.b32.xlu1 %v2477_v19, %s2263_s30 }
 0x617   :  { %v925_v8 = vpop.xlane.xlu0 %924 }
 0x618   :  { %v929_v9 = vsub.f32 %v921_v50, %v925_v8 }
 0x61a   :  { %v931_v10 = vmul.f32 1.442695, %v929_v9 }
 0x61b   :  { %v944_v11 = vpop.permute.xlu0 %943 }
 0x61c   :  { %2212 = vpow2.f32 %v931_v10  ;;  %v949_v12 = vsel %vm486_vm2, %v944_v11, 0 }
 0x61d   :  { %2059 = vmatpush3.bf16.msra.mxu0 %v949_v12 }
 0x61e   :  { %2070 = vmatprep.subr.bf16.mxu0 %v2258_v3 }
 0x61f   :  { %v1057_v15 = vpop.permute.xlu0 %1056 }
 0x620   :  { %v1062_v14 = vsel %vm367_vm1, %v1057_v15, 0 }
 0x623   :  { %v1055_v20 = vpop.permute.xlu0 %1054 }
 0x629   :  { %v2213_v6 = vpop.eup %2212 }
 0x62a   :  { %v941_v16 = vpack.c.bf16 %v2213_v6, %v2213_v6  ;;  %v935_v58 = vsel %vm462_vm4, %v2213_v6, 0.0 }
 0x62c   :  { %2061 = vmatmul.mubr.msk.bf16.vlgmr.msra.gmra.mxu0 %vm462_vm4, %v941_v16 }
 0x62d   :  { %2071 = vmatpush3.bf16.xpose.msra.mxu0 %v1062_v14  ;;  %2072 = vmatprep.mubr.msk.bf16.mxu0 %vm2260_vm0, %v2258_v3 }
 0x62e   :  { %2082 = vmatprep.subr.bf16.mxu0 %v2258_v3 }
 0x62f   :  { %v928_v13 = vpop.xlane.xlu1 %927 }
 0x630   :  { %v930_v19 = vsub.f32 %v922_v63, %v928_v13 }
 0x632   :  { %v933_v17 = vmul.f32 1.442695, %v930_v19 }
 0x633   :  { %v1107_v23 = vpop.permute.xlu1 %1106 }
 0x634   :  { %2214 = vpow2.f32 %v933_v17  ;;  %2073 = vmatmul.mubr.msk.bf16.vlgmr.msra.gmra.mxu0 %vm367_vm1, %v1055_v20  ;;  %v1112_v25 = vsel %vm367_vm1, %v1107_v23, 0 }
 0x635   :  { %2084 = vmatprep.mubr.msk.bf16.mxu0 %vm2260_vm0, %v2258_v3 }
 0x637   :  { %v1105_v28 = vpop.permute.xlu1 %1104 }
 0x641   :  { %v2215_v22 = vpop.eup %2214 }
 0x642   :  { %v942_v24 = vpack.c.bf16 %v2215_v22, %v2215_v22  ;;  %v938_v21 = vsel %vm462_vm4, %v2215_v22, 0.0 }
 0x644   :  { %2067 = vmatmul.mubr.msk.bf16.vlgmr.msra.gmra.mxu1 %vm462_vm4, %v942_v24 }
 0x645   :  { %2077 = vmatpush3.bf16.xpose.msra.mxu1 %v1112_v25  ;;  %2078 = vmatprep.mubr.msk.bf16.mxu1 %vm2260_vm0, %v2258_v3 }
 0x646   :  { %2088 = vmatprep.subr.bf16.mxu1 %v2258_v3 }
 0x64c   :  { %2079 = vmatmul.mubr.msk.bf16.vlgmr.msra.gmra.mxu1 %vm367_vm1, %v1105_v28 }
 0x64d   :  { %2090 = vmatprep.mubr.msk.bf16.mxu1 %vm2260_vm0, %v2258_v3 }
 0x6ec   :  { %v2622_v29 = vpop.f32.mrf.mxu0 }
 0x6ee   :  { %v2062_v30 = vpop.f32.mrf.mxu0 }
 0x6f0   :  { %v988_v31 = vpop.f32.mrf.mxu0 }
 0x6f2   :  { %v2063_v32 = vpop.f32.mrf.mxu0 }
 0x6f4   :  { %v1098_v33 = vpop.f32.mrf.mxu0 }
 0x6f5   :  { %v1154_v34 = vsel %vm366_vm3, %v1098_v33, -1e+30 }
 0x6f6   :  { %v2074_v36 = vpop.f32.mrf.mxu0  ;;  %v1156_v38 = vsel %vm462_vm4, %v1154_v34, -inf }
 0x6f7   :  { %1157 = vmax.xlane.f32.xlu0 %v1156_v38 }
 0x6f8   :  { %v1101_v39 = vpop.f32.mrf.mxu0 }
 0x6fa   :  { %v2075_v40 = vpop.f32.mrf.mxu0 }
 0x704   :  { %v2627_v41 = vpop.f32.mrf.mxu1 }
 0x706   :  { %v2068_v42 = vpop.f32.mrf.mxu1 }
 0x707   :  { %v2155_v42 = vld [vmem:[%s2843_s5 + $0x20] sm:$0xff]  }
 0x708   :  { %v1036_v44 = vpop.f32.mrf.mxu1 }
 0x70a   :  { %v2069_v45 = vpop.f32.mrf.mxu1 }
 0x70c   :  { %v1148_v47 = vpop.f32.mrf.mxu1 }
 0x70d   :  { %v1155_v48 = vsel %vm366_vm3, %v1148_v47, -1e+30  ;;  %1176 = vrot.lane.b32.xlu0 %v2475_v18, %s2263_s30  ;;  %v703_v18 = vsel %vm462_vm4, %v2570_v37, 0.0  ;;  %v475_v37 = vsel %vm462_vm4, %v2510_v46, 0.0  ;;  %v478_v46 = vsel %vm462_vm4, %v2520_v49, 0.0 }
 0x70e   :  { %v2080_v50 = vpop.f32.mrf.mxu1  ;;  %v1159_v51 = vsel %vm462_vm4, %v1155_v48, -inf }
 0x70f   :  { %1160 = vmax.xlane.f32.xlu1 %v1159_v51  ;;  %v2157_v51 = vld [vmem:[%s2843_s5 + $0x10] sm:$0xff]  }
 0x710   :  { %v1151_v52 = vpop.f32.mrf.mxu1 }
 0x711   :  { %v2158_v52 = vld [vmem:[%s2843_s5 + $0x8] sm:$0xff]  }
 0x712   :  { %v2081_v53 = vpop.f32.mrf.mxu1 }
 0x713   :  { %v2159_v53 = vld [vmem:[%s2843_s5] sm:$0xff]  }
 0x720   :  { %1224 = vrot.lane.b32.xlu1 %v2501_v35, %s2263_s30 }
 0x72c   :  { %701 = vadd.xlane.f32.xlu0 %v700_v56 }
 0x730   :  { %936 = vadd.xlane.f32.xlu0 %v935_v58 }
 0x734   :  { %939 = vadd.xlane.f32.xlu0 %v938_v21 }
 0x744   :  { %704 = vadd.xlane.f32.xlu1 %v703_v18 }
 0x780   :  { %v1158_v59 = vpop.xlane.xlu0 %1157 }
 0x781   :  { %v1162_v60 = vsub.f32 %v1154_v34, %v1158_v59  ;;  %v2152_v34 = vld [vmem:[%s2843_s5 + $0x38] sm:$0xff]  }
 0x783   :  { %v1164_v62 = vmul.f32 1.442695, %v1162_v60 }
 0x784   :  { %v1177_v63 = vpop.permute.xlu0 %1176 }
 0x785   :  { %2216 = vpow2.f32 %v1164_v62  ;;  %v1182_v35 = vsel %vm486_vm2, %v1177_v63, 0 }
 0x786   :  { %2083 = vmatpush3.bf16.msra.mxu0 %v1182_v35 }
 0x787   :  { %2094 = vmatprep.subr.bf16.mxu0 %v2258_v3 }
 0x792   :  { %v2217_v26 = vpop.eup %2216 }
 0x793   :  { %v1168_v1 = vsel %vm462_vm4, %v2217_v26, 0.0  ;;  %v1174_v2 = vpack.c.bf16 %v2217_v26, %v2217_v26 }
 0x794   :  { %1169 = vadd.xlane.f32.xlu0 %v1168_v1 }
 0x795   :  { %2085 = vmatmul.mubr.msk.bf16.vlgmr.msra.gmra.mxu0 %vm462_vm4, %v1174_v2 }
 0x796   :  { %2110 = vmatprep.mubr.msk.bf16.mxu0 %vm2260_vm0, %v2258_v3  ;;  %2095 = vmatpush3.bf16.msra.mxu0 %v2152_v34  ;;  %v2183_v34 = vld [vmem:[%s2845_s9 + $0x4] ss:$8 sps:$4 sm:$0xff]  }
 0x797   :  { %2096 = vmatprep.subr.bf16.mxu0 %v2258_v3 }
 0x798   :  { %476 = vadd.xlane.f32.xlu0 %v475_v37  ;;  %v1161_v4 = vpop.xlane.xlu1 %1160 }
 0x799   :  { %v1163_v7 = vsub.f32 %v1155_v48, %v1161_v4  ;;  %v2156_v48 = vld [vmem:[%s2843_s5 + $0x18] sm:$0xff]  }
 0x79b   :  { %v1166_v8 = vmul.f32 1.442695, %v1163_v7  ;;  %v2256_v7 = vld [vmem:[%s2838_s0] sm:$0xff] }
 0x79c   :  { %v1225_v9 = vpop.permute.xlu1 %1224 }
 0x79d   :  { %2218 = vpow2.f32 %v1166_v8  ;;  %v1230_v10 = vsel %vm486_vm2, %v1225_v9, 0 }
 0x79e   :  { %2089 = vmatpush3.bf16.msra.mxu1 %v1230_v10 }
 0x7aa   :  { %v2219_v11 = vpop.eup %2218 }
 0x7ab   :  { %v1171_v12 = vsel %vm462_vm4, %v2219_v11, 0.0  ;;  %v1175_v6 = vpack.c.bf16 %v2219_v11, %v2219_v11 }
 0x7ac   :  { %1172 = vadd.xlane.f32.xlu1 %v1171_v12  ;;  %v2257_v12 = vld [vmem:[%s2838_s0 + $0x8] sm:$0xff] }
 0x7ad   :  { %2091 = vmatmul.mubr.msk.bf16.vlgmr.msra.gmra.mxu1 %vm462_vm4, %v1175_v6 }
 0x7ae   :  { %1585 = vmatprep.mubr.bf16.mxu1 %v2259_v27 }
 0x7b0   :  { %479 = vadd.xlane.f32.xlu1 %v478_v46  ;;  %v2160_v46 = vld [vmem:[%s2845_s9 + $0x70] ss:$8 sps:$4 sm:$0xff]  }
 0x7b5   :  { %v702_v15 = vpop.xlane.xlu0 %701 }
 0x7b6   :  { %2220 = vrcp.f32 %v702_v15  ;;  %v2162_v15 = vld [vmem:[%s2845_s9 + $0x74] ss:$8 sps:$4 sm:$0xff]  }
 0x7b7   :  { %1553 = vmatprep.subr.bf16.mxu1 %v2162_v15 }
 0x7b8   :  { %1554 = vmatpush1.bf16.msra.mxu1 %v2160_v46 }
 0x7b9   :  { %v937_v13 = vpop.xlane.xlu0 %936 }
 0x7bd   :  { %v940_v17 = vpop.xlane.xlu0 %939 }
 0x7c3   :  { %v2221_v16 = vpop.eup %2220 }
 0x7c4   :  { %v808_v14 = vmul.f32 %v2221_v16, %v2584_v43 }
 0x7c6   :  { %812 = vrot.lane.b32.xlu0 %v808_v14, %s2263_s30 }
 0x7cd   :  { %v705_v19 = vpop.xlane.xlu1 %704 }
 0x7ce   :  { %2222 = vrcp.f32 %v705_v19 }
 0x7cf   :  { %2224 = vrcp.f32 %v937_v13 }
 0x7d0   :  { %2226 = vrcp.f32 %v940_v17 }
 0x7db   :  { %v2223_v20 = vpop.eup %2222 }
 0x7dc   :  { %v809_v27 = vmul.f32 %v2223_v20, %v2589_v57  ;;  %v2225_v22 = vpop.eup %2224 }
 0x7dd   :  { %v1041_v49 = vmul.f32 %v2225_v22, %v2622_v29  ;;  %v2227_v23 = vpop.eup %2226 }
 0x7de   :  { %814 = vrot.lane.b32.xlu1 %v809_v27, %s2263_s30  ;;  %v1042_v43 = vmul.f32 %v2227_v23, %v2627_v41  ;;  %v2163_v23 = vld [vmem:[%s2845_s9 + $0x60] ss:$8 sps:$4 sm:$0xff]  }
 0x7e2   :  { %1045 = vrot.lane.b32.xlu1 %v1041_v49, %s2262_s4  ;;  %v2165_v49 = vld [vmem:[%s2845_s9 + $0x64] ss:$8 sps:$4 sm:$0xff]  }
 0x7e3   :  { %1555 = vmatprep.subr.bf16.mxu1 %v2165_v49 }
 0x7e4   :  { %1556 = vmatpush1.bf16.msra.mxu1 %v2163_v23 }
 0x7e6   :  { %1047 = vrot.lane.b32.xlu1 %v1042_v43, %s2262_s4  ;;  %v2168_v43 = vld [vmem:[%s2845_s9 + $0x54] ss:$8 sps:$4 sm:$0xff]  }
 0x7e7   :  { %1557 = vmatprep.subr.bf16.mxu1 %v2168_v43 }
 0x81d   :  { %v1170_v24 = vpop.xlane.xlu0 %1169 }
 0x821   :  { %v477_v25 = vpop.xlane.xlu0 %476 }
 0x822   :  { %2228 = vrcp.f32 %v477_v25  ;;  %v2169_v25 = vld [vmem:[%s2845_s9 + $0x40] ss:$8 sps:$4 sm:$0xff]  }
 0x82f   :  { %v2229_v28 = vpop.eup %2228 }
 0x830   :  { %v578_v30 = vmul.f32 %v2229_v28, %v2537_v0  ;;  %v2153_v0 = vld [vmem:[%s2843_s5 + $0x30] sm:$0xff]   ;;  %v2171_v28 = vld [vmem:[%s2845_s9 + $0x44] ss:$8 sps:$4 sm:$0xff]  }
 0x831   :  { %2097 = vmatpush3.bf16.msra.mxu0 %v2153_v0  ;;  %v2181_v0 = vld [vmem:[%s2845_s9] ss:$8 sps:$4 sm:$0xff]  }
 0x832   :  { %580 = vst.msk [vmem:[#allocation3] sm:$0xff] %vm367_vm1, %v578_v30  ;;  %2098 = vmatprep.subr.bf16.mxu0 %v2258_v3  ;;  %v2174_v30 = vld [vmem:[%s2845_s9 + $0x34] ss:$8 sps:$4 sm:$0xff]  }
 0x835   :  { %v1173_v57 = vpop.xlane.xlu1 %1172 }
 0x838   :  { %v813_v31 = vpop.permute.xlu0 %812 }
 0x839   :  { %819 = vst.msk [vmem:[#allocation3] sm:$0xff] %vm818_vm5, %v813_v31  ;;  %v480_v29 = vpop.xlane.xlu1 %479  ;;  %v2177_v31 = vld [vmem:[%s2845_s9 + $0x24] ss:$8 sps:$4 sm:$0xff]  }
 0x83a   :  { %2230 = vrcp.f32 %v480_v29  ;;  %v2175_v29 = vld [vmem:[%s2845_s9 + $0x20] ss:$8 sps:$4 sm:$0xff]  }
 0x83b   :  { %2232 = vrcp.f32 %v1170_v24  ;;  %v2166_v24 = vld [vmem:[%s2845_s9 + $0x50] ss:$8 sps:$4 sm:$0xff]  }
 0x83c   :  { %2234 = vrcp.f32 %v1173_v57  ;;  %1558 = vmatpush1.bf16.msra.mxu1 %v2166_v24  ;;  %v2172_v57 = vld [vmem:[%s2845_s9 + $0x30] ss:$8 sps:$4 sm:$0xff]  }
 0x83d   :  { %1559 = vmatprep.subr.bf16.mxu1 %v2171_v28 }
 0x840   :  { %1560 = vmatpush1.bf16.msra.mxu1 %v2169_v25 }
 0x841   :  { %1561 = vmatprep.subr.bf16.mxu1 %v2174_v30 }
 0x844   :  { %1562 = vmatpush1.bf16.msra.mxu1 %v2172_v57 }
 0x845   :  { %1563 = vmatprep.subr.bf16.mxu1 %v2177_v31 }
 0x847   :  { %v2231_v32 = vpop.eup %2230 }
 0x848   :  { %v579_v33 = vmul.f32 %v2231_v32, %v2539_v5  ;;  %v2154_v5 = vld [vmem:[%s2843_s5 + $0x28] sm:$0xff]   ;;  %v2233_v39 = vpop.eup %2232  ;;  %v2180_v32 = vld [vmem:[%s2845_s9 + $0x14] ss:$8 sps:$4 sm:$0xff]   ;;  %1564 = vmatpush1.bf16.msra.mxu1 %v2175_v29 }
 0x849   :  { %2099 = vmatpush3.bf16.msra.mxu0 %v2154_v5  ;;  %v2235_v56 = vpop.eup %2234  ;;  %1565 = vmatprep.subr.bf16.mxu1 %v2180_v32 }
 0x84a   :  { %581 = vst.msk [vmem:[#allocation3 + $0x8] sm:$0xff] %vm367_vm1, %v579_v33  ;;  %2100 = vmatprep.subr.bf16.mxu0 %v2258_v3  ;;  %v2178_v33 = vld [vmem:[%s2845_s9 + $0x10] ss:$8 sps:$4 sm:$0xff]  }
 0x84c   :  { %1566 = vmatpush1.bf16.msra.mxu1 %v2178_v33 }
 0x84d   :  { %2101 = vmatpush3.bf16.msra.mxu0 %v2155_v42  ;;  %1567 = vmatprep.subr.bf16.mxu1 %v2183_v34 }
 0x84e   :  { %2102 = vmatprep.subr.bf16.mxu0 %v2258_v3 }
 0x850   :  { %v815_v36 = vpop.permute.xlu1 %814  ;;  %1568 = vmatpush1.bf16.msra.mxu1 %v2181_v0 }
 0x851   :  { %820 = vst.msk [vmem:[#allocation3 + $0x8] sm:$0xff] %vm818_vm5, %v815_v36  ;;  %2103 = vmatpush3.bf16.msra.mxu0 %v2156_v48 }
 0x852   :  { %2104 = vmatprep.subr.bf16.mxu0 %v2258_v3 }
 0x854   :  { %v1046_v38 = vpop.permute.xlu1 %1045 }
 0x855   :  { %1052 = vst.msk [vmem:[#allocation3] sm:$0xff] %vm1051_vm6, %v1046_v38  ;;  %v1218_v40 = vpop.f32.mrf.mxu0  ;;  %2105 = vmatpush3.bf16.msra.mxu0 %v2157_v51  ;;  %v1868_v51 = vld [vmem:[%s2847_s8] ss:$0 sm:$0xff] }
 0x856   :  { %v1274_v41 = vmul.f32 %v2233_v39, %v1218_v40  ;;  %2106 = vmatprep.subr.bf16.mxu0 %v2258_v3 }
 0x857   :  { %v2086_v44 = vpop.f32.mrf.mxu0 }
 0x858   :  { %1278 = vrot.lane.b32.xlu0 %v1274_v41, %s2261_s2  ;;  %v1048_v45 = vpop.permute.xlu1 %1047 }
 0x859   :  { %1053 = vst.msk [vmem:[#allocation3 + $0x8] sm:$0xff] %vm1051_vm6, %v1048_v45  ;;  %v1221_v47 = vpop.f32.mrf.mxu0  ;;  %2107 = vmatpush3.bf16.msra.mxu0 %v2158_v52  ;;  %v1867_v45 = vld [vmem:[%s2846_s7] ss:$0 sm:$0xff] }
 0x85a   :  { %2108 = vmatprep.subr.bf16.mxu0 %v2258_v3  ;;  %v1858_v3 = vld [vmem:[%s2844_s6] ss:$0 sm:$0xff] }
 0x85b   :  { %v2087_v50 = vpop.f32.mrf.mxu0 }
 0x85d   :  { %2109 = vmatpush3.bf16.msra.mxu0 %v2159_v53 }
 0x86d   :  { %v1266_v58 = vpop.f32.mrf.mxu1 }
 0x86e   :  { %v1275_v21 = vmul.f32 %v2235_v56, %v1266_v58 }
 0x86f   :  { %v2092_v18 = vpop.f32.mrf.mxu1 }
 0x870   :  { %1280 = vrot.lane.b32.xlu1 %v1275_v21, %s2261_s2  ;;  %v2184_v21 = vld [vmem:[%s2848_s11 + $0x78] sm:$0xff]  }
 0x871   :  { %v1269_v59 = vpop.f32.mrf.mxu1  ;;  %v2185_v18 = vld [vmem:[%s2848_s11 + $0x38] sm:$0xff]   ;;  %1956 = vmatprep.subr.bf16.mxu0 %v2184_v21 }
 0x872   :  { %v2186_v59 = vld [vmem:[%s2848_s11 + $0x70] sm:$0xff]  }
 0x873   :  { %v2093_v60 = vpop.f32.mrf.mxu1 }
 0x874   :  { %v2187_v60 = vld [vmem:[%s2848_s11 + $0x30] sm:$0xff]  }
 0x8ca   :  { %v1279_v62 = vpop.permute.xlu0 %1278 }
 0x8cb   :  { %1285 = vst.msk [vmem:[#allocation3] sm:$0xff] %vm1284_vm7, %v1279_v62  ;;  %v2188_v62 = vld [vmem:[%s2848_s11 + $0x68] sm:$0xff]  }
 0x8d2   :  { %v1287_v35 = vld [vmem:[#allocation3] sm:$0xff] }
 0x8e2   :  { %v1281_v63 = vpop.permute.xlu1 %1280 }
 0x8e3   :  { %1286 = vst.msk [vmem:[#allocation3 + $0x8] sm:$0xff] %vm1284_vm7, %v1281_v63  ;;  %v2189_v63 = vld [vmem:[%s2848_s11 + $0x28] sm:$0xff]  }
 0x8ea   :  { %v1288_v26 = vld [vmem:[#allocation3 + $0x8] sm:$0xff] }
 0x8eb   :  { %v1289_v1 = vpack.c.bf16 %v1288_v26, %v1287_v35  ;;  %v2190_v35 = vld [vmem:[%s2848_s11 + $0x60] sm:$0xff]  }
 0x8ec   :  { %v2191_v26 = vld [vmem:[%s2848_s11 + $0x20] sm:$0xff]  }
 0x8ed   :  { %2111 = vmatmul.mubr.bf16.vlgmr.msra.gmra.mxu0 %v1289_v1  ;;  %v2192_v1 = vld [vmem:[%s2848_s11 + $0x58] sm:$0xff]  }
 0x8ee   :  { %1957 = vmatpush3.bf16.msra.mxu0 %v2185_v18 }
 0x8ef   :  { %1958 = vmatprep.subr.bf16.mxu0 %v2186_v59 }
 0x8f2   :  { %1959 = vmatpush3.bf16.msra.mxu0 %v2187_v60 }
 0x8f3   :  { %1960 = vmatprep.subr.bf16.mxu0 %v2188_v62 }
 0x8f6   :  { %1961 = vmatpush3.bf16.msra.mxu0 %v2189_v63 }
 0x8f7   :  { %1962 = vmatprep.subr.bf16.mxu0 %v2190_v35 }
 0x8fa   :  { %1963 = vmatpush3.bf16.msra.mxu0 %v2191_v26 }
 0x8fb   :  { %1964 = vmatprep.subr.bf16.mxu0 %v2192_v1 }
 0x9ad   :  { %v1395_v2 = vpop.f32.mrf.mxu0 }
 0x9ae   :  { %v1396_v37 = vadd.f32 %v1858_v3, %v1395_v2  ;;  %v2194_v2 = vld [vmem:[%s2848_s11 + $0x50] sm:$0xff]  }
 0x9af   :  { %v2112_v4 = vpop.f32.mrf.mxu0 }
 0x9b0   :  { %v2707_v8 = vadd.f32 %v2256_v7, %v1396_v37  ;;  %v2195_v37 = vld [vmem:[%s2848_s11 + $0x10] sm:$0xff]   ;;  %v2196_v4 = vld [vmem:[%s2848_s11 + $0x48] sm:$0xff]  }
 0x9b1   :  { %v1398_v9 = vpop.f32.mrf.mxu0  ;;  %v2197_v7 = vld [vmem:[%s2848_s11 + $0x8] sm:$0xff]  }
 0x9b2   :  { %v1399_v10 = vadd.f32 %v1858_v3, %v1398_v9  ;;  %1406 = vadd.xlane.f32.xlu0 %v2707_v8  ;;  %v2193_v3 = vld [vmem:[%s2848_s11 + $0x18] sm:$0xff]   ;;  %v2198_v9 = vld [vmem:[%s2848_s11 + $0x40] sm:$0xff]  }
 0x9b3   :  { %v2113_v11 = vpop.f32.mrf.mxu0  ;;  %1965 = vmatpush3.bf16.msra.mxu0 %v2193_v3 }
 0x9b4   :  { %v2713_v6 = vadd.f32 %v2257_v12, %v1399_v10  ;;  %1966 = vmatprep.subr.bf16.mxu0 %v2194_v2  ;;  %v2199_v10 = vld [vmem:[%s2848_s11] sm:$0xff]  }
 0x9b5   :  { %v1461_v11 = vld [vmem:[%s2849_s10] sm:$0x3] }
 0x9b6   :  { %1408 = vadd.xlane.f32.xlu1 %v2713_v6  ;;  %v1466_v12 = vrot.slane %v1461_v11, %v133_v61  ;;  %v1470_v46 = vrot.slane %v1461_v11, %v137_v55 }
 0x9b7   :  { %1967 = vmatpush3.bf16.msra.mxu0 %v2195_v37 }
 0x9b8   :  { %1968 = vmatprep.subr.bf16.mxu0 %v2196_v4 }
 0x9bb   :  { %1969 = vmatpush3.bf16.msra.mxu0 %v2197_v7 }
 0x9bc   :  { %1970 = vmatprep.subr.bf16.mxu0 %v2198_v9 }
 0x9bf   :  { %1971 = vmatpush3.bf16.msra.mxu0 %v2199_v10 }
 0xa3b   :  { %v1407_v16 = vpop.xlane.xlu0 %1406 }
 0xa3c   :  { %v1410_v14 = vmul.f32 0.0078125, %v1407_v16 }
 0xa3e   :  { %v1412_v13 = vsub.f32 %v2707_v8, %v1410_v14 }
 0xa3f   :  { %v1409_v19 = vpop.xlane.xlu1 %1408 }
 0xa40   :  { %v1411_v17 = vmul.f32 0.0078125, %v1409_v19  ;;  %v1414_v20 = vmul.f32 %v1412_v13, %v1412_v13 }
 0xa42   :  { %v1413_v27 = vsub.f32 %v2713_v6, %v1411_v17  ;;  %1416 = vadd.xlane.f32.xlu0 %v1414_v20 }
 0xa44   :  { %v1415_v22 = vmul.f32 %v1413_v27, %v1413_v27 }
 0xa46   :  { %1418 = vadd.xlane.f32.xlu0 %v1415_v22 }
 0xacb   :  { %v1417_v36 = vpop.xlane.xlu0 %1416 }
 0xacc   :  { %v1420_v5 = vmul.f32 0.0078125, %v1417_v36 }
 0xace   :  { %v1422_v38 = vadd.f32 1e-05, %v1420_v5 }
 0xacf   :  { %v1419_v39 = vpop.xlane.xlu0 %1418 }
 0xad0   :  { %2236 = vrsqrt.f32 %v1422_v38  ;;  %v1421_v40 = vmul.f32 0.0078125, %v1419_v39 }
 0xad2   :  { %v1423_v41 = vadd.f32 1e-05, %v1421_v40 }
 0xad4   :  { %2238 = vrsqrt.f32 %v1423_v41 }
 0xadd   :  { %v2237_v42 = vpop.eup %2236 }
 0xade   :  { %v1426_v44 = vmul.f32 %v2237_v42, %v1412_v13 }
 0xae0   :  { %v1434_v50 = vmul.f32 %v1867_v45, %v1426_v44 }
 0xae1   :  { %v2239_v47 = vpop.eup %2238 }
 0xae2   :  { %v1427_v48 = vmul.f32 %v2239_v47, %v1413_v27  ;;  %v1442_v53 = vadd.f32 %v1868_v51, %v1434_v50  ;;  %v1889_v47 = vld [vmem:[%s2850_s12] ss:$0 sm:$0xff] }
 0xae4   :  { %v1435_v52 = vmul.f32 %v1867_v45, %v1427_v48 }
 0xae6   :  { %v1443_v56 = vadd.f32 %v1868_v51, %v1435_v52 }
 0xae8   :  { %v1444_v58 = vpack.c.bf16 %v1443_v56, %v1442_v53 }
 0xaea   :  { %1586 = vmatmul.mubr.bf16.vlgmr.msra.gmra.mxu1 %v1444_v58 }
 0xbaa   :  { %v1587_v15 = vpop.f32.mrf.mxu1 }
 0xbab   :  { %v1588_v16 = vadd.f32 %v1587_v15, %v1466_v12 }
 0xbac   :  { %v1589_v14 = vpop.f32.mrf.mxu1 }
 0xbad   :  { %v1885_v13 = vmul.f32 -1.702, %v1588_v16  ;;  %v1590_v19 = vadd.f32 %v1589_v14, %v1470_v46 }
 0xbae   :  { %v1591_v17 = vpop.f32.mrf.mxu1 }
 0xbaf   :  { %v1604_v20 = vmul.f32 1.442695, %v1885_v13  ;;  %v1886_v27 = vmul.f32 -1.702, %v1590_v19  ;;  %v1592_v22 = vadd.f32 %v1591_v17, %v1466_v12 }
 0xbb0   :  { %v1593_v49 = vpop.f32.mrf.mxu1 }
 0xbb1   :  { %v1606_v23 = vmul.f32 1.442695, %v1886_v27  ;;  %v1887_v43 = vmul.f32 -1.702, %v1592_v22  ;;  %v1594_v24 = vadd.f32 %v1593_v49, %v1470_v46  ;;  %2240 = vpow2.f32 %v1604_v20 }
 0xbb3   :  { %2242 = vpow2.f32 %v1606_v23  ;;  %v1608_v25 = vmul.f32 1.442695, %v1887_v43  ;;  %v1888_v61 = vmul.f32 -1.702, %v1594_v24 }
 0xbb5   :  { %2244 = vpow2.f32 %v1608_v25  ;;  %v1610_v54 = vmul.f32 1.442695, %v1888_v61 }
 0xbb7   :  { %2246 = vpow2.f32 %v1610_v54 }
 0xbbe   :  { %v2241_v55 = vpop.eup %2240 }
 0xbbf   :  { %v1612_v31 = vadd.f32 1.0, %v2241_v55 }
 0xbc0   :  { %v2243_v28 = vpop.eup %2242 }
 0xbc1   :  { %v1613_v30 = vadd.f32 1.0, %v2243_v28 }
 0xbc2   :  { %v2245_v57 = vpop.eup %2244 }
 0xbc3   :  { %v1614_v29 = vadd.f32 1.0, %v2245_v57  ;;  %2248 = vrcp.f32 %v1613_v30 }
 0xbc4   :  { %v2247_v32 = vpop.eup %2246 }
 0xbc5   :  { %2250 = vrcp.f32 %v1614_v29  ;;  %v1615_v33 = vadd.f32 1.0, %v2247_v32 }
 0xbc6   :  { %2252 = vrcp.f32 %v1612_v31 }
 0xbc7   :  { %2254 = vrcp.f32 %v1615_v33 }
 0xbd0   :  { %v2249_v34 = vpop.eup %2248 }
 0xbd1   :  { %v1625_v39 = vmul.f32 %v2249_v34, %v1590_v19 }
 0xbd2   :  { %v2251_v0 = vpop.eup %2250 }
 0xbd3   :  { %v2253_v36 = vpop.eup %2252  ;;  %v1626_v38 = vmul.f32 %v2251_v0, %v1592_v22 }
 0xbd4   :  { %v2255_v5 = vpop.eup %2254  ;;  %v1624_v41 = vmul.f32 %v2253_v36, %v1588_v16 }
 0xbd5   :  { %v1627_v40 = vmul.f32 %v2255_v5, %v1594_v24 }
 0xbd6   :  { %v1628_v44 = vpack.c.bf16 %v1626_v38, %v1624_v41 }
 0xbd7   :  { %v1629_v42 = vpack.c.bf16 %v1627_v40, %v1625_v39 }
 0xbd9   :  { %1797 = vmatprep.mubr.bf16.mxu0 %v1629_v42 }
 0xbda   :  { %1798 = vmatmul.mubr.bf16.vlgmr.msra.gmra.mxu0 %v1628_v44 }
 0xc9a   :  { %v1972_v45 = vpop.f32.mrf.mxu0 }
 0xc9c   :  { %v1973_v48 = vpop.f32.mrf.mxu0 }
 0xc9d   :  { %v1974_v50 = vadd.f32 %v1973_v48, %v1972_v45 }
 0xc9e   :  { %v1975_v51 = vpop.f32.mrf.mxu0 }
 0xc9f   :  { %v1800_v52 = vadd.f32 %v1974_v50, %v1889_v47 }
 0xca0   :  { %v1976_v53 = vpop.f32.mrf.mxu0 }
 0xca1   :  { %v1806_v56 = vadd.f32 %v1800_v52, %v2707_v8  ;;  %v1977_v58 = vadd.f32 %v1976_v53, %v1975_v51 }
 0xca3   :  { %1810 = vst [vmem:[%s2851_s13] sm:$0xff] %v1806_v56  ;;  %v1803_v21 = vadd.f32 %v1977_v58, %v1889_v47 }
 0xca5   :  { %v1807_v18 = vadd.f32 %v1803_v21, %v2713_v6 }
 0xca7   :  { %1811 = vst [vmem:[%s2851_s13 + $0x8] sm:$0xff] %v1807_v18 }

// kernel: image_transformer_encoder_forward.6
= control target key start
LH: loop header
LB: loop body
LE: loop exit
PB: predicated region body
PF: predicated region fallthrough
CT: control target
= control target key end

     0   :  { %s11350_s25 = smov 0   ;;  %s11352_s26 = smov 0   ;;  %s15461_s0 = inlined_call_operand.vmem [shape: f32[8,24,128], index: 0, kind: input, shape index: {}]   ;;  %s15462_s1 = inlined_call_operand.vmem [shape: f32[2,1,128], index: 1, kind: input, shape index: {}]   ;;  %s15463_s2 = inlined_call_operand.vmem [shape: f32[2,1,128], index: 2, kind: input, shape index: {}]   ;;  %s15464_s3 = inlined_call_operand.vmem [shape: bf16[2,128,384], index: 3, kind: input, shape index: {}]   ;;  %s15465_s4 = inlined_call_operand.vmem [shape: f32[2,1,384], index: 4, kind: input, shape index: {}]   ;;  %s15466_s5 = inlined_call_operand.vmem [shape: bf16[2,128,128], index: 5, kind: input, shape index: {}]   ;;  %s15467_s6 = inlined_call_operand.vmem [shape: f32[2,1,128], index: 6, kind: input, shape index: {}]   ;;  %s15468_s7 = inlined_call_operand.vmem [shape: f32[2,1,128], index: 7, kind: input, shape index: {}]   ;;  %s15469_s8 = inlined_call_operand.vmem [shape: f32[2,1,128], index: 8, kind: input, shape index: {}]   ;;  %s15470_s9 = inlined_call_operand.vmem [shape: bf16[2,128,256], index: 9, kind: input, shape index: {}]   ;;  %s15471_s10 = inlined_call_operand.vmem [shape: f32[2,1,256], index: 10, kind: input, shape index: {}]   ;;  %s15472_s11 = inlined_call_operand.vmem [shape: bf16[2,256,128], index: 11, kind: input, shape index: {}]   ;;  %s15473_s12 = inlined_call_operand.vmem [shape: f32[2,1,128], index: 12, kind: input, shape index: {}]   ;;  %s15474_s13 = inlined_call_operand.vmem [shape: f32[8,24,128], index: 13, kind: output, shape index: {}]  }
   0x1   :  { %15618 = sst [smem:[#allocation107_spill]] %s15463_s2  ;;  %s11354_s27 = smov 0  }
   0x2   :  { %15619 = sst [smem:[#allocation108_spill]] %s15464_s3 }
   0x3   :  { %15620 = sst [smem:[#allocation109_spill]] %s15466_s5 }
   0x4   :  { %15621 = sst [smem:[#allocation110_spill]] %s15474_s13 }
   0x5 LB: > { %15622 = sst [smem:[#allocation4_spill]] %s11270_s26  ;;  %s32_s28 = sadd.s32 1, %s11270_s26  ;;  %s11274_s27 = sphi %s11354_s27, %s23_s27   ;;  %s11270_s26 = sphi %s11352_s26, %s16007_s26   ;;  %s11266_s25 = sphi %s11350_s25, %s16006_s25  }
   0x6   : > { %15623 = sst [smem:[#allocation5_spill]] %s11274_s27  ;;  %p9095_p0 = scmp.ge.s32.totalorder %s11274_s27, 1 }
   0x7   : > { %p33_p1 = scmp.ge.s32.totalorder %s32_s28, 2  ;;  %p507_p2 = scmp.lt.s32.totalorder %s11274_s27, 3 }
   0x9   : > { %s16009_s28 = smov (%p33_p1, %s32_s28), 0  ;;  %p508_p3 = pnand %p9095_p0, %p507_p2 }
   0xa   : > { %15624 = sst [smem:[#allocation6_spill]] %s16009_s28 }
   0xb   : > { %511 = sbr.rel (%p508_p3) target bundleno = 3797 (0xed5), region = 72 }
  0x10   : > { %p606_p4 = scmp.lt.s32.totalorder %s11266_s25, 1  ;;  %s15626_s5 = sld [smem:[#allocation109_spill]] }
  0x11   : > { %s15627_s3 = sld [smem:[#allocation108_spill]]  ;;  %p9104_p5 = scmp.ne.s32.totalorder %s11266_s25, 0 }
  0x12   : > { %s11372_s29 = scalar_select %p606_p4, %s11266_s25, 1 }
  0x14   : > { %s10446_s19 = smul.u32 192, %s11372_s29  ;;  %s9355_s20 = sshll.u32 %s11372_s29, 6 }
  0x15   : > { %s10447_s21 = smul.u32 3, %s11372_s29  ;;  %s631_s22 = scalar_lea.vmem %s15468_s7, %s11372_s29 }
  0x16   : > { %s11388_s24 = scalar_lea.vmem %s15626_s5, %s9355_s20  ;;  %s9356_s30 = sshll.u32 %s11372_s29, 7 }
  0x17   : > { %s11393_s28 = scalar_lea.vmem %s15627_s3, %s10446_s19  ;;  %s11402_s18 = scalar_lea.vmem %s15465_s4, %s10447_s21 }
  0x18   : > { %s11416_s3 = scalar_lea.vmem %s15470_s9, %s9356_s30  ;;  %s9101_s26 = sshll.u32 %s11372_s29, 1 }
  0x19   : > { %s11422_s21 = scalar_lea.vmem %s15471_s10, %s9101_s26  ;;  %s11427_s2 = scalar_lea.vmem %s15472_s11, %s9356_s30 }
  0x1a   : > { %s651_s23 = scalar_lea.vmem %s15473_s12, %s11372_s29  ;;  %663 = sbr.rel (%p9104_p5) target bundleno = 44 (0x2c), region = 76 }
  0x1f   : > { %v664_v0 = vld [vmem:[%s15461_s0] sm:$0xff]  ;;  %v665_v1 = vld [vmem:[%s15461_s0 + $0x8] sm:$0xff]  ;;  %v666_v2 = vld [vmem:[%s15461_s0 + $0x10] sm:$0xff] }
  0x20   : > { %688 = vst [vmem:[#allocation2 + $0xb0] sm:$0xff] %v664_v0  ;;  %689 = vst [vmem:[#allocation2] sm:$0xff] %v665_v1  ;;  %v667_v3 = vld [vmem:[%s15461_s0 + $0x18] sm:$0xff]  ;;  %v668_v4 = vld [vmem:[%s15461_s0 + $0x20] sm:$0xff] }
  0x21   : > { %690 = vst [vmem:[#allocation2 + $0x10] sm:$0xff] %v666_v2  ;;  %v669_v5 = vld [vmem:[%s15461_s0 + $0x28] sm:$0xff]  ;;  %691 = vst [vmem:[#allocation2 + $0x48] sm:$0xff] %v667_v3  ;;  %v670_v6 = vld [vmem:[%s15461_s0 + $0x30] sm:$0xff] }
  0x22   : > { %692 = vst [vmem:[#allocation2 + $0x60] sm:$0xff] %v668_v4  ;;  %693 = vst [vmem:[#allocation2 + $0x28] sm:$0xff] %v669_v5  ;;  %v671_v7 = vld [vmem:[%s15461_s0 + $0x38] sm:$0xff]  ;;  %v672_v8 = vld [vmem:[%s15461_s0 + $0x40] sm:$0xff] }
  0x23   : > { %694 = vst [vmem:[#allocation2 + $0x40] sm:$0xff] %v670_v6  ;;  %695 = vst [vmem:[#allocation2 + $0x78] sm:$0xff] %v671_v7  ;;  %v673_v9 = vld [vmem:[%s15461_s0 + $0x48] sm:$0xff]  ;;  %v674_v10 = vld [vmem:[%s15461_s0 + $0x50] sm:$0xff] }
  0x24   : > { %696 = vst [vmem:[#allocation2 + $0x88] sm:$0xff] %v672_v8  ;;  %v675_v11 = vld [vmem:[%s15461_s0 + $0x58] sm:$0xff]  ;;  %697 = vst [vmem:[#allocation2 + $0x90] sm:$0xff] %v673_v9  ;;  %v676_v12 = vld [vmem:[%s15461_s0 + $0x60] sm:$0xff] }
  0x25   : > { %698 = vst [vmem:[#allocation2 + $0x18] sm:$0xff] %v674_v10  ;;  %699 = vst [vmem:[#allocation2 + $0x98] sm:$0xff] %v675_v11  ;;  %v677_v13 = vld [vmem:[%s15461_s0 + $0x68] sm:$0xff]  ;;  %v678_v14 = vld [vmem:[%s15461_s0 + $0x70] sm:$0xff] }
  0x26   : > { %700 = vst [vmem:[#allocation2 + $0x38] sm:$0xff] %v676_v12  ;;  %701 = vst [vmem:[#allocation2 + $0x50] sm:$0xff] %v677_v13  ;;  %v679_v15 = vld [vmem:[%s15461_s0 + $0x78] sm:$0xff]  ;;  %v680_v16 = vld [vmem:[%s15461_s0 + $0x80] sm:$0xff] }
  0x27   : > { %702 = vst [vmem:[#allocation2 + $0x70] sm:$0xff] %v678_v14  ;;  %v681_v17 = vld [vmem:[%s15461_s0 + $0x88] sm:$0xff]  ;;  %703 = vst [vmem:[#allocation2 + $0xa0] sm:$0xff] %v679_v15  ;;  %v682_v18 = vld [vmem:[%s15461_s0 + $0x90] sm:$0xff] }
  0x28   : > { %704 = vst [vmem:[#allocation2 + $0xa8] sm:$0xff] %v680_v16  ;;  %705 = vst [vmem:[#allocation2 + $0x68] sm:$0xff] %v681_v17  ;;  %v683_v19 = vld [vmem:[%s15461_s0 + $0x98] sm:$0xff]  ;;  %v684_v20 = vld [vmem:[%s15461_s0 + $0xa0] sm:$0xff] }
  0x29   : > { %706 = vst [vmem:[#allocation2 + $0x30] sm:$0xff] %v682_v18  ;;  %707 = vst [vmem:[#allocation2 + $0x58] sm:$0xff] %v683_v19  ;;  %v685_v21 = vld [vmem:[%s15461_s0 + $0xa8] sm:$0xff]  ;;  %v686_v22 = vld [vmem:[%s15461_s0 + $0xb0] sm:$0xff] }
  0x2a   : > { %708 = vst [vmem:[#allocation2 + $0x80] sm:$0xff] %v684_v20  ;;  %v687_v23 = vld [vmem:[%s15461_s0 + $0xb8] sm:$0xff]  ;;  %709 = vst [vmem:[#allocation2 + $0xb8] sm:$0xff] %v685_v21 }
  0x2b   : > { %710 = vst [vmem:[#allocation2 + $0x20] sm:$0xff] %v686_v22  ;;  %711 = vst [vmem:[#allocation2 + $0x8] sm:$0xff] %v687_v23 }
  0x2c PF: > { %v712_v24 = vld [vmem:[#allocation2 + $0xb0] sm:$0xff]  ;;  %v713_v26 = vld [vmem:[#allocation2] sm:$0xff]  ;;  %v715_v27 = vld [vmem:[#allocation2 + $0x48] sm:$0xff]  ;;  %s15628_s19 = scalar_lea.vmem %s15462_s1, %s11372_s29  ;;  %s15629_s26 = sld [smem:[#allocation107_spill]]  ;;  %vm1585_vm0 = vcmask 261120   ;;  %vm2329_vm1 = vcmask 1043456  }
  0x2d   : > { %v714_v25 = vld [vmem:[#allocation2 + $0x10] sm:$0xff]  ;;  %738 = vadd.xlane.f32.xlu0 %v712_v24  ;;  %v11506_v28 = vld [vmem:[#allocation2 + $0x60] sm:$0xff]  ;;  %v11508_v29 = vld [vmem:[#allocation2 + $0x28] sm:$0xff]  ;;  %vm2090_vm3 = vcmask 195584   ;;  %s11278_s30 = smov 64   ;;  %s11279_s16 = smov 32  }
  0x2e   : > { %742 = vadd.xlane.f32.xlu1 %v714_v25  ;;  %v11510_v30 = vld [vmem:[#allocation2 + $0x40] sm:$0xff]  ;;  %v11512_v31 = vld [vmem:[#allocation2 + $0x78] sm:$0xff]  ;;  %v11516_v32 = vld [vmem:[#allocation2 + $0x88] sm:$0xff]  ;;  %vm4340_vm4 = vcmask 523520   ;;  %vm5805_vm5 = vcmask 785920   ;;  %vm7270_vm6 = vcmask 1048320   ;;  %s15993_s17 = scalar_lea.vmem %s15467_s6, %s11372_s29  ;;  %s15997_s5 = scalar_lea.vmem %s15469_s8, %s11372_s29 }
  0x2f   : > { %v11518_v33 = vld [vmem:[#allocation2 + $0x90] sm:$0xff]  ;;  %v11522_v34 = vld [vmem:[#allocation2 + $0x18] sm:$0xff]  ;;  %v11538_v39 = vld [vmem:[#allocation2 + $0xa0] sm:$0xff]  ;;  %s16001_s14 = sld [smem:[#allocation110_spill]] }
  0x30   : > { %v11526_v35 = vld [vmem:[#allocation2 + $0x98] sm:$0xff]  ;;  %v11530_v37 = vld [vmem:[#allocation2 + $0x50] sm:$0xff]  ;;  %v11540_v40 = vld [vmem:[#allocation2 + $0xa8] sm:$0xff] }
  0x31   : > { %740 = vadd.xlane.f32.xlu0 %v713_v26  ;;  %v11528_v36 = vld [vmem:[#allocation2 + $0x38] sm:$0xff]  ;;  %v11534_v38 = vld [vmem:[#allocation2 + $0x70] sm:$0xff]  ;;  %v11544_v41 = vld [vmem:[#allocation2 + $0x68] sm:$0xff] }
  0x32   : > { %744 = vadd.xlane.f32.xlu1 %v715_v27  ;;  %v11546_v42 = vld [vmem:[#allocation2 + $0x30] sm:$0xff]  ;;  %v11548_v43 = vld [vmem:[#allocation2 + $0x58] sm:$0xff]  ;;  %v11564_v58 = vld [vmem:[#allocation2 + $0x80] sm:$0xff]  ;;  %s15630_s15 = scalar_lea.vmem %s15629_s26, %s11372_s29 }
  0x33   : > { %v10476_v44 = vld [vmem:[%s11393_s28 + $0xac] ss:$12 sps:$4 sm:$0xff]   ;;  %v10478_v45 = vld [vmem:[%s11393_s28 + $0xa8] ss:$12 sps:$4 sm:$0xff]   ;;  %v11581_v8 = vld [vmem:[#allocation2 + $0x20] sm:$0xff] }
  0x34   : > { %1252 = vmatprep.subr.bf16.mxu0 %v10476_v44  ;;  %v11573_v1 = vld [vmem:[#allocation2 + $0xb8] sm:$0xff]  ;;  %v10479_v11 = vld [vmem:[%s11393_s28 + $0x94] ss:$12 sps:$4 sm:$0xff]   ;;  %v11594_v18 = vld [vmem:[#allocation2 + $0x8] sm:$0xff] }
  0x35   : > { %746 = vadd.xlane.f32.xlu0 %v11506_v28  ;;  %1253 = vmatpush1.bf16.msra.mxu0 %v10478_v45  ;;  %v10481_v13 = vld [vmem:[%s11393_s28 + $0x90] ss:$12 sps:$4 sm:$0xff]   ;;  %v10488_v45 = vld [vmem:[%s11393_s28 + $0x98] ss:$12 sps:$4 sm:$0xff]  }
  0x36   : > { %748 = vadd.xlane.f32.xlu1 %v11508_v29  ;;  %1254 = vmatprep.subr.bf16.mxu0 %v10479_v11  ;;  %v10482_v21 = vld [vmem:[%s11393_s28 + $0x7c] ss:$12 sps:$4 sm:$0xff]  }
  0x37   : > { %v10484_v22 = vld [vmem:[%s11393_s28 + $0xb0] ss:$12 sps:$4 sm:$0xff]  }
  0x38   : > { %9742 = vmatprep.subr.bf16.mxu1 %v10484_v22  ;;  %v10497_v11 = vld [vmem:[%s11393_s28 + $0x30] ss:$12 sps:$4 sm:$0xff]  }
  0x39   : > { %750 = vadd.xlane.f32.xlu0 %v11510_v30  ;;  %1255 = vmatpush1.bf16.msra.mxu0 %v10481_v13 }
  0x3a   : > { %752 = vadd.xlane.f32.xlu1 %v11512_v31  ;;  %1256 = vmatprep.subr.bf16.mxu0 %v10482_v21 }
  0x3b   : > { %9743 = vmatpush3.bf16.msra.mxu1 %v10484_v22 }
  0x3c   : > { %9744 = vmatprep.subr.bf16.mxu1 %v10488_v45 }
  0x3d   : > { %754 = vadd.xlane.f32.xlu0 %v11516_v32 }
  0x3e   : > { %756 = vadd.xlane.f32.xlu1 %v11518_v33 }
  0x3f   : > { %9745 = vmatpush3.bf16.msra.mxu1 %v10488_v45  ;;  %v10505_v45 = vld [vmem:[%s11393_s28] ss:$12 sps:$4 sm:$0xff]  }
  0x41   : > { %758 = vadd.xlane.f32.xlu0 %v11522_v34 }
  0x42   : > { %760 = vadd.xlane.f32.xlu1 %v11526_v35 }
  0x45   : > { %762 = vadd.xlane.f32.xlu0 %v11528_v36 }
  0x46   : > { %764 = vadd.xlane.f32.xlu1 %v11530_v37 }
  0x49   : > { %766 = vadd.xlane.f32.xlu0 %v11534_v38 }
  0x4a   : > { %768 = vadd.xlane.f32.xlu1 %v11538_v39 }
  0x4d   : > { %770 = vadd.xlane.f32.xlu0 %v11540_v40 }
  0x4e   : > { %772 = vadd.xlane.f32.xlu1 %v11544_v41 }
  0x51   : > { %774 = vadd.xlane.f32.xlu0 %v11546_v42 }
  0x52   : > { %776 = vadd.xlane.f32.xlu1 %v11548_v43 }
  0xb6   : > { %v739_v46 = vpop.xlane.xlu0 %738 }
  0xb7   : > { %v743_v47 = vpop.xlane.xlu1 %742  ;;  %v787_v48 = vmul.f32 0.0078125, %v739_v46 }
  0xb8   : > { %v789_v50 = vmul.f32 0.0078125, %v743_v47 }
  0xb9   : > { %v11556_v49 = vsub.f32 %v712_v24, %v787_v48  ;;  %v10489_v48 = vld [vmem:[%s11393_s28 + $0x60] ss:$12 sps:$4 sm:$0xff]  }
  0xba   : > { %v741_v51 = vpop.xlane.xlu0 %740  ;;  %v11562_v57 = vsub.f32 %v714_v25, %v789_v50  ;;  %v10485_v25 = vld [vmem:[%s11393_s28 + $0x78] ss:$12 sps:$4 sm:$0xff]  }
  0xbb   : > { %v745_v52 = vpop.xlane.xlu1 %744  ;;  %v788_v53 = vmul.f32 0.0078125, %v741_v51  ;;  %v835_v54 = vmul.f32 %v11556_v49, %v11556_v49  ;;  %1257 = vmatpush1.bf16.msra.mxu0 %v10485_v25  ;;  %v10501_v25 = vld [vmem:[%s11393_s28 + $0x18] ss:$12 sps:$4 sm:$0xff]  }
  0xbc   : > { %v790_v56 = vmul.f32 0.0078125, %v745_v52  ;;  %v837_v62 = vmul.f32 %v11562_v57, %v11562_v57 }
  0xbd   : > { %859 = vadd.xlane.f32.xlu0 %v835_v54  ;;  %v11560_v55 = vsub.f32 %v713_v26, %v788_v53 }
  0xbe   : > { %v747_v59 = vpop.xlane.xlu0 %746  ;;  %v11571_v0 = vsub.f32 %v715_v27, %v790_v56  ;;  %v10492_v56 = vld [vmem:[%s11393_s28 + $0x80] ss:$12 sps:$4 sm:$0xff]  }
  0xbf   : > { %v749_v60 = vpop.xlane.xlu1 %748  ;;  %v836_v61 = vmul.f32 %v11560_v55, %v11560_v55  ;;  %v791_v63 = vmul.f32 0.0078125, %v747_v59  ;;  %9746 = vmatprep.subr.bf16.mxu1 %v10492_v56 }
  0xc0   : > { %v838_v4 = vmul.f32 %v11571_v0, %v11571_v0  ;;  %v792_v5 = vmul.f32 0.0078125, %v749_v60  ;;  %9747 = vmatpush3.bf16.msra.mxu1 %v10492_v56 }
  0xc1   : > { %778 = vadd.xlane.f32.xlu0 %v11564_v58  ;;  %861 = vadd.xlane.f32.xlu1 %v836_v61  ;;  %v11579_v7 = vsub.f32 %v11506_v28, %v791_v63  ;;  %v10493_v61 = vld [vmem:[%s11393_s28 + $0x48] ss:$12 sps:$4 sm:$0xff]  }
  0xc2   : > { %v751_v2 = vpop.xlane.xlu0 %750  ;;  %v11589_v16 = vsub.f32 %v11508_v29, %v792_v5  ;;  %v10496_v5 = vld [vmem:[%s11393_s28 + $0x68] ss:$12 sps:$4 sm:$0xff]  }
  0xc3   : > { %v753_v3 = vpop.xlane.xlu1 %752  ;;  %v793_v6 = vmul.f32 0.0078125, %v751_v2  ;;  %v839_v14 = vmul.f32 %v11579_v7, %v11579_v7  ;;  %9748 = vmatprep.subr.bf16.mxu1 %v10496_v5 }
  0xc4   : > { %v794_v12 = vmul.f32 0.0078125, %v753_v3  ;;  %v840_v26 = vmul.f32 %v11589_v16, %v11589_v16  ;;  %9749 = vmatpush3.bf16.msra.mxu1 %v10496_v5 }
  0xc5   : > { %863 = vadd.xlane.f32.xlu0 %v837_v62  ;;  %780 = vadd.xlane.f32.xlu1 %v11573_v1  ;;  %v11592_v17 = vsub.f32 %v11510_v30, %v793_v6 }
  0xc6   : > { %v755_v9 = vpop.xlane.xlu0 %754  ;;  %v11599_v24 = vsub.f32 %v11512_v31, %v794_v12  ;;  %v10486_v31 = vld [vmem:[%s11393_s28 + $0x64] ss:$12 sps:$4 sm:$0xff]  }
  0xc7   : > { %v757_v10 = vpop.xlane.xlu1 %756  ;;  %v795_v15 = vmul.f32 0.0078125, %v755_v9  ;;  %v841_v27 = vmul.f32 %v11592_v17, %v11592_v17  ;;  %1258 = vmatprep.subr.bf16.mxu0 %v10486_v31 }
  0xc8   : > { %v796_v23 = vmul.f32 0.0078125, %v757_v10  ;;  %v842_v46 = vmul.f32 %v11599_v24, %v11599_v24  ;;  %1259 = vmatpush1.bf16.msra.mxu0 %v10489_v48 }
  0xc9   : > { %782 = vadd.xlane.f32.xlu0 %v11581_v8  ;;  %865 = vadd.xlane.f32.xlu1 %v838_v4  ;;  %v11608_v29 = vsub.f32 %v11516_v32, %v795_v15  ;;  %v10494_v4 = vld [vmem:[%s11393_s28 + $0x34] ss:$12 sps:$4 sm:$0xff]  }
  0xca   : > { %v759_v19 = vpop.xlane.xlu0 %758  ;;  %v11615_v47 = vsub.f32 %v11518_v33, %v796_v23  ;;  %v10490_v33 = vld [vmem:[%s11393_s28 + $0x4c] ss:$12 sps:$4 sm:$0xff]  }
  0xcb   : > { %v761_v20 = vpop.xlane.xlu1 %760  ;;  %v797_v28 = vmul.f32 0.0078125, %v759_v19  ;;  %v843_v32 = vmul.f32 %v11608_v29, %v11608_v29  ;;  %1260 = vmatprep.subr.bf16.mxu0 %v10490_v33  ;;  %v10498_v19 = vld [vmem:[%s11393_s28 + $0x1c] ss:$12 sps:$4 sm:$0xff]  }
  0xcc   : > { %v798_v50 = vmul.f32 0.0078125, %v761_v20  ;;  %v844_v59 = vmul.f32 %v11615_v47, %v11615_v47  ;;  %1261 = vmatpush1.bf16.msra.mxu0 %v10493_v61  ;;  %v10500_v20 = vld [vmem:[%s11393_s28 + $0x50] ss:$12 sps:$4 sm:$0xff]  }
  0xcd   : > { %784 = vadd.xlane.f32.xlu1 %v11594_v18  ;;  %867 = vadd.xlane.f32.xlu0 %v839_v14  ;;  %v11621_v52 = vsub.f32 %v11522_v34, %v797_v28  ;;  %v10504_v28 = vld [vmem:[%s11393_s28 + $0x38] ss:$12 sps:$4 sm:$0xff]  }
  0xce   : > { %v763_v30 = vpop.xlane.xlu0 %762  ;;  %v11631_v63 = vsub.f32 %v11526_v35, %v798_v50  ;;  %1262 = vmatprep.subr.bf16.mxu0 %v10494_v4  ;;  %9750 = vmatprep.subr.bf16.mxu1 %v10500_v20  ;;  %v10507_v50 = vld [vmem:[%s11393_s28 + $0x8] ss:$12 sps:$4 sm:$0xff]  }
  0xcf   : > { %v765_v44 = vpop.xlane.xlu1 %764  ;;  %v799_v51 = vmul.f32 0.0078125, %v763_v30  ;;  %v845_v34 = vmul.f32 %v11621_v52, %v11621_v52  ;;  %9751 = vmatpush3.bf16.msra.mxu1 %v10500_v20 }
  0xd0   : > { %v800_v60 = vmul.f32 0.0078125, %v765_v44  ;;  %v846_v35 = vmul.f32 %v11631_v63, %v11631_v63  ;;  %1263 = vmatpush1.bf16.msra.mxu0 %v10497_v11  ;;  %9752 = vmatprep.subr.bf16.mxu1 %v10504_v28 }
  0xd1   : > { %869 = vadd.xlane.f32.xlu1 %v840_v26  ;;  %871 = vadd.xlane.f32.xlu0 %v841_v27  ;;  %v11634_v2 = vsub.f32 %v11528_v36, %v799_v51  ;;  %v10502_v27 = vld [vmem:[%s11393_s28 + $0x4] ss:$12 sps:$4 sm:$0xff]  }
  0xd2   : > { %v767_v53 = vpop.xlane.xlu0 %766  ;;  %v11639_v9 = vsub.f32 %v11530_v37, %v800_v60  ;;  %1264 = vmatprep.subr.bf16.mxu0 %v10498_v19 }
  0xd3   : > { %v769_v54 = vpop.xlane.xlu1 %768  ;;  %v801_v62 = vmul.f32 0.0078125, %v767_v53  ;;  %v847_v36 = vmul.f32 %v11634_v2, %v11634_v2  ;;  %9753 = vmatpush3.bf16.msra.mxu1 %v10504_v28 }
  0xd4   : > { %v802_v6 = vmul.f32 0.0078125, %v769_v54  ;;  %v848_v37 = vmul.f32 %v11639_v9, %v11639_v9  ;;  %1265 = vmatpush1.bf16.msra.mxu0 %v10501_v25 }
  0xd5   : > { %873 = vadd.xlane.f32.xlu1 %v842_v46  ;;  %875 = vadd.xlane.f32.xlu0 %v843_v32  ;;  %v11647_v13 = vsub.f32 %v11534_v38, %v801_v62  ;;  %v10506_v46 = vld [vmem:[%s11393_s28 + $0x20] ss:$12 sps:$4 sm:$0xff]  }
  0xd6   : > { %v771_v3 = vpop.xlane.xlu0 %770  ;;  %v11652_v15 = vsub.f32 %v11538_v39, %v802_v6  ;;  %1266 = vmatprep.subr.bf16.mxu0 %v10502_v27  ;;  %9754 = vmatprep.subr.bf16.mxu1 %v10506_v46 }
  0xd7   : > { %v773_v10 = vpop.xlane.xlu1 %772  ;;  %v803_v12 = vmul.f32 0.0078125, %v771_v3  ;;  %v849_v38 = vmul.f32 %v11647_v13, %v11647_v13  ;;  %9755 = vmatpush3.bf16.msra.mxu1 %v10506_v46 }
  0xd8   : > { %v804_v21 = vmul.f32 0.0078125, %v773_v10  ;;  %v850_v39 = vmul.f32 %v11652_v15, %v11652_v15  ;;  %1267 = vmatpush1.bf16.msra.mxu0 %v10505_v45  ;;  %9756 = vmatprep.subr.bf16.mxu1 %v10507_v50 }
  0xd9   : > { %877 = vadd.xlane.f32.xlu1 %v844_v59  ;;  %879 = vadd.xlane.f32.xlu0 %v845_v34  ;;  %v11659_v23 = vsub.f32 %v11540_v40, %v803_v12 }
  0xda   : > { %v775_v14 = vpop.xlane.xlu0 %774  ;;  %v11669_v44 = vsub.f32 %v11544_v41, %v804_v21 }
  0xdb   : > { %v805_v22 = vmul.f32 0.0078125, %v775_v14  ;;  %v777_v26 = vpop.xlane.xlu1 %776  ;;  %v851_v30 = vmul.f32 %v11659_v23, %v11659_v23  ;;  %9757 = vmatpush3.bf16.msra.mxu1 %v10507_v50 }
  0xdc   : > { %v806_v40 = vmul.f32 0.0078125, %v777_v26  ;;  %v852_v48 = vmul.f32 %v11669_v44, %v11669_v44 }
  0xdd   : > { %881 = vadd.xlane.f32.xlu1 %v846_v35  ;;  %883 = vadd.xlane.f32.xlu0 %v847_v36  ;;  %v11672_v31 = vsub.f32 %v11546_v42, %v805_v22  ;;  %v15480_v42 = vmov 0  }
  0xde   : > { %v11681_v41 = vsub.f32 %v11548_v43, %v806_v40  ;;  %1284 = vmatprep.mubr.bf16.mxu0 %v15480_v42 }
  0xdf   : > { %v853_v32 = vmul.f32 %v11672_v31, %v11672_v31 }
  0xe0   : > { %v854_v51 = vmul.f32 %v11681_v41, %v11681_v41 }
  0xe1   : > { %885 = vadd.xlane.f32.xlu1 %v848_v37  ;;  %887 = vadd.xlane.f32.xlu0 %v849_v38 }
  0xe5   : > { %889 = vadd.xlane.f32.xlu1 %v850_v39  ;;  %891 = vadd.xlane.f32.xlu0 %v851_v30 }
  0xe9   : > { %893 = vadd.xlane.f32.xlu1 %v852_v48  ;;  %895 = vadd.xlane.f32.xlu0 %v853_v32 }
  0xed   : > { %897 = vadd.xlane.f32.xlu1 %v854_v51  ;;  %v11721_v51 = vld [vmem:[%s15630_s15] ss:$0 sm:$0xff] }
 0x146   : > { %v860_v53 = vpop.xlane.xlu0 %859 }
 0x147   : > { %v907_v54 = vmul.f32 0.0078125, %v860_v53 }
 0x149   : > { %v931_v33 = vadd.f32 1e-05, %v907_v54 }
 0x14a   : > { %v862_v56 = vpop.xlane.xlu1 %861  ;;  %v779_v43 = vpop.xlane.xlu0 %778 }
 0x14b   : > { %10556 = vrsqrt.f32 %v931_v33  ;;  %v908_v59 = vmul.f32 0.0078125, %v862_v56  ;;  %v807_v60 = vmul.f32 0.0078125, %v779_v43 }
 0x14d   : > { %v932_v61 = vadd.f32 1e-05, %v908_v59  ;;  %v11688_v34 = vsub.f32 %v11564_v58, %v807_v60 }
 0x14e   : > { %v781_v62 = vpop.xlane.xlu1 %780  ;;  %v864_v3 = vpop.xlane.xlu0 %863 }
 0x14f   : > { %10558 = vrsqrt.f32 %v932_v61  ;;  %v808_v4 = vmul.f32 0.0078125, %v781_v62  ;;  %v909_v5 = vmul.f32 0.0078125, %v864_v3  ;;  %v855_v6 = vmul.f32 %v11688_v34, %v11688_v34 }
 0x151   : > { %v933_v10 = vadd.f32 1e-05, %v909_v5  ;;  %899 = vadd.xlane.f32.xlu0 %v855_v6  ;;  %v11693_v11 = vsub.f32 %v11573_v1, %v808_v4 }
 0x152   : > { %v866_v35 = vpop.xlane.xlu1 %865  ;;  %v783_v36 = vpop.xlane.xlu0 %782 }
 0x153   : > { %10560 = vrsqrt.f32 %v933_v10  ;;  %v910_v12 = vmul.f32 0.0078125, %v866_v35  ;;  %v809_v58 = vmul.f32 0.0078125, %v783_v36  ;;  %v856_v14 = vmul.f32 %v11693_v11, %v11693_v11 }
 0x155   : > { %v934_v37 = vadd.f32 1e-05, %v910_v12  ;;  %901 = vadd.xlane.f32.xlu1 %v856_v14  ;;  %v11698_v19 = vsub.f32 %v11581_v8, %v809_v58  ;;  %v11710_v8 = vld [vmem:[%s15628_s19] ss:$0 sm:$0xff] }
 0x156   : > { %v785_v20 = vpop.xlane.xlu1 %784  ;;  %v868_v38 = vpop.xlane.xlu0 %867 }
 0x157   : > { %10562 = vrsqrt.f32 %v934_v37  ;;  %v810_v21 = vmul.f32 0.0078125, %v785_v20  ;;  %v911_v1 = vmul.f32 0.0078125, %v868_v38  ;;  %v857_v22 = vmul.f32 %v11698_v19, %v11698_v19 }
 0x158   : > { %v10557_v25 = vpop.eup %10556 }
 0x159   : > { %v935_v26 = vadd.f32 1e-05, %v911_v1  ;;  %903 = vadd.xlane.f32.xlu0 %v857_v22  ;;  %v11703_v39 = vsub.f32 %v11594_v18, %v810_v21  ;;  %v979_v27 = vmul.f32 %v10557_v25, %v11556_v49 }
 0x15a   : > { %v870_v28 = vpop.xlane.xlu1 %869  ;;  %v872_v30 = vpop.xlane.xlu0 %871 }
 0x15b   : > { %10564 = vrsqrt.f32 %v935_v26  ;;  %v912_v40 = vmul.f32 0.0078125, %v870_v28  ;;  %v913_v45 = vmul.f32 0.0078125, %v872_v30  ;;  %v858_v46 = vmul.f32 %v11703_v39, %v11703_v39 }
 0x15c   : > { %v10559_v48 = vpop.eup %10558  ;;  %v1009_v18 = vmul.f32 %v11710_v8, %v979_v27 }
 0x15d   : > { %v936_v32 = vadd.f32 1e-05, %v912_v40  ;;  %v937_v50 = vadd.f32 1e-05, %v913_v45  ;;  %905 = vadd.xlane.f32.xlu1 %v858_v46  ;;  %v980_v49 = vmul.f32 %v10559_v48, %v11560_v55 }
 0x15e   : > { %v874_v53 = vpop.xlane.xlu1 %873  ;;  %v876_v54 = vpop.xlane.xlu0 %875  ;;  %v1039_v60 = vadd.f32 %v11721_v51, %v1009_v18 }
 0x15f   : > { %10566 = vrsqrt.f32 %v936_v32  ;;  %v914_v33 = vmul.f32 0.0078125, %v874_v53  ;;  %v915_v56 = vmul.f32 0.0078125, %v876_v54  ;;  %v1010_v43 = vmul.f32 %v11710_v8, %v980_v49 }
 0x160   : > { %v10561_v59 = vpop.eup %10560  ;;  %10568 = vrsqrt.f32 %v937_v50 }
 0x161   : > { %v938_v61 = vadd.f32 1e-05, %v914_v33  ;;  %v939_v62 = vadd.f32 1e-05, %v915_v56  ;;  %v1040_v3 = vadd.f32 %v11721_v51, %v1010_v43  ;;  %v981_v4 = vmul.f32 %v10561_v59, %v11562_v57 }
 0x162   : > { %v878_v5 = vpop.xlane.xlu1 %877  ;;  %v880_v6 = vpop.xlane.xlu0 %879 }
 0x163   : > { %10570 = vrsqrt.f32 %v938_v61  ;;  %v916_v55 = vmul.f32 0.0078125, %v878_v5  ;;  %v917_v10 = vmul.f32 0.0078125, %v880_v6  ;;  %v1063_v35 = vpack.c.bf16 %v1040_v3, %v1039_v60 }
 0x164   : > { %v10563_v36 = vpop.eup %10562  ;;  %10572 = vrsqrt.f32 %v939_v62  ;;  %v1011_v12 = vmul.f32 %v11710_v8, %v981_v4 }
 0x165   : > { %v940_v58 = vadd.f32 1e-05, %v916_v55  ;;  %v941_v14 = vadd.f32 1e-05, %v917_v10  ;;  %1285 = vmatmul.mubr.bf16.vlgmr.msra.gmra.mxu0 %v1063_v35  ;;  %9758 = vmatprep.mubr.bf16.mxu1 %v1063_v35  ;;  %v982_v37 = vmul.f32 %v10563_v36, %v11571_v0 }
 0x166   : > { %v882_v20 = vpop.xlane.xlu1 %881  ;;  %v884_v38 = vpop.xlane.xlu0 %883  ;;  %1294 = vmatprep.mubr.bf16.mxu0 %v15480_v42  ;;  %v1041_v25 = vadd.f32 %v11721_v51, %v1011_v12 }
 0x167   : > { %10574 = vrsqrt.f32 %v940_v58  ;;  %v918_v57 = vmul.f32 0.0078125, %v882_v20  ;;  %v919_v21 = vmul.f32 0.0078125, %v884_v38  ;;  %v1012_v1 = vmul.f32 %v11710_v8, %v982_v37 }
 0x168   : > { %v10565_v22 = vpop.eup %10564  ;;  %10576 = vrsqrt.f32 %v941_v14 }
 0x169   : > { %v942_v26 = vadd.f32 1e-05, %v918_v57  ;;  %v943_v27 = vadd.f32 1e-05, %v919_v21  ;;  %v1042_v28 = vadd.f32 %v11721_v51, %v1012_v1  ;;  %v983_v30 = vmul.f32 %v10565_v22, %v11579_v7 }
 0x16a   : > { %v886_v0 = vpop.xlane.xlu1 %885  ;;  %v888_v40 = vpop.xlane.xlu0 %887 }
 0x16b   : > { %10578 = vrsqrt.f32 %v942_v26  ;;  %v920_v45 = vmul.f32 0.0078125, %v886_v0  ;;  %v921_v46 = vmul.f32 0.0078125, %v888_v40  ;;  %v1064_v48 = vpack.c.bf16 %v1042_v28, %v1041_v25 }
 0x16c   : > { %v10567_v18 = vpop.eup %10566  ;;  %10580 = vrsqrt.f32 %v943_v27  ;;  %v1013_v32 = vmul.f32 %v11710_v8, %v983_v30 }
 0x16d   : > { %v10569_v50 = vpop.eup %10568  ;;  %v944_v49 = vadd.f32 1e-05, %v920_v45  ;;  %v945_v53 = vadd.f32 1e-05, %v921_v46  ;;  %1295 = vmatmul.mubr.bf16.gmra.mxu0 %v1064_v48  ;;  %9759 = vmatmul.mubr.bf16.vlgmr.msra.gmra.mxu1 %v1064_v48  ;;  %v984_v54 = vmul.f32 %v10567_v18, %v11589_v16 }
 0x16e   : > { %v890_v33 = vpop.xlane.xlu1 %889  ;;  %v892_v56 = vpop.xlane.xlu0 %891  ;;  %1304 = vmatprep.mubr.bf16.mxu0 %v15480_v42  ;;  %v985_v7 = vmul.f32 %v10569_v50, %v11592_v17  ;;  %v1043_v62 = vadd.f32 %v11721_v51, %v1013_v32 }
 0x16f   : > { %10582 = vrsqrt.f32 %v944_v49  ;;  %v922_v43 = vmul.f32 0.0078125, %v890_v33  ;;  %v923_v59 = vmul.f32 0.0078125, %v892_v56  ;;  %v1014_v60 = vmul.f32 %v11710_v8, %v984_v54 }
 0x170   : > { %v10571_v61 = vpop.eup %10570  ;;  %10584 = vrsqrt.f32 %v945_v53  ;;  %v1015_v17 = vmul.f32 %v11710_v8, %v985_v7 }
 0x171   : > { %v10573_v3 = vpop.eup %10572  ;;  %v946_v4 = vadd.f32 1e-05, %v922_v43  ;;  %v947_v5 = vadd.f32 1e-05, %v923_v59  ;;  %v1044_v16 = vadd.f32 %v11721_v51, %v1014_v60  ;;  %v986_v6 = vmul.f32 %v10571_v61, %v11599_v24 }
 0x172   : > { %v894_v55 = vpop.xlane.xlu1 %893  ;;  %v896_v10 = vpop.xlane.xlu0 %895  ;;  %v987_v35 = vmul.f32 %v10573_v3, %v11608_v29  ;;  %v1045_v29 = vadd.f32 %v11721_v51, %v1015_v17 }
 0x173   : > { %10586 = vrsqrt.f32 %v946_v4  ;;  %v924_v36 = vmul.f32 0.0078125, %v894_v55  ;;  %v925_v12 = vmul.f32 0.0078125, %v896_v10  ;;  %v1065_v58 = vpack.c.bf16 %v1044_v16, %v1043_v62 }
 0x174   : > { %v10575_v14 = vpop.eup %10574  ;;  %10588 = vrsqrt.f32 %v947_v5  ;;  %v1016_v37 = vmul.f32 %v11710_v8, %v986_v6  ;;  %v1017_v21 = vmul.f32 %v11710_v8, %v987_v35 }
 0x175   : > { %v10577_v20 = vpop.eup %10576  ;;  %v948_v38 = vadd.f32 1e-05, %v924_v36  ;;  %v949_v57 = vadd.f32 1e-05, %v925_v12  ;;  %1305 = vmatmul.mubr.bf16.gmra.mxu0 %v1065_v58  ;;  %9762 = vmatprep.mubr.bf16.mxu1 %v1065_v58  ;;  %v988_v24 = vmul.f32 %v10575_v14, %v11615_v47 }
 0x176   : > { %v898_v1 = vpop.xlane.xlu1 %897  ;;  %v1046_v22 = vadd.f32 %v11721_v51, %v1016_v37  ;;  %1314 = vmatprep.mubr.bf16.mxu0 %v15480_v42  ;;  %v989_v25 = vmul.f32 %v10577_v20, %v11621_v52  ;;  %v1047_v45 = vadd.f32 %v11721_v51, %v1017_v21 }
 0x177   : > { %10590 = vrsqrt.f32 %v948_v38  ;;  %v926_v26 = vmul.f32 0.0078125, %v898_v1  ;;  %v1018_v27 = vmul.f32 %v11710_v8, %v988_v24  ;;  %v1107_v1 = vld [vmem:[%s11402_s18] sm:$0x7]  ;;  %s11277_s18 = smov 96  }
 0x178   : > { %v10579_v28 = vpop.eup %10578  ;;  %10592 = vrsqrt.f32 %v949_v57  ;;  %v1066_v30 = vpack.c.bf16 %v1046_v22, %v1045_v29  ;;  %v1019_v47 = vmul.f32 %v11710_v8, %v989_v25 }
 0x179   : > { %v10581_v0 = vpop.eup %10580  ;;  %v950_v40 = vadd.f32 1e-05, %v926_v26  ;;  %v1048_v46 = vadd.f32 %v11721_v51, %v1018_v27  ;;  %v990_v48 = vmul.f32 %v10579_v28, %v11631_v63 }
 0x17a   : > { %9763 = vmatmul.mubr.bf16.gmra.mxu1 %v1066_v30  ;;  %v991_v52 = vmul.f32 %v10581_v0, %v11634_v2  ;;  %v1049_v49 = vadd.f32 %v11721_v51, %v1019_v47 }
 0x17b   : > { %10594 = vrsqrt.f32 %v950_v40  ;;  %v1067_v18 = vpack.c.bf16 %v1048_v46, %v1047_v45  ;;  %v1020_v32 = vmul.f32 %v11710_v8, %v990_v48 }
 0x17c   : > { %v10583_v50 = vpop.eup %10582  ;;  %v1021_v56 = vmul.f32 %v11710_v8, %v991_v52 }
 0x17d   : > { %v10585_v53 = vpop.eup %10584  ;;  %1315 = vmatmul.mubr.bf16.gmra.mxu0 %v1066_v30  ;;  %9766 = vmatprep.mubr.bf16.mxu1 %v1067_v18  ;;  %v1050_v54 = vadd.f32 %v11721_v51, %v1020_v32  ;;  %v992_v33 = vmul.f32 %v10583_v50, %v11639_v9 }
 0x17e   : > { %1324 = vmatprep.mubr.bf16.mxu0 %v15480_v42  ;;  %v993_v63 = vmul.f32 %v10585_v53, %v11647_v13  ;;  %v1051_v61 = vadd.f32 %v11721_v51, %v1021_v56 }
 0x17f   : > { %v1068_v2 = vpack.c.bf16 %v1050_v54, %v1049_v49  ;;  %v1022_v7 = vmul.f32 %v11710_v8, %v992_v33 }
 0x180   : > { %v10587_v43 = vpop.eup %10586  ;;  %v1023_v59 = vmul.f32 %v11710_v8, %v993_v63 }
 0x181   : > { %v10589_v60 = vpop.eup %10588  ;;  %v1052_v62 = vadd.f32 %v11721_v51, %v1022_v7  ;;  %v994_v3 = vmul.f32 %v10587_v43, %v11652_v15 }
 0x182   : > { %9767 = vmatmul.mubr.bf16.gmra.mxu1 %v1068_v2  ;;  %v995_v9 = vmul.f32 %v10589_v60, %v11659_v23  ;;  %v1053_v16 = vadd.f32 %v11721_v51, %v1023_v59 }
 0x183   : > { %v1069_v4 = vpack.c.bf16 %v1052_v62, %v1051_v61  ;;  %v1024_v5 = vmul.f32 %v11710_v8, %v994_v3 }
 0x184   : > { %v10591_v13 = vpop.eup %10590  ;;  %v1025_v17 = vmul.f32 %v11710_v8, %v995_v9 }
 0x185   : > { %v10593_v6 = vpop.eup %10592  ;;  %1325 = vmatmul.mubr.bf16.gmra.mxu0 %v1067_v18  ;;  %9770 = vmatprep.mubr.bf16.mxu1 %v1069_v4  ;;  %v1054_v55 = vadd.f32 %v11721_v51, %v1024_v5  ;;  %v996_v10 = vmul.f32 %v10591_v13, %v11669_v44 }
 0x186   : > { %1334 = vmatprep.mubr.bf16.mxu0 %v15480_v42  ;;  %v997_v15 = vmul.f32 %v10593_v6, %v11672_v31  ;;  %v1055_v12 = vadd.f32 %v11721_v51, %v1025_v17 }
 0x187   : > { %v1070_v23 = vpack.c.bf16 %v1054_v55, %v1053_v16  ;;  %v1026_v35 = vmul.f32 %v11710_v8, %v996_v10 }
 0x188   : > { %v10595_v36 = vpop.eup %10594  ;;  %v1027_v37 = vmul.f32 %v11710_v8, %v997_v15 }
 0x189   : > { %v1056_v58 = vadd.f32 %v11721_v51, %v1026_v35  ;;  %v998_v14 = vmul.f32 %v10595_v36, %v11681_v41  ;;  %v1109_v41 = vlaneseq }
 0x18a   : > { %9771 = vmatmul.mubr.bf16.gmra.mxu1 %v1070_v23  ;;  %v1057_v31 = vadd.f32 %v11721_v51, %v1027_v37 }
 0x18b   : > { %v1071_v44 = vpack.c.bf16 %v1056_v58, %v1055_v12  ;;  %v1028_v20 = vmul.f32 %v11710_v8, %v998_v14  ;;  %v11791_v24 = vshrl.u32 %v1109_v41, 7 }
 0x18d   : > { %1335 = vmatmul.mubr.bf16.gmra.mxu0 %v1068_v2  ;;  %9774 = vmatprep.mubr.bf16.mxu1 %v1071_v44  ;;  %v1058_v38 = vadd.f32 %v11721_v51, %v1028_v20  ;;  %15631 = vst [vmem:[#allocation7_spill] sm:$0xff] %v11791_v24  ;;  %v1119_v21 = vsub.s32 2, %v11791_v24 }
 0x18e   : > { %1344 = vmatprep.mubr.bf16.mxu0 %v15480_v42 }
 0x18f   : > { %v1072_v57 = vpack.c.bf16 %v1058_v38, %v1057_v31  ;;  %v11795_v29 = vrot.slane %v1107_v1, %v1119_v21 }
 0x192   : > { %9775 = vmatmul.mubr.bf16.gmra.mxu1 %v1072_v57 }
 0x195   : > { %1345 = vmatmul.mubr.bf16.gmra.mxu0 %v1069_v4 }
 0x196   : > { %1354 = vmatprep.mubr.bf16.mxu0 %v15480_v42 }
 0x19d   : > { %1355 = vmatmul.mubr.bf16.gmra.mxu0 %v1070_v23 }
 0x19e   : > { %1364 = vmatprep.mubr.bf16.mxu0 %v15480_v42 }
 0x1a5   : > { %1365 = vmatmul.mubr.bf16.gmra.mxu0 %v1071_v44 }
 0x1a6   : > { %1374 = vmatprep.mubr.bf16.mxu0 %v15480_v42 }
 0x1ad   : > { %1375 = vmatmul.mubr.bf16.gmra.mxu0 %v1072_v57 }
 0x1ae   : > { %1384 = vmatprep.mubr.bf16.mxu0 %v15480_v42 }
 0x1da   : > { %v900_v22 = vpop.xlane.xlu0 %899 }
 0x1db   : > { %v927_v25 = vmul.f32 0.0078125, %v900_v22 }
 0x1dd   : > { %v951_v26 = vadd.f32 1e-05, %v927_v25 }
 0x1de   : > { %v902_v27 = vpop.xlane.xlu1 %901 }
 0x1df   : > { %10596 = vrsqrt.f32 %v951_v26  ;;  %v928_v28 = vmul.f32 0.0078125, %v902_v27 }
 0x1e1   : > { %v952_v30 = vadd.f32 1e-05, %v928_v28 }
 0x1e2   : > { %v904_v47 = vpop.xlane.xlu0 %903 }
 0x1e3   : > { %10598 = vrsqrt.f32 %v952_v30  ;;  %v929_v0 = vmul.f32 0.0078125, %v904_v47 }
 0x1e5   : > { %v953_v40 = vadd.f32 1e-05, %v929_v0 }
 0x1e6   : > { %v906_v45 = vpop.xlane.xlu1 %905 }
 0x1e7   : > { %10600 = vrsqrt.f32 %v953_v40  ;;  %v930_v46 = vmul.f32 0.0078125, %v906_v45 }
 0x1e9   : > { %v954_v48 = vadd.f32 1e-05, %v930_v46 }
 0x1eb   : > { %10602 = vrsqrt.f32 %v954_v48 }
 0x1ec   : > { %v10597_v52 = vpop.eup %10596 }
 0x1ed   : > { %v999_v18 = vmul.f32 %v10597_v52, %v11688_v34 }
 0x1ef   : > { %v1029_v49 = vmul.f32 %v11710_v8, %v999_v18 }
 0x1f0   : > { %v10599_v32 = vpop.eup %10598 }
 0x1f1   : > { %v1000_v50 = vmul.f32 %v10599_v32, %v11693_v11  ;;  %v1059_v33 = vadd.f32 %v11721_v51, %v1029_v49 }
 0x1f3   : > { %v1030_v53 = vmul.f32 %v11710_v8, %v1000_v50 }
 0x1f4   : > { %v10601_v54 = vpop.eup %10600 }
 0x1f5   : > { %v1060_v56 = vadd.f32 %v11721_v51, %v1030_v53  ;;  %v1001_v63 = vmul.f32 %v10601_v54, %v11698_v19  ;;  %v15479_v19 = vsub.s32 0, %v11791_v24 }
 0x1f7   : > { %v1073_v2 = vpack.c.bf16 %v1060_v56, %v1059_v33  ;;  %v1031_v43 = vmul.f32 %v11710_v8, %v1001_v63  ;;  %v11814_v3 = vrot.slane %v1107_v1, %v15479_v19 }
 0x1f8   : > { %v10603_v7 = vpop.eup %10602 }
 0x1f9   : > { %1385 = vmatmul.mubr.bf16.gmra.mxu0 %v1073_v2  ;;  %9778 = vmatprep.mubr.bf16.mxu1 %v1073_v2  ;;  %v1002_v34 = vmul.f32 %v10603_v7, %v11703_v39  ;;  %v1061_v59 = vadd.f32 %v11721_v51, %v1031_v43 }
 0x1fa   : > { %1394 = vmatprep.mubr.bf16.mxu0 %v15480_v42 }
 0x1fb   : > { %v1032_v11 = vmul.f32 %v11710_v8, %v1002_v34  ;;  %v15478_v8 = vsub.s32 1, %v11791_v24 }
 0x1fd   : > { %v1062_v60 = vadd.f32 %v11721_v51, %v1032_v11  ;;  %v11825_v55 = vrot.slane %v1107_v1, %v15478_v8 }
 0x1ff   : > { %v1074_v61 = vpack.c.bf16 %v1062_v60, %v1061_v59 }
 0x201   : > { %1395 = vmatmul.mubr.bf16.gmra.mxu0 %v1074_v61  ;;  %9779 = vmatmul.mubr.bf16.gmra.mxu1 %v1074_v61 }
 0x225   : > { %v1286_v62 = vpop.f32.mrf.mxu0 }
 0x226   : > { %v1287_v4 = vadd.f32 %v1286_v62, %v11814_v3 }
 0x227   : > { %v1288_v39 = vpop.f32.mrf.mxu0 }
 0x228   : > { %v1289_v36 = vadd.f32 %v1288_v39, %v11825_v55 }
 0x229   : > { %v1290_v9 = vpop.f32.mrf.mxu0 }
 0x22a   : > { %v1291_v5 = vadd.f32 %v1290_v9, %v11814_v3 }
 0x22b   : > { %v1292_v13 = vpop.f32.mrf.mxu0 }
 0x22c   : > { %v11819_v51 = vpack.c.bf16 %v1291_v5, %v1287_v4  ;;  %v1293_v17 = vadd.f32 %v1292_v13, %v11825_v55 }
 0x22d   : > { %v1296_v16 = vpop.f32.mrf.mxu0  ;;  %v11821_v6 = vpop.f32.mrf.mxu1 }
 0x22e   : > { %15632 = vst [vmem:[#allocation8_spill] sm:$0xff] %v11819_v51  ;;  %9786 = vmatprep.mubr.msk.bf16.mxu1 %vm1585_vm0, %v11819_v51  ;;  %v11836_v14 = vpack.c.bf16 %v1293_v17, %v1289_v36  ;;  %v1297_v47 = vadd.f32 %v1296_v16, %v11814_v3 }
 0x22f   : > { %v1298_v10 = vpop.f32.mrf.mxu0  ;;  %v11831_v23 = vpop.f32.mrf.mxu1 }
 0x230   : > { %v1299_v15 = vadd.f32 %v1298_v10, %v11825_v55  ;;  %v1593_v26 = vsel %vm1585_vm0, %v11836_v14, 0  ;;  %v11867_v49 = vpack.c.bf16 %v1297_v47, %v1297_v47 }
 0x231   : > { %v1300_v35 = vpop.f32.mrf.mxu0  ;;  %v9761_v37 = vpop.f32.mrf.mxu1 }
 0x232   : > { %v11834_v12 = vpack.c.bf16 %v1299_v15, %v1299_v15  ;;  %v1451_v27 = vadd.f32 %v9761_v37, %v11795_v29  ;;  %v1301_v32 = vadd.f32 %v1300_v35, %v11814_v3 }
 0x233   : > { %v1302_v58 = vpop.f32.mrf.mxu0  ;;  %v11844_v38 = vpop.f32.mrf.mxu1 }
 0x234   : > { %10350 = vmatprep.subr.msk.bf16.mxu1 %vm1585_vm0, %v11834_v12  ;;  %v1596_v44 = vsel %vm1585_vm0, %v11834_v12, 0  ;;  %v1303_v53 = vadd.f32 %v1302_v58, %v11825_v55 }
 0x235   : > { %v1306_v20 = vpop.f32.mrf.mxu0  ;;  %9783 = vmatpush3.bf16.xpose.msra.mxu1 %v1596_v44 }
 0x236   : > { %10351 = vmatprep.subr.msk.bf16.mxu1 %vm1585_vm0, %v11836_v14  ;;  %v1307_v45 = vadd.f32 %v1306_v20, %v11814_v3 }
 0x237   : > { %v1308_v31 = vpop.f32.mrf.mxu0 }
 0x238   : > { %v1309_v52 = vadd.f32 %v1308_v31, %v11825_v55  ;;  %v11872_v33 = vpack.c.bf16 %v1307_v45, %v1301_v32 }
 0x239   : > { %v1310_v57 = vpop.f32.mrf.mxu0 }
 0x23a   : > { %v11846_v21 = vpop.f32.mrf.mxu1  ;;  %v11874_v63 = vpack.c.bf16 %v1309_v52, %v1303_v53  ;;  %v1311_v16 = vadd.f32 %v1310_v57, %v11814_v3 }
 0x23b   : > { %v1312_v1 = vpop.f32.mrf.mxu0 }
 0x23c   : > { %v1313_v22 = vadd.f32 %v1312_v1, %v11825_v55  ;;  %v1455_v25 = vpop.f32.mrf.mxu1  ;;  %v1653_v5 = vsel %vm1585_vm0, %v11874_v63, 0  ;;  %v11913_v57 = vpack.c.bf16 %v1311_v16, %v1311_v16 }
 0x23d   : > { %v1456_v28 = vadd.f32 %v1455_v25, %v11795_v29  ;;  %v1316_v30 = vpop.f32.mrf.mxu0  ;;  %9785 = vmatpush3.bf16.xpose.msra.mxu1 %v1593_v26 }
 0x23e   : > { %v11854_v0 = vpack.c.bf16 %v1313_v22, %v1313_v22  ;;  %v11856_v40 = vpop.f32.mrf.mxu1  ;;  %v1317_v20 = vadd.f32 %v1316_v30, %v11814_v3  ;;  %15635 = vst [vmem:[#allocation11_spill] sm:$0xff] %v11913_v57 }
 0x23f   : > { %v11859_v46 = vpack.c.bf16 %v1456_v28, %v1451_v27  ;;  %v1318_v48 = vpop.f32.mrf.mxu0 }
 0x240   : > { %v11862_v18 = vpop.f32.mrf.mxu1  ;;  %10352 = vmatprep.subr.msk.bf16.mxu1 %vm1585_vm0, %v11854_v0  ;;  %v1656_v7 = vsel %vm1585_vm0, %v11854_v0, 0  ;;  %v1319_v1 = vadd.f32 %v1318_v48, %v11825_v55 }
 0x241   : > { %15633 = vst [vmem:[#allocation9_spill] sm:$0xff] %v11859_v46  ;;  %v1320_v50 = vpop.f32.mrf.mxu0 }
 0x242   : > { %v11870_v54 = vpop.f32.mrf.mxu1  ;;  %v1321_v35 = vadd.f32 %v1320_v50, %v11814_v3 }
 0x243   : > { %v1322_v56 = vpop.f32.mrf.mxu0 }
 0x244   : > { %v11876_v2 = vpop.f32.mrf.mxu1  ;;  %9787 = vmatmul.mubr.msk.bf16.vlgmr.msra.gmra.mxu1 %vm1585_vm0, %v11867_v49  ;;  %v1323_v58 = vadd.f32 %v1322_v56, %v11825_v55  ;;  %v11918_v25 = vpack.c.bf16 %v1321_v35, %v1317_v20 }
 0x245   : > { %v11882_v34 = vpop.f32.mrf.mxu0  ;;  %9791 = vmatpush3.bf16.xpose.msra.mxu1 %v1656_v7  ;;  %9794 = vmatprep.mubr.msk.bf16.mxu1 %vm1585_vm0, %v11872_v33 }
 0x246   : > { %v11886_v43 = vpop.f32.mrf.mxu1  ;;  %10353 = vmatprep.subr.msk.bf16.mxu1 %vm1585_vm0, %v11874_v63  ;;  %v11920_v27 = vpack.c.bf16 %v1323_v58, %v1319_v1  ;;  %v1327_v35 = vadd.f32 %v11882_v34, %v11814_v3 }
 0x247   : > { %v1328_v11 = vpop.f32.mrf.mxu0 }
 0x248   : > { %v1329_v59 = vadd.f32 %v1328_v11, %v11825_v55  ;;  %v11891_v60 = vpop.f32.mrf.mxu1  ;;  %15636 = vst [vmem:[#allocation12_spill] sm:$0xff] %v11920_v27 }
 0x249   : > { %v1330_v61 = vpop.f32.mrf.mxu0 }
 0x24a   : > { %v11893_v62 = vpop.f32.mrf.mxu1  ;;  %v11895_v9 = vpack.c.bf16 %v1329_v59, %v1329_v59  ;;  %v1331_v10 = vadd.f32 %v1330_v61, %v11814_v3 }
 0x24b   : > { %v1332_v39 = vpop.f32.mrf.mxu0 }
 0x24c   : > { %15634 = vst [vmem:[#allocation10_spill] sm:$0xff] %v11895_v9  ;;  %v11897_v4 = vpop.f32.mrf.mxu1  ;;  %v1716_v30 = vsel %vm1585_vm0, %v11895_v9, 0  ;;  %v1333_v50 = vadd.f32 %v1332_v39, %v11825_v55 }
 0x24d   : > { %v1336_v13 = vpop.f32.mrf.mxu0  ;;  %9793 = vmatpush3.bf16.xpose.msra.mxu1 %v1653_v5 }
 0x24e   : > { %v1337_v17 = vadd.f32 %v1336_v13, %v11814_v3  ;;  %v9773_v15 = vpop.f32.mrf.mxu1  ;;  %10354 = vmatprep.subr.msk.bf16.mxu1 %vm1585_vm0, %v11895_v9 }
 0x24f   : > { %v1338_v36 = vpop.f32.mrf.mxu0  ;;  %v1499_v48 = vadd.f32 %v9773_v15, %v11795_v29 }
 0x250   : > { %v11908_v37 = vpack.c.bf16 %v1337_v17, %v1331_v10  ;;  %v11910_v44 = vpop.f32.mrf.mxu1  ;;  %v1339_v28 = vadd.f32 %v1338_v36, %v11825_v55  ;;  %v1713_v17 = vsel %vm1585_vm0, %v11920_v27, 0 }
 0x251   : > { %v1340_v31 = vpop.f32.mrf.mxu0 }
 0x252   : > { %v9776_v22 = vpop.f32.mrf.mxu1  ;;  %9810 = vmatprep.mubr.msk.bf16.mxu0 %vm1585_vm0, %v11908_v37  ;;  %v11941_v5 = vpack.c.bf16 %v1339_v28, %v1333_v50 }
 0x253   : > { %v1342_v26 = vpop.f32.mrf.mxu0  ;;  %v1512_v7 = vadd.f32 %v9776_v22, %v11795_v29 }
 0x254   : > { %v1343_v47 = vadd.f32 %v1342_v26, %v11825_v55  ;;  %v1503_v45 = vpop.f32.mrf.mxu1  ;;  %9795 = vmatmul.mubr.msk.bf16.vlgmr.msra.gmra.mxu1 %vm1585_vm0, %v11913_v57  ;;  %15638 = vst [vmem:[#allocation14_spill] sm:$0xff] %v11941_v5  ;;  %v1773_v22 = vsel %vm1585_vm0, %v11941_v5, 0 }
 0x255   : > { %v1504_v52 = vadd.f32 %v1503_v45, %v11795_v29  ;;  %v1346_v32 = vpop.f32.mrf.mxu0  ;;  %9799 = vmatpush3.bf16.xpose.msra.mxu1 %v1716_v30  ;;  %9802 = vmatprep.mubr.msk.bf16.mxu1 %vm1585_vm0, %v11918_v25  ;;  %v1341_v45 = vadd.f32 %v1340_v31, %v11814_v3 }
 0x256   : > { %v11933_v53 = vpack.c.bf16 %v1343_v47, %v1343_v47  ;;  %v9777_v56 = vpop.f32.mrf.mxu1  ;;  %10355 = vmatprep.subr.msk.bf16.mxu1 %vm1585_vm0, %v11920_v27  ;;  %v1347_v26 = vadd.f32 %v1346_v32, %v11814_v3  ;;  %v11961_v47 = vpack.c.bf16 %v1327_v35, %v1327_v35 }
 0x257   : > { %v11938_v11 = vpack.c.bf16 %v1504_v52, %v1499_v48  ;;  %v1515_v59 = vadd.f32 %v9777_v56, %v11795_v29  ;;  %v1348_v61 = vpop.f32.mrf.mxu0  ;;  %v11979_v31 = vpack.c.bf16 %v1341_v45, %v1341_v45 }
 0x258   : > { %15637 = vst [vmem:[#allocation13_spill] sm:$0xff] %v11933_v53  ;;  %10356 = vmatprep.subr.msk.bf16.mxu0 %vm1585_vm0, %v11933_v53  ;;  %v1776_v39 = vsel %vm1585_vm0, %v11933_v53, 0  ;;  %v1349_v34 = vadd.f32 %v1348_v61, %v11825_v55 }
 0x259   : > { %v11947_v13 = vpack.c.bf16 %v1515_v59, %v1512_v7  ;;  %v1350_v16 = vpop.f32.mrf.mxu0  ;;  %9807 = vmatpush3.bf16.xpose.msra.mxu0 %v1776_v39 }
 0x25a   : > { %10357 = vmatprep.subr.msk.bf16.mxu0 %vm1585_vm0, %v11941_v5  ;;  %v1351_v36 = vadd.f32 %v1350_v16, %v11814_v3 }
 0x25b   : > { %15639 = vst [vmem:[#allocation15_spill] sm:$0xff] %v11947_v13  ;;  %v1352_v10 = vpop.f32.mrf.mxu0 }
 0x25c   : > { %v1353_v20 = vadd.f32 %v1352_v10, %v11825_v55  ;;  %v11967_v48 = vpack.c.bf16 %v1351_v36, %v1347_v26 }
 0x25d   : > { %v1356_v15 = vpop.f32.mrf.mxu0  ;;  %9801 = vmatpush3.bf16.xpose.msra.mxu1 %v1713_v17 }
 0x25e   : > { %15640 = vst [vmem:[#allocation16_spill] sm:$0xff] %v11967_v48  ;;  %v11969_v50 = vpack.c.bf16 %v1353_v20, %v1349_v34  ;;  %v1357_v20 = vadd.f32 %v1356_v15, %v11814_v3 }
 0x25f   : > { %v1358_v58 = vpop.f32.mrf.mxu0 }
 0x260   : > { %v1359_v1 = vadd.f32 %v1358_v58, %v11825_v55  ;;  %v1833_v36 = vsel %vm1585_vm0, %v11969_v50, 0 }
 0x261   : > { %v1360_v28 = vpop.f32.mrf.mxu0  ;;  %9809 = vmatpush3.bf16.xpose.msra.mxu0 %v1773_v22 }
 0x262   : > { %v11965_v30 = vpack.c.bf16 %v1359_v1, %v1359_v1  ;;  %v1361_v7 = vadd.f32 %v1360_v28, %v11814_v3 }
 0x263   : > { %v1362_v52 = vpop.f32.mrf.mxu0 }
 0x264   : > { %9803 = vmatmul.mubr.msk.bf16.vlgmr.msra.gmra.mxu1 %vm1585_vm0, %v11961_v47  ;;  %10358 = vmatprep.subr.msk.bf16.mxu1 %vm1585_vm0, %v11965_v30  ;;  %v1836_v32 = vsel %vm1585_vm0, %v11965_v30, 0  ;;  %v1363_v1 = vadd.f32 %v1362_v52, %v11825_v55 }
 0x265   : > { %v1366_v56 = vpop.f32.mrf.mxu0  ;;  %9815 = vmatpush3.bf16.xpose.msra.mxu1 %v1836_v32  ;;  %9818 = vmatprep.mubr.msk.bf16.mxu1 %vm1585_vm0, %v11967_v48  ;;  %v12005_v32 = vpack.c.bf16 %v1357_v20, %v1357_v20 }
 0x266   : > { %v1367_v59 = vadd.f32 %v1366_v56, %v11814_v3  ;;  %10359 = vmatprep.subr.msk.bf16.mxu1 %vm1585_vm0, %v11969_v50 }
 0x267   : > { %v1368_v61 = vpop.f32.mrf.mxu0  ;;  %15643 = vst [vmem:[#allocation19_spill] sm:$0xff] %v12005_v32 }
 0x268   : > { %v11985_v39 = vpack.c.bf16 %v1367_v59, %v1361_v7  ;;  %9811 = vmatmul.mubr.msk.bf16.vlgmr.msra.gmra.mxu0 %vm1585_vm0, %v11979_v31  ;;  %v1369_v17 = vadd.f32 %v1368_v61, %v11825_v55 }
 0x269   : > { %v1370_v16 = vpop.f32.mrf.mxu0 }
 0x26a   : > { %15641 = vst [vmem:[#allocation17_spill] sm:$0xff] %v11985_v39  ;;  %9826 = vmatprep.mubr.msk.bf16.mxu0 %vm1585_vm0, %v11985_v39  ;;  %v11999_v28 = vpack.c.bf16 %v1369_v17, %v1363_v1  ;;  %v1371_v59 = vadd.f32 %v1370_v16, %v11814_v3 }
 0x26b   : > { %v1372_v10 = vpop.f32.mrf.mxu0 }
 0x26c   : > { %v1373_v35 = vadd.f32 %v1372_v10, %v11825_v55  ;;  %15642 = vst [vmem:[#allocation18_spill] sm:$0xff] %v11999_v28  ;;  %v1893_v7 = vsel %vm1585_vm0, %v11999_v28, 0  ;;  %v12020_v61 = vpack.c.bf16 %v1371_v59, %v1371_v59 }
 0x26d   : > { %v1376_v58 = vpop.f32.mrf.mxu0  ;;  %9817 = vmatpush3.bf16.xpose.msra.mxu1 %v1833_v36 }
 0x26e   : > { %v11997_v22 = vpack.c.bf16 %v1373_v35, %v1373_v35  ;;  %v1377_v56 = vadd.f32 %v1376_v58, %v11814_v3  ;;  %15645 = vst [vmem:[#allocation21_spill] sm:$0xff] %v12020_v61 }
 0x26f   : > { %v1378_v26 = vpop.f32.mrf.mxu0 }
 0x270   : > { %10360 = vmatprep.subr.msk.bf16.mxu0 %vm1585_vm0, %v11997_v22  ;;  %v1896_v45 = vsel %vm1585_vm0, %v11997_v22, 0  ;;  %v1379_v1 = vadd.f32 %v1378_v26, %v11825_v55 }
 0x271   : > { %v1380_v34 = vpop.f32.mrf.mxu0  ;;  %9823 = vmatpush3.bf16.xpose.msra.mxu0 %v1896_v45 }
 0x272   : > { %v1381_v15 = vadd.f32 %v1380_v34, %v11814_v3  ;;  %10361 = vmatprep.subr.msk.bf16.mxu0 %vm1585_vm0, %v11999_v28 }
 0x273   : > { %v1382_v10 = vpop.f32.mrf.mxu0 }
 0x274   : > { %v12011_v52 = vpack.c.bf16 %v1381_v15, %v1377_v56  ;;  %9819 = vmatmul.mubr.msk.bf16.vlgmr.msra.gmra.mxu1 %vm1585_vm0, %v12005_v32  ;;  %v1383_v36 = vadd.f32 %v1382_v10, %v11825_v55  ;;  %v1448_v10 = vadd.f32 %v11821_v6, %v11795_v29 }
 0x276   : > { %15644 = vst [vmem:[#allocation20_spill] sm:$0xff] %v12011_v52  ;;  %9834 = vmatprep.mubr.msk.bf16.mxu1 %vm1585_vm0, %v12011_v52  ;;  %v12029_v56 = vpack.c.bf16 %v1383_v36, %v1379_v1  ;;  %v12045_v1 = vpack.c.bf16 %v1448_v10, %v1448_v10  ;;  %v1443_v10 = vadd.f32 %v11844_v38, %v11795_v29 }
 0x277   : > { %v1459_v38 = vadd.f32 %v11862_v18, %v11795_v29 }
 0x278   : > { %15647 = vst [vmem:[#allocation23_spill] sm:$0xff] %v12029_v56  ;;  %15649 = vst [vmem:[#allocation25_spill] sm:$0xff] %v12045_v1 }
 0x279   : > { %9825 = vmatpush3.bf16.xpose.msra.mxu0 %v1893_v7 }
 0x280   : > { %9827 = vmatmul.mubr.msk.bf16.vlgmr.msra.gmra.mxu0 %vm1585_vm0, %v12020_v61 }
 0x2b9   : > { %v1386_v17 = vpop.f32.mrf.mxu0 }
 0x2ba   : > { %v1387_v6 = vadd.f32 %v1386_v17, %v11814_v3 }
 0x2bb   : > { %v1388_v35 = vpop.f32.mrf.mxu0 }
 0x2bc   : > { %v1389_v58 = vadd.f32 %v1388_v35, %v11825_v55  ;;  %v12067_v17 = vpack.c.bf16 %v1387_v6, %v1387_v6 }
 0x2bd   : > { %v1390_v20 = vpop.f32.mrf.mxu0 }
 0x2be   : > { %v12027_v45 = vpack.c.bf16 %v1389_v58, %v1389_v58  ;;  %v1391_v7 = vadd.f32 %v1390_v20, %v11814_v3  ;;  %15652 = vst [vmem:[#allocation28_spill] sm:$0xff] %v12067_v17 }
 0x2bf   : > { %v1392_v34 = vpop.f32.mrf.mxu0 }
 0x2c0   : > { %15646 = vst [vmem:[#allocation22_spill] sm:$0xff] %v12027_v45  ;;  %10362 = vmatprep.subr.msk.bf16.mxu1 %vm1585_vm0, %v12027_v45  ;;  %v1956_v16 = vsel %vm1585_vm0, %v12027_v45, 0 }
 0x2c1   : > { %v1396_v15 = vpop.f32.mrf.mxu0  ;;  %9831 = vmatpush3.bf16.xpose.msra.mxu1 %v1956_v16 }
 0x2c2   : > { %v1397_v59 = vadd.f32 %v1396_v15, %v11814_v3  ;;  %10363 = vmatprep.subr.msk.bf16.mxu1 %vm1585_vm0, %v12029_v56  ;;  %v1953_v15 = vsel %vm1585_vm0, %v12029_v56, 0 }
 0x2c3   : > { %v1398_v26 = vpop.f32.mrf.mxu0 }
 0x2c4   : > { %v12041_v35 = vpack.c.bf16 %v1397_v59, %v1391_v7  ;;  %v1399_v20 = vadd.f32 %v1398_v26, %v11825_v55  ;;  %v1393_v7 = vadd.f32 %v1392_v34, %v11825_v55 }
 0x2c5   : > { %v1400_v36 = vpop.f32.mrf.mxu0 }
 0x2c6   : > { %15648 = vst [vmem:[#allocation24_spill] sm:$0xff] %v12041_v35  ;;  %9842 = vmatprep.mubr.msk.bf16.mxu0 %vm1585_vm0, %v12041_v35  ;;  %v12059_v26 = vpack.c.bf16 %v1399_v20, %v1393_v7  ;;  %v1472_v20 = vadd.f32 %v11876_v2, %v11795_v29  ;;  %v1401_v18 = vadd.f32 %v1400_v36, %v11814_v3 }
 0x2c7   : > { %v1402_v58 = vpop.f32.mrf.mxu0  ;;  %v1467_v2 = vadd.f32 %v11856_v40, %v11795_v29  ;;  %v1464_v7 = vadd.f32 %v11846_v21, %v11795_v29  ;;  %v12114_v21 = vpop.f32.mrf.mxu1 }
 0x2c8   : > { %v1403_v16 = vadd.f32 %v1402_v58, %v11825_v55  ;;  %15651 = vst [vmem:[#allocation27_spill] sm:$0xff] %v12059_v26  ;;  %v1440_v55 = vadd.f32 %v11831_v23, %v11795_v29  ;;  %v12082_v23 = vpack.c.bf16 %v1459_v38, %v1459_v38  ;;  %v2013_v6 = vsel %vm1585_vm0, %v12059_v26, 0 }
 0x2c9   : > { %9833 = vmatpush3.bf16.xpose.msra.mxu1 %v1953_v15  ;;  %v12084_v15 = vpack.c.bf16 %v1472_v20, %v1472_v20  ;;  %v12116_v36 = vpop.f32.mrf.mxu1  ;;  %v12121_v38 = vand.u32 127, %v1109_v41 }
 0x2ca   : > { %v12053_v59 = vpack.c.bf16 %v1403_v16, %v1403_v16  ;;  %10366 = vmatprep.subr.msk.bf16.mxu1 %vm2329_vm1, %v12045_v1  ;;  %v12071_v34 = vpack.c.bf16 %v1443_v10, %v1440_v55  ;;  %v2331_v16 = vsel %vm2329_vm1, %v12045_v1, 0  ;;  %v12098_v10 = vpack.c.bf16 %v1401_v18, %v1401_v18  ;;  %15658 = vst [vmem:[#allocation34_spill] sm:$0xff] %v12116_v36 }
 0x2cb   : > { %15654 = vst [vmem:[#allocation30_spill] sm:$0xff] %v12084_v15  ;;  %v1496_v55 = vadd.f32 %v11893_v62, %v11795_v29  ;;  %v2445_v3 = vsel %vm2329_vm1, %v12084_v15, 0  ;;  %v12118_v62 = vpop.f32.mrf.mxu1  ;;  %15659 = vst [vmem:[#allocation35_spill] sm:$0xff] %v12121_v38  ;;  %vm1584_vm2 = vcmp.lt.s32.totalorder %v12121_v38, 17 }
 0x2cc   : > { %15650 = vst [vmem:[#allocation26_spill] sm:$0xff] %v12053_v59  ;;  %10364 = vmatprep.subr.msk.bf16.mxu0 %vm1585_vm0, %v12053_v59  ;;  %v2016_v58 = vsel %vm1585_vm0, %v12053_v59, 0  ;;  %15653 = vst [vmem:[#allocation29_spill] sm:$0xff] %v12071_v34 }
 0x2cd   : > { %9839 = vmatpush3.bf16.xpose.msra.mxu0 %v2016_v58  ;;  %15655 = vst [vmem:[#allocation31_spill] sm:$0xff] %v12098_v10  ;;  %v12100_v58 = vpack.c.bf16 %v1467_v2, %v1464_v7  ;;  %v12109_v40 = vpack.c.bf16 %v1496_v55, %v1496_v55  ;;  %v12123_v20 = vpop.f32.mrf.mxu1 }
 0x2ce   : > { %10365 = vmatprep.subr.msk.bf16.mxu0 %vm1585_vm0, %v12059_v26 }
 0x2cf   : > { %15656 = vst [vmem:[#allocation32_spill] sm:$0xff] %v12100_v58  ;;  %15657 = vst [vmem:[#allocation33_spill] sm:$0xff] %v12109_v40 }
 0x2d0   : > { %9835 = vmatmul.mubr.msk.bf16.vlgmr.msra.gmra.mxu1 %vm1585_vm0, %v12067_v17 }
 0x2d1   : > { %9847 = vmatpush3.bf16.msra.mxu1 %v2331_v16  ;;  %v12126_v16 = vpop.f32.mrf.mxu1 }
 0x2d2   : > { %9848 = vmatprep.subr.bf16.mxu1 %v12071_v34  ;;  %15660 = vst [vmem:[#allocation36_spill] sm:$0xff] %v12126_v16 }
 0x2d5   : > { %9841 = vmatpush3.bf16.xpose.msra.mxu0 %v2013_v6  ;;  %9849 = vmatpush3.bf16.msra.mxu1 %v12071_v34 }
 0x2d6   : > { %10367 = vmatprep.subr.msk.bf16.mxu1 %vm2329_vm1, %v12082_v23  ;;  %10368 = vmatprep.subr.msk.bf16.mxu0 %vm2329_vm1, %v12084_v15 }
 0x2dc   : > { %9843 = vmatmul.mubr.msk.bf16.vlgmr.msra.gmra.mxu0 %vm1585_vm0, %v12098_v10 }
 0x2dd   : > { %9863 = vmatpush3.bf16.msra.mxu0 %v2445_v3 }
 0x2de   : > { %9864 = vmatprep.subr.bf16.mxu0 %v12100_v58 }
 0x2e1   : > { %9865 = vmatpush3.bf16.msra.mxu0 %v12100_v58 }
 0x2e2   : > { %10370 = vmatprep.subr.msk.bf16.mxu0 %vm2329_vm1, %v12109_v40 }
 0x304   : > { %v9788_v6 = vpop.f32.mrf.mxu1 }
 0x305   : > { %v12130_v18 = vsel %vm1584_vm2, %v9788_v6, -1e+30 }
 0x306   : > { %v1632_v2 = vpop.f32.mrf.mxu1  ;;  %v2097_v7 = vsel %vm2090_vm3, %v12130_v18, -inf }
 0x307   : > { %v12136_v41 = vsel %vm1584_vm2, %v1632_v2, -1e+30  ;;  %2098 = vmax.xlane.f32.xlu0 %v2097_v7 }
 0x308   : > { %v9789_v55 = vpop.f32.mrf.mxu1  ;;  %v2091_v8 = vsel %vm2090_vm3, %v12136_v41, -inf }
 0x30a   : > { %v1635_v3 = vpop.f32.mrf.mxu1 }
 0x30b   : > { %2092 = vmax.xlane.f32.xlu0 %v2091_v8  ;;  %v12142_v19 = vsel %vm1584_vm2, %v1635_v3, -1e+30 }
 0x30c   : > { %v2094_v6 = vsel %vm2090_vm3, %v12142_v19, -inf }
 0x30d   : > { %2095 = vmax.xlane.f32.xlu1 %v2094_v6 }
 0x314   : > { %v9796_v42 = vpop.f32.mrf.mxu1 }
 0x315   : > { %v12148_v2 = vsel %vm1584_vm2, %v9796_v42, -1e+30 }
 0x316   : > { %v1692_v7 = vpop.f32.mrf.mxu1  ;;  %v2106_v55 = vsel %vm2090_vm3, %v12148_v2, -inf }
 0x317   : > { %v12154_v8 = vsel %vm1584_vm2, %v1692_v7, -1e+30  ;;  %2107 = vmax.xlane.f32.xlu1 %v2106_v55 }
 0x318   : > { %v9797_v3 = vpop.f32.mrf.mxu1  ;;  %v2100_v58 = vsel %vm2090_vm3, %v12154_v8, -inf }
 0x31a   : > { %v1695_v24 = vpop.f32.mrf.mxu1 }
 0x31b   : > { %2101 = vmax.xlane.f32.xlu1 %v2100_v58  ;;  %v12160_v6 = vsel %vm1584_vm2, %v1695_v24, -1e+30 }
 0x31c   : > { %v2103_v42 = vsel %vm2090_vm3, %v12160_v6, -inf }
 0x31d   : > { %2104 = vmax.xlane.f32.xlu0 %v2103_v42 }
 0x324   : > { %v9804_v15 = vpop.f32.mrf.mxu1 }
 0x325   : > { %v12166_v7 = vsel %vm1584_vm2, %v9804_v15, -1e+30 }
 0x326   : > { %v1752_v55 = vpop.f32.mrf.mxu1  ;;  %v2115_v3 = vsel %vm2090_vm3, %v12166_v7, -inf }
 0x327   : > { %v12172_v58 = vsel %vm1584_vm2, %v1752_v55, -1e+30  ;;  %2116 = vmax.xlane.f32.xlu0 %v2115_v3 }
 0x328   : > { %v9805_v24 = vpop.f32.mrf.mxu1  ;;  %v9812_v34 = vpop.f32.mrf.mxu0  ;;  %v2109_v15 = vsel %vm2090_vm3, %v12172_v58, -inf }
 0x329   : > { %v12176_v1 = vsel %vm1584_vm2, %v9812_v34, -1e+30 }
 0x32a   : > { %v1755_v42 = vpop.f32.mrf.mxu1  ;;  %v1812_v10 = vpop.f32.mrf.mxu0  ;;  %v2124_v35 = vsel %vm2090_vm3, %v12176_v1, -inf }
 0x32b   : > { %2110 = vmax.xlane.f32.xlu0 %v2109_v15  ;;  %2125 = vmax.xlane.f32.xlu1 %v2124_v35  ;;  %v12184_v55 = vsel %vm1584_vm2, %v1755_v42, -1e+30  ;;  %v12190_v17 = vsel %vm1584_vm2, %v1812_v10, -1e+30 }
 0x32c   : > { %v9813_v3 = vpop.f32.mrf.mxu0  ;;  %v2112_v34 = vsel %vm2090_vm3, %v12184_v55, -inf  ;;  %v2118_v42 = vsel %vm2090_vm3, %v12190_v17, -inf }
 0x32e   : > { %v1815_v24 = vpop.f32.mrf.mxu0 }
 0x32f   : > { %2113 = vmax.xlane.f32.xlu1 %v2112_v34  ;;  %v12194_v52 = vsel %vm1584_vm2, %v1815_v24, -1e+30 }
 0x330   : > { %v2121_v35 = vsel %vm2090_vm3, %v12194_v52, -inf }
 0x331   : > { %2122 = vmax.xlane.f32.xlu0 %v2121_v35 }
 0x333   : > { %2119 = vmax.xlane.f32.xlu1 %v2118_v42 }
 0x334   : > { %v9820_v15 = vpop.f32.mrf.mxu1 }
 0x335   : > { %v12202_v3 = vsel %vm1584_vm2, %v9820_v15, -1e+30 }
 0x336   : > { %v1872_v10 = vpop.f32.mrf.mxu1  ;;  %v2133_v34 = vsel %vm2090_vm3, %v12202_v3, -inf }
 0x337   : > { %v12208_v24 = vsel %vm1584_vm2, %v1872_v10, -1e+30  ;;  %2134 = vmax.xlane.f32.xlu0 %v2133_v34 }
 0x338   : > { %v9821_v26 = vpop.f32.mrf.mxu1  ;;  %v2127_v56 = vsel %vm2090_vm3, %v12208_v24, -inf }
 0x33a   : > { %v1875_v35 = vpop.f32.mrf.mxu1 }
 0x33b   : > { %2128 = vmax.xlane.f32.xlu0 %v2127_v56  ;;  %v12214_v42 = vsel %vm1584_vm2, %v1875_v35, -1e+30 }
 0x33c   : > { %v2130_v15 = vsel %vm2090_vm3, %v12214_v42, -inf }
 0x33d   : > { %2131 = vmax.xlane.f32.xlu1 %v2130_v15 }
 0x340   : > { %v9828_v61 = vpop.f32.mrf.mxu0 }
 0x341   : > { %v12220_v10 = vsel %vm1584_vm2, %v9828_v61, -1e+30 }
 0x342   : > { %v1932_v34 = vpop.f32.mrf.mxu0  ;;  %v2142_v26 = vsel %vm2090_vm3, %v12220_v10, -inf }
 0x343   : > { %v12226_v56 = vsel %vm1584_vm2, %v1932_v34, -1e+30  ;;  %2143 = vmax.xlane.f32.xlu1 %v2142_v26 }
 0x344   : > { %v9829_v35 = vpop.f32.mrf.mxu0  ;;  %v2136_v39 = vsel %vm2090_vm3, %v12226_v56, -inf }
 0x346   : > { %v1935_v59 = vpop.f32.mrf.mxu0 }
 0x347   : > { %2137 = vmax.xlane.f32.xlu1 %v2136_v39  ;;  %v12232_v15 = vsel %vm1584_vm2, %v1935_v59, -1e+30 }
 0x348   : > { %v2139_v61 = vsel %vm2090_vm3, %v12232_v15, -inf }
 0x349   : > { %2140 = vmax.xlane.f32.xlu0 %v2139_v61 }
 0x390   : > { %v2099_v36 = vpop.xlane.xlu0 %2098  ;;  %v9836_v32 = vpop.f32.mrf.mxu1 }
 0x391   : > { %v2165_v34 = vsub.f32 %v12130_v18, %v2099_v36  ;;  %v12239_v26 = vsel %vm1584_vm2, %v9836_v32, -1e+30 }
 0x392   : > { %15661 = vst [vmem:[#allocation37_spill] sm:$0xff] %v12239_v26  ;;  %v1992_v35 = vpop.f32.mrf.mxu1  ;;  %v2151_v39 = vsel %vm2090_vm3, %v12239_v26, -inf }
 0x393   : > { %v12245_v59 = vsel %vm1584_vm2, %v1992_v35, -1e+30  ;;  %2152 = vmax.xlane.f32.xlu0 %v2151_v39  ;;  %v2191_v61 = vmul.f32 1.442695, %v2165_v34 }
 0x394   : > { %v2093_v16 = vpop.xlane.xlu0 %2092  ;;  %v9837_v45 = vpop.f32.mrf.mxu1  ;;  %v2145_v32 = vsel %vm2090_vm3, %v12245_v59, -inf }
 0x395   : > { %v2163_v48 = vsub.f32 %v12136_v41, %v2093_v16  ;;  %10604 = vpow2.f32 %v2191_v61 }
 0x396   : > { %v2096_v13 = vpop.xlane.xlu1 %2095  ;;  %v1995_v36 = vpop.f32.mrf.mxu1 }
 0x397   : > { %v2187_v18 = vmul.f32 1.442695, %v2163_v48  ;;  %v2164_v28 = vsub.f32 %v12142_v19, %v2096_v13  ;;  %2146 = vmax.xlane.f32.xlu0 %v2145_v32  ;;  %v12253_v26 = vsel %vm1584_vm2, %v1995_v36, -1e+30 }
 0x398   : > { %v2148_v35 = vsel %vm2090_vm3, %v12253_v26, -inf }
 0x399   : > { %v2189_v45 = vmul.f32 1.442695, %v2164_v28  ;;  %2149 = vmax.xlane.f32.xlu1 %v2148_v35  ;;  %10606 = vpow2.f32 %v2187_v18 }
 0x39b   : > { %10608 = vpow2.f32 %v2189_v45 }
 0x39c   : > { %v9844_v16 = vpop.f32.mrf.mxu0 }
 0x39d   : > { %v12259_v41 = vsel %vm1584_vm2, %v9844_v16, -1e+30 }
 0x39e   : > { %v2052_v48 = vpop.f32.mrf.mxu0  ;;  %v2160_v19 = vsel %vm2090_vm3, %v12259_v41, -inf }
 0x39f   : > { %v12265_v13 = vsel %vm1584_vm2, %v2052_v48, -1e+30  ;;  %2161 = vmax.xlane.f32.xlu1 %v2160_v19 }
 0x3a0   : > { %v2108_v34 = vpop.xlane.xlu1 %2107  ;;  %v9845_v39 = vpop.f32.mrf.mxu0  ;;  %v2154_v36 = vsel %vm2090_vm3, %v12265_v13, -inf }
 0x3a1   : > { %v2168_v28 = vsub.f32 %v12148_v2, %v2108_v34 }
 0x3a2   : > { %v2055_v61 = vpop.f32.mrf.mxu0  ;;  %v12277_v48 = vpop.eup %10604 }
 0x3a3   : > { %2155 = vmax.xlane.f32.xlu1 %v2154_v36  ;;  %v12272_v32 = vsel %vm1584_vm2, %v2055_v61, -1e+30  ;;  %v2197_v45 = vmul.f32 1.442695, %v2168_v28  ;;  %15662 = vst [vmem:[#allocation38_spill] sm:$0xff] %v12277_v48  ;;  %v1483_v28 = vadd.f32 %v11886_v43, %v11795_v29 }
 0x3a4   : > { %v2102_v18 = vpop.xlane.xlu1 %2101  ;;  %v2157_v35 = vsel %vm2090_vm3, %v12272_v32, -inf }
 0x3a5   : > { %v2166_v16 = vsub.f32 %v12154_v8, %v2102_v18  ;;  %2158 = vmax.xlane.f32.xlu0 %v2157_v35  ;;  %10610 = vpow2.f32 %v2197_v45  ;;  %v2308_v8 = vpack.c.bf16 %v12277_v48, %v12277_v48  ;;  %v12295_v18 = vpack.c.bf16 %v1483_v28, %v1483_v28 }
 0x3a6   : > { %v2105_v2 = vpop.xlane.xlu0 %2104  ;;  %v12279_v19 = vpop.eup %10606 }
 0x3a7   : > { %15663 = vst [vmem:[#allocation39_spill] sm:$0xff] %v12279_v19  ;;  %v2193_v34 = vmul.f32 1.442695, %v2166_v16  ;;  %v2167_v39 = vsub.f32 %v12160_v6, %v2105_v2  ;;  %v2388_v6 = vsel %vm2329_vm1, %v12082_v23, 0 }
 0x3a8   : > { %v12282_v36 = vpop.eup %10608 }
 0x3a9   : > { %15664 = vst [vmem:[#allocation40_spill] sm:$0xff] %v12282_v36  ;;  %v2195_v61 = vmul.f32 1.442695, %v2167_v39  ;;  %v2307_v38 = vpack.c.bf16 %v12282_v36, %v12279_v19  ;;  %10612 = vpow2.f32 %v2193_v34 }
 0x3ab   : > { %10614 = vpow2.f32 %v2195_v61  ;;  %9850 = vmatprep.mubr.msk.bf16.mxu1 %vm2090_vm3, %v2307_v38 }
 0x3ac   : > { %9851 = vmatmul.mubr.msk.bf16.vlgmr.msra.gmra.mxu1 %vm2090_vm3, %v2308_v8 }
 0x3ad   : > { %9855 = vmatpush3.bf16.msra.mxu1 %v2388_v6 }
 0x3ae   : > { %9856 = vmatprep.subr.bf16.mxu1 %v11859_v46 }
 0x3b0   : > { %v2117_v35 = vpop.xlane.xlu0 %2116 }
 0x3b1   : > { %9857 = vmatpush3.bf16.msra.mxu1 %v11859_v46  ;;  %v2171_v38 = vsub.f32 %v12166_v7, %v2117_v35  ;;  %v1475_v7 = vadd.f32 %v11891_v60, %v11795_v29 }
 0x3b2   : > { %10369 = vmatprep.subr.msk.bf16.mxu1 %vm2329_vm1, %v12295_v18  ;;  %v12304_v2 = vpop.eup %10610 }
 0x3b3   : > { %15665 = vst [vmem:[#allocation41_spill] sm:$0xff] %v12304_v2  ;;  %v2203_v39 = vmul.f32 1.442695, %v2171_v38  ;;  %v1480_v38 = vadd.f32 %v11870_v54, %v11795_v29  ;;  %v2502_v54 = vsel %vm2329_vm1, %v12295_v18, 0 }
 0x3b4   : > { %v2111_v45 = vpop.xlane.xlu0 %2110  ;;  %v2126_v43 = vpop.xlane.xlu1 %2125  ;;  %2934 = vrot.lane.b32.xlu1 %v11854_v0, %s11277_s18 }
 0x3b5   : > { %v2169_v16 = vsub.f32 %v12172_v58, %v2111_v45  ;;  %v2174_v61 = vsub.f32 %v12176_v1, %v2126_v43  ;;  %v2310_v1 = vpack.c.bf16 %v12304_v2, %v12304_v2  ;;  %10616 = vpow2.f32 %v2203_v39 }
 0x3b6   : > { %v12306_v34 = vpop.eup %10612 }
 0x3b7   : > { %15666 = vst [vmem:[#allocation42_spill] sm:$0xff] %v12306_v34  ;;  %v2199_v28 = vmul.f32 1.442695, %v2169_v16  ;;  %v2209_v43 = vmul.f32 1.442695, %v2174_v61 }
 0x3b8   : > { %v12309_v8 = vpop.eup %10614  ;;  %v2114_v6 = vpop.xlane.xlu1 %2113  ;;  %2860 = vrot.lane.b32.xlu1 %v11836_v14, %s11277_s18 }
 0x3b9   : > { %15667 = vst [vmem:[#allocation43_spill] sm:$0xff] %v12309_v8  ;;  %v2170_v35 = vsub.f32 %v12184_v55, %v2114_v6  ;;  %v2309_v58 = vpack.c.bf16 %v12309_v8, %v12306_v34  ;;  %v12326_v55 = vpack.c.bf16 %v1480_v38, %v1475_v7  ;;  %v1507_v6 = vadd.f32 %v12114_v21, %v11795_v29 }
 0x3ba   : > { %v2123_v45 = vpop.xlane.xlu0 %2122  ;;  %10618 = vpow2.f32 %v2199_v28 }
 0x3bb   : > { %v2201_v60 = vmul.f32 1.442695, %v2170_v35  ;;  %v2173_v16 = vsub.f32 %v12194_v52, %v2123_v45  ;;  %9858 = vmatprep.mubr.msk.bf16.mxu1 %vm2090_vm3, %v2309_v58  ;;  %2862 = vrot.lane.b32.xlu0 %v11834_v12, %s11277_s18  ;;  %v12339_v21 = vpack.c.bf16 %v1507_v6, %v1507_v6 }
 0x3bc   : > { %9859 = vmatmul.mubr.msk.bf16.vlgmr.msra.gmra.mxu1 %vm2090_vm3, %v2310_v1  ;;  %v2120_v39 = vpop.xlane.xlu1 %2119  ;;  %2932 = vrot.lane.b32.xlu1 %v11874_v63, %s11277_s18 }
 0x3bd   : > { %10620 = vpow2.f32 %v2201_v60  ;;  %v2207_v52 = vmul.f32 1.442695, %v2173_v16  ;;  %9871 = vmatpush3.bf16.msra.mxu1 %v2502_v54  ;;  %v2172_v61 = vsub.f32 %v12190_v17, %v2120_v39  ;;  %v1488_v39 = vadd.f32 %v11897_v4, %v11795_v29 }
 0x3be   : > { %9872 = vmatprep.subr.bf16.mxu1 %v12326_v55  ;;  %10622 = vpow2.f32 %v2209_v43  ;;  %v1520_v4 = vadd.f32 %v12118_v62, %v11795_v29 }
 0x3bf   : > { %v2205_v7 = vmul.f32 1.442695, %v2172_v61  ;;  %2854 = vrot.lane.b32.xlu0 %v11819_v51, %s11277_s18  ;;  %10624 = vpow2.f32 %v2207_v52 }
 0x3c0   : > { %v2135_v28 = vpop.xlane.xlu0 %2134  ;;  %3006 = vrot.lane.b32.xlu1 %v11895_v9, %s11277_s18 }
 0x3c1   : > { %10626 = vpow2.f32 %v2205_v7  ;;  %9873 = vmatpush3.bf16.msra.mxu1 %v12326_v55  ;;  %v2177_v35 = vsub.f32 %v12202_v3, %v2135_v28 }
 0x3c2   : > { %10371 = vmatprep.subr.msk.bf16.mxu1 %vm2329_vm1, %v12339_v21  ;;  %v12355_v3 = vpop.eup %10616 }
 0x3c3   : > { %2856 = vrot.lane.b32.xlu0 %v11867_v49, %s11277_s18  ;;  %v2215_v58 = vmul.f32 1.442695, %v2177_v35  ;;  %15668 = vst [vmem:[#allocation44_spill] sm:$0xff] %v12355_v3 }
 0x3c4   : > { %v2129_v17 = vpop.xlane.xlu0 %2128  ;;  %2926 = vrot.lane.b32.xlu1 %v11872_v33, %s11277_s18 }
 0x3c5   : > { %v2175_v38 = vsub.f32 %v12208_v24, %v2129_v17  ;;  %10628 = vpow2.f32 %v2215_v58  ;;  %v1491_v24 = vadd.f32 %v11910_v44, %v11795_v29  ;;  %v2312_v44 = vpack.c.bf16 %v12355_v3, %v12355_v3 }
 0x3c6   : > { %v2132_v45 = vpop.xlane.xlu1 %2131  ;;  %v2559_v17 = vsel %vm2329_vm1, %v12109_v40, 0 }
 0x3c7   : > { %v2211_v1 = vmul.f32 1.442695, %v2175_v38  ;;  %v2176_v43 = vsub.f32 %v12214_v42, %v2132_v45  ;;  %3078 = vrot.lane.b32.xlu0 %v11933_v53, %s11277_s18  ;;  %v12359_v60 = vpop.eup %10618  ;;  %v12383_v35 = vpack.c.bf16 %v1491_v24, %v1488_v39 }
 0x3c8   : > { %2928 = vrot.lane.b32.xlu1 %v11913_v57, %s11277_s18  ;;  %15669 = vst [vmem:[#allocation45_spill] sm:$0xff] %v12359_v60 }
 0x3c9   : > { %v2213_v16 = vmul.f32 1.442695, %v2176_v43  ;;  %10630 = vpow2.f32 %v2211_v1  ;;  %v12401_v1 = vpack.c.bf16 %v1520_v4, %v1520_v4  ;;  %v1531_v43 = vadd.f32 %v12123_v20, %v11795_v29 }
 0x3ca   : > { %v12361_v6 = vpop.eup %10620 }
 0x3cb   : > { %15670 = vst [vmem:[#allocation46_spill] sm:$0xff] %v12361_v6  ;;  %10632 = vpow2.f32 %v2213_v16  ;;  %3004 = vrot.lane.b32.xlu0 %v11920_v27, %s11277_s18  ;;  %v2311_v42 = vpack.c.bf16 %v12361_v6, %v12359_v60  ;;  %v12369_v54 = vpop.eup %10622  ;;  %v2616_v16 = vsel %vm2329_vm1, %v12339_v21, 0 }
 0x3cc   : > { %15671 = vst [vmem:[#allocation47_spill] sm:$0xff] %v12369_v54  ;;  %v2144_v52 = vpop.xlane.xlu1 %2143  ;;  %3076 = vrot.lane.b32.xlu1 %v11941_v5, %s11277_s18  ;;  %v12377_v61 = vpop.eup %10624  ;;  %v2314_v62 = vpack.c.bf16 %v12369_v54, %v12369_v54  ;;  %v15699_v54 = vld [vmem:[#allocation32_spill] sm:$0xff] }
 0x3cd   : > { %15672 = vst [vmem:[#allocation48_spill] sm:$0xff] %v12377_v61  ;;  %v2180_v7 = vsub.f32 %v12220_v10, %v2144_v52  ;;  %9866 = vmatprep.mubr.msk.bf16.mxu0 %vm2090_vm3, %v2311_v42  ;;  %v12419_v52 = vpack.c.bf16 %v1531_v43, %v1531_v43 }
 0x3ce   : > { %v12381_v28 = vpop.eup %10626  ;;  %9867 = vmatmul.mubr.msk.bf16.vlgmr.msra.gmra.mxu0 %vm2090_vm3, %v2312_v44 }
 0x3cf   : > { %15673 = vst [vmem:[#allocation49_spill] sm:$0xff] %v12381_v28  ;;  %9879 = vmatpush3.bf16.msra.mxu0 %v2559_v17  ;;  %2998 = vrot.lane.b32.xlu0 %v11918_v25, %s11277_s18  ;;  %v2313_v10 = vpack.c.bf16 %v12377_v61, %v12381_v28  ;;  %v2221_v38 = vmul.f32 1.442695, %v2180_v7  ;;  %v2673_v17 = vsel %vm2329_vm1, %v12401_v1, 0  ;;  %v15700_v61 = vld [vmem:[#allocation37_spill] sm:$0xff] }
 0x3d0   : > { %9880 = vmatprep.subr.bf16.mxu0 %v12383_v35  ;;  %v2138_v58 = vpop.xlane.xlu1 %2137  ;;  %3150 = vrot.lane.b32.xlu1 %v11965_v30, %s11277_s18 }
 0x3d1   : > { %v2178_v45 = vsub.f32 %v12226_v56, %v2138_v58  ;;  %9874 = vmatprep.mubr.msk.bf16.mxu1 %vm2090_vm3, %v2313_v10  ;;  %10634 = vpow2.f32 %v2221_v38  ;;  %v15677_v10 = vld [vmem:[#allocation18_spill] sm:$0xff]  ;;  %v15678_v58 = vld [vmem:[#allocation15_spill] sm:$0xff] }
 0x3d2   : > { %9875 = vmatmul.mubr.msk.bf16.vlgmr.msra.gmra.mxu1 %vm2090_vm3, %v2314_v62  ;;  %v2141_v24 = vpop.xlane.xlu0 %2140  ;;  %v12417_v20 = vpop.eup %10628  ;;  %v15679_v62 = vld [vmem:[#allocation16_spill] sm:$0xff] }
 0x3d3   : > { %v2217_v42 = vmul.f32 1.442695, %v2178_v45  ;;  %9887 = vmatpush3.bf16.msra.mxu1 %v2616_v16  ;;  %v2179_v39 = vsub.f32 %v12232_v15, %v2141_v24  ;;  %9881 = vmatpush3.bf16.msra.mxu0 %v12383_v35  ;;  %15674 = vst [vmem:[#allocation50_spill] sm:$0xff] %v12417_v20  ;;  %v2316_v4 = vpack.c.bf16 %v12417_v20, %v12417_v20  ;;  %v15681_v45 = vld [vmem:[#allocation22_spill] sm:$0xff]  ;;  %v15684_v24 = vld [vmem:[#allocation36_spill] sm:$0xff] }
 0x3d4   : > { %9888 = vmatprep.subr.bf16.mxu1 %v11938_v11  ;;  %10372 = vmatprep.subr.msk.bf16.mxu0 %vm2329_vm1, %v12401_v1 }
 0x3d5   : > { %v2219_v56 = vmul.f32 1.442695, %v2179_v39  ;;  %3000 = vrot.lane.b32.xlu0 %v11961_v47, %s11277_s18  ;;  %3070 = vrot.lane.b32.xlu1 %v11908_v37, %s11277_s18  ;;  %10636 = vpow2.f32 %v2217_v42  ;;  %v1523_v42 = vadd.f32 %v15684_v24, %v11795_v29  ;;  %v15685_v39 = vld [vmem:[#allocation19_spill] sm:$0xff]  ;;  %v2730_v24 = vsel %vm2329_vm1, %v12419_v52, 0 }
 0x3d6   : > { %v12421_v15 = vpop.eup %10630 }
 0x3d7   : > { %15675 = vst [vmem:[#allocation51_spill] sm:$0xff] %v12421_v15  ;;  %10638 = vpow2.f32 %v2219_v56  ;;  %9889 = vmatpush3.bf16.msra.mxu1 %v11938_v11 }
 0x3d8   : > { %v12424_v44 = vpop.eup %10632  ;;  %10373 = vmatprep.subr.msk.bf16.mxu1 %vm2329_vm1, %v12419_v52 }
 0x3d9   : > { %15676 = vst [vmem:[#allocation52_spill] sm:$0xff] %v12424_v44  ;;  %3222 = vrot.lane.b32.xlu0 %v11997_v22, %s11277_s18  ;;  %3072 = vrot.lane.b32.xlu1 %v11979_v31, %s11277_s18  ;;  %v2315_v7 = vpack.c.bf16 %v12424_v44, %v12421_v15  ;;  %v15698_v15 = vld [vmem:[#allocation30_spill] sm:$0xff] }
 0x3db   : > { %9882 = vmatprep.mubr.msk.bf16.mxu0 %vm2090_vm3, %v2315_v7  ;;  %v15686_v7 = vld [vmem:[#allocation34_spill] sm:$0xff] }
 0x3dc   : > { %9883 = vmatmul.mubr.msk.bf16.vlgmr.msra.gmra.mxu0 %vm2090_vm3, %v2316_v4  ;;  %v1528_v4 = vadd.f32 %v15686_v7, %v11795_v29  ;;  %v15689_v29 = vld [vmem:[#allocation21_spill] sm:$0xff]  ;;  %v15690_v7 = vld [vmem:[#allocation23_spill] sm:$0xff] }
 0x3dd   : > { %3148 = vrot.lane.b32.xlu0 %v11969_v50, %s11277_s18  ;;  %9895 = vmatpush3.bf16.msra.mxu0 %v2673_v17  ;;  %v15687_v17 = vld [vmem:[#allocation17_spill] sm:$0xff] }
 0x3de   : > { %3220 = vrot.lane.b32.xlu1 %v15677_v10, %s11277_s18  ;;  %9896 = vmatprep.subr.bf16.mxu0 %v15678_v58  ;;  %v12448_v38 = vpop.eup %10634  ;;  %v12469_v20 = vpack.c.bf16 %v1528_v4, %v1523_v42  ;;  %v15691_v42 = vld [vmem:[#allocation27_spill] sm:$0xff]  ;;  %v15694_v4 = vld [vmem:[#allocation24_spill] sm:$0xff] }
 0x3df   : > { %15680 = vst [vmem:[#allocation18_spill] sm:$0xff] %v12448_v38  ;;  %v2318_v44 = vpack.c.bf16 %v12448_v38, %v12448_v38  ;;  %v15696_v38 = vld [vmem:[#allocation25_spill] sm:$0xff] }
 0x3e1   : > { %3142 = vrot.lane.b32.xlu0 %v15679_v62, %s11277_s18  ;;  %9897 = vmatpush3.bf16.msra.mxu0 %v15678_v58 }
 0x3e2   : > { %3294 = vrot.lane.b32.xlu1 %v15681_v45, %s11277_s18  ;;  %v12452_v43 = vpop.eup %10636 }
 0x3e3   : > { %15682 = vst [vmem:[#allocation15_spill] sm:$0xff] %v12452_v43 }
 0x3e4   : > { %v12454_v16 = vpop.eup %10638 }
 0x3e5   : > { %15683 = vst [vmem:[#allocation16_spill] sm:$0xff] %v12454_v16  ;;  %3144 = vrot.lane.b32.xlu0 %v15685_v39, %s11277_s18  ;;  %v2317_v56 = vpack.c.bf16 %v12454_v16, %v12452_v43  ;;  %v15688_v16 = vld [vmem:[#allocation26_spill] sm:$0xff]  ;;  %v15697_v43 = vld [vmem:[#allocation29_spill] sm:$0xff] }
 0x3e6   : > { %3214 = vrot.lane.b32.xlu1 %v15687_v17, %s11277_s18 }
 0x3e7   : > { %9890 = vmatprep.mubr.msk.bf16.mxu1 %vm2090_vm3, %v2317_v56  ;;  %v15693_v56 = vld [vmem:[#allocation28_spill] sm:$0xff] }
 0x3e8   : > { %9891 = vmatmul.mubr.msk.bf16.vlgmr.msra.gmra.mxu1 %vm2090_vm3, %v2318_v44  ;;  %v15692_v44 = vld [vmem:[#allocation20_spill] sm:$0xff] }
 0x3e9   : > { %3366 = vrot.lane.b32.xlu0 %v15688_v16, %s11277_s18  ;;  %9903 = vmatpush3.bf16.msra.mxu1 %v2730_v24  ;;  %v15695_v24 = vld [vmem:[#allocation31_spill] sm:$0xff] }
 0x3ea   : > { %3216 = vrot.lane.b32.xlu1 %v15689_v29, %s11277_s18  ;;  %9904 = vmatprep.subr.bf16.mxu1 %v12469_v20 }
 0x3ed   : > { %3292 = vrot.lane.b32.xlu0 %v15690_v7, %s11277_s18  ;;  %9905 = vmatpush3.bf16.msra.mxu1 %v12469_v20 }
 0x3ee   : > { %3364 = vrot.lane.b32.xlu1 %v15691_v42, %s11277_s18 }
 0x3f1   : > { %3286 = vrot.lane.b32.xlu0 %v15692_v44, %s11277_s18 }
 0x3f2   : > { %3288 = vrot.lane.b32.xlu1 %v15693_v56, %s11277_s18 }
 0x3f5   : > { %3358 = vrot.lane.b32.xlu0 %v15694_v4, %s11277_s18 }
 0x3f6   : > { %3360 = vrot.lane.b32.xlu1 %v15695_v24, %s11277_s18 }
 0x3f9   : > { %3688 = vrot.lane.b32.xlu0 %v15696_v38, %s11277_s18 }
 0x3fa   : > { %3686 = vrot.lane.b32.xlu1 %v15697_v43, %s11277_s18 }
 0x3fd   : > { %3752 = vrot.lane.b32.xlu0 %v12082_v23, %s11277_s18 }
 0x3fe   : > { %3816 = vrot.lane.b32.xlu1 %v15698_v15, %s11277_s18 }
 0x401   : > { %3750 = vrot.lane.b32.xlu0 %v11859_v46, %s11277_s18 }
 0x402   : > { %3814 = vrot.lane.b32.xlu1 %v15699_v54, %s11277_s18 }
 0x405   : > { %3880 = vrot.lane.b32.xlu0 %v12295_v18, %s11277_s18 }
 0x406   : > { %3944 = vrot.lane.b32.xlu1 %v12109_v40, %s11277_s18 }
 0x409   : > { %3878 = vrot.lane.b32.xlu0 %v12326_v55, %s11277_s18 }
 0x40a   : > { %3942 = vrot.lane.b32.xlu1 %v12383_v35, %s11277_s18 }
 0x40d   : > { %4008 = vrot.lane.b32.xlu0 %v12339_v21, %s11277_s18 }
 0x40e   : > { %4072 = vrot.lane.b32.xlu1 %v12401_v1, %s11277_s18 }
 0x411   : > { %4006 = vrot.lane.b32.xlu0 %v11938_v11, %s11277_s18 }
 0x412   : > { %4070 = vrot.lane.b32.xlu1 %v15678_v58, %s11277_s18 }
 0x415   : > { %4136 = vrot.lane.b32.xlu0 %v12419_v52, %s11277_s18 }
 0x416   : > { %4371 = vrot.lane.b32.xlu1 %v11834_v12, %s11278_s30 }
 0x419   : > { %4134 = vrot.lane.b32.xlu0 %v12469_v20, %s11277_s18 }
 0x41a   : > { %4439 = vrot.lane.b32.xlu1 %v11854_v0, %s11278_s30 }
 0x41c   : > { %v2153_v28 = vpop.xlane.xlu0 %2152 }
 0x41d   : > { %4369 = vrot.lane.b32.xlu0 %v11836_v14, %s11278_s30  ;;  %v2183_v3 = vsub.f32 %v15700_v61, %v2153_v28 }
 0x41e   : > { %4437 = vrot.lane.b32.xlu1 %v11874_v63, %s11278_s30 }
 0x41f   : > { %v2227_v2 = vmul.f32 1.442695, %v2183_v3 }
 0x420   : > { %v2147_v6 = vpop.xlane.xlu0 %2146 }
 0x421   : > { %4365 = vrot.lane.b32.xlu0 %v11819_v51, %s11278_s30  ;;  %v2181_v34 = vsub.f32 %v12245_v59, %v2147_v6  ;;  %10640 = vpow2.f32 %v2227_v2 }
 0x422   : > { %4507 = vrot.lane.b32.xlu1 %v11895_v9, %s11278_s30  ;;  %v2150_v36 = vpop.xlane.xlu1 %2149 }
 0x423   : > { %v2223_v60 = vmul.f32 1.442695, %v2181_v34  ;;  %v2182_v8 = vsub.f32 %v12253_v26, %v2150_v36 }
 0x425   : > { %v2225_v48 = vmul.f32 1.442695, %v2182_v8  ;;  %4367 = vrot.lane.b32.xlu0 %v11867_v49, %s11278_s30  ;;  %10642 = vpow2.f32 %v2223_v60 }
 0x426   : > { %4433 = vrot.lane.b32.xlu1 %v11872_v33, %s11278_s30 }
 0x427   : > { %10644 = vpow2.f32 %v2225_v48 }
 0x428   : > { %v2162_v3 = vpop.xlane.xlu1 %2161 }
 0x429   : > { %4575 = vrot.lane.b32.xlu0 %v11933_v53, %s11278_s30  ;;  %v2186_v59 = vsub.f32 %v12259_v41, %v2162_v3 }
 0x42a   : > { %4435 = vrot.lane.b32.xlu1 %v11913_v57, %s11278_s30 }
 0x42b   : > { %v2233_v36 = vmul.f32 1.442695, %v2186_v59 }
 0x42c   : > { %v2156_v26 = vpop.xlane.xlu1 %2155 }
 0x42d   : > { %4505 = vrot.lane.b32.xlu0 %v11920_v27, %s11278_s30  ;;  %v2184_v2 = vsub.f32 %v12265_v13, %v2156_v26  ;;  %10646 = vpow2.f32 %v2233_v36 }
 0x42e   : > { %4573 = vrot.lane.b32.xlu1 %v11941_v5, %s11278_s30  ;;  %v2159_v48 = vpop.xlane.xlu0 %2158  ;;  %v12555_v6 = vpop.eup %10640 }
 0x42f   : > { %v2229_v34 = vmul.f32 1.442695, %v2184_v2  ;;  %v2185_v8 = vsub.f32 %v12272_v32, %v2159_v48  ;;  %15701 = vst [vmem:[#allocation36_spill] sm:$0xff] %v12555_v6  ;;  %v2320_v26 = vpack.c.bf16 %v12555_v6, %v12555_v6 }
 0x430   : > { %v2935_v60 = vpop.permute.xlu1 %2934 }
 0x431   : > { %v2231_v41 = vmul.f32 1.442695, %v2185_v8  ;;  %10376 = vmatprep.subr.msk.bf16.mxu1 %vm1585_vm0, %v2935_v60  ;;  %10648 = vpow2.f32 %v2229_v34  ;;  %v2946_v19 = vsel %vm1585_vm0, %v2935_v60, 0 }
 0x432   : > { %v2863_v61 = vpop.permute.xlu0 %2862  ;;  %v12557_v28 = vpop.eup %10642 }
 0x433   : > { %15702 = vst [vmem:[#allocation19_spill] sm:$0xff] %v12557_v28  ;;  %10650 = vpow2.f32 %v2231_v41  ;;  %10374 = vmatprep.subr.msk.bf16.mxu0 %vm1585_vm0, %v2863_v61  ;;  %v2874_v2 = vsel %vm1585_vm0, %v2863_v61, 0 }
 0x434   : > { %v12560_v13 = vpop.eup %10644  ;;  %v2861_v3 = vpop.permute.xlu1 %2860 }
 0x435   : > { %15703 = vst [vmem:[#allocation34_spill] sm:$0xff] %v12560_v13  ;;  %v2319_v32 = vpack.c.bf16 %v12560_v13, %v12557_v28 }
 0x436   : > { %v2855_v59 = vpop.permute.xlu0 %2854 }
 0x437   : > { %9898 = vmatprep.mubr.msk.bf16.mxu0 %vm2090_vm3, %v2319_v32 }
 0x438   : > { %9899 = vmatmul.mubr.msk.bf16.vlgmr.msra.gmra.mxu0 %vm2090_vm3, %v2320_v26  ;;  %v2933_v36 = vpop.permute.xlu1 %2932  ;;  %v2871_v26 = vsel %vm1585_vm0, %v2861_v3, 0 }
 0x439   : > { %9911 = vmatpush3.bf16.xpose.msra.mxu0 %v2874_v2  ;;  %9914 = vmatprep.mubr.msk.bf16.mxu0 %vm1585_vm0, %v2855_v59  ;;  %v2943_v60 = vsel %vm1585_vm0, %v2933_v36, 0 }
 0x43a   : > { %10375 = vmatprep.subr.msk.bf16.mxu0 %vm1585_vm0, %v2861_v3  ;;  %v2857_v48 = vpop.permute.xlu0 %2856  ;;  %v12571_v8 = vpop.eup %10646 }
 0x43b   : > { %15704 = vst [vmem:[#allocation17_spill] sm:$0xff] %v12571_v8  ;;  %v2322_v2 = vpack.c.bf16 %v12571_v8, %v12571_v8 }
 0x43c   : > { %v3007_v34 = vpop.permute.xlu1 %3006 }
 0x43e   : > { %v3079_v41 = vpop.permute.xlu0 %3078  ;;  %v12573_v28 = vpop.eup %10648 }
 0x43f   : > { %15705 = vst [vmem:[#allocation26_spill] sm:$0xff] %v12573_v28 }
 0x440   : > { %v12575_v6 = vpop.eup %10650  ;;  %v2927_v32 = vpop.permute.xlu1 %2926 }
 0x441   : > { %15706 = vst [vmem:[#allocation21_spill] sm:$0xff] %v12575_v6  ;;  %9913 = vmatpush3.bf16.xpose.msra.mxu0 %v2871_v26  ;;  %v2321_v61 = vpack.c.bf16 %v12575_v6, %v12573_v28  ;;  %v3018_v6 = vsel %vm1585_vm0, %v3007_v34, 0 }
 0x442   : > { %10378 = vmatprep.subr.msk.bf16.mxu0 %vm1585_vm0, %v3007_v34  ;;  %v3005_v59 = vpop.permute.xlu0 %3004  ;;  %v3090_v34 = vsel %vm1585_vm0, %v3079_v41, 0 }
 0x443   : > { %9906 = vmatprep.mubr.msk.bf16.mxu1 %vm2090_vm3, %v2321_v61  ;;  %v3015_v8 = vsel %vm1585_vm0, %v3005_v59, 0 }
 0x444   : > { %v2929_v13 = vpop.permute.xlu1 %2928  ;;  %9907 = vmatmul.mubr.msk.bf16.vlgmr.msra.gmra.mxu1 %vm2090_vm3, %v2322_v2 }
 0x445   : > { %9919 = vmatpush3.bf16.xpose.msra.mxu1 %v2946_v19  ;;  %9922 = vmatprep.mubr.msk.bf16.mxu1 %vm1585_vm0, %v2927_v32 }
 0x446   : > { %10377 = vmatprep.subr.msk.bf16.mxu1 %vm1585_vm0, %v2933_v36  ;;  %v2999_v3 = vpop.permute.xlu0 %2998 }
 0x448   : > { %9915 = vmatmul.mubr.msk.bf16.vlgmr.msra.gmra.mxu0 %vm1585_vm0, %v2857_v48  ;;  %v3077_v26 = vpop.permute.xlu1 %3076 }
 0x449   : > { %9927 = vmatpush3.bf16.xpose.msra.mxu0 %v3018_v6  ;;  %9930 = vmatprep.mubr.msk.bf16.mxu0 %vm1585_vm0, %v2999_v3 }
 0x44a   : > { %10379 = vmatprep.subr.msk.bf16.mxu0 %vm1585_vm0, %v3005_v59  ;;  %v3001_v61 = vpop.permute.xlu0 %3000 }
 0x44c   : > { %v3151_v2 = vpop.permute.xlu1 %3150 }
 0x44d   : > { %9921 = vmatpush3.bf16.xpose.msra.mxu1 %v2943_v60  ;;  %v3162_v59 = vsel %vm1585_vm0, %v3151_v2, 0 }
 0x44e   : > { %10380 = vmatprep.subr.msk.bf16.mxu1 %vm1585_vm0, %v3079_v41  ;;  %v3223_v19 = vpop.permute.xlu0 %3222  ;;  %v3087_v41 = vsel %vm1585_vm0, %v3077_v26, 0 }
 0x450   : > { %v3071_v32 = vpop.permute.xlu1 %3070 }
 0x451   : > { %9929 = vmatpush3.bf16.xpose.msra.mxu0 %v3015_v8 }
 0x452   : > { %10382 = vmatprep.subr.msk.bf16.mxu0 %vm1585_vm0, %v3151_v2  ;;  %v3149_v48 = vpop.permute.xlu0 %3148 }
 0x454   : > { %9923 = vmatmul.mubr.msk.bf16.vlgmr.msra.gmra.mxu1 %vm1585_vm0, %v2929_v13  ;;  %v3073_v6 = vpop.permute.xlu1 %3072 }
 0x455   : > { %9935 = vmatpush3.bf16.xpose.msra.mxu1 %v3090_v34  ;;  %9938 = vmatprep.mubr.msk.bf16.mxu1 %vm1585_vm0, %v3071_v32  ;;  %v3159_v34 = vsel %vm1585_vm0, %v3149_v48, 0 }
 0x456   : > { %10381 = vmatprep.subr.msk.bf16.mxu1 %vm1585_vm0, %v3077_v26  ;;  %v3143_v36 = vpop.permute.xlu0 %3142 }
 0x458   : > { %9931 = vmatmul.mubr.msk.bf16.vlgmr.msra.gmra.mxu0 %vm1585_vm0, %v3001_v61  ;;  %v3221_v3 = vpop.permute.xlu1 %3220 }
 0x459   : > { %9943 = vmatpush3.bf16.xpose.msra.mxu0 %v3162_v59  ;;  %9946 = vmatprep.mubr.msk.bf16.mxu0 %vm1585_vm0, %v3143_v36  ;;  %v3234_v36 = vsel %vm1585_vm0, %v3223_v19, 0 }
 0x45a   : > { %10383 = vmatprep.subr.msk.bf16.mxu0 %vm1585_vm0, %v3149_v48  ;;  %v3145_v13 = vpop.permute.xlu0 %3144 }
 0x45c   : > { %v3295_v8 = vpop.permute.xlu1 %3294 }
 0x45d   : > { %9937 = vmatpush3.bf16.xpose.msra.mxu1 %v3087_v41  ;;  %v3306_v48 = vsel %vm1585_vm0, %v3295_v8, 0 }
 0x45e   : > { %10384 = vmatprep.subr.msk.bf16.mxu1 %vm1585_vm0, %v3223_v19  ;;  %v3367_v60 = vpop.permute.xlu0 %3366 }
 0x460   : > { %v3215_v32 = vpop.permute.xlu1 %3214 }
 0x461   : > { %9945 = vmatpush3.bf16.xpose.msra.mxu0 %v3159_v34  ;;  %v3231_v34 = vsel %vm1585_vm0, %v3221_v3, 0 }
 0x462   : > { %10386 = vmatprep.subr.msk.bf16.mxu0 %vm1585_vm0, %v3295_v8  ;;  %v3293_v61 = vpop.permute.xlu0 %3292 }
 0x464   : > { %9939 = vmatmul.mubr.msk.bf16.vlgmr.msra.gmra.mxu1 %vm1585_vm0, %v3073_v6  ;;  %v3217_v2 = vpop.permute.xlu1 %3216 }
 0x465   : > { %9951 = vmatpush3.bf16.xpose.msra.mxu1 %v3234_v36  ;;  %9954 = vmatprep.mubr.msk.bf16.mxu1 %vm1585_vm0, %v3215_v32  ;;  %v3303_v36 = vsel %vm1585_vm0, %v3293_v61, 0 }
 0x466   : > { %10385 = vmatprep.subr.msk.bf16.mxu1 %vm1585_vm0, %v3221_v3  ;;  %v3287_v26 = vpop.permute.xlu0 %3286 }
 0x468   : > { %9947 = vmatmul.mubr.msk.bf16.vlgmr.msra.gmra.mxu0 %vm1585_vm0, %v3145_v13  ;;  %v3365_v59 = vpop.permute.xlu1 %3364 }
 0x469   : > { %9959 = vmatpush3.bf16.xpose.msra.mxu0 %v3306_v48  ;;  %9962 = vmatprep.mubr.msk.bf16.mxu0 %vm1585_vm0, %v3287_v26  ;;  %v3378_v26 = vsel %vm1585_vm0, %v3367_v60, 0 }
 0x46a   : > { %10387 = vmatprep.subr.msk.bf16.mxu0 %vm1585_vm0, %v3293_v61  ;;  %v3359_v6 = vpop.permute.xlu0 %3358 }
 0x46c   : > { %v12616_v41 = vpop.f32.mrf.mxu1  ;;  %v3289_v19 = vpop.permute.xlu1 %3288 }
 0x46d   : > { %15707 = vst [vmem:[#allocation23_spill] sm:$0xff] %v12616_v41  ;;  %9953 = vmatpush3.bf16.xpose.msra.mxu1 %v3231_v34 }
 0x46e   : > { %10388 = vmatprep.subr.msk.bf16.mxu1 %vm1585_vm0, %v3367_v60  ;;  %v12620_v32 = vpop.f32.mrf.mxu1  ;;  %v3689_v8 = vpop.permute.xlu0 %3688 }
 0x46f   : > { %15708 = vst [vmem:[#allocation27_spill] sm:$0xff] %v12620_v32  ;;  %v3698_v34 = vsel %vm2329_vm1, %v3689_v8, 0 }
 0x470   : > { %v9853_v13 = vpop.f32.mrf.mxu1  ;;  %v3361_v48 = vpop.permute.xlu1 %3360 }
 0x471   : > { %9961 = vmatpush3.bf16.xpose.msra.mxu0 %v3303_v36 }
 0x472   : > { %10390 = vmatprep.subr.msk.bf16.mxu0 %vm2329_vm1, %v3689_v8  ;;  %v12630_v61 = vpop.f32.mrf.mxu1  ;;  %v3753_v36 = vpop.permute.xlu0 %3752 }
 0x473   : > { %15709 = vst [vmem:[#allocation20_spill] sm:$0xff] %v12630_v61 }
 0x474   : > { %9955 = vmatmul.mubr.msk.bf16.vlgmr.msra.gmra.mxu1 %vm1585_vm0, %v3217_v2  ;;  %v3687_v3 = vpop.permute.xlu1 %3686  ;;  %v3375_v2 = vsel %vm1585_vm0, %v3365_v59, 0 }
 0x475   : > { %9967 = vmatpush3.bf16.xpose.msra.mxu1 %v3378_v26  ;;  %9970 = vmatprep.mubr.msk.bf16.mxu1 %vm1585_vm0, %v3359_v6  ;;  %v3762_v26 = vsel %vm2329_vm1, %v3753_v36, 0 }
 0x476   : > { %10389 = vmatprep.subr.msk.bf16.mxu1 %vm1585_vm0, %v3365_v59  ;;  %v3751_v8 = vpop.permute.xlu0 %3750 }
 0x478   : > { %9963 = vmatmul.mubr.msk.bf16.vlgmr.msra.gmra.mxu0 %vm1585_vm0, %v3289_v19  ;;  %v12635_v60 = vpop.permute.xlu1 %3816 }
 0x479   : > { %9975 = vmatpush3.bf16.msra.mxu0 %v3698_v34 }
 0x47a   : > { %9976 = vmatprep.subr.bf16.mxu0 %v3687_v3  ;;  %v12644_v59 = vpop.permute.xlu0 %3880 }
 0x47b   : > { %15712 = vst [vmem:[#allocation31_spill] sm:$0xff] %v12644_v59 }
 0x47c   : > { %v12632_v13 = vpop.f32.mrf.mxu1 }
 0x47d   : > { %15710 = vst [vmem:[#allocation28_spill] sm:$0xff] %v12632_v13  ;;  %9969 = vmatpush3.bf16.xpose.msra.mxu1 %v3375_v2  ;;  %9977 = vmatpush3.bf16.msra.mxu0 %v3687_v3 }
 0x47e   : > { %10391 = vmatprep.subr.msk.bf16.mxu1 %vm2329_vm1, %v3753_v36  ;;  %10392 = vmatprep.subr.msk.bf16.mxu0 %vm2329_vm1, %v12635_v60  ;;  %v12640_v6 = vpop.f32.mrf.mxu1 }
 0x47f   : > { %15711 = vst [vmem:[#allocation24_spill] sm:$0xff] %v12640_v6 }
 0x480   : > { %v9861_v19 = vpop.f32.mrf.mxu1 }
 0x482   : > { %v12650_v34 = vpop.f32.mrf.mxu1 }
 0x483   : > { %15714 = vst [vmem:[#allocation37_spill] sm:$0xff] %v12650_v34 }
 0x484   : > { %9971 = vmatmul.mubr.msk.bf16.vlgmr.msra.gmra.mxu1 %vm1585_vm0, %v3361_v48 }
 0x485   : > { %9983 = vmatpush3.bf16.msra.mxu1 %v3762_v26 }
 0x486   : > { %9984 = vmatprep.subr.bf16.mxu1 %v3751_v8 }
 0x489   : > { %9985 = vmatpush3.bf16.msra.mxu1 %v3751_v8 }
 0x48a   : > { %10393 = vmatprep.subr.msk.bf16.mxu1 %vm2329_vm1, %v12644_v59 }
 0x48e   : > { %v12648_v3 = vpop.f32.mrf.mxu0 }
 0x48f   : > { %15713 = vst [vmem:[#allocation25_spill] sm:$0xff] %v12648_v3 }
 0x490   : > { %v12652_v2 = vpop.f32.mrf.mxu0 }
 0x491   : > { %15715 = vst [vmem:[#allocation53_spill] sm:$0xff] %v12652_v2 }
 0x492   : > { %v9869_v19 = vpop.f32.mrf.mxu0  ;;  %v12654_v28 = vpop.f32.mrf.mxu1 }
 0x493   : > { %15716 = vst [vmem:[#allocation54_spill] sm:$0xff] %v12654_v28 }
 0x494   : > { %v12656_v48 = vpop.f32.mrf.mxu1  ;;  %v12658_v26 = vpop.f32.mrf.mxu0 }
 0x495   : > { %15717 = vst [vmem:[#allocation55_spill] sm:$0xff] %v12656_v48  ;;  %15718 = vst [vmem:[#allocation56_spill] sm:$0xff] %v12658_v26 }
 0x496   : > { %v9877_v36 = vpop.f32.mrf.mxu1 }
 0x498   : > { %v12664_v61 = vpop.f32.mrf.mxu1 }
 0x499   : > { %15721 = vst [vmem:[#allocation59_spill] sm:$0xff] %v12664_v61 }
 0x49c   : > { %v12660_v13 = vpop.f32.mrf.mxu0 }
 0x49d   : > { %15719 = vst [vmem:[#allocation57_spill] sm:$0xff] %v12660_v13 }
 0x49e   : > { %v12662_v8 = vpop.f32.mrf.mxu0 }
 0x49f   : > { %15720 = vst [vmem:[#allocation58_spill] sm:$0xff] %v12662_v8 }
 0x4a0   : > { %v9885_v6 = vpop.f32.mrf.mxu0 }
 0x4a2   : > { %v12670_v19 = vpop.f32.mrf.mxu0 }
 0x4a3   : > { %15724 = vst [vmem:[#allocation62_spill] sm:$0xff] %v12670_v19 }
 0x4a8   : > { %v12666_v3 = vpop.f32.mrf.mxu1 }
 0x4a9   : > { %15722 = vst [vmem:[#allocation60_spill] sm:$0xff] %v12666_v3 }
 0x4aa   : > { %v12668_v34 = vpop.f32.mrf.mxu1 }
 0x4ab   : > { %15723 = vst [vmem:[#allocation61_spill] sm:$0xff] %v12668_v34 }
 0x4ac   : > { %v9893_v2 = vpop.f32.mrf.mxu1 }
 0x4ae   : > { %v12676_v26 = vpop.f32.mrf.mxu1 }
 0x4af   : > { %15727 = vst [vmem:[#allocation65_spill] sm:$0xff] %v12676_v26 }
 0x4f8   : > { %v12672_v28 = vpop.f32.mrf.mxu0 }
 0x4f9   : > { %15725 = vst [vmem:[#allocation63_spill] sm:$0xff] %v12672_v28 }
 0x4fa   : > { %v12674_v48 = vpop.f32.mrf.mxu0 }
 0x4fb   : > { %15726 = vst [vmem:[#allocation64_spill] sm:$0xff] %v12674_v48 }
 0x4fc   : > { %v9901_v36 = vpop.f32.mrf.mxu0 }
 0x4fe   : > { %v12680_v8 = vpop.f32.mrf.mxu0 }
 0x4ff   : > { %15729 = vst [vmem:[#allocation67_spill] sm:$0xff] %v12680_v8 }
 0x504   : > { %v12678_v13 = vpop.f32.mrf.mxu1 }
 0x505   : > { %15728 = vst [vmem:[#allocation66_spill] sm:$0xff] %v12678_v13 }
 0x506   : > { %v12682_v6 = vpop.f32.mrf.mxu1 }
 0x507   : > { %15730 = vst [vmem:[#allocation68_spill] sm:$0xff] %v12682_v6 }
 0x508   : > { %v9916_v61 = vpop.f32.mrf.mxu0  ;;  %v9909_v3 = vpop.f32.mrf.mxu1 }
 0x509   : > { %v12686_v2 = vsel %vm1584_vm2, %v9916_v61, -1e+30 }
 0x50a   : > { %v3458_v28 = vsel %vm2090_vm3, %v12686_v2, -inf  ;;  %v2910_v34 = vpop.f32.mrf.mxu0  ;;  %v12702_v26 = vpop.f32.mrf.mxu1 }
 0x50b   : > { %v12692_v36 = vsel %vm1584_vm2, %v2910_v34, -1e+30  ;;  %3459 = vmax.xlane.f32.xlu0 %v3458_v28  ;;  %15732 = vst [vmem:[#allocation69_spill] sm:$0xff] %v12702_v26 }
 0x50c   : > { %v9917_v13 = vpop.f32.mrf.mxu0  ;;  %v3452_v48 = vsel %vm2090_vm3, %v12692_v36, -inf }
 0x50e   : > { %v2913_v6 = vpop.f32.mrf.mxu0 }
 0x50f   : > { %v12698_v3 = vsel %vm1584_vm2, %v2913_v6, -1e+30  ;;  %3453 = vmax.xlane.f32.xlu0 %v3452_v48 }
 0x510   : > { %v3455_v61 = vsel %vm2090_vm3, %v12698_v3, -inf }
 0x511   : > { %3456 = vmax.xlane.f32.xlu1 %v3455_v61 }
 0x514   : > { %v9924_v8 = vpop.f32.mrf.mxu1 }
 0x515   : > { %v12706_v28 = vsel %vm1584_vm2, %v9924_v8, -1e+30 }
 0x516   : > { %v3467_v13 = vsel %vm2090_vm3, %v12706_v28, -inf  ;;  %v2982_v34 = vpop.f32.mrf.mxu1 }
 0x517   : > { %v12712_v6 = vsel %vm1584_vm2, %v2982_v34, -1e+30  ;;  %3468 = vmax.xlane.f32.xlu1 %v3467_v13 }
 0x518   : > { %v3461_v48 = vsel %vm2090_vm3, %v12712_v6, -inf  ;;  %v9925_v61 = vpop.f32.mrf.mxu1  ;;  %v9932_v19 = vpop.f32.mrf.mxu0 }
 0x519   : > { %v12718_v26 = vsel %vm1584_vm2, %v9932_v19, -1e+30  ;;  %3462 = vmax.xlane.f32.xlu0 %v3461_v48 }
 0x51a   : > { %v2985_v8 = vpop.f32.mrf.mxu1  ;;  %v3054_v32 = vpop.f32.mrf.mxu0  ;;  %v3476_v53 = vsel %vm2090_vm3, %v12718_v26, -inf }
 0x51b   : > { %v12724_v34 = vsel %vm1584_vm2, %v2985_v8, -1e+30  ;;  %v12736_v5 = vsel %vm1584_vm2, %v3054_v32, -1e+30 }
 0x51c   : > { %v9933_v59 = vpop.f32.mrf.mxu0  ;;  %v3464_v19 = vsel %vm2090_vm3, %v12724_v34, -inf }
 0x51d   : > { %3477 = vmax.xlane.f32.xlu0 %v3476_v53  ;;  %v3470_v53 = vsel %vm2090_vm3, %v12736_v5, -inf }
 0x51e   : > { %v3057_v13 = vpop.f32.mrf.mxu0 }
 0x51f   : > { %v12728_v61 = vsel %vm1584_vm2, %v3057_v13, -1e+30 }
 0x520   : > { %v3473_v48 = vsel %vm2090_vm3, %v12728_v61, -inf }
 0x521   : > { %3465 = vmax.xlane.f32.xlu0 %v3464_v19  ;;  %3474 = vmax.xlane.f32.xlu1 %v3473_v48 }
 0x524   : > { %v9940_v59 = vpop.f32.mrf.mxu1 }
 0x525   : > { %v12742_v8 = vsel %vm1584_vm2, %v9940_v59, -1e+30  ;;  %3471 = vmax.xlane.f32.xlu0 %v3470_v53 }
 0x526   : > { %15733 = vst [vmem:[#allocation70_spill] sm:$0xff] %v12742_v8  ;;  %v3485_v13 = vsel %vm2090_vm3, %v12742_v8, -inf  ;;  %v3126_v57 = vpop.f32.mrf.mxu1 }
 0x527   : > { %v12748_v9 = vsel %vm1584_vm2, %v3126_v57, -1e+30  ;;  %3486 = vmax.xlane.f32.xlu1 %v3485_v13 }
 0x528   : > { %15734 = vst [vmem:[#allocation71_spill] sm:$0xff] %v12748_v9  ;;  %v9941_v32 = vpop.f32.mrf.mxu1  ;;  %v9948_v19 = vpop.f32.mrf.mxu0  ;;  %v3479_v59 = vsel %vm2090_vm3, %v12748_v9, -inf }
 0x529   : > { %v12752_v48 = vsel %vm1584_vm2, %v9948_v19, -1e+30 }
 0x52a   : > { %15735 = vst [vmem:[#allocation72_spill] sm:$0xff] %v12752_v48  ;;  %v3494_v53 = vsel %vm2090_vm3, %v12752_v48, -inf  ;;  %v3129_v27 = vpop.f32.mrf.mxu1  ;;  %v3198_v51 = vpop.f32.mrf.mxu0 }
 0x52b   : > { %v12760_v8 = vsel %vm1584_vm2, %v3129_v27, -1e+30  ;;  %3480 = vmax.xlane.f32.xlu1 %v3479_v59  ;;  %3495 = vmax.xlane.f32.xlu0 %v3494_v53  ;;  %v12766_v19 = vsel %vm1584_vm2, %v3198_v51, -1e+30 }
 0x52c   : > { %15736 = vst [vmem:[#allocation73_spill] sm:$0xff] %v12760_v8  ;;  %v9949_v57 = vpop.f32.mrf.mxu0  ;;  %v3482_v32 = vsel %vm2090_vm3, %v12760_v8, -inf  ;;  %15737 = vst [vmem:[#allocation74_spill] sm:$0xff] %v12766_v19  ;;  %v3488_v59 = vsel %vm2090_vm3, %v12766_v19, -inf }
 0x52e   : > { %v3201_v13 = vpop.f32.mrf.mxu0 }
 0x52f   : > { %v12770_v48 = vsel %vm1584_vm2, %v3201_v13, -1e+30  ;;  %3483 = vmax.xlane.f32.xlu0 %v3482_v32 }
 0x530   : > { %15738 = vst [vmem:[#allocation75_spill] sm:$0xff] %v12770_v48  ;;  %v3491_v27 = vsel %vm2090_vm3, %v12770_v48, -inf }
 0x531   : > { %3492 = vmax.xlane.f32.xlu1 %v3491_v27 }
 0x533   : > { %3489 = vmax.xlane.f32.xlu0 %v3488_v59 }
 0x534   : > { %v9956_v53 = vpop.f32.mrf.mxu1 }
 0x535   : > { %v12778_v57 = vsel %vm1584_vm2, %v9956_v53, -1e+30 }
 0x536   : > { %15739 = vst [vmem:[#allocation76_spill] sm:$0xff] %v12778_v57  ;;  %v3503_v51 = vsel %vm2090_vm3, %v12778_v57, -inf  ;;  %v3270_v8 = vpop.f32.mrf.mxu1 }
 0x537   : > { %v12784_v13 = vsel %vm1584_vm2, %v3270_v8, -1e+30  ;;  %3504 = vmax.xlane.f32.xlu1 %v3503_v51 }
 0x538   : > { %15740 = vst [vmem:[#allocation77_spill] sm:$0xff] %v12784_v13  ;;  %v9957_v32 = vpop.f32.mrf.mxu1  ;;  %v9964_v27 = vpop.f32.mrf.mxu0  ;;  %v3497_v19 = vsel %vm2090_vm3, %v12784_v13, -inf }
 0x539   : > { %v12790_v53 = vsel %vm1584_vm2, %v9964_v27, -1e+30 }
 0x53a   : > { %v3273_v59 = vpop.f32.mrf.mxu1  ;;  %v3342_v48 = vpop.f32.mrf.mxu0  ;;  %15741 = vst [vmem:[#allocation78_spill] sm:$0xff] %v12790_v53  ;;  %v3512_v32 = vsel %vm2090_vm3, %v12790_v53, -inf }
 0x53b   : > { %v12794_v57 = vsel %vm1584_vm2, %v3273_v59, -1e+30  ;;  %3498 = vmax.xlane.f32.xlu1 %v3497_v19  ;;  %v12800_v51 = vsel %vm1584_vm2, %v3342_v48, -1e+30 }
 0x53c   : > { %v9965_v9 = vpop.f32.mrf.mxu0  ;;  %v3500_v8 = vsel %vm2090_vm3, %v12794_v57, -inf  ;;  %15742 = vst [vmem:[#allocation79_spill] sm:$0xff] %v12800_v51 }
 0x53d   : > { %3501 = vmax.xlane.f32.xlu0 %v3500_v8  ;;  %v3506_v9 = vsel %vm2090_vm3, %v12800_v51, -inf  ;;  %v12832_v51 = vpop.permute.xlu0 %3878 }
 0x53e   : > { %v3345_v13 = vpop.f32.mrf.mxu0 }
 0x53f   : > { %v12806_v27 = vsel %vm1584_vm2, %v3345_v13, -1e+30  ;;  %3513 = vmax.xlane.f32.xlu1 %v3512_v32 }
 0x540   : > { %15743 = vst [vmem:[#allocation80_spill] sm:$0xff] %v12806_v27  ;;  %v3509_v19 = vsel %vm2090_vm3, %v12806_v27, -inf }
 0x541   : > { %3507 = vmax.xlane.f32.xlu0 %v3506_v9 }
 0x543   : > { %3510 = vmax.xlane.f32.xlu1 %v3509_v19 }
 0x544   : > { %v9972_v48 = vpop.f32.mrf.mxu1 }
 0x545   : > { %v12814_v59 = vsel %vm1584_vm2, %v9972_v48, -1e+30 }
 0x546   : > { %15744 = vst [vmem:[#allocation81_spill] sm:$0xff] %v12814_v59  ;;  %v3521_v8 = vsel %vm2090_vm3, %v12814_v59, -inf  ;;  %v3414_v53 = vpop.f32.mrf.mxu1  ;;  %v12830_v59 = vpop.permute.xlu1 %3814 }
 0x547   : > { %v12820_v13 = vsel %vm1584_vm2, %v3414_v53, -1e+30  ;;  %3522 = vmax.xlane.f32.xlu1 %v3521_v8  ;;  %v12838_v8 = vpop.permute.xlu0 %4008 }
 0x548   : > { %15745 = vst [vmem:[#allocation82_spill] sm:$0xff] %v12820_v13  ;;  %v9973_v32 = vpop.f32.mrf.mxu1  ;;  %v3515_v9 = vsel %vm2090_vm3, %v12820_v13, -inf }
 0x54a   : > { %v3417_v27 = vpop.f32.mrf.mxu1  ;;  %v12834_v53 = vpop.permute.xlu1 %3944 }
 0x54b   : > { %v12826_v19 = vsel %vm1584_vm2, %v3417_v27, -1e+30  ;;  %3516 = vmax.xlane.f32.xlu1 %v3515_v9  ;;  %v12848_v27 = vpop.permute.xlu0 %4006 }
 0x54c   : > { %15746 = vst [vmem:[#allocation83_spill] sm:$0xff] %v12826_v19  ;;  %v3518_v48 = vsel %vm2090_vm3, %v12826_v19, -inf }
 0x54d   : > { %3519 = vmax.xlane.f32.xlu0 %v3518_v48 }
 0x54e   : > { %v12840_v32 = vpop.permute.xlu1 %3942 }
 0x54f   : > { %v12858_v48 = vpop.permute.xlu0 %4136 }
 0x550   : > { %15747 = vst [vmem:[#allocation84_spill] sm:$0xff] %v12858_v48 }
 0x552   : > { %v12850_v9 = vpop.permute.xlu1 %4072 }
 0x553   : > { %v12868_v19 = vpop.permute.xlu0 %4134 }
 0x554   : > { %15748 = vst [vmem:[#allocation85_spill] sm:$0xff] %v12868_v19 }
 0x556   : > { %v12860_v41 = vpop.permute.xlu1 %4070 }
 0x55a   : > { %v12870_v13 = vpop.permute.xlu1 %4371 }
 0x55b   : > { %15749 = vst [vmem:[#allocation86_spill] sm:$0xff] %v12870_v13 }
 0x55c   : > { %4643 = vrot.lane.b32.xlu1 %v11965_v30, %s11278_s30 }
 0x55e   : > { %v12880_v48 = vpop.permute.xlu1 %4439 }
 0x55f   : > { %15751 = vst [vmem:[#allocation88_spill] sm:$0xff] %v12880_v48 }
 0x560   : > { %4569 = vrot.lane.b32.xlu1 %v11908_v37, %s11278_s30 }
 0x562   : > { %v12890_v13 = vpop.permute.xlu1 %4437 }
 0x563   : > { %4501 = vrot.lane.b32.xlu0 %v11918_v25, %s11278_s30  ;;  %15753 = vst [vmem:[#allocation90_spill] sm:$0xff] %v12890_v13 }
 0x564   : > { %4571 = vrot.lane.b32.xlu1 %v11979_v31, %s11278_s30 }
 0x566   : > { %v12900_v48 = vpop.permute.xlu1 %4507 }
 0x567   : > { %4503 = vrot.lane.b32.xlu0 %v11961_v47, %s11278_s30  ;;  %15755 = vst [vmem:[#allocation92_spill] sm:$0xff] %v12900_v48 }
 0x568   : > { %4709 = vrot.lane.b32.xlu1 %v15677_v10, %s11278_s30 }
 0x56b   : > { %4711 = vrot.lane.b32.xlu0 %v11997_v22, %s11278_s30 }
 0x56c   : > { %4779 = vrot.lane.b32.xlu1 %v15681_v45, %s11278_s30  ;;  %v12878_v45 = vpop.permute.xlu0 %4369 }
 0x56d   : > { %15750 = vst [vmem:[#allocation87_spill] sm:$0xff] %v12878_v45 }
 0x56f   : > { %4641 = vrot.lane.b32.xlu0 %v11969_v50, %s11278_s30 }
 0x570   : > { %4705 = vrot.lane.b32.xlu1 %v15687_v17, %s11278_s30  ;;  %v12888_v19 = vpop.permute.xlu0 %4365 }
 0x571   : > { %15752 = vst [vmem:[#allocation89_spill] sm:$0xff] %v12888_v19  ;;  %v12910_v19 = vpop.permute.xlu1 %4433 }
 0x572   : > { %15757 = vst [vmem:[#allocation94_spill] sm:$0xff] %v12910_v19 }
 0x573   : > { %4637 = vrot.lane.b32.xlu0 %v15679_v62, %s11278_s30 }
 0x574   : > { %4707 = vrot.lane.b32.xlu1 %v15689_v29, %s11278_s30  ;;  %v12898_v45 = vpop.permute.xlu0 %4367 }
 0x575   : > { %15754 = vst [vmem:[#allocation91_spill] sm:$0xff] %v12898_v45  ;;  %v12920_v48 = vpop.permute.xlu1 %4435 }
 0x576   : > { %15759 = vst [vmem:[#allocation96_spill] sm:$0xff] %v12920_v48 }
 0x577   : > { %4639 = vrot.lane.b32.xlu0 %v15685_v39, %s11278_s30 }
 0x578   : > { %4845 = vrot.lane.b32.xlu1 %v15691_v42, %s11278_s30  ;;  %v12908_v13 = vpop.permute.xlu0 %4575 }
 0x579   : > { %15756 = vst [vmem:[#allocation93_spill] sm:$0xff] %v12908_v13 }
 0x57b   : > { %4847 = vrot.lane.b32.xlu0 %v15688_v16, %s11278_s30 }
 0x57c   : > { %4775 = vrot.lane.b32.xlu1 %v15693_v56, %s11278_s30  ;;  %v12918_v45 = vpop.permute.xlu0 %4505 }
 0x57d   : > { %15758 = vst [vmem:[#allocation95_spill] sm:$0xff] %v12918_v45 }
 0x57f   : > { %4777 = vrot.lane.b32.xlu0 %v15690_v7, %s11278_s30 }
 0x580   : > { %4843 = vrot.lane.b32.xlu1 %v15695_v24, %s11278_s30 }
 0x583   : > { %4773 = vrot.lane.b32.xlu0 %v15692_v44, %s11278_s30 }
 0x584   : > { %5165 = vrot.lane.b32.xlu1 %v15697_v43, %s11278_s30 }
 0x587   : > { %4841 = vrot.lane.b32.xlu0 %v15694_v4, %s11278_s30 }
 0x588   : > { %5291 = vrot.lane.b32.xlu1 %v15698_v15, %s11278_s30 }
 0x58b   : > { %5167 = vrot.lane.b32.xlu0 %v15696_v38, %s11278_s30 }
 0x58c   : > { %5289 = vrot.lane.b32.xlu1 %v15699_v54, %s11278_s30  ;;  %v12929_v54 = vpop.permute.xlu1 %4573 }
 0x58f   : > { %5229 = vrot.lane.b32.xlu0 %v12082_v23, %s11278_s30 }
 0x590   : > { %5415 = vrot.lane.b32.xlu1 %v12109_v40, %s11278_s30 }
 0x593   : > { %5227 = vrot.lane.b32.xlu0 %v11859_v46, %s11278_s30 }
 0x594   : > { %5413 = vrot.lane.b32.xlu1 %v12383_v35, %s11278_s30  ;;  %v3460_v13 = vpop.xlane.xlu0 %3459 }
 0x595   : > { %v3526_v15 = vsub.f32 %v12686_v2, %v3460_v13 }
 0x597   : > { %5353 = vrot.lane.b32.xlu0 %v12295_v18, %s11278_s30  ;;  %v3552_v45 = vmul.f32 1.442695, %v3526_v15 }
 0x598   : > { %5539 = vrot.lane.b32.xlu1 %v12401_v1, %s11278_s30  ;;  %v3454_v48 = vpop.xlane.xlu0 %3453 }
 0x599   : > { %v3524_v40 = vsub.f32 %v12692_v36, %v3454_v48  ;;  %10652 = vpow2.f32 %v3552_v45 }
 0x59a   : > { %v3457_v19 = vpop.xlane.xlu1 %3456 }
 0x59b   : > { %v3548_v46 = vmul.f32 1.442695, %v3524_v40  ;;  %v3525_v43 = vsub.f32 %v12698_v3, %v3457_v19  ;;  %5351 = vrot.lane.b32.xlu0 %v12326_v55, %s11278_s30 }
 0x59c   : > { %5537 = vrot.lane.b32.xlu1 %v15678_v58, %s11278_s30 }
 0x59d   : > { %v3550_v2 = vmul.f32 1.442695, %v3525_v43  ;;  %10654 = vpow2.f32 %v3548_v46 }
 0x59f   : > { %10656 = vpow2.f32 %v3550_v2  ;;  %5477 = vrot.lane.b32.xlu0 %v12339_v21, %s11278_s30 }
 0x5a0   : > { %5836 = vrot.lane.b32.xlu1 %v11834_v12, %s11279_s16  ;;  %v3469_v15 = vpop.xlane.xlu1 %3468 }
 0x5a1   : > { %v3529_v45 = vsub.f32 %v12706_v28, %v3469_v15 }
 0x5a2   : > { %v3463_v40 = vpop.xlane.xlu0 %3462 }
 0x5a3   : > { %5475 = vrot.lane.b32.xlu0 %v11938_v11, %s11278_s30  ;;  %v3527_v46 = vsub.f32 %v12712_v6, %v3463_v40  ;;  %v3558_v3 = vmul.f32 1.442695, %v3529_v45 }
 0x5a4   : > { %5904 = vrot.lane.b32.xlu1 %v11854_v0, %s11279_s16 }
 0x5a5   : > { %v3554_v0 = vmul.f32 1.442695, %v3527_v46  ;;  %10658 = vpow2.f32 %v3558_v3 }
 0x5a6   : > { %v3478_v43 = vpop.xlane.xlu0 %3477  ;;  %v12956_v36 = vpop.eup %10652 }
 0x5a7   : > { %5601 = vrot.lane.b32.xlu0 %v12419_v52, %s11278_s30  ;;  %v3532_v12 = vsub.f32 %v12718_v26, %v3478_v43  ;;  %10660 = vpow2.f32 %v3554_v0  ;;  %v3826_v43 = vsel %vm2329_vm1, %v12635_v60, 0 }
 0x5a8   : > { %5902 = vrot.lane.b32.xlu1 %v11874_v63, %s11279_s16 }
 0x5a9   : > { %v3564_v63 = vmul.f32 1.442695, %v3532_v12  ;;  %v15761_v12 = vld [vmem:[#allocation8_spill] sm:$0xff] }
 0x5aa   : > { %v3475_v13 = vpop.xlane.xlu1 %3474  ;;  %v3466_v19 = vpop.xlane.xlu0 %3465 }
 0x5ab   : > { %v12958_v48 = vpop.eup %10654  ;;  %v3531_v28 = vsub.f32 %v12728_v61, %v3475_v13  ;;  %v3528_v6 = vsub.f32 %v12724_v34, %v3466_v19  ;;  %5599 = vrot.lane.b32.xlu0 %v12469_v20, %s11278_s30  ;;  %v3669_v61 = vpack.c.bf16 %v12956_v36, %v12956_v36  ;;  %v15763_v19 = vld [vmem:[#allocation71_spill] sm:$0xff] }
 0x5ac   : > { %v12964_v2 = vpop.eup %10656  ;;  %5832 = vrot.lane.b32.xlu1 %v11867_v49, %s11279_s16 }
 0x5ad   : > { %v3556_v26 = vmul.f32 1.442695, %v3528_v6  ;;  %v3668_v40 = vpack.c.bf16 %v12964_v2, %v12958_v48  ;;  %v3562_v15 = vmul.f32 1.442695, %v3531_v28  ;;  %v15764_v28 = vld [vmem:[#allocation72_spill] sm:$0xff] }
 0x5ae   : > { %v3472_v45 = vpop.xlane.xlu0 %3471 }
 0x5af   : > { %v3530_v34 = vsub.f32 %v12736_v5, %v3472_v45  ;;  %5834 = vrot.lane.b32.xlu0 %v11836_v14, %s11279_s16  ;;  %9978 = vmatprep.mubr.msk.bf16.mxu0 %vm2090_vm3, %v3668_v40  ;;  %10662 = vpow2.f32 %v3556_v26  ;;  %v15760_v14 = vld [vmem:[#allocation70_spill] sm:$0xff] }
 0x5b0   : > { %v3487_v49 = vpop.xlane.xlu1 %3486  ;;  %5898 = vrot.lane.b32.xlu1 %v11872_v33, %s11279_s16  ;;  %9979 = vmatmul.mubr.msk.bf16.vlgmr.msra.gmra.mxu0 %vm2090_vm3, %v3669_v61  ;;  %10664 = vpow2.f32 %v3564_v63  ;;  %v15762_v33 = vld [vmem:[#allocation12_spill] sm:$0xff]  ;;  %v15765_v63 = vld [vmem:[#allocation10_spill] sm:$0xff] }
 0x5b1   : > { %v3560_v46 = vmul.f32 1.442695, %v3530_v34  ;;  %9991 = vmatpush3.bf16.msra.mxu0 %v3826_v43  ;;  %10666 = vpow2.f32 %v3562_v15  ;;  %v3535_v5 = vsub.f32 %v15760_v14, %v3487_v49  ;;  %v15766_v15 = vld [vmem:[#allocation73_spill] sm:$0xff]  ;;  %v15767_v43 = vld [vmem:[#allocation75_spill] sm:$0xff] }
 0x5b2   : > { %9992 = vmatprep.subr.bf16.mxu0 %v12830_v59  ;;  %v12997_v34 = vpop.eup %10658  ;;  %v15768_v14 = vld [vmem:[#allocation11_spill] sm:$0xff] }
 0x5b3   : > { %10668 = vpow2.f32 %v3560_v46  ;;  %5830 = vrot.lane.b32.xlu0 %v15761_v12, %s11279_s16  ;;  %v3570_v60 = vmul.f32 1.442695, %v3535_v5  ;;  %v15769_v12 = vld [vmem:[#allocation14_spill] sm:$0xff] }
 0x5b4   : > { %v3481_v3 = vpop.xlane.xlu1 %3480  ;;  %5970 = vrot.lane.b32.xlu1 %v15762_v33, %s11279_s16  ;;  %v3496_v13 = vpop.xlane.xlu0 %3495 }
 0x5b5   : > { %v3533_v0 = vsub.f32 %v15763_v19, %v3481_v3  ;;  %9993 = vmatpush3.bf16.msra.mxu0 %v12830_v59  ;;  %v3538_v6 = vsub.f32 %v15764_v28, %v3496_v13  ;;  %10670 = vpow2.f32 %v3570_v60  ;;  %v13002_v5 = vpop.eup %10660  ;;  %v15770_v13 = vld [vmem:[#allocation74_spill] sm:$0xff] }
 0x5b6   : > { %10394 = vmatprep.subr.msk.bf16.mxu0 %vm2329_vm1, %v12834_v53 }
 0x5b7   : > { %5972 = vrot.lane.b32.xlu0 %v15765_v63, %s11279_s16  ;;  %v3566_v26 = vmul.f32 1.442695, %v3533_v0  ;;  %v3576_v59 = vmul.f32 1.442695, %v3538_v6  ;;  %v3671_v63 = vpack.c.bf16 %v12997_v34, %v12997_v34 }
 0x5b8   : > { %5968 = vrot.lane.b32.xlu1 %v11961_v47, %s11279_s16  ;;  %v3484_v40 = vpop.xlane.xlu0 %3483 }
 0x5b9   : > { %v3534_v45 = vsub.f32 %v15766_v15, %v3484_v40  ;;  %10672 = vpow2.f32 %v3566_v26  ;;  %v15771_v15 = vld [vmem:[#allocation76_spill] sm:$0xff] }
 0x5ba   : > { %v3493_v61 = vpop.xlane.xlu1 %3492 }
 0x5bb   : > { %v3568_v49 = vmul.f32 1.442695, %v3534_v45  ;;  %v3537_v46 = vsub.f32 %v15767_v43, %v3493_v61  ;;  %5900 = vrot.lane.b32.xlu0 %v15768_v14, %s11279_s16  ;;  %v15772_v61 = vld [vmem:[#allocation31_spill] sm:$0xff]  ;;  %v15774_v14 = vld [vmem:[#allocation77_spill] sm:$0xff] }
 0x5bc   : > { %6038 = vrot.lane.b32.xlu1 %v15769_v12, %s11279_s16  ;;  %v3490_v47 = vpop.xlane.xlu0 %3489  ;;  %v13006_v3 = vpop.eup %10662 }
 0x5bd   : > { %10674 = vpow2.f32 %v3568_v49  ;;  %v3574_v33 = vmul.f32 1.442695, %v3537_v46  ;;  %v3536_v19 = vsub.f32 %v15770_v13, %v3490_v47  ;;  %v13009_v0 = vpop.eup %10664  ;;  %v3670_v60 = vpack.c.bf16 %v13006_v3, %v13002_v5  ;;  %v15773_v49 = vld [vmem:[#allocation13_spill] sm:$0xff] }
 0x5be   : > { %v13013_v28 = vpop.eup %10666  ;;  %10676 = vpow2.f32 %v3576_v59  ;;  %v3954_v47 = vsel %vm2329_vm1, %v12834_v53, 0 }
 0x5bf   : > { %v3572_v6 = vmul.f32 1.442695, %v3536_v19  ;;  %5966 = vrot.lane.b32.xlu0 %v11918_v25, %s11279_s16  ;;  %10678 = vpow2.f32 %v3574_v33  ;;  %9986 = vmatprep.mubr.msk.bf16.mxu1 %vm2090_vm3, %v3670_v60  ;;  %v3890_v25 = vsel %vm2329_vm1, %v15772_v61, 0 }
 0x5c0   : > { %v13019_v26 = vpop.eup %10668  ;;  %v3505_v40 = vpop.xlane.xlu1 %3504  ;;  %6108 = vrot.lane.b32.xlu1 %v11965_v30, %s11279_s16  ;;  %9987 = vmatmul.mubr.msk.bf16.vlgmr.msra.gmra.mxu1 %vm2090_vm3, %v3671_v63  ;;  %v3673_v30 = vpack.c.bf16 %v13009_v0, %v13009_v0 }
 0x5c1   : > { %10680 = vpow2.f32 %v3572_v6  ;;  %v3541_v45 = vsub.f32 %v15771_v15, %v3505_v40  ;;  %v3672_v59 = vpack.c.bf16 %v13013_v28, %v13019_v26  ;;  %9999 = vmatpush3.bf16.msra.mxu1 %v3890_v25  ;;  %v15775_v6 = vld [vmem:[#allocation78_spill] sm:$0xff] }
 0x5c2   : > { %10000 = vmatprep.subr.bf16.mxu1 %v12832_v51  ;;  %v13047_v19 = vpop.eup %10670 }
 0x5c3   : > { %6040 = vrot.lane.b32.xlu0 %v15773_v49, %s11279_s16  ;;  %9994 = vmatprep.mubr.msk.bf16.mxu0 %vm2090_vm3, %v3672_v59  ;;  %v3582_v46 = vmul.f32 1.442695, %v3541_v45 }
 0x5c4   : > { %v3499_v43 = vpop.xlane.xlu1 %3498  ;;  %6176 = vrot.lane.b32.xlu1 %v11997_v22, %s11279_s16  ;;  %9995 = vmatmul.mubr.msk.bf16.vlgmr.msra.gmra.mxu0 %vm2090_vm3, %v3673_v30  ;;  %v15777_v30 = vld [vmem:[#allocation80_spill] sm:$0xff] }
 0x5c5   : > { %v3539_v12 = vsub.f32 %v15774_v14, %v3499_v43  ;;  %10001 = vmatpush3.bf16.msra.mxu1 %v12832_v51  ;;  %10007 = vmatpush3.bf16.msra.mxu0 %v3954_v47  ;;  %10682 = vpow2.f32 %v3582_v46 }
 0x5c6   : > { %v3502_v33 = vpop.xlane.xlu0 %3501  ;;  %10008 = vmatprep.subr.bf16.mxu0 %v12840_v32  ;;  %10395 = vmatprep.subr.msk.bf16.mxu1 %vm2329_vm1, %v12838_v8  ;;  %v13053_v51 = vpop.eup %10672 }
 0x5c7   : > { %v3578_v13 = vmul.f32 1.442695, %v3539_v12  ;;  %v3540_v22 = vsub.f32 %v12794_v57, %v3502_v33  ;;  %6034 = vrot.lane.b32.xlu0 %v11908_v37, %s11279_s16  ;;  %v15776_v37 = vld [vmem:[#allocation79_spill] sm:$0xff]  ;;  %v15778_v33 = vld [vmem:[#allocation81_spill] sm:$0xff] }
 0x5c8   : > { %v3514_v60 = vpop.xlane.xlu1 %3513  ;;  %6174 = vrot.lane.b32.xlu1 %v15677_v10, %s11279_s16 }
 0x5c9   : > { %v3580_v53 = vmul.f32 1.442695, %v3540_v22  ;;  %v3544_v63 = vsub.f32 %v15775_v6, %v3514_v60  ;;  %10684 = vpow2.f32 %v3578_v13  ;;  %10009 = vmatpush3.bf16.msra.mxu0 %v12840_v32  ;;  %v3675_v32 = vpack.c.bf16 %v13047_v19, %v13047_v19  ;;  %v15779_v60 = vld [vmem:[#allocation84_spill] sm:$0xff] }
 0x5ca   : > { %v13056_v40 = vpop.eup %10674  ;;  %v3508_v57 = vpop.xlane.xlu0 %3507  ;;  %10396 = vmatprep.subr.msk.bf16.mxu0 %vm2329_vm1, %v12850_v9 }
 0x5cb   : > { %10686 = vpow2.f32 %v3580_v53  ;;  %v3588_v15 = vmul.f32 1.442695, %v3544_v63  ;;  %v3542_v45 = vsub.f32 %v15776_v37, %v3508_v57  ;;  %v3674_v10 = vpack.c.bf16 %v13056_v40, %v13053_v51  ;;  %v13064_v61 = vpop.eup %10676  ;;  %6036 = vrot.lane.b32.xlu0 %v11979_v31, %s11279_s16  ;;  %v15782_v37 = vld [vmem:[#allocation22_spill] sm:$0xff] }
 0x5cc   : > { %v3511_v25 = vpop.xlane.xlu1 %3510  ;;  %6104 = vrot.lane.b32.xlu1 %v15685_v39, %s11279_s16  ;;  %v13072_v59 = vpop.eup %10678  ;;  %v4018_v31 = vsel %vm2329_vm1, %v12838_v8, 0  ;;  %v3677_v47 = vpack.c.bf16 %v13064_v61, %v13064_v61  ;;  %v4082_v8 = vsel %vm2329_vm1, %v12850_v9, 0 }
 0x5cd   : > { %v3584_v49 = vmul.f32 1.442695, %v3542_v45  ;;  %v3543_v43 = vsub.f32 %v15777_v30, %v3511_v25  ;;  %10002 = vmatprep.mubr.msk.bf16.mxu1 %vm2090_vm3, %v3674_v10  ;;  %10688 = vpow2.f32 %v3588_v15  ;;  %v15783_v45 = vld [vmem:[#allocation86_spill] sm:$0xff] }
 0x5ce   : > { %v13076_v46 = vpop.eup %10680  ;;  %10003 = vmatmul.mubr.msk.bf16.vlgmr.msra.gmra.mxu1 %vm2090_vm3, %v3675_v32 }
 0x5cf   : > { %v3586_v14 = vmul.f32 1.442695, %v3543_v43  ;;  %10015 = vmatpush3.bf16.msra.mxu1 %v4018_v31  ;;  %v3676_v39 = vpack.c.bf16 %v13072_v59, %v13076_v46  ;;  %10690 = vpow2.f32 %v3584_v49  ;;  %6106 = vrot.lane.b32.xlu0 %v11969_v50, %s11279_s16 }
 0x5d0   : > { %10016 = vmatprep.subr.bf16.mxu1 %v12848_v27  ;;  %v3523_v12 = vpop.xlane.xlu1 %3522  ;;  %6170 = vrot.lane.b32.xlu1 %v15687_v17, %s11279_s16  ;;  %v15780_v17 = vld [vmem:[#allocation82_spill] sm:$0xff] }
 0x5d1   : > { %10692 = vpow2.f32 %v3586_v14  ;;  %v3547_v13 = vsub.f32 %v15778_v33, %v3523_v12  ;;  %10010 = vmatprep.mubr.msk.bf16.mxu0 %vm2090_vm3, %v3676_v39  ;;  %v15784_v14 = vld [vmem:[#allocation85_spill] sm:$0xff] }
 0x5d2   : > { %10011 = vmatmul.mubr.msk.bf16.vlgmr.msra.gmra.mxu0 %vm2090_vm3, %v3677_v47  ;;  %v13104_v6 = vpop.eup %10682  ;;  %v15785_v47 = vld [vmem:[#allocation88_spill] sm:$0xff] }
 0x5d3   : > { %10017 = vmatpush3.bf16.msra.mxu1 %v12848_v27  ;;  %10023 = vmatpush3.bf16.msra.mxu0 %v4082_v8  ;;  %v3594_v22 = vmul.f32 1.442695, %v3547_v13  ;;  %v3679_v32 = vpack.c.bf16 %v13104_v6, %v13104_v6  ;;  %v15786_v13 = vld [vmem:[#allocation87_spill] sm:$0xff]  ;;  %v15787_v8 = vld [vmem:[#allocation89_spill] sm:$0xff] }
 0x5d4   : > { %6102 = vrot.lane.b32.xlu0 %v15679_v62, %s11279_s16  ;;  %10024 = vmatprep.subr.bf16.mxu0 %v12860_v41  ;;  %v3517_v50 = vpop.xlane.xlu1 %3516  ;;  %v15781_v62 = vld [vmem:[#allocation83_spill] sm:$0xff] }
 0x5d5   : > { %10397 = vmatprep.subr.msk.bf16.mxu1 %vm2329_vm1, %v15779_v60  ;;  %6242 = vrot.lane.b32.xlu1 %v15690_v7, %s11279_s16  ;;  %v3545_v53 = vsub.f32 %v15780_v17, %v3517_v50  ;;  %10694 = vpow2.f32 %v3594_v22 }
 0x5d6   : > { %v3520_v9 = vpop.xlane.xlu0 %3519  ;;  %v13106_v27 = vpop.eup %10684 }
 0x5d7   : > { %v3590_v63 = vmul.f32 1.442695, %v3545_v53  ;;  %10025 = vmatpush3.bf16.msra.mxu0 %v12860_v41  ;;  %v3546_v57 = vsub.f32 %v15781_v62, %v3520_v9 }
 0x5d8   : > { %v13110_v15 = vpop.eup %10686  ;;  %6244 = vrot.lane.b32.xlu0 %v15782_v37, %s11279_s16  ;;  %10398 = vmatprep.subr.msk.bf16.mxu0 %vm1585_vm0, %v15783_v45  ;;  %v13116_v7 = vpop.permute.xlu1 %4643  ;;  %v15790_v37 = vld [vmem:[#allocation9_spill] sm:$0xff] }
 0x5d9   : > { %v3592_v10 = vmul.f32 1.442695, %v3546_v57  ;;  %6240 = vrot.lane.b32.xlu1 %v15693_v56, %s11279_s16  ;;  %v3678_v41 = vpack.c.bf16 %v13110_v15, %v13106_v27  ;;  %10696 = vpow2.f32 %v3590_v63  ;;  %v4146_v56 = vsel %vm2329_vm1, %v15779_v60, 0  ;;  %v15789_v57 = vld [vmem:[#allocation92_spill] sm:$0xff] }
 0x5da   : > { %v4502_v25 = vpop.permute.xlu0 %4501  ;;  %v13125_v49 = vpop.eup %10688 }
 0x5db   : > { %10698 = vpow2.f32 %v3592_v10  ;;  %10018 = vmatprep.mubr.msk.bf16.mxu1 %vm2090_vm3, %v3678_v41  ;;  %v15791_v10 = vld [vmem:[#allocation90_spill] sm:$0xff] }
 0x5dc   : > { %6172 = vrot.lane.b32.xlu0 %v15689_v29, %s11279_s16  ;;  %v13129_v30 = vpop.permute.xlu1 %4569  ;;  %10019 = vmatmul.mubr.msk.bf16.vlgmr.msra.gmra.mxu1 %vm2090_vm3, %v3679_v32  ;;  %v13134_v43 = vpop.eup %10690  ;;  %v15792_v41 = vld [vmem:[#allocation94_spill] sm:$0xff] }
 0x5dd   : > { %6310 = vrot.lane.b32.xlu1 %v15691_v42, %s11279_s16  ;;  %10031 = vmatpush3.bf16.msra.mxu1 %v4146_v56  ;;  %v3681_v42 = vpack.c.bf16 %v13125_v49, %v13125_v49  ;;  %v15793_v32 = vld [vmem:[#allocation30_spill] sm:$0xff] }
 0x5de   : > { %v13138_v31 = vpop.eup %10692  ;;  %10032 = vmatprep.subr.bf16.mxu1 %v15784_v14  ;;  %v13141_v39 = vpop.permute.xlu0 %4503 }
 0x5df   : > { %v3680_v29 = vpack.c.bf16 %v13138_v31, %v13134_v43 }
 0x5e0   : > { %6238 = vrot.lane.b32.xlu0 %v15692_v44, %s11279_s16  ;;  %v13147_v12 = vpop.permute.xlu1 %4571  ;;  %v4383_v44 = vsel %vm1585_vm0, %v15783_v45, 0 }
 0x5e1   : > { %6308 = vrot.lane.b32.xlu1 %v15695_v24, %s11279_s16  ;;  %10033 = vmatpush3.bf16.msra.mxu1 %v15784_v14  ;;  %v15794_v14 = vld [vmem:[#allocation32_spill] sm:$0xff] }
 0x5e2   : > { %10026 = vmatprep.mubr.msk.bf16.mxu0 %vm2090_vm3, %v3680_v29  ;;  %10400 = vmatprep.subr.msk.bf16.mxu1 %vm1585_vm0, %v15785_v47  ;;  %v13157_v33 = vpop.permute.xlu0 %4711  ;;  %v13170_v50 = vpop.eup %10694 }
 0x5e3   : > { %10027 = vmatmul.mubr.msk.bf16.vlgmr.msra.gmra.mxu0 %vm2090_vm3, %v3681_v42  ;;  %v3683_v63 = vpack.c.bf16 %v13170_v50, %v13170_v50  ;;  %v15795_v42 = vld [vmem:[#allocation91_spill] sm:$0xff] }
 0x5e4   : > { %10039 = vmatpush3.bf16.xpose.msra.mxu0 %v4383_v44  ;;  %6312 = vrot.lane.b32.xlu0 %v15688_v16, %s11279_s16  ;;  %v13164_v24 = vpop.permute.xlu1 %4709 }
 0x5e5   : > { %10399 = vmatprep.subr.msk.bf16.mxu0 %vm1585_vm0, %v15786_v13  ;;  %10042 = vmatprep.mubr.msk.bf16.mxu0 %vm1585_vm0, %v15787_v8  ;;  %v4448_v8 = vsel %vm1585_vm0, %v15791_v10, 0 }
 0x5e6   : > { %6632 = vrot.lane.b32.xlu1 %v15696_v38, %s11279_s16  ;;  %v13174_v22 = vpop.permute.xlu0 %4641  ;;  %v13176_v60 = vpop.eup %10696  ;;  %v4380_v38 = vsel %vm1585_vm0, %v15786_v13, 0  ;;  %v15796_v13 = vld [vmem:[#allocation95_spill] sm:$0xff] }
 0x5e8   : > { %v13178_v17 = vpop.eup %10698  ;;  %6306 = vrot.lane.b32.xlu0 %v15694_v4, %s11279_s16  ;;  %v13182_v16 = vpop.permute.xlu1 %4779  ;;  %v15788_v4 = vld [vmem:[#allocation29_spill] sm:$0xff] }
 0x5e9   : > { %v3682_v53 = vpack.c.bf16 %v13178_v17, %v13176_v60 }
 0x5ea   : > { %6694 = vrot.lane.b32.xlu1 %v12082_v23, %s11279_s16  ;;  %v4638_v9 = vpop.permute.xlu0 %4637  ;;  %v4451_v23 = vsel %vm1585_vm0, %v15785_v47, 0  ;;  %v4519_v47 = vsel %vm1585_vm0, %v15789_v57, 0 }
 0x5eb   : > { %10034 = vmatprep.mubr.msk.bf16.mxu1 %vm2090_vm3, %v3682_v53 }
 0x5ec   : > { %10041 = vmatpush3.bf16.xpose.msra.mxu0 %v4380_v38  ;;  %6630 = vrot.lane.b32.xlu0 %v15788_v4, %s11279_s16  ;;  %v13195_v62 = vpop.permute.xlu1 %4705  ;;  %v15797_v38 = vld [vmem:[#allocation93_spill] sm:$0xff]  ;;  %v4516_v4 = vsel %vm1585_vm0, %v15796_v13, 0 }
 0x5ed   : > { %10402 = vmatprep.subr.msk.bf16.mxu0 %vm1585_vm0, %v15789_v57  ;;  %10035 = vmatmul.mubr.msk.bf16.vlgmr.msra.gmra.mxu1 %vm2090_vm3, %v3683_v63 }
 0x5ee   : > { %6692 = vrot.lane.b32.xlu1 %v15790_v37, %s11279_s16  ;;  %10047 = vmatpush3.bf16.xpose.msra.mxu1 %v4451_v23  ;;  %v13204_v45 = vpop.permute.xlu0 %4639 }
 0x5ef   : > { %10401 = vmatprep.subr.msk.bf16.mxu1 %vm1585_vm0, %v15791_v10  ;;  %10050 = vmatprep.mubr.msk.bf16.mxu1 %vm1585_vm0, %v15792_v41 }
 0x5f0   : > { %6756 = vrot.lane.b32.xlu0 %v15793_v32, %s11279_s16  ;;  %v13212_v56 = vpop.permute.xlu1 %4707  ;;  %v15800_v32 = vld [vmem:[#allocation39_spill] sm:$0xff] }
 0x5f2   : > { %6754 = vrot.lane.b32.xlu1 %v15794_v14, %s11279_s16  ;;  %v13216_v29 = vpop.permute.xlu0 %4847 }
 0x5f3   : > { %10043 = vmatmul.mubr.msk.bf16.vlgmr.msra.gmra.mxu0 %vm1585_vm0, %v15795_v42 }
 0x5f4   : > { %10055 = vmatpush3.bf16.xpose.msra.mxu0 %v4519_v47  ;;  %10058 = vmatprep.mubr.msk.bf16.mxu0 %vm1585_vm0, %v4502_v25  ;;  %v13223_v44 = vpop.permute.xlu1 %4845 }
 0x5f5   : > { %6818 = vrot.lane.b32.xlu0 %v12295_v18, %s11279_s16  ;;  %10403 = vmatprep.subr.msk.bf16.mxu0 %vm1585_vm0, %v15796_v13  ;;  %v15798_v18 = vld [vmem:[#allocation33_spill] sm:$0xff]  ;;  %v15801_v13 = vld [vmem:[#allocation38_spill] sm:$0xff] }
 0x5f6   : > { %6816 = vrot.lane.b32.xlu1 %v12326_v55, %s11279_s16  ;;  %10049 = vmatpush3.bf16.xpose.msra.mxu1 %v4448_v8  ;;  %v4778_v53 = vpop.permute.xlu0 %4777  ;;  %v15799_v55 = vld [vmem:[#allocation96_spill] sm:$0xff]  ;;  %v2241_v8 = vsel %vm2090_vm3, %v15801_v13, 0.0  ;;  %v15817_v13 = vld [vmem:[#allocation46_spill] sm:$0xff] }
 0x5f7   : > { %10404 = vmatprep.subr.msk.bf16.mxu1 %vm1585_vm0, %v15797_v38  ;;  %v4788_v14 = vsel %vm1585_vm0, %v4778_v53, 0 }
 0x5f8   : > { %v13235_v25 = vpop.permute.xlu1 %4775 }
 0x5f9   : > { %6878 = vrot.lane.b32.xlu0 %v12383_v35, %s11279_s16  ;;  %v4587_v35 = vsel %vm1585_vm0, %v15797_v38, 0 }
 0x5fa   : > { %6880 = vrot.lane.b32.xlu1 %v15798_v18, %s11279_s16  ;;  %v4774_v63 = vpop.permute.xlu0 %4773 }
 0x5fc   : > { %10057 = vmatpush3.bf16.xpose.msra.mxu0 %v4516_v4  ;;  %v13243_v57 = vpop.permute.xlu1 %4843  ;;  %v4856_v4 = vsel %vm1585_vm0, %v13223_v44, 0 }
 0x5fd   : > { %7004 = vrot.lane.b32.xlu0 %v12401_v1, %s11279_s16  ;;  %10051 = vmatmul.mubr.msk.bf16.vlgmr.msra.gmra.mxu1 %vm1585_vm0, %v15799_v55  ;;  %v15805_v55 = vld [vmem:[#allocation45_spill] sm:$0xff] }
 0x5fe   : > { %10406 = vmatprep.subr.msk.bf16.mxu0 %vm1585_vm0, %v13116_v7  ;;  %6942 = vrot.lane.b32.xlu1 %v12339_v21, %s11279_s16  ;;  %v4842_v23 = vpop.permute.xlu0 %4841  ;;  %v4655_v21 = vsel %vm1585_vm0, %v13116_v7, 0 }
 0x5ff   : > { %10063 = vmatpush3.bf16.xpose.msra.mxu1 %v4587_v35  ;;  %10066 = vmatprep.mubr.msk.bf16.mxu1 %vm1585_vm0, %v13129_v30  ;;  %v2253_v35 = vsel %vm2090_vm3, %v15805_v55, 0.0 }
 0x600   : > { %10405 = vmatprep.subr.msk.bf16.mxu1 %vm1585_vm0, %v12929_v54  ;;  %v13259_v1 = vpop.permute.xlu1 %5165 }
 0x602   : > { %6940 = vrot.lane.b32.xlu1 %v11938_v11, %s11279_s16  ;;  %v5168_v37 = vpop.permute.xlu0 %5167  ;;  %v4584_v11 = vsel %vm1585_vm0, %v12929_v54, 0  ;;  %v4723_v54 = vsel %vm1585_vm0, %v13157_v33, 0 }
 0x603   : > { %10059 = vmatmul.mubr.msk.bf16.vlgmr.msra.gmra.mxu0 %vm1585_vm0, %v13141_v39  ;;  %v5177_v18 = vsel %vm2329_vm1, %v5168_v37, 0 }
 0x604   : > { %10071 = vmatpush3.bf16.xpose.msra.mxu0 %v4655_v21  ;;  %10074 = vmatprep.mubr.msk.bf16.mxu0 %vm1585_vm0, %v4638_v9  ;;  %v13268_v10 = vpop.permute.xlu1 %5291  ;;  %v4652_v9 = vsel %vm1585_vm0, %v13174_v22, 0 }
 0x605   : > { %10407 = vmatprep.subr.msk.bf16.mxu0 %vm1585_vm0, %v13174_v22 }
 0x606   : > { %7002 = vrot.lane.b32.xlu1 %v15678_v58, %s11279_s16  ;;  %v13276_v30 = vpop.permute.xlu0 %5229 }
 0x607   : > { %10065 = vmatpush3.bf16.xpose.msra.mxu1 %v4584_v11  ;;  %v5239_v11 = vsel %vm2329_vm1, %v13276_v30, 0 }
 0x608   : > { %10408 = vmatprep.subr.msk.bf16.mxu1 %vm1585_vm0, %v13157_v33  ;;  %v13280_v7 = vpop.permute.xlu1 %5289  ;;  %v4720_v33 = vsel %vm1585_vm0, %v13164_v24, 0 }
 0x60a   : > { %7066 = vrot.lane.b32.xlu1 %v12419_v52, %s11279_s16  ;;  %v13284_v39 = vpop.permute.xlu0 %5227 }
 0x60c   : > { %10073 = vmatpush3.bf16.xpose.msra.mxu0 %v4652_v9  ;;  %v13288_v58 = vpop.permute.xlu1 %5415 }
 0x60d   : > { %10410 = vmatprep.subr.msk.bf16.mxu0 %vm1585_vm0, %v13182_v16 }
 0x60e   : > { %10067 = vmatmul.mubr.msk.bf16.vlgmr.msra.gmra.mxu1 %vm1585_vm0, %v13147_v12  ;;  %7064 = vrot.lane.b32.xlu1 %v12469_v20, %s11279_s16  ;;  %v13298_v52 = vpop.permute.xlu0 %5353  ;;  %v4791_v20 = vsel %vm1585_vm0, %v13182_v16, 0  ;;  %v2235_v16 = vsel %vm2090_vm3, %v15800_v32, 0.0  ;;  %v3620_v32 = vsel %vm2090_vm3, %v13009_v0, 0.0  ;;  %v3614_v0 = vsel %vm2090_vm3, %v13019_v26, 0.0 }
 0x60f   : > { %10079 = vmatpush3.bf16.xpose.msra.mxu1 %v4723_v54  ;;  %10082 = vmatprep.mubr.msk.bf16.mxu1 %vm1585_vm0, %v13195_v62  ;;  %v3626_v26 = vsel %vm2090_vm3, %v13056_v40, 0.0  ;;  %v3656_v40 = vsel %vm2090_vm3, %v13125_v49, 0.0  ;;  %v3650_v49 = vsel %vm2090_vm3, %v13134_v43, 0.0 }
 0x610   : > { %10409 = vmatprep.subr.msk.bf16.mxu1 %vm1585_vm0, %v13164_v24  ;;  %v13304_v22 = vpop.permute.xlu1 %5413  ;;  %v4859_v24 = vsel %vm1585_vm0, %v13216_v29, 0 }
 0x612   : > { %v13306_v41 = vpop.permute.xlu0 %5351 }
 0x613   : > { %10075 = vmatmul.mubr.msk.bf16.vlgmr.msra.gmra.mxu0 %vm1585_vm0, %v13204_v45 }
 0x614   : > { %10087 = vmatpush3.bf16.xpose.msra.mxu0 %v4791_v20  ;;  %10090 = vmatprep.mubr.msk.bf16.mxu0 %vm1585_vm0, %v4774_v63  ;;  %v13313_v12 = vpop.permute.xlu1 %5539 }
 0x615   : > { %10411 = vmatprep.subr.msk.bf16.mxu0 %vm1585_vm0, %v4778_v53 }
 0x616   : > { %v13318_v62 = vpop.permute.xlu0 %5477 }
 0x617   : > { %10081 = vmatpush3.bf16.xpose.msra.mxu1 %v4720_v33 }
 0x618   : > { %10412 = vmatprep.subr.msk.bf16.mxu1 %vm1585_vm0, %v13216_v29  ;;  %v13322_v45 = vpop.permute.xlu1 %5537 }
 0x61a   : > { %v13327_v42 = vpop.permute.xlu0 %5475 }
 0x61c   : > { %2236 = vadd.xlane.f32.xlu0 %v2235_v16  ;;  %10089 = vmatpush3.bf16.xpose.msra.mxu0 %v4788_v14  ;;  %v13329_v47 = vpop.permute.xlu1 %5836  ;;  %v3608_v14 = vsel %vm2090_vm3, %v13006_v3, 0.0  ;;  %v3638_v3 = vsel %vm2090_vm3, %v13064_v61, 0.0  ;;  %v3632_v61 = vsel %vm2090_vm3, %v13076_v46, 0.0  ;;  %v3644_v46 = vsel %vm2090_vm3, %v13110_v15, 0.0 }
 0x61d   : > { %10414 = vmatprep.subr.msk.bf16.mxu0 %vm2329_vm1, %v5168_v37  ;;  %v3662_v15 = vsel %vm2090_vm3, %v13178_v17, 0.0 }
 0x61e   : > { %10083 = vmatmul.mubr.msk.bf16.vlgmr.msra.gmra.mxu1 %vm1585_vm0, %v13212_v56  ;;  %v13343_v38 = vpop.permute.xlu0 %5601  ;;  %v15803_v56 = vld [vmem:[#allocation43_spill] sm:$0xff] }
 0x61f   : > { %10095 = vmatpush3.bf16.xpose.msra.mxu1 %v4859_v24  ;;  %10098 = vmatprep.mubr.msk.bf16.mxu1 %vm1585_vm0, %v4842_v23  ;;  %v2247_v29 = vsel %vm2090_vm3, %v15803_v56, 0.0 }
 0x620   : > { %10413 = vmatprep.subr.msk.bf16.mxu1 %vm1585_vm0, %v13223_v44  ;;  %2242 = vadd.xlane.f32.xlu0 %v2241_v8  ;;  %v13341_v53 = vpop.permute.xlu1 %5904  ;;  %v3602_v44 = vsel %vm2090_vm3, %v12956_v36, 0.0  ;;  %v15810_v36 = vld [vmem:[#allocation40_spill] sm:$0xff]  ;;  %v2256_v8 = vsel %vm2090_vm3, %v15817_v13, 0.0 }
 0x621   : > { %15802 = vst [vmem:[#allocation70_spill] sm:$0xff] %v13341_v53  ;;  %v2238_v54 = vsel %vm2090_vm3, %v15810_v36, 0.0  ;;  %v15885_v53 = vld [vmem:[#allocation49_spill] sm:$0xff] }
 0x622   : > { %v13357_v23 = vpop.permute.xlu0 %5599 }
 0x623   : > { %10091 = vmatmul.mubr.msk.bf16.vlgmr.msra.gmra.mxu0 %vm1585_vm0, %v13235_v25 }
 0x624   : > { %2248 = vadd.xlane.f32.xlu0 %v2247_v29  ;;  %10103 = vmatpush3.bf16.msra.mxu0 %v5177_v18  ;;  %v13350_v63 = vpop.permute.xlu1 %5902  ;;  %v3599_v29 = vsel %vm2090_vm3, %v12964_v2, 0.0  ;;  %v3617_v2 = vsel %vm2090_vm3, %v13013_v28, 0.0  ;;  %v3623_v28 = vsel %vm2090_vm3, %v13053_v51, 0.0  ;;  %v3647_v51 = vsel %vm2090_vm3, %v13104_v6, 0.0 }
 0x625   : > { %15804 = vst [vmem:[#allocation8_spill] sm:$0xff] %v13350_v63  ;;  %10104 = vmatprep.subr.bf16.mxu0 %v13259_v1 }
 0x626   : > { %v13370_v21 = vpop.permute.xlu0 %5834 }
 0x627   : > { %10097 = vmatpush3.bf16.xpose.msra.mxu1 %v4856_v4  ;;  %15808 = vst [vmem:[#allocation72_spill] sm:$0xff] %v13370_v21  ;;  %v3611_v4 = vsel %vm2090_vm3, %v12997_v34, 0.0  ;;  %v3629_v34 = vsel %vm2090_vm3, %v13047_v19, 0.0  ;;  %v3635_v19 = vsel %vm2090_vm3, %v13072_v59, 0.0  ;;  %v3641_v59 = vsel %vm2090_vm3, %v13106_v27, 0.0 }
 0x628   : > { %10415 = vmatprep.subr.msk.bf16.mxu1 %vm2329_vm1, %v13276_v30  ;;  %2254 = vadd.xlane.f32.xlu0 %v2253_v35  ;;  %v13361_v25 = vpop.permute.xlu1 %5832  ;;  %v3659_v27 = vsel %vm2090_vm3, %v13176_v60, 0.0 }
 0x629   : > { %15806 = vst [vmem:[#allocation12_spill] sm:$0xff] %v13361_v25  ;;  %10105 = vmatpush3.bf16.msra.mxu0 %v13259_v1  ;;  %v3596_v1 = vsel %vm2090_vm3, %v12958_v48, 0.0  ;;  %v15812_v48 = vld [vmem:[#allocation42_spill] sm:$0xff] }
 0x62a   : > { %10416 = vmatprep.subr.msk.bf16.mxu0 %vm2329_vm1, %v13268_v10  ;;  %v13386_v20 = vpop.permute.xlu0 %5830  ;;  %v2244_v30 = vsel %vm2090_vm3, %v15812_v48, 0.0 }
 0x62b   : > { %15811 = vst [vmem:[#allocation73_spill] sm:$0xff] %v13386_v20 }
 0x62c   : > { %3603 = vadd.xlane.f32.xlu0 %v3602_v44  ;;  %v13368_v37 = vpop.permute.xlu1 %5898 }
 0x62d   : > { %15807 = vst [vmem:[#allocation71_spill] sm:$0xff] %v13368_v37 }
 0x62e   : > { %10099 = vmatmul.mubr.msk.bf16.vlgmr.msra.gmra.mxu1 %vm1585_vm0, %v13243_v57  ;;  %v3605_v57 = vsel %vm2090_vm3, %v13002_v5, 0.0  ;;  %v13398_v5 = vpop.permute.xlu0 %5972 }
 0x62f   : > { %10111 = vmatpush3.bf16.msra.mxu1 %v5239_v11  ;;  %15815 = vst [vmem:[#allocation11_spill] sm:$0xff] %v13398_v5 }
 0x630   : > { %10112 = vmatprep.subr.bf16.mxu1 %v13284_v39  ;;  %3597 = vadd.xlane.f32.xlu0 %v3596_v1  ;;  %v13379_v9 = vpop.permute.xlu1 %5970 }
 0x631   : > { %15809 = vst [vmem:[#allocation10_spill] sm:$0xff] %v13379_v9 }
 0x632   : > { %2239 = vadd.xlane.f32.xlu1 %v2238_v54  ;;  %v13408_v56 = vpop.permute.xlu0 %5900 }
 0x633   : > { %10113 = vmatpush3.bf16.msra.mxu1 %v13284_v39  ;;  %v15814_v39 = vld [vmem:[#allocation41_spill] sm:$0xff]  ;;  %15818 = vst [vmem:[#allocation74_spill] sm:$0xff] %v13408_v56 }
 0x634   : > { %10417 = vmatprep.subr.msk.bf16.mxu1 %vm2329_vm1, %v13298_v52  ;;  %3606 = vadd.xlane.f32.xlu0 %v3605_v57  ;;  %v13392_v33 = vpop.permute.xlu1 %5968  ;;  %v2250_v16 = vsel %vm2090_vm3, %v15814_v39, 0.0 }
 0x635   : > { %15813 = vst [vmem:[#allocation75_spill] sm:$0xff] %v13392_v33 }
 0x636   : > { %2245 = vadd.xlane.f32.xlu1 %v2244_v30  ;;  %v13418_v55 = vpop.permute.xlu0 %5966  ;;  %v3653_v30 = vsel %vm2090_vm3, %v13138_v31, 0.0 }
 0x637   : > { %15820 = vst [vmem:[#allocation31_spill] sm:$0xff] %v13418_v55 }
 0x638   : > { %3621 = vadd.xlane.f32.xlu0 %v3620_v32  ;;  %v13402_v24 = vpop.permute.xlu1 %6038  ;;  %v3665_v32 = vsel %vm2090_vm3, %v13170_v50, 0.0 }
 0x639   : > { %15816 = vst [vmem:[#allocation14_spill] sm:$0xff] %v13402_v24 }
 0x63a   : > { %2251 = vadd.xlane.f32.xlu1 %v2250_v16  ;;  %v13428_v44 = vpop.permute.xlu0 %6040 }
 0x63b   : > { %15822 = vst [vmem:[#allocation77_spill] sm:$0xff] %v13428_v44 }
 0x63c   : > { %3609 = vadd.xlane.f32.xlu0 %v3608_v14  ;;  %v13412_v18 = vpop.permute.xlu1 %6108 }
 0x63d   : > { %15819 = vst [vmem:[#allocation76_spill] sm:$0xff] %v13412_v18 }
 0x63e   : > { %2257 = vadd.xlane.f32.xlu1 %v2256_v8  ;;  %v13438_v1 = vpop.permute.xlu0 %6034 }
 0x63f   : > { %15824 = vst [vmem:[#allocation79_spill] sm:$0xff] %v13438_v1 }
 0x640   : > { %3615 = vadd.xlane.f32.xlu0 %v3614_v0  ;;  %v13422_v35 = vpop.permute.xlu1 %6176 }
 0x641   : > { %15821 = vst [vmem:[#allocation13_spill] sm:$0xff] %v13422_v35  ;;  %v15874_v35 = vld [vmem:[#allocation28_spill] sm:$0xff] }
 0x642   : > { %3600 = vadd.xlane.f32.xlu1 %v3599_v29  ;;  %v13448_v54 = vpop.permute.xlu0 %6036 }
 0x643   : > { %15826 = vst [vmem:[#allocation81_spill] sm:$0xff] %v13448_v54 }
 0x644   : > { %3639 = vadd.xlane.f32.xlu0 %v3638_v3  ;;  %v13432_v11 = vpop.permute.xlu1 %6174 }
 0x645   : > { %15823 = vst [vmem:[#allocation78_spill] sm:$0xff] %v13432_v11  ;;  %v15872_v11 = vld [vmem:[#allocation20_spill] sm:$0xff] }
 0x646   : > { %3612 = vadd.xlane.f32.xlu1 %v3611_v4  ;;  %v13458_v48 = vpop.permute.xlu0 %6106 }
 0x647   : > { %15828 = vst [vmem:[#allocation82_spill] sm:$0xff] %v13458_v48 }
 0x648   : > { %3627 = vadd.xlane.f32.xlu0 %v3626_v26  ;;  %v13442_v36 = vpop.permute.xlu1 %6104 }
 0x649   : > { %15825 = vst [vmem:[#allocation80_spill] sm:$0xff] %v13442_v36 }
 0x64a   : > { %3618 = vadd.xlane.f32.xlu1 %v3617_v2  ;;  %v13464_v6 = vpop.permute.xlu0 %6102 }
 0x64b   : > { %15830 = vst [vmem:[#allocation22_spill] sm:$0xff] %v13464_v6 }
 0x64c   : > { %3633 = vadd.xlane.f32.xlu0 %v3632_v61  ;;  %v13452_v57 = vpop.permute.xlu1 %6170 }
 0x64d   : > { %15827 = vst [vmem:[#allocation84_spill] sm:$0xff] %v13452_v57 }
 0x64e   : > { %3630 = vadd.xlane.f32.xlu1 %v3629_v34  ;;  %v13472_v17 = vpop.permute.xlu0 %6244 }
 0x64f   : > { %15832 = vst [vmem:[#allocation85_spill] sm:$0xff] %v13472_v17 }
 0x650   : > { %3657 = vadd.xlane.f32.xlu0 %v3656_v40  ;;  %v13460_v43 = vpop.permute.xlu1 %6242 }
 0x651   : > { %15829 = vst [vmem:[#allocation83_spill] sm:$0xff] %v13460_v43 }
 0x652   : > { %3624 = vadd.xlane.f32.xlu1 %v3623_v28  ;;  %v13476_v14 = vpop.permute.xlu0 %6172 }
 0x653   : > { %15834 = vst [vmem:[#allocation87_spill] sm:$0xff] %v13476_v14 }
 0x654   : > { %3645 = vadd.xlane.f32.xlu0 %v3644_v46  ;;  %v13468_v39 = vpop.permute.xlu1 %6240 }
 0x655   : > { %15831 = vst [vmem:[#allocation86_spill] sm:$0xff] %v13468_v39 }
 0x656   : > { %3636 = vadd.xlane.f32.xlu1 %v3635_v19  ;;  %v13484_v0 = vpop.permute.xlu0 %6238 }
 0x657   : > { %15836 = vst [vmem:[#allocation29_spill] sm:$0xff] %v13484_v0 }
 0x658   : > { %3651 = vadd.xlane.f32.xlu0 %v3650_v49  ;;  %v13474_v16 = vpop.permute.xlu1 %6310 }
 0x659   : > { %15833 = vst [vmem:[#allocation88_spill] sm:$0xff] %v13474_v16 }
 0x65a   : > { %3648 = vadd.xlane.f32.xlu1 %v3647_v51  ;;  %v13488_v3 = vpop.permute.xlu0 %6312 }
 0x65b   : > { %15838 = vst [vmem:[#allocation9_spill] sm:$0xff] %v13488_v3 }
 0x65c   : > { %3663 = vadd.xlane.f32.xlu0 %v3662_v15  ;;  %v13480_v13 = vpop.permute.xlu1 %6308 }
 0x65d   : > { %15835 = vst [vmem:[#allocation89_spill] sm:$0xff] %v13480_v13 }
 0x65e   : > { %3642 = vadd.xlane.f32.xlu1 %v3641_v59  ;;  %v13494_v26 = vpop.permute.xlu0 %6306 }
 0x65f   : > { %15840 = vst [vmem:[#allocation94_spill] sm:$0xff] %v13494_v26 }
 0x660   : > { %v13486_v29 = vpop.permute.xlu1 %6632 }
 0x661   : > { %15837 = vst [vmem:[#allocation92_spill] sm:$0xff] %v13486_v29 }
 0x662   : > { %3654 = vadd.xlane.f32.xlu1 %v3653_v30  ;;  %v13506_v19 = vpop.permute.xlu0 %6630 }
 0x663   : > { %15842 = vst [vmem:[#allocation32_spill] sm:$0xff] %v13506_v19 }
 0x664   : > { %v13490_v60 = vpop.permute.xlu1 %6694 }
 0x665   : > { %15839 = vst [vmem:[#allocation90_spill] sm:$0xff] %v13490_v60 }
 0x666   : > { %3666 = vadd.xlane.f32.xlu1 %v3665_v32  ;;  %v13514_v30 = vpop.permute.xlu0 %6756 }
 0x667   : > { %15844 = vst [vmem:[#allocation95_spill] sm:$0xff] %v13514_v30 }
 0x668   : > { %v13500_v34 = vpop.permute.xlu1 %6692 }
 0x669   : > { %15841 = vst [vmem:[#allocation30_spill] sm:$0xff] %v13500_v34 }
 0x66a   : > { %3660 = vadd.xlane.f32.xlu1 %v3659_v27 }
 0x66c   : > { %v13508_v51 = vpop.permute.xlu1 %6754 }
 0x66d   : > { %15843 = vst [vmem:[#allocation91_spill] sm:$0xff] %v13508_v51 }
 0x670   : > { %v13478_v31 = vpop.f32.mrf.mxu0 }
 0x672   : > { %v13482_v8 = vpop.f32.mrf.mxu0 }
 0x674   : > { %v9981_v50 = vpop.f32.mrf.mxu0 }
 0x675   : > { %v13520_v50 = vpop.permute.xlu1 %6816 }
 0x676   : > { %v13496_v2 = vpop.f32.mrf.mxu0  ;;  %15845 = vst [vmem:[#allocation93_spill] sm:$0xff] %v13520_v50 }
 0x679   : > { %v13528_v60 = vpop.permute.xlu1 %6880 }
 0x67a   : > { %15849 = vst [vmem:[#allocation38_spill] sm:$0xff] %v13528_v60 }
 0x67d   : > { %v13536_v16 = vpop.permute.xlu1 %6942 }
 0x67e   : > { %15852 = vst [vmem:[#allocation40_spill] sm:$0xff] %v13536_v16 }
 0x680   : > { %v13492_v4 = vpop.f32.mrf.mxu1 }
 0x682   : > { %v13498_v61 = vpop.f32.mrf.mxu1 }
 0x684   : > { %v9989_v40 = vpop.f32.mrf.mxu1  ;;  %v13502_v28 = vpop.f32.mrf.mxu0 }
 0x686   : > { %v13504_v46 = vpop.f32.mrf.mxu0  ;;  %v13510_v15 = vpop.f32.mrf.mxu1 }
 0x688   : > { %v9997_v49 = vpop.f32.mrf.mxu0 }
 0x689   : > { %v13526_v49 = vpop.permute.xlu0 %6818 }
 0x68a   : > { %v13516_v32 = vpop.f32.mrf.mxu0  ;;  %15848 = vst [vmem:[#allocation39_spill] sm:$0xff] %v13526_v49 }
 0x68d   : > { %v13532_v39 = vpop.permute.xlu0 %6878 }
 0x68e   : > { %v13512_v59 = vpop.f32.mrf.mxu1  ;;  %15850 = vst [vmem:[#allocation43_spill] sm:$0xff] %v13532_v39 }
 0x690   : > { %v13518_v27 = vpop.f32.mrf.mxu1 }
 0x691   : > { %v13540_v50 = vpop.permute.xlu0 %7004 }
 0x692   : > { %v10005_v40 = vpop.f32.mrf.mxu1  ;;  %v13522_v34 = vpop.f32.mrf.mxu0  ;;  %15854 = vst [vmem:[#allocation41_spill] sm:$0xff] %v13540_v50 }
 0x693   : > { %15846 = vst [vmem:[#allocation33_spill] sm:$0xff] %v13522_v34 }
 0x694   : > { %v13524_v13 = vpop.f32.mrf.mxu0  ;;  %v13530_v19 = vpop.f32.mrf.mxu1 }
 0x695   : > { %15847 = vst [vmem:[#allocation96_spill] sm:$0xff] %v13524_v13 }
 0x696   : > { %v10013_v51 = vpop.f32.mrf.mxu0 }
 0x697   : > { %v13546_v51 = vpop.permute.xlu1 %6940 }
 0x698   : > { %v13542_v34 = vpop.f32.mrf.mxu0  ;;  %15857 = vst [vmem:[#allocation98_spill] sm:$0xff] %v13546_v51 }
 0x699   : > { %15855 = vst [vmem:[#allocation46_spill] sm:$0xff] %v13542_v34 }
 0x69c   : > { %v13534_v30 = vpop.f32.mrf.mxu1 }
 0x69d   : > { %15851 = vst [vmem:[#allocation45_spill] sm:$0xff] %v13534_v30  ;;  %v13550_v30 = vpop.permute.xlu1 %7002 }
 0x69e   : > { %v13538_v26 = vpop.f32.mrf.mxu1  ;;  %15859 = vst [vmem:[#allocation100_spill] sm:$0xff] %v13550_v30 }
 0x69f   : > { %15853 = vst [vmem:[#allocation42_spill] sm:$0xff] %v13538_v26 }
 0x6a0   : > { %v10021_v40 = vpop.f32.mrf.mxu1 }
 0x6a2   : > { %v13552_v16 = vpop.f32.mrf.mxu1 }
 0x6a3   : > { %v13544_v13 = vpop.f32.mrf.mxu0  ;;  %15860 = vst [vmem:[#allocation101_spill] sm:$0xff] %v13552_v16  ;;  %v15866_v16 = vld [vmem:[#allocation27_spill] sm:$0xff] }
 0x6a4   : > { %15856 = vst [vmem:[#allocation97_spill] sm:$0xff] %v13544_v13  ;;  %v13558_v13 = vpop.permute.xlu1 %7066 }
 0x6a5   : > { %v2237_v60 = vpop.xlane.xlu0 %2236  ;;  %v13548_v49 = vpop.f32.mrf.mxu0  ;;  %15863 = vst [vmem:[#allocation104_spill] sm:$0xff] %v13558_v13  ;;  %v15868_v13 = vld [vmem:[#allocation23_spill] sm:$0xff] }
 0x6a6   : > { %15858 = vst [vmem:[#allocation99_spill] sm:$0xff] %v13548_v49  ;;  %10700 = vrcp.f32 %v2237_v60 }
 0x6a7   : > { %v10029_v39 = vpop.f32.mrf.mxu0 }
 0x6a9   : > { %v2243_v29 = vpop.xlane.xlu0 %2242  ;;  %v13560_v51 = vpop.f32.mrf.mxu0 }
 0x6aa   : > { %10702 = vrcp.f32 %v2243_v29  ;;  %15864 = vst [vmem:[#allocation105_spill] sm:$0xff] %v13560_v51 }
 0x6ad   : > { %v2249_v40 = vpop.xlane.xlu0 %2248  ;;  %v13554_v26 = vpop.f32.mrf.mxu1 }
 0x6ae   : > { %15861 = vst [vmem:[#allocation102_spill] sm:$0xff] %v13554_v26  ;;  %10704 = vrcp.f32 %v2249_v40 }
 0x6af   : > { %v13556_v50 = vpop.f32.mrf.mxu1 }
 0x6b0   : > { %15862 = vst [vmem:[#allocation103_spill] sm:$0xff] %v13556_v50 }
 0x6b1   : > { %v2255_v34 = vpop.xlane.xlu0 %2254  ;;  %v10037_v49 = vpop.f32.mrf.mxu1 }
 0x6b2   : > { %10706 = vrcp.f32 %v2255_v34  ;;  %v13574_v49 = vpop.permute.xlu1 %7064 }
 0x6b3   : > { %v10701_v39 = vpop.eup %10700  ;;  %v10044_v60 = vpop.f32.mrf.mxu0  ;;  %15867 = vst [vmem:[#allocation27_spill] sm:$0xff] %v13574_v49 }
 0x6b4   : > { %v13564_v29 = vsel %vm1584_vm2, %v10044_v60, -1e+30  ;;  %v2804_v30 = vmul.f32 %v10701_v39, %v15866_v16 }
 0x6b5   : > { %v4939_v40 = vsel %vm2090_vm3, %v13564_v29, -inf  ;;  %v4419_v26 = vpop.f32.mrf.mxu0 }
 0x6b6   : > { %v13571_v50 = vsel %vm1584_vm2, %v4419_v26, -1e+30  ;;  %4940 = vmax.xlane.f32.xlu0 %v4939_v40  ;;  %2828 = vst.msk [vmem:[#allocation3] sm:$0xff] %vm1585_vm0, %v2804_v30  ;;  %v13584_v40 = vpop.f32.mrf.mxu1 }
 0x6b7   : > { %v10703_v34 = vpop.eup %10702  ;;  %v10045_v51 = vpop.f32.mrf.mxu0  ;;  %v4933_v16 = vsel %vm2090_vm3, %v13571_v50, -inf  ;;  %15869 = vst [vmem:[#allocation23_spill] sm:$0xff] %v13584_v40 }
 0x6b8   : > { %v2806_v60 = vmul.f32 %v10703_v34, %v15868_v13  ;;  %v15870_v13 = vld [vmem:[#allocation37_spill] sm:$0xff] }
 0x6b9   : > { %v4422_v39 = vpop.f32.mrf.mxu0 }
 0x6ba   : > { %v13581_v3 = vsel %vm1584_vm2, %v4422_v39, -1e+30  ;;  %4934 = vmax.xlane.f32.xlu0 %v4933_v16  ;;  %2830 = vst.msk [vmem:[#allocation3 + $0x10] sm:$0xff] %vm1585_vm0, %v2806_v60 }
 0x6bb   : > { %v10705_v26 = vpop.eup %10704  ;;  %v2240_v30 = vpop.xlane.xlu1 %2239  ;;  %v4936_v51 = vsel %vm2090_vm3, %v13581_v3, -inf }
 0x6bc   : > { %10708 = vrcp.f32 %v2240_v30  ;;  %4937 = vmax.xlane.f32.xlu1 %v4936_v51  ;;  %v2808_v34 = vmul.f32 %v10705_v26, %v15870_v13  ;;  %v15871_v26 = vld [vmem:[#allocation53_spill] sm:$0xff] }
 0x6bd   : > { %v10052_v49 = vpop.f32.mrf.mxu1 }
 0x6be   : > { %v13591_v43 = vsel %vm1584_vm2, %v10052_v49, -1e+30  ;;  %2832 = vst.msk [vmem:[#allocation3 + $0x20] sm:$0xff] %vm1585_vm0, %v2808_v34 }
 0x6bf   : > { %v10707_v16 = vpop.eup %10706  ;;  %v4948_v60 = vsel %vm2090_vm3, %v13591_v43, -inf  ;;  %v2246_v39 = vpop.xlane.xlu1 %2245 }
 0x6c0   : > { %v4487_v40 = vpop.f32.mrf.mxu1  ;;  %10710 = vrcp.f32 %v2246_v39  ;;  %4949 = vmax.xlane.f32.xlu1 %v4948_v60  ;;  %v2810_v51 = vmul.f32 %v10707_v16, %v15871_v26 }
 0x6c1   : > { %v13598_v30 = vsel %vm1584_vm2, %v4487_v40, -1e+30 }
 0x6c2   : > { %v4942_v49 = vsel %vm2090_vm3, %v13598_v30, -inf  ;;  %v10053_v13 = vpop.f32.mrf.mxu1  ;;  %2834 = vst.msk [vmem:[#allocation3 + $0x30] sm:$0xff] %vm1585_vm0, %v2810_v51 }
 0x6c3   : > { %4943 = vmax.xlane.f32.xlu0 %v4942_v49  ;;  %v2252_v34 = vpop.xlane.xlu1 %2251  ;;  %v10060_v36 = vpop.f32.mrf.mxu0 }
 0x6c4   : > { %10712 = vrcp.f32 %v2252_v34  ;;  %v4490_v0 = vpop.f32.mrf.mxu1  ;;  %v13606_v39 = vsel %vm1584_vm2, %v10060_v36, -1e+30 }
 0x6c5   : > { %v4957_v40 = vsel %vm2090_vm3, %v13606_v39, -inf  ;;  %v4555_v60 = vpop.f32.mrf.mxu0  ;;  %v13612_v16 = vsel %vm1584_vm2, %v4490_v0, -1e+30 }
 0x6c6   : > { %v4945_v34 = vsel %vm2090_vm3, %v13612_v16, -inf  ;;  %v13619_v57 = vsel %vm1584_vm2, %v4555_v60, -1e+30 }
 0x6c7   : > { %4958 = vmax.xlane.f32.xlu0 %v4957_v40  ;;  %v2258_v26 = vpop.xlane.xlu1 %2257  ;;  %v10061_v51 = vpop.f32.mrf.mxu0 }
 0x6c8   : > { %10714 = vrcp.f32 %v2258_v26  ;;  %v4951_v26 = vsel %vm2090_vm3, %v13619_v57, -inf  ;;  %v15873_v51 = vld [vmem:[#allocation24_spill] sm:$0xff] }
 0x6c9   : > { %v10709_v49 = vpop.eup %10708  ;;  %v4558_v13 = vpop.f32.mrf.mxu0 }
 0x6ca   : > { %v2805_v36 = vmul.f32 %v10709_v49, %v15872_v11  ;;  %v13623_v17 = vsel %vm1584_vm2, %v4558_v13, -1e+30 }
 0x6cb   : > { %4946 = vmax.xlane.f32.xlu0 %v4945_v34  ;;  %v4954_v0 = vsel %vm2090_vm3, %v13623_v17, -inf  ;;  %v3601_v9 = vpop.xlane.xlu1 %3600 }
 0x6cc   : > { %2829 = vst.msk [vmem:[#allocation3 + $0x8] sm:$0xff] %vm1585_vm0, %v2805_v36  ;;  %4955 = vmax.xlane.f32.xlu1 %v4954_v0  ;;  %10716 = vrcp.f32 %v3601_v9 }
 0x6cd   : > { %v10711_v40 = vpop.eup %10710 }
 0x6ce   : > { %v10068_v11 = vpop.f32.mrf.mxu1  ;;  %v2807_v49 = vmul.f32 %v10711_v40, %v15873_v51 }
 0x6cf   : > { %v13633_v60 = vsel %vm1584_vm2, %v10068_v11, -1e+30  ;;  %4952 = vmax.xlane.f32.xlu0 %v4951_v26 }
 0x6d0   : > { %v4966_v13 = vsel %vm2090_vm3, %v13633_v60, -inf  ;;  %v4623_v34 = vpop.f32.mrf.mxu1  ;;  %2831 = vst.msk [vmem:[#allocation3 + $0x18] sm:$0xff] %vm1585_vm0, %v2807_v49 }
 0x6d1   : > { %v10713_v36 = vpop.eup %10712  ;;  %v13640_v0 = vsel %vm1584_vm2, %v4623_v34, -1e+30  ;;  %4967 = vmax.xlane.f32.xlu1 %v4966_v13 }
 0x6d2   : > { %v10069_v54 = vpop.f32.mrf.mxu1  ;;  %v2809_v40 = vmul.f32 %v10713_v36, %v15874_v35  ;;  %v4960_v11 = vsel %vm2090_vm3, %v13640_v0, -inf }
 0x6d3   : > { %v10076_v51 = vpop.f32.mrf.mxu0  ;;  %v15875_v54 = vld [vmem:[#allocation56_spill] sm:$0xff] }
 0x6d4   : > { %v4626_v26 = vpop.f32.mrf.mxu1  ;;  %v13647_v48 = vsel %vm1584_vm2, %v10076_v51, -1e+30  ;;  %2833 = vst.msk [vmem:[#allocation3 + $0x28] sm:$0xff] %vm1585_vm0, %v2809_v40 }
 0x6d5   : > { %v10715_v49 = vpop.eup %10714  ;;  %v4975_v34 = vsel %vm2090_vm3, %v13647_v48, -inf  ;;  %4961 = vmax.xlane.f32.xlu1 %v4960_v11  ;;  %v4691_v13 = vpop.f32.mrf.mxu0  ;;  %v13654_v35 = vsel %vm1584_vm2, %v4626_v26, -1e+30 }
 0x6d6   : > { %4976 = vmax.xlane.f32.xlu0 %v4975_v34  ;;  %v2811_v36 = vmul.f32 %v10715_v49, %v15875_v54  ;;  %v4963_v40 = vsel %vm2090_vm3, %v13654_v35, -inf  ;;  %v13662_v33 = vsel %vm1584_vm2, %v4691_v13, -1e+30 }
 0x6d7   : > { %v10077_v6 = vpop.f32.mrf.mxu0 }
 0x6d8   : > { %2835 = vst.msk [vmem:[#allocation3 + $0x38] sm:$0xff] %vm1585_vm0, %v2811_v36  ;;  %v4969_v6 = vsel %vm2090_vm3, %v13662_v33, -inf }
 0x6d9   : > { %v4694_v51 = vpop.f32.mrf.mxu0 }
 0x6da   : > { %v13666_v11 = vsel %vm1584_vm2, %v4694_v51, -1e+30  ;;  %4964 = vmax.xlane.f32.xlu0 %v4963_v40 }
 0x6db   : > { %v4972_v26 = vsel %vm2090_vm3, %v13666_v11, -inf }
 0x6dc   : > { %4973 = vmax.xlane.f32.xlu1 %v4972_v26 }
 0x6de   : > { %v10084_v49 = vpop.f32.mrf.mxu1  ;;  %4970 = vmax.xlane.f32.xlu0 %v4969_v6 }
 0x6df   : > { %v13674_v34 = vsel %vm1584_vm2, %v10084_v49, -1e+30 }
 0x6e0   : > { %v4984_v13 = vsel %vm2090_vm3, %v13674_v34, -inf  ;;  %v4759_v54 = vpop.f32.mrf.mxu1 }
 0x6e1   : > { %v13680_v36 = vsel %vm1584_vm2, %v4759_v54, -1e+30  ;;  %4985 = vmax.xlane.f32.xlu1 %v4984_v13 }
 0x6e2   : > { %v10085_v51 = vpop.f32.mrf.mxu1  ;;  %v4978_v26 = vsel %vm2090_vm3, %v13680_v36, -inf }
 0x6e3   : > { %v10092_v40 = vpop.f32.mrf.mxu0 }
 0x6e4   : > { %v4762_v24 = vpop.f32.mrf.mxu1  ;;  %v13690_v49 = vsel %vm1584_vm2, %v10092_v40, -1e+30 }
 0x6e5   : > { %v13686_v6 = vsel %vm1584_vm2, %v4762_v24, -1e+30  ;;  %4979 = vmax.xlane.f32.xlu1 %v4978_v26  ;;  %v4827_v1 = vpop.f32.mrf.mxu0  ;;  %v4993_v18 = vsel %vm2090_vm3, %v13690_v49, -inf }
 0x6e6   : > { %v4981_v54 = vsel %vm2090_vm3, %v13686_v6, -inf  ;;  %v13696_v13 = vsel %vm1584_vm2, %v4827_v1, -1e+30  ;;  %v3604_v1 = vpop.xlane.xlu0 %3603 }
 0x6e7   : > { %4982 = vmax.xlane.f32.xlu0 %v4981_v54  ;;  %v10093_v51 = vpop.f32.mrf.mxu0  ;;  %v4987_v40 = vsel %vm2090_vm3, %v13696_v13, -inf  ;;  %10718 = vrcp.f32 %v3604_v1 }
 0x6e9   : > { %4994 = vmax.xlane.f32.xlu1 %v4993_v18  ;;  %v4830_v24 = vpop.f32.mrf.mxu0 }
 0x6ea   : > { %v13704_v26 = vsel %vm1584_vm2, %v4830_v24, -1e+30  ;;  %v3598_v25 = vpop.xlane.xlu0 %3597 }
 0x6eb   : > { %v4990_v56 = vsel %vm2090_vm3, %v13704_v26, -inf  ;;  %4988 = vmax.xlane.f32.xlu0 %v4987_v40  ;;  %10720 = vrcp.f32 %v3598_v25 }
 0x6ed   : > { %4991 = vmax.xlane.f32.xlu1 %v4990_v56 }
 0x6ee   : > { %v10100_v54 = vpop.f32.mrf.mxu1 }
 0x6ef   : > { %v13710_v51 = vsel %vm1584_vm2, %v10100_v54, -1e+30 }
 0x6f0   : > { %v5002_v18 = vsel %vm2090_vm3, %v13710_v51, -inf  ;;  %v4895_v44 = vpop.f32.mrf.mxu1 }
 0x6f1   : > { %v13716_v24 = vsel %vm1584_vm2, %v4895_v44, -1e+30  ;;  %5003 = vmax.xlane.f32.xlu1 %v5002_v18  ;;  %v3607_v44 = vpop.xlane.xlu0 %3606 }
 0x6f2   : > { %v10101_v55 = vpop.f32.mrf.mxu1  ;;  %v4996_v56 = vsel %vm2090_vm3, %v13716_v24, -inf  ;;  %10722 = vrcp.f32 %v3607_v44 }
 0x6f3   : > { %v10717_v55 = vpop.eup %10716 }
 0x6f4   : > { %v4898_v40 = vpop.f32.mrf.mxu1  ;;  %v4221_v9 = vmul.f32 %v10717_v55, %v13496_v2  ;;  %v10719_v18 = vpop.eup %10718 }
 0x6f5   : > { %v13722_v54 = vsel %vm1584_vm2, %v4898_v40, -1e+30  ;;  %4997 = vmax.xlane.f32.xlu1 %v4996_v56  ;;  %v13727_v37 = vpop.xlane.xlu0 %3621  ;;  %v4222_v40 = vmul.f32 %v10719_v18, %v13478_v31 }
 0x6f6   : > { %v4999_v63 = vsel %vm2090_vm3, %v13722_v54, -inf }
 0x6f7   : > { %5000 = vmax.xlane.f32.xlu0 %v4999_v63  ;;  %v3613_v63 = vpop.xlane.xlu1 %3612 }
 0x6f8   : > { %v10721_v14 = vpop.eup %10720 }
 0x6f9   : > { %v3610_v5 = vpop.xlane.xlu0 %3609  ;;  %v4220_v1 = vmul.f32 %v10721_v14, %v13482_v8 }
 0x6fa   : > { %10724 = vrcp.f32 %v3610_v5 }
 0x6fb   : > { %v3619_v44 = vpop.xlane.xlu1 %3618  ;;  %10726 = vrcp.f32 %v3613_v63 }
 0x6fd   : > { %v3616_v2 = vpop.xlane.xlu0 %3615 }
 0x6fe   : > { %10728 = vrcp.f32 %v3616_v2 }
 0x6ff   : > { %v10723_v56 = vpop.eup %10722  ;;  %10730 = vrcp.f32 %v3619_v44 }
 0x700   : > { %v4223_v25 = vmul.f32 %v10723_v56, %v13498_v61  ;;  %v15881_v61 = vld [vmem:[#allocation44_spill] sm:$0xff] }
 0x701   : > { %v13736_v55 = vpop.xlane.xlu0 %3639  ;;  %v2259_v56 = vsel %vm2090_vm3, %v15881_v61, 0.0  ;;  %v15888_v61 = vld [vmem:[#allocation47_spill] sm:$0xff] }
 0x702   : > { %15876 = vst [vmem:[#allocation37_spill] sm:$0xff] %v13736_v55  ;;  %v15884_v55 = vld [vmem:[#allocation48_spill] sm:$0xff] }
 0x703   : > { %v2265_v20 = vsel %vm2090_vm3, %v15884_v55, 0.0 }
 0x705   : > { %v13740_v31 = vpop.xlane.xlu0 %3627 }
 0x706   : > { %4270 = vrot.lane.b32.xlu1 %v4221_v9, %s11279_s16  ;;  %v13738_v9 = vpop.xlane.xlu1 %3630 }
 0x70a   : > { %4272 = vrot.lane.b32.xlu1 %v4222_v40, %s11279_s16  ;;  %v13742_v18 = vpop.xlane.xlu1 %3624  ;;  %v13744_v40 = vpop.xlane.xlu0 %3633 }
 0x70b   : > { %15877 = vst [vmem:[#allocation53_spill] sm:$0xff] %v13744_v40  ;;  %v2262_v40 = vsel %vm2090_vm3, %v15885_v53, 0.0 }
 0x70d   : > { %4268 = vrot.lane.b32.xlu0 %v4220_v1, %s11279_s16 }
 0x70e   : > { %4274 = vrot.lane.b32.xlu1 %v4223_v25, %s11279_s16  ;;  %v13746_v21 = vpop.xlane.xlu1 %3636  ;;  %v13748_v14 = vpop.xlane.xlu0 %3657 }
 0x70f   : > { %15878 = vst [vmem:[#allocation20_spill] sm:$0xff] %v13746_v21  ;;  %15879 = vst [vmem:[#allocation24_spill] sm:$0xff] %v13748_v14 }
 0x712   : > { %v13750_v8 = vpop.xlane.xlu1 %3648  ;;  %v13754_v1 = vpop.xlane.xlu0 %3645 }
 0x713   : > { %15880 = vst [vmem:[#allocation28_spill] sm:$0xff] %v13750_v8  ;;  %15882 = vst [vmem:[#allocation56_spill] sm:$0xff] %v13754_v1 }
 0x716   : > { %v13756_v25 = vpop.xlane.xlu1 %3642  ;;  %v13762_v14 = vpop.xlane.xlu0 %3651 }
 0x717   : > { %15883 = vst [vmem:[#allocation44_spill] sm:$0xff] %v13756_v25  ;;  %15886 = vst [vmem:[#allocation48_spill] sm:$0xff] %v13762_v14 }
 0x71a   : > { %v13764_v8 = vpop.xlane.xlu1 %3654  ;;  %v13768_v1 = vpop.xlane.xlu0 %3663 }
 0x71b   : > { %15887 = vst [vmem:[#allocation49_spill] sm:$0xff] %v13764_v8  ;;  %15889 = vst [vmem:[#allocation47_spill] sm:$0xff] %v13768_v1 }
 0x71e   : > { %v13770_v55 = vpop.xlane.xlu1 %3666 }
 0x71f   : > { %15890 = vst [vmem:[#allocation106_spill] sm:$0xff] %v13770_v55 }
 0x722   : > { %v13773_v5 = vpop.xlane.xlu1 %3660 }
 0x72c   : > { %2260 = vadd.xlane.f32.xlu0 %v2259_v56  ;;  %v2268_v56 = vsel %vm2090_vm3, %v15888_v61, 0.0 }
 0x730   : > { %2266 = vadd.xlane.f32.xlu0 %v2265_v20 }
 0x732   : > { %2263 = vadd.xlane.f32.xlu1 %v2262_v40  ;;  %v10725_v40 = vpop.eup %10724 }
 0x733   : > { %v10727_v63 = vpop.eup %10726  ;;  %v4224_v61 = vmul.f32 %v10725_v40, %v13510_v15 }
 0x734   : > { %v4225_v44 = vmul.f32 %v10727_v63, %v13492_v4 }
 0x736   : > { %2269 = vadd.xlane.f32.xlu1 %v2268_v56  ;;  %v10729_v56 = vpop.eup %10728 }
 0x737   : > { %v10731_v1 = vpop.eup %10730 }
 0x73f   : > { %v4941_v20 = vpop.xlane.xlu0 %4940 }
 0x740   : > { %v5007_v53 = vsub.f32 %v13564_v29, %v4941_v20  ;;  %v4226_v20 = vmul.f32 %v10729_v56, %v13504_v46 }
 0x742   : > { %v5033_v25 = vmul.f32 1.442695, %v5007_v53 }
 0x743   : > { %v4935_v14 = vpop.xlane.xlu0 %4934 }
 0x744   : > { %v5005_v8 = vsub.f32 %v13571_v50, %v4935_v14  ;;  %10732 = vpow2.f32 %v5033_v25  ;;  %v4227_v50 = vmul.f32 %v10731_v1, %v13516_v32 }
 0x745   : > { %v4938_v2 = vpop.xlane.xlu1 %4937 }
 0x746   : > { %v5029_v21 = vmul.f32 1.442695, %v5005_v8  ;;  %v5006_v55 = vsub.f32 %v13581_v3, %v4938_v2  ;;  %4276 = vrot.lane.b32.xlu0 %v4224_v61, %s11279_s16 }
 0x747   : > { %4278 = vrot.lane.b32.xlu1 %v4225_v44, %s11279_s16 }
 0x748   : > { %v5031_v29 = vmul.f32 1.442695, %v5006_v55  ;;  %10734 = vpow2.f32 %v5029_v21 }
 0x749   : > { %v4950_v15 = vpop.xlane.xlu1 %4949 }
 0x74a   : > { %10736 = vpow2.f32 %v5031_v29  ;;  %4280 = vrot.lane.b32.xlu0 %v4226_v20, %s11279_s16  ;;  %v5010_v3 = vsub.f32 %v13591_v43, %v4950_v15 }
 0x74b   : > { %4282 = vrot.lane.b32.xlu1 %v4227_v50, %s11279_s16 }
 0x74c   : > { %v4944_v4 = vpop.xlane.xlu0 %4943  ;;  %v5039_v53 = vmul.f32 1.442695, %v5010_v3 }
 0x74d   : > { %v5008_v14 = vsub.f32 %v13598_v30, %v4944_v4 }
 0x74e   : > { %10738 = vpow2.f32 %v5039_v53 }
 0x74f   : > { %v5035_v55 = vmul.f32 1.442695, %v5008_v14 }
 0x750   : > { %v4959_v8 = vpop.xlane.xlu0 %4958 }
 0x751   : > { %v5013_v25 = vsub.f32 %v13606_v39, %v4959_v8  ;;  %v13788_v21 = vpop.eup %10732  ;;  %10740 = vpow2.f32 %v5035_v55 }
 0x752   : > { %v5150_v2 = vpack.c.bf16 %v13788_v21, %v13788_v21 }
 0x753   : > { %v5045_v61 = vmul.f32 1.442695, %v5013_v25 }
 0x754   : > { %v4947_v46 = vpop.xlane.xlu0 %4946 }
 0x755   : > { %v5009_v32 = vsub.f32 %v13612_v16, %v4947_v46  ;;  %v13791_v1 = vpop.eup %10734  ;;  %v4956_v40 = vpop.xlane.xlu1 %4955 }
 0x756   : > { %v5012_v30 = vsub.f32 %v13623_v17, %v4956_v40  ;;  %v5301_v17 = vsel %vm2329_vm1, %v13268_v10, 0 }
 0x757   : > { %v13793_v63 = vpop.eup %10736  ;;  %v5037_v43 = vmul.f32 1.442695, %v5009_v32 }
 0x758   : > { %v4953_v56 = vpop.xlane.xlu0 %4952  ;;  %v5149_v39 = vpack.c.bf16 %v13793_v63, %v13791_v1  ;;  %v5043_v16 = vmul.f32 1.442695, %v5012_v30 }
 0x759   : > { %10742 = vpow2.f32 %v5037_v43  ;;  %v5011_v44 = vsub.f32 %v13619_v57, %v4953_v56 }
 0x75a   : > { %v4968_v29 = vpop.xlane.xlu1 %4967  ;;  %10106 = vmatprep.mubr.msk.bf16.mxu0 %vm2090_vm3, %v5149_v39  ;;  %10744 = vpow2.f32 %v5045_v61  ;;  %v15891_v61 = vld [vmem:[#allocation51_spill] sm:$0xff] }
 0x75b   : > { %v5041_v20 = vmul.f32 1.442695, %v5011_v44  ;;  %10107 = vmatmul.mubr.msk.bf16.vlgmr.msra.gmra.mxu0 %vm2090_vm3, %v5150_v2  ;;  %10746 = vpow2.f32 %v5043_v16  ;;  %v5016_v50 = vsub.f32 %v13633_v60, %v4968_v29  ;;  %v13812_v53 = vpop.eup %10738  ;;  %v5363_v29 = vsel %vm2329_vm1, %v13298_v52, 0 }
 0x75c   : > { %10119 = vmatpush3.bf16.msra.mxu0 %v5301_v17 }
 0x75d   : > { %10748 = vpow2.f32 %v5041_v20  ;;  %10120 = vmatprep.subr.bf16.mxu0 %v13280_v7  ;;  %v5051_v3 = vmul.f32 1.442695, %v5016_v50  ;;  %v15892_v50 = vld [vmem:[#allocation50_spill] sm:$0xff] }
 0x75e   : > { %v4962_v4 = vpop.xlane.xlu1 %4961  ;;  %v13815_v55 = vpop.eup %10740 }
 0x75f   : > { %v5014_v57 = vsub.f32 %v13640_v0, %v4962_v4  ;;  %v4977_v15 = vpop.xlane.xlu0 %4976  ;;  %10750 = vpow2.f32 %v5051_v3  ;;  %v2277_v4 = vsel %vm2090_vm3, %v15892_v50, 0.0  ;;  %v15893_v3 = vld [vmem:[#allocation52_spill] sm:$0xff] }
 0x760   : > { %10121 = vmatpush3.bf16.msra.mxu0 %v13280_v7  ;;  %v5019_v14 = vsub.f32 %v13647_v48, %v4977_v15  ;;  %v2271_v48 = vsel %vm2090_vm3, %v15891_v61, 0.0 }
 0x761   : > { %10418 = vmatprep.subr.msk.bf16.mxu0 %vm2329_vm1, %v13288_v58  ;;  %v5047_v10 = vmul.f32 1.442695, %v5014_v57 }
 0x762   : > { %v5057_v0 = vmul.f32 1.442695, %v5019_v14  ;;  %v2274_v14 = vsel %vm2090_vm3, %v15893_v3, 0.0 }
 0x763   : > { %v4965_v8 = vpop.xlane.xlu0 %4964  ;;  %10752 = vpow2.f32 %v5047_v10 }
 0x764   : > { %v5015_v25 = vsub.f32 %v13654_v35, %v4965_v8  ;;  %v5152_v35 = vpack.c.bf16 %v13812_v53, %v13812_v53 }
 0x765   : > { %v4974_v60 = vpop.xlane.xlu1 %4973 }
 0x766   : > { %v13817_v46 = vpop.eup %10742  ;;  %v5049_v7 = vmul.f32 1.442695, %v5015_v25  ;;  %v5018_v32 = vsub.f32 %v13666_v11, %v4974_v60  ;;  %v15894_v60 = vld [vmem:[#allocation15_spill] sm:$0xff] }
 0x767   : > { %v4971_v40 = vpop.xlane.xlu0 %4970  ;;  %v5151_v43 = vpack.c.bf16 %v13817_v46, %v13815_v55  ;;  %v13824_v30 = vpop.eup %10744 }
 0x768   : > { %10754 = vpow2.f32 %v5049_v7  ;;  %v5055_v56 = vmul.f32 1.442695, %v5018_v32  ;;  %v5017_v39 = vsub.f32 %v13662_v33, %v4971_v40  ;;  %v13829_v2 = vpop.eup %10746  ;;  %v5154_v17 = vpack.c.bf16 %v13824_v30, %v13824_v30 }
 0x769   : > { %2272 = vadd.xlane.f32.xlu0 %v2271_v48  ;;  %10114 = vmatprep.mubr.msk.bf16.mxu1 %vm2090_vm3, %v5151_v43  ;;  %10756 = vpow2.f32 %v5057_v0 }
 0x76a   : > { %v13832_v11 = vpop.eup %10748  ;;  %v5053_v16 = vmul.f32 1.442695, %v5017_v39  ;;  %v4986_v44 = vpop.xlane.xlu1 %4985  ;;  %10115 = vmatmul.mubr.msk.bf16.vlgmr.msra.gmra.mxu1 %vm2090_vm3, %v5152_v35  ;;  %10758 = vpow2.f32 %v5055_v56  ;;  %v5487_v39 = vsel %vm2329_vm1, %v13318_v62, 0 }
 0x76b   : > { %v5022_v20 = vsub.f32 %v13674_v34, %v4986_v44  ;;  %10127 = vmatpush3.bf16.msra.mxu1 %v5363_v29  ;;  %v5153_v33 = vpack.c.bf16 %v13829_v2, %v13832_v11  ;;  %v5425_v34 = vsel %vm2329_vm1, %v13288_v58, 0 }
 0x76c   : > { %10760 = vpow2.f32 %v5053_v16  ;;  %10128 = vmatprep.subr.bf16.mxu1 %v13306_v41 }
 0x76d   : > { %2278 = vadd.xlane.f32.xlu0 %v2277_v4  ;;  %10122 = vmatprep.mubr.msk.bf16.mxu0 %vm2090_vm3, %v5153_v33  ;;  %v5063_v57 = vmul.f32 1.442695, %v5022_v20  ;;  %10762 = vrcp.f32 %v13727_v37 }
 0x76e   : > { %v4980_v52 = vpop.xlane.xlu1 %4979  ;;  %10123 = vmatmul.mubr.msk.bf16.vlgmr.msra.gmra.mxu0 %vm2090_vm3, %v5154_v17  ;;  %10764 = vrcp.f32 %v13740_v31  ;;  %v2280_v31 = vsel %vm2090_vm3, %v15894_v60, 0.0 }
 0x76f   : > { %v5020_v15 = vsub.f32 %v13680_v36, %v4980_v52  ;;  %10129 = vmatpush3.bf16.msra.mxu1 %v13306_v41  ;;  %10135 = vmatpush3.bf16.msra.mxu0 %v5425_v34  ;;  %10766 = vrcp.f32 %v13742_v18  ;;  %v13860_v36 = vpop.eup %10750 }
 0x770   : > { %2275 = vadd.xlane.f32.xlu1 %v2274_v14  ;;  %10136 = vmatprep.subr.bf16.mxu0 %v13304_v22  ;;  %v4983_v10 = vpop.xlane.xlu0 %4982  ;;  %10768 = vpow2.f32 %v5063_v57  ;;  %v13866_v0 = vpop.eup %10752  ;;  %v5156_v61 = vpack.c.bf16 %v13860_v36, %v13860_v36 }
 0x771   : > { %v5059_v8 = vmul.f32 1.442695, %v5020_v15  ;;  %10419 = vmatprep.subr.msk.bf16.mxu1 %vm2329_vm1, %v13318_v62  ;;  %v5021_v58 = vsub.f32 %v13686_v6, %v4983_v10  ;;  %v5549_v62 = vsel %vm2329_vm1, %v13313_v12, 0 }
 0x772   : > { %v4995_v41 = vpop.xlane.xlu1 %4994 }
 0x773   : > { %v5061_v25 = vmul.f32 1.442695, %v5021_v58  ;;  %v5025_v37 = vsub.f32 %v13690_v49, %v4995_v41  ;;  %10137 = vmatpush3.bf16.msra.mxu0 %v13304_v22  ;;  %10770 = vpow2.f32 %v5059_v8  ;;  %v5611_v41 = vsel %vm2329_vm1, %v13343_v38, 0 }
 0x774   : > { %2281 = vadd.xlane.f32.xlu1 %v2280_v31  ;;  %10420 = vmatprep.subr.msk.bf16.mxu0 %vm2329_vm1, %v13313_v12  ;;  %v4989_v6 = vpop.xlane.xlu0 %4988 }
 0x775   : > { %v13870_v18 = vpop.eup %10754  ;;  %10772 = vpow2.f32 %v5061_v25  ;;  %v5069_v7 = vmul.f32 1.442695, %v5025_v37  ;;  %v5023_v32 = vsub.f32 %v13696_v13, %v4989_v6  ;;  %v5848_v6 = vsel %vm1585_vm0, %v13329_v47, 0 }
 0x776   : > { %v4992_v49 = vpop.xlane.xlu1 %4991  ;;  %v5155_v22 = vpack.c.bf16 %v13870_v18, %v13866_v0  ;;  %v13875_v40 = vpop.eup %10756  ;;  %10774 = vrcp.f32 %v13738_v9 }
 0x777   : > { %v5065_v48 = vmul.f32 1.442695, %v5023_v32  ;;  %v5024_v43 = vsub.f32 %v13704_v26, %v4992_v49  ;;  %v13881_v35 = vpop.eup %10758  ;;  %10776 = vpow2.f32 %v5069_v7  ;;  %v5158_v26 = vpack.c.bf16 %v13875_v40, %v13875_v40  ;;  %v15896_v7 = vld [vmem:[#allocation73_spill] sm:$0xff]  ;;  %v15897_v32 = vld [vmem:[#allocation72_spill] sm:$0xff] }
 0x778   : > { %10130 = vmatprep.mubr.msk.bf16.mxu1 %vm2090_vm3, %v5155_v22 }
 0x779   : > { %v13884_v56 = vpop.eup %10760  ;;  %v5067_v13 = vmul.f32 1.442695, %v5024_v43  ;;  %10131 = vmatmul.mubr.msk.bf16.vlgmr.msra.gmra.mxu1 %vm2090_vm3, %v5156_v61  ;;  %10778 = vpow2.f32 %v5065_v48  ;;  %v15898_v43 = vld [vmem:[#allocation11_spill] sm:$0xff] }
 0x77a   : > { %v5004_v9 = vpop.xlane.xlu1 %5003  ;;  %10143 = vmatpush3.bf16.msra.mxu1 %v5487_v39  ;;  %v5157_v16 = vpack.c.bf16 %v13881_v35, %v13884_v56  ;;  %v10763_v29 = vpop.eup %10762  ;;  %v15899_v39 = vld [vmem:[#allocation71_spill] sm:$0xff] }
 0x77b   : > { %10780 = vpow2.f32 %v5067_v13  ;;  %v5028_v44 = vsub.f32 %v13710_v51, %v5004_v9  ;;  %10144 = vmatprep.subr.bf16.mxu1 %v13327_v42  ;;  %v10765_v20 = vpop.eup %10764  ;;  %v15900_v9 = vld [vmem:[#allocation8_spill] sm:$0xff] }
 0x77c   : > { %10138 = vmatprep.mubr.msk.bf16.mxu0 %vm2090_vm3, %v5157_v16  ;;  %v10767_v17 = vpop.eup %10766  ;;  %v4230_v8 = vmul.f32 %v10765_v20, %v13530_v19  ;;  %v15901_v16 = vld [vmem:[#allocation12_spill] sm:$0xff]  ;;  %v15904_v20 = vld [vmem:[#allocation77_spill] sm:$0xff] }
 0x77d   : > { %10139 = vmatmul.mubr.msk.bf16.vlgmr.msra.gmra.mxu0 %vm2090_vm3, %v5158_v26  ;;  %v5075_v50 = vmul.f32 1.442695, %v5028_v44  ;;  %v13904_v51 = vpop.eup %10768  ;;  %v4229_v14 = vmul.f32 %v10767_v17, %v13518_v27  ;;  %v5984_v26 = vsel %vm1585_vm0, %v15898_v43, 0  ;;  %v15902_v44 = vld [vmem:[#allocation31_spill] sm:$0xff]  ;;  %v15905_v17 = vld [vmem:[#allocation74_spill] sm:$0xff] }
 0x77e   : > { %v4998_v33 = vpop.xlane.xlu1 %4997  ;;  %10145 = vmatpush3.bf16.msra.mxu1 %v13327_v42  ;;  %10151 = vmatpush3.bf16.msra.mxu0 %v5549_v62  ;;  %v4228_v42 = vmul.f32 %v10763_v29, %v13502_v28  ;;  %v5160_v10 = vpack.c.bf16 %v13904_v51, %v13904_v51  ;;  %v15903_v29 = vld [vmem:[#allocation10_spill] sm:$0xff]  ;;  %v5913_v62 = vsel %vm1585_vm0, %v15900_v9, 0 }
 0x77f   : > { %v5026_v4 = vsub.f32 %v13716_v24, %v4998_v33  ;;  %10152 = vmatprep.subr.bf16.mxu0 %v13322_v45  ;;  %10421 = vmatprep.subr.msk.bf16.mxu1 %vm2329_vm1, %v13343_v38  ;;  %10782 = vpow2.f32 %v5075_v50  ;;  %v5981_v33 = vsel %vm1585_vm0, %v15903_v29, 0  ;;  %v15906_v50 = vld [vmem:[#allocation76_spill] sm:$0xff] }
 0x780   : > { %v5001_v52 = vpop.xlane.xlu0 %5000  ;;  %v13906_v34 = vpop.eup %10770 }
 0x781   : > { %v5071_v12 = vmul.f32 1.442695, %v5026_v4  ;;  %v5027_v57 = vsub.f32 %v13722_v54, %v5001_v52  ;;  %v5083_v4 = vsel %vm2090_vm3, %v13788_v21, 0.0  ;;  %v6052_v52 = vsel %vm1585_vm0, %v15904_v20, 0 }
 0x782   : > { %v13910_v15 = vpop.eup %10772  ;;  %v4271_v3 = vpop.permute.xlu1 %4270  ;;  %10153 = vmatpush3.bf16.msra.mxu0 %v13322_v45  ;;  %v5080_v21 = vsel %vm2090_vm3, %v13793_v63, 0.0  ;;  %v15912_v63 = vld [vmem:[#allocation13_spill] sm:$0xff] }
 0x783   : > { %v5073_v24 = vmul.f32 1.442695, %v5027_v57  ;;  %4342 = vst.msk [vmem:[#allocation3 + $0x8] sm:$0xff] %vm4340_vm4, %v4271_v3  ;;  %4284 = vrot.lane.b32.xlu0 %v4228_v42, %s11279_s16  ;;  %10422 = vmatprep.subr.msk.bf16.mxu0 %vm1585_vm0, %v13329_v47  ;;  %v5159_v54 = vpack.c.bf16 %v13910_v15, %v13906_v34  ;;  %v10775_v28 = vpop.eup %10774  ;;  %10784 = vpow2.f32 %v5071_v12  ;;  %v5845_v47 = vsel %vm1585_vm0, %v15897_v32, 0  ;;  %v15907_v12 = vld [vmem:[#allocation79_spill] sm:$0xff]  ;;  %v15908_v57 = vld [vmem:[#allocation14_spill] sm:$0xff] }
 0x784   : > { %v4269_v45 = vpop.permute.xlu0 %4268  ;;  %v13926_v58 = vpop.eup %10776  ;;  %v4231_v37 = vmul.f32 %v10775_v28, %v13512_v59  ;;  %v15895_v59 = vld [vmem:[#allocation70_spill] sm:$0xff]  ;;  %v5077_v42 = vsel %vm2090_vm3, %v13791_v1, 0.0  ;;  %v15909_v3 = vld [vmem:[#allocation75_spill] sm:$0xff]  ;;  %v5101_v1 = vsel %vm2090_vm3, %v13824_v30, 0.0  ;;  %v6049_v28 = vsel %vm1585_vm0, %v15908_v57, 0 }
 0x785   : > { %10786 = vpow2.f32 %v5073_v24  ;;  %4286 = vrot.lane.b32.xlu1 %v4229_v14, %s11279_s16  ;;  %4341 = vst.msk [vmem:[#allocation3] sm:$0xff] %vm4340_vm4, %v4269_v45  ;;  %10146 = vmatprep.mubr.msk.bf16.mxu1 %vm2090_vm3, %v5159_v54  ;;  %v5162_v38 = vpack.c.bf16 %v13926_v58, %v13926_v58  ;;  %v5916_v13 = vsel %vm1585_vm0, %v15895_v59, 0  ;;  %v6120_v24 = vsel %vm1585_vm0, %v15906_v50, 0  ;;  %v15910_v14 = vld [vmem:[#allocation22_spill] sm:$0xff] }
 0x786   : > { %v4273_v27 = vpop.permute.xlu1 %4272  ;;  %10147 = vmatmul.mubr.msk.bf16.vlgmr.msra.gmra.mxu1 %vm2090_vm3, %v5160_v10  ;;  %v13931_v25 = vpop.eup %10778  ;;  %v15911_v54 = vld [vmem:[#allocation82_spill] sm:$0xff]  ;;  %v5092_v10 = vsel %vm2090_vm3, %v13812_v53, 0.0  ;;  %v5089_v45 = vsel %vm2090_vm3, %v13817_v46, 0.0  ;;  %v5095_v53 = vsel %vm2090_vm3, %v13832_v11, 0.0  ;;  %v6188_v46 = vsel %vm1585_vm0, %v15912_v63, 0 }
 0x787   : > { %4343 = vst.msk [vmem:[#allocation3 + $0x10] sm:$0xff] %vm4340_vm4, %v4273_v27  ;;  %10159 = vmatpush3.bf16.msra.mxu1 %v5611_v41  ;;  %4288 = vrot.lane.b32.xlu0 %v4230_v8, %s11279_s16  ;;  %v5086_v8 = vsel %vm2090_vm3, %v13815_v55, 0.0  ;;  %v6117_v30 = vsel %vm1585_vm0, %v15911_v54, 0  ;;  %v15913_v41 = vld [vmem:[#allocation81_spill] sm:$0xff]  ;;  %v15915_v55 = vld [vmem:[#allocation84_spill] sm:$0xff]  ;;  %v5119_v11 = vsel %vm2090_vm3, %v13875_v40, 0.0 }
 0x788   : > { %v13936_v60 = vpop.eup %10780  ;;  %10160 = vmatprep.subr.bf16.mxu1 %v13357_v23  ;;  %v5107_v40 = vsel %vm2090_vm3, %v13870_v18, 0.0  ;;  %v5113_v18 = vsel %vm2090_vm3, %v13884_v56, 0.0  ;;  %v5137_v56 = vsel %vm2090_vm3, %v13926_v58, 0.0  ;;  %v5128_v58 = vsel %vm2090_vm3, %v13904_v51, 0.0 }
 0x789   : > { %4290 = vrot.lane.b32.xlu1 %v4231_v37, %s11279_s16  ;;  %v5161_v19 = vpack.c.bf16 %v13936_v60, %v13931_v25  ;;  %v15914_v37 = vld [vmem:[#allocation85_spill] sm:$0xff] }
 0x78a   : > { %v4275_v31 = vpop.permute.xlu1 %4274 }
 0x78b   : > { %4344 = vst.msk [vmem:[#allocation3 + $0x18] sm:$0xff] %vm4340_vm4, %v4275_v31  ;;  %10161 = vmatpush3.bf16.msra.mxu1 %v13357_v23  ;;  %10154 = vmatprep.mubr.msk.bf16.mxu0 %vm2090_vm3, %v5161_v19  ;;  %v15916_v19 = vld [vmem:[#allocation78_spill] sm:$0xff] }
 0x78c   : > { %10424 = vmatprep.subr.msk.bf16.mxu1 %vm1585_vm0, %v15895_v59  ;;  %10155 = vmatmul.mubr.msk.bf16.vlgmr.msra.gmra.mxu0 %vm2090_vm3, %v5162_v38  ;;  %v13956_v49 = vpop.eup %10782  ;;  %v5098_v38 = vsel %vm2090_vm3, %v13829_v2, 0.0 }
 0x78d   : > { %10167 = vmatpush3.bf16.xpose.msra.mxu0 %v5848_v6  ;;  %10170 = vmatprep.mubr.msk.bf16.mxu0 %vm1585_vm0, %v15896_v7  ;;  %v5164_v48 = vpack.c.bf16 %v13956_v49, %v13956_v49  ;;  %v15917_v6 = vld [vmem:[#allocation80_spill] sm:$0xff]  ;;  %v5110_v7 = vsel %vm2090_vm3, %v13860_v36, 0.0  ;;  %v6185_v36 = vsel %vm1585_vm0, %v15916_v19, 0 }
 0x78e   : > { %10423 = vmatprep.subr.msk.bf16.mxu0 %vm1585_vm0, %v15897_v32  ;;  %v6256_v32 = vsel %vm1585_vm0, %v15914_v37, 0 }
 0x790   : > { %v13958_v23 = vpop.eup %10784 }
 0x792   : > { %v13960_v22 = vpop.eup %10786 }
 0x793   : > { %v5163_v61 = vpack.c.bf16 %v13960_v22, %v13958_v23 }
 0x795   : > { %10169 = vmatpush3.bf16.xpose.msra.mxu0 %v5845_v47  ;;  %10162 = vmatprep.mubr.msk.bf16.mxu1 %vm2090_vm3, %v5163_v61  ;;  %v15918_v61 = vld [vmem:[#allocation29_spill] sm:$0xff] }
 0x796   : > { %10426 = vmatprep.subr.msk.bf16.mxu0 %vm1585_vm0, %v15898_v43  ;;  %10163 = vmatmul.mubr.msk.bf16.vlgmr.msra.gmra.mxu1 %vm2090_vm3, %v5164_v48  ;;  %v15919_v48 = vld [vmem:[#allocation83_spill] sm:$0xff]  ;;  %v15920_v43 = vld [vmem:[#allocation9_spill] sm:$0xff] }
 0x797   : > { %10175 = vmatpush3.bf16.xpose.msra.mxu1 %v5916_v13  ;;  %10178 = vmatprep.mubr.msk.bf16.mxu1 %vm1585_vm0, %v15899_v39  ;;  %v5104_v13 = vsel %vm2090_vm3, %v13866_v0, 0.0 }
 0x798   : > { %10425 = vmatprep.subr.msk.bf16.mxu1 %vm1585_vm0, %v15900_v9 }
 0x79c   : > { %10171 = vmatmul.mubr.msk.bf16.vlgmr.msra.gmra.mxu0 %vm1585_vm0, %v15901_v16 }
 0x79d   : > { %10183 = vmatpush3.bf16.xpose.msra.mxu0 %v5984_v26  ;;  %10186 = vmatprep.mubr.msk.bf16.mxu0 %vm1585_vm0, %v15902_v44  ;;  %v5116_v26 = vsel %vm2090_vm3, %v13881_v35, 0.0  ;;  %v6253_v44 = vsel %vm1585_vm0, %v15919_v48, 0 }
 0x79e   : > { %10427 = vmatprep.subr.msk.bf16.mxu0 %vm1585_vm0, %v15903_v29  ;;  %v15921_v29 = vld [vmem:[#allocation25_spill] sm:$0xff] }
 0x79f   : > { %10177 = vmatpush3.bf16.xpose.msra.mxu1 %v5913_v62  ;;  %v15922_v62 = vld [vmem:[#allocation87_spill] sm:$0xff] }
 0x7a0   : > { %10428 = vmatprep.subr.msk.bf16.mxu1 %vm1585_vm0, %v15904_v20  ;;  %v15923_v20 = vld [vmem:[#allocation92_spill] sm:$0xff] }
 0x7a1   : > { %v6642_v51 = vsel %vm2329_vm1, %v15923_v20, 0 }
 0x7a5   : > { %10185 = vmatpush3.bf16.xpose.msra.mxu0 %v5981_v33  ;;  %v6324_v33 = vsel %vm1585_vm0, %v15920_v43, 0 }
 0x7a6   : > { %10179 = vmatmul.mubr.msk.bf16.vlgmr.msra.gmra.mxu1 %vm1585_vm0, %v15905_v17  ;;  %10430 = vmatprep.subr.msk.bf16.mxu0 %vm1585_vm0, %v15906_v50  ;;  %v15924_v50 = vld [vmem:[#allocation94_spill] sm:$0xff] }
 0x7a7   : > { %5084 = vadd.xlane.f32.xlu0 %v5083_v4  ;;  %10191 = vmatpush3.bf16.xpose.msra.mxu1 %v6052_v52  ;;  %v15925_v4 = vld [vmem:[#allocation88_spill] sm:$0xff]  ;;  %v15926_v52 = vld [vmem:[#allocation59_spill] sm:$0xff] }
 0x7a8   : > { %10194 = vmatprep.mubr.msk.bf16.mxu1 %vm1585_vm0, %v15907_v12  ;;  %10429 = vmatprep.subr.msk.bf16.mxu1 %vm1585_vm0, %v15908_v57 }
 0x7ab   : > { %5078 = vadd.xlane.f32.xlu0 %v5077_v42  ;;  %v5125_v42 = vsel %vm2090_vm3, %v13910_v15, 0.0  ;;  %v15929_v15 = vld [vmem:[#allocation32_spill] sm:$0xff] }
 0x7ac   : > { %10187 = vmatmul.mubr.msk.bf16.vlgmr.msra.gmra.mxu0 %vm1585_vm0, %v15909_v3  ;;  %v15927_v3 = vld [vmem:[#allocation55_spill] sm:$0xff] }
 0x7ad   : > { %5081 = vadd.xlane.f32.xlu1 %v5080_v21  ;;  %10199 = vmatpush3.bf16.xpose.msra.mxu0 %v6120_v24  ;;  %v15928_v24 = vld [vmem:[#allocation86_spill] sm:$0xff] }
 0x7ae   : > { %10202 = vmatprep.mubr.msk.bf16.mxu0 %vm1585_vm0, %v15910_v14  ;;  %10431 = vmatprep.subr.msk.bf16.mxu0 %vm1585_vm0, %v15911_v54  ;;  %v5122_v14 = vsel %vm2090_vm3, %v13906_v34, 0.0  ;;  %v15931_v34 = vld [vmem:[#allocation90_spill] sm:$0xff] }
 0x7af   : > { %5102 = vadd.xlane.f32.xlu0 %v5101_v1  ;;  %10193 = vmatpush3.bf16.xpose.msra.mxu1 %v6049_v28  ;;  %v5131_v1 = vsel %vm2090_vm3, %v13931_v25, 0.0  ;;  %v6321_v28 = vsel %vm1585_vm0, %v15925_v4, 0  ;;  %v5143_v25 = vsel %vm2090_vm3, %v13960_v22, 0.0  ;;  %v15935_v22 = vld [vmem:[#allocation39_spill] sm:$0xff] }
 0x7b0   : > { %10432 = vmatprep.subr.msk.bf16.mxu1 %vm1585_vm0, %v15912_v63  ;;  %v15930_v63 = vld [vmem:[#allocation54_spill] sm:$0xff] }
 0x7b1   : > { %5093 = vadd.xlane.f32.xlu1 %v5092_v10 }
 0x7b3   : > { %5090 = vadd.xlane.f32.xlu0 %v5089_v45  ;;  %v5134_v45 = vsel %vm2090_vm3, %v13936_v60, 0.0  ;;  %v6704_v60 = vsel %vm2329_vm1, %v15931_v34, 0 }
 0x7b5   : > { %5087 = vadd.xlane.f32.xlu1 %v5086_v8  ;;  %10201 = vmatpush3.bf16.xpose.msra.mxu0 %v6117_v30  ;;  %v2261_v27 = vpop.xlane.xlu0 %2260  ;;  %v15932_v8 = vld [vmem:[#allocation95_spill] sm:$0xff]  ;;  %v5146_v30 = vsel %vm2090_vm3, %v13956_v49, 0.0 }
 0x7b6   : > { %10195 = vmatmul.mubr.msk.bf16.vlgmr.msra.gmra.mxu1 %vm1585_vm0, %v15913_v41  ;;  %10434 = vmatprep.subr.msk.bf16.mxu0 %vm1585_vm0, %v15914_v37  ;;  %10788 = vrcp.f32 %v2261_v27  ;;  %v15933_v27 = vld [vmem:[#allocation89_spill] sm:$0xff]  ;;  %v15934_v41 = vld [vmem:[#allocation30_spill] sm:$0xff]  ;;  %v5140_v37 = vsel %vm2090_vm3, %v13958_v23, 0.0 }
 0x7b7   : > { %5096 = vadd.xlane.f32.xlu0 %v5095_v53  ;;  %10207 = vmatpush3.bf16.xpose.msra.mxu1 %v6188_v46 }
 0x7b8   : > { %10210 = vmatprep.mubr.msk.bf16.mxu1 %vm1585_vm0, %v15915_v55  ;;  %10433 = vmatprep.subr.msk.bf16.mxu1 %vm1585_vm0, %v15916_v19 }
 0x7b9   : > { %5099 = vadd.xlane.f32.xlu1 %v5098_v38  ;;  %v2267_v31 = vpop.xlane.xlu0 %2266 }
 0x7ba   : > { %10790 = vrcp.f32 %v2267_v31 }
 0x7bb   : > { %5120 = vadd.xlane.f32.xlu0 %v5119_v11  ;;  %v2264_v59 = vpop.xlane.xlu1 %2263  ;;  %v15936_v11 = vld [vmem:[#allocation58_spill] sm:$0xff] }
 0x7bc   : > { %10792 = vrcp.f32 %v2264_v59  ;;  %10203 = vmatmul.mubr.msk.bf16.vlgmr.msra.gmra.mxu0 %vm1585_vm0, %v15917_v6 }
 0x7bd   : > { %5111 = vadd.xlane.f32.xlu1 %v5110_v7  ;;  %10215 = vmatpush3.bf16.xpose.msra.mxu0 %v6256_v32  ;;  %v4277_v2 = vpop.permute.xlu0 %4276  ;;  %v15937_v32 = vld [vmem:[#allocation57_spill] sm:$0xff] }
 0x7be   : > { %10218 = vmatprep.mubr.msk.bf16.mxu0 %vm1585_vm0, %v15918_v61  ;;  %10435 = vmatprep.subr.msk.bf16.mxu0 %vm1585_vm0, %v15919_v48  ;;  %4345 = vst.msk [vmem:[#allocation3 + $0x20] sm:$0xff] %vm4340_vm4, %v4277_v2  ;;  %v15938_v48 = vld [vmem:[#allocation62_spill] sm:$0xff] }
 0x7bf   : > { %5108 = vadd.xlane.f32.xlu0 %v5107_v40  ;;  %10209 = vmatpush3.bf16.xpose.msra.mxu1 %v6185_v36  ;;  %v2270_v47 = vpop.xlane.xlu1 %2269 }
 0x7c0   : > { %10794 = vrcp.f32 %v2270_v47  ;;  %10436 = vmatprep.subr.msk.bf16.mxu1 %vm1585_vm0, %v15920_v43  ;;  %v15939_v47 = vld [vmem:[#allocation61_spill] sm:$0xff] }
 0x7c1   : > { %5105 = vadd.xlane.f32.xlu1 %v5104_v13  ;;  %v4281_v39 = vpop.permute.xlu0 %4280 }
 0x7c2   : > { %4347 = vst.msk [vmem:[#allocation3 + $0x30] sm:$0xff] %vm4340_vm4, %v4281_v39 }
 0x7c3   : > { %v10789_v9 = vpop.eup %10788  ;;  %5114 = vadd.xlane.f32.xlu0 %v5113_v18  ;;  %v4279_v16 = vpop.permute.xlu1 %4278 }
 0x7c4   : > { %4346 = vst.msk [vmem:[#allocation3 + $0x28] sm:$0xff] %vm4340_vm4, %v4279_v16  ;;  %v2812_v0 = vmul.f32 %v10789_v9, %v15921_v29 }
 0x7c5   : > { %5117 = vadd.xlane.f32.xlu1 %v5116_v26  ;;  %10217 = vmatpush3.bf16.xpose.msra.mxu0 %v6253_v44 }
 0x7c6   : > { %10211 = vmatmul.mubr.msk.bf16.vlgmr.msra.gmra.mxu1 %vm1585_vm0, %v15922_v62  ;;  %10438 = vmatprep.subr.msk.bf16.mxu0 %vm2329_vm1, %v15923_v20  ;;  %2836 = vst.msk [vmem:[#allocation3 + $0x40] sm:$0xff] %vm1585_vm0, %v2812_v0 }
 0x7c7   : > { %v10791_v35 = vpop.eup %10790  ;;  %5138 = vadd.xlane.f32.xlu0 %v5137_v56  ;;  %10223 = vmatpush3.bf16.xpose.msra.mxu1 %v6324_v33  ;;  %v4283_v17 = vpop.permute.xlu1 %4282 }
 0x7c8   : > { %10226 = vmatprep.mubr.msk.bf16.mxu1 %vm1585_vm0, %v15924_v50  ;;  %4348 = vst.msk [vmem:[#allocation3 + $0x38] sm:$0xff] %vm4340_vm4, %v4283_v17  ;;  %10437 = vmatprep.subr.msk.bf16.mxu1 %vm1585_vm0, %v15925_v4  ;;  %v2814_v12 = vmul.f32 %v10791_v35, %v15926_v52 }
 0x7c9   : > { %v10793_v57 = vpop.eup %10792  ;;  %5129 = vadd.xlane.f32.xlu1 %v5128_v58 }
 0x7ca   : > { %2838 = vst.msk [vmem:[#allocation3 + $0x50] sm:$0xff] %vm1585_vm0, %v2814_v12  ;;  %v2813_v21 = vmul.f32 %v10793_v57, %v15927_v3 }
 0x7cb   : > { %5126 = vadd.xlane.f32.xlu0 %v5125_v42 }
 0x7cc   : > { %10219 = vmatmul.mubr.msk.bf16.vlgmr.msra.gmra.mxu0 %vm1585_vm0, %v15928_v24  ;;  %2837 = vst.msk [vmem:[#allocation3 + $0x48] sm:$0xff] %vm1585_vm0, %v2813_v21 }
 0x7cd   : > { %v10795_v54 = vpop.eup %10794  ;;  %5123 = vadd.xlane.f32.xlu1 %v5122_v14  ;;  %10231 = vmatpush3.bf16.msra.mxu0 %v6642_v51 }
 0x7ce   : > { %10232 = vmatprep.subr.bf16.mxu0 %v15929_v15  ;;  %v2815_v10 = vmul.f32 %v10795_v54, %v15930_v63 }
 0x7cf   : > { %5132 = vadd.xlane.f32.xlu0 %v5131_v1  ;;  %10225 = vmatpush3.bf16.xpose.msra.mxu1 %v6321_v28 }
 0x7d0   : > { %10439 = vmatprep.subr.msk.bf16.mxu1 %vm2329_vm1, %v15931_v34  ;;  %2839 = vst.msk [vmem:[#allocation3 + $0x58] sm:$0xff] %vm1585_vm0, %v2815_v10 }
 0x7d1   : > { %5135 = vadd.xlane.f32.xlu1 %v5134_v45  ;;  %10233 = vmatpush3.bf16.msra.mxu0 %v15929_v15 }
 0x7d2   : > { %10440 = vmatprep.subr.msk.bf16.mxu0 %vm2329_vm1, %v15932_v8 }
 0x7d3   : > { %5144 = vadd.xlane.f32.xlu0 %v5143_v25 }
 0x7d5   : > { %5147 = vadd.xlane.f32.xlu1 %v5146_v30 }
 0x7d6   : > { %10227 = vmatmul.mubr.msk.bf16.vlgmr.msra.gmra.mxu1 %vm1585_vm0, %v15933_v27 }
 0x7d7   : > { %10239 = vmatpush3.bf16.msra.mxu1 %v6704_v60 }
 0x7d8   : > { %10240 = vmatprep.subr.bf16.mxu1 %v15934_v41 }
 0x7d9   : > { %5141 = vadd.xlane.f32.xlu1 %v5140_v37 }
 0x7db   : > { %10241 = vmatpush3.bf16.msra.mxu1 %v15934_v41 }
 0x7dc   : > { %10441 = vmatprep.subr.msk.bf16.mxu1 %vm2329_vm1, %v15935_v22 }
 0x7f2   : > { %v2273_v49 = vpop.xlane.xlu0 %2272 }
 0x7f3   : > { %10796 = vrcp.f32 %v2273_v49 }
 0x7f6   : > { %v2279_v53 = vpop.xlane.xlu0 %2278 }
 0x7f7   : > { %10798 = vrcp.f32 %v2279_v53 }
 0x7f9   : > { %v2276_v46 = vpop.xlane.xlu1 %2275 }
 0x7fa   : > { %10800 = vrcp.f32 %v2276_v46  ;;  %v4285_v55 = vpop.permute.xlu0 %4284 }
 0x7fb   : > { %4349 = vst.msk [vmem:[#allocation3 + $0x40] sm:$0xff] %vm4340_vm4, %v4285_v55 }
 0x7fd   : > { %v2282_v19 = vpop.xlane.xlu1 %2281 }
 0x7fe   : > { %10802 = vrcp.f32 %v2282_v19  ;;  %v4289_v38 = vpop.permute.xlu0 %4288 }
 0x7ff   : > { %4351 = vst.msk [vmem:[#allocation3 + $0x50] sm:$0xff] %vm4340_vm4, %v4289_v38 }
 0x800   : > { %v10797_v23 = vpop.eup %10796 }
 0x801   : > { %v4287_v31 = vpop.permute.xlu1 %4286  ;;  %v2816_v59 = vmul.f32 %v10797_v23, %v15936_v11 }
 0x802   : > { %4350 = vst.msk [vmem:[#allocation3 + $0x48] sm:$0xff] %vm4340_vm4, %v4287_v31 }
 0x803   : > { %2840 = vst.msk [vmem:[#allocation3 + $0x60] sm:$0xff] %vm1585_vm0, %v2816_v59 }
 0x804   : > { %v10799_v6 = vpop.eup %10798 }
 0x805   : > { %v4291_v7 = vpop.permute.xlu1 %4290  ;;  %v2818_v2 = vmul.f32 %v10799_v6, %v15937_v32 }
 0x806   : > { %4352 = vst.msk [vmem:[#allocation3 + $0x58] sm:$0xff] %vm4340_vm4, %v4291_v7 }
 0x807   : > { %v10801_v61 = vpop.eup %10800  ;;  %2842 = vst.msk [vmem:[#allocation3 + $0x70] sm:$0xff] %vm1585_vm0, %v2818_v2 }
 0x808   : > { %v2817_v40 = vmul.f32 %v10801_v61, %v15938_v48 }
 0x80a   : > { %2841 = vst.msk [vmem:[#allocation3 + $0x68] sm:$0xff] %vm1585_vm0, %v2817_v40 }
 0x80b   : > { %v10803_v36 = vpop.eup %10802 }
 0x80c   : > { %v2819_v43 = vmul.f32 %v10803_v36, %v15939_v47 }
 0x80e   : > { %2843 = vst.msk [vmem:[#allocation3 + $0x78] sm:$0xff] %vm1585_vm0, %v2819_v43 }
 0x81b   : > { %v10108_v13 = vpop.f32.mrf.mxu0 }
 0x81d   : > { %v5213_v39 = vpop.f32.mrf.mxu0 }
 0x81f   : > { %v10109_v18 = vpop.f32.mrf.mxu0 }
 0x821   : > { %v5216_v16 = vpop.f32.mrf.mxu0 }
 0x82a   : > { %v10116_v9 = vpop.f32.mrf.mxu1 }
 0x82c   : > { %v5275_v26 = vpop.f32.mrf.mxu1 }
 0x82e   : > { %v10117_v44 = vpop.f32.mrf.mxu1  ;;  %v14142_v29 = vpop.f32.mrf.mxu0 }
 0x830   : > { %v5085_v0 = vpop.xlane.xlu0 %5084  ;;  %v5337_v62 = vpop.f32.mrf.mxu0 }
 0x831   : > { %10804 = vrcp.f32 %v5085_v0  ;;  %v5278_v35 = vpop.f32.mrf.mxu1 }
 0x832   : > { %v10125_v20 = vpop.f32.mrf.mxu0 }
 0x834   : > { %v5079_v56 = vpop.xlane.xlu0 %5078  ;;  %v5340_v58 = vpop.f32.mrf.mxu0 }
 0x835   : > { %10806 = vrcp.f32 %v5079_v56 }
 0x836   : > { %v5082_v33 = vpop.xlane.xlu1 %5081 }
 0x837   : > { %10808 = vrcp.f32 %v5082_v33 }
 0x838   : > { %v14144_v17 = vpop.xlane.xlu0 %5102 }
 0x839   : > { %v14146_v50 = vpop.f32.mrf.mxu1 }
 0x83a   : > { %v5094_v4 = vpop.xlane.xlu1 %5093 }
 0x83b   : > { %10810 = vrcp.f32 %v5094_v4  ;;  %v14148_v52 = vpop.f32.mrf.mxu1 }
 0x83c   : > { %v5091_v12 = vpop.xlane.xlu0 %5090 }
 0x83d   : > { %10812 = vrcp.f32 %v5091_v12  ;;  %v10133_v57 = vpop.f32.mrf.mxu1  ;;  %v14150_v42 = vpop.f32.mrf.mxu0 }
 0x83e   : > { %v10805_v3 = vpop.eup %10804  ;;  %v5088_v21 = vpop.xlane.xlu1 %5087 }
 0x83f   : > { %10814 = vrcp.f32 %v5088_v21  ;;  %v14152_v24 = vpop.f32.mrf.mxu0  ;;  %v5687_v14 = vmul.f32 %v10805_v3, %v10108_v13  ;;  %v14155_v10 = vpop.f32.mrf.mxu1 }
 0x840   : > { %v5097_v51 = vpop.xlane.xlu0 %5096 }
 0x841   : > { %10816 = vrcp.f32 %v5097_v51  ;;  %5737 = vrot.lane.b32.xlu0 %v5687_v14, %s11278_s30  ;;  %v10141_v54 = vpop.f32.mrf.mxu0 }
 0x842   : > { %v10807_v15 = vpop.eup %10806  ;;  %v5100_v1 = vpop.xlane.xlu1 %5099 }
 0x843   : > { %10818 = vrcp.f32 %v5100_v1  ;;  %v5685_v28 = vmul.f32 %v10807_v15, %v5213_v39  ;;  %v14163_v37 = vpop.f32.mrf.mxu0 }
 0x844   : > { %v10809_v63 = vpop.eup %10808 }
 0x845   : > { %5733 = vrot.lane.b32.xlu0 %v5685_v28, %s11278_s30  ;;  %v5686_v34 = vmul.f32 %v10809_v63, %v5216_v16 }
 0x846   : > { %v14158_v45 = vpop.f32.mrf.mxu1 }
 0x847   : > { %5735 = vrot.lane.b32.xlu1 %v5686_v34, %s11278_s30 }
 0x848   : > { %v10811_v25 = vpop.eup %10810  ;;  %v14161_v30 = vpop.f32.mrf.mxu1 }
 0x849   : > { %v5690_v27 = vmul.f32 %v10811_v25, %v10116_v9 }
 0x84a   : > { %v10813_v60 = vpop.eup %10812  ;;  %v10149_v41 = vpop.f32.mrf.mxu1 }
 0x84b   : > { %5743 = vrot.lane.b32.xlu1 %v5690_v27, %s11278_s30  ;;  %v5689_v49 = vmul.f32 %v10813_v60, %v5278_v35 }
 0x84c   : > { %v10815_v53 = vpop.eup %10814  ;;  %v14166_v46 = vpop.f32.mrf.mxu0 }
 0x84d   : > { %5741 = vrot.lane.b32.xlu0 %v5689_v49, %s11278_s30  ;;  %v5688_v55 = vmul.f32 %v10815_v53, %v5275_v26  ;;  %v14174_v6 = vpop.f32.mrf.mxu1 }
 0x84e   : > { %v10817_v19 = vpop.eup %10816  ;;  %v14170_v38 = vpop.f32.mrf.mxu0 }
 0x84f   : > { %5739 = vrot.lane.b32.xlu1 %v5688_v55, %s11278_s30  ;;  %v5691_v23 = vmul.f32 %v10817_v19, %v5337_v62 }
 0x850   : > { %v10819_v31 = vpop.eup %10818  ;;  %v10157_v11 = vpop.f32.mrf.mxu0 }
 0x851   : > { %5745 = vrot.lane.b32.xlu0 %v5691_v23, %s11278_s30  ;;  %v5692_v59 = vmul.f32 %v10819_v31, %v5340_v58  ;;  %v14206_v58 = vpop.xlane.xlu1 %5111 }
 0x852   : > { %v14180_v2 = vpop.f32.mrf.mxu0 }
 0x853   : > { %5747 = vrot.lane.b32.xlu1 %v5692_v59, %s11278_s30 }
 0x855   : > { %v5106_v28 = vpop.xlane.xlu1 %5105 }
 0x856   : > { %v14176_v7 = vpop.f32.mrf.mxu1  ;;  %10820 = vrcp.f32 %v5106_v28 }
 0x857   : > { %10822 = vrcp.f32 %v14144_v17 }
 0x858   : > { %v14178_v32 = vpop.f32.mrf.mxu1  ;;  %10824 = vrcp.f32 %v14206_v58 }
 0x85a   : > { %v10165_v61 = vpop.f32.mrf.mxu1 }
 0x85b   : > { %v14241_v61 = vpop.xlane.xlu0 %5120 }
 0x85c   : > { %v10172_v48 = vpop.f32.mrf.mxu0  ;;  %v14182_v47 = vpop.f32.mrf.mxu1 }
 0x85d   : > { %15940 = vst [vmem:[#allocation51_spill] sm:$0xff] %v14182_v47  ;;  %v14186_v16 = vsel %vm1584_vm2, %v10172_v48, -1e+30  ;;  %v15944_v47 = vld [vmem:[#allocation34_spill] sm:$0xff] }
 0x85e   : > { %v5884_v40 = vpop.f32.mrf.mxu0  ;;  %v6404_v0 = vsel %vm2090_vm3, %v14186_v16, -inf }
 0x85f   : > { %v14194_v62 = vsel %vm1584_vm2, %v5884_v40, -1e+30 }
 0x860   : > { %v10173_v36 = vpop.f32.mrf.mxu0  ;;  %v6398_v56 = vsel %vm2090_vm3, %v14194_v62, -inf }
 0x862   : > { %v5887_v39 = vpop.f32.mrf.mxu0 }
 0x863   : > { %v14200_v33 = vsel %vm1584_vm2, %v5887_v39, -1e+30  ;;  %v10821_v59 = vpop.eup %10820  ;;  %v14247_v39 = vpop.xlane.xlu0 %5108 }
 0x864   : > { %v6401_v12 = vsel %vm2090_vm3, %v14200_v33, -inf  ;;  %v5694_v36 = vmul.f32 %v10821_v59, %v14148_v52  ;;  %10826 = vrcp.f32 %v14247_v39 }
 0x866   : > { %v10180_v43 = vpop.f32.mrf.mxu1 }
 0x867   : > { %v14214_v3 = vsel %vm1584_vm2, %v10180_v43, -1e+30 }
 0x868   : > { %v5952_v13 = vpop.f32.mrf.mxu1  ;;  %v6413_v15 = vsel %vm2090_vm3, %v14214_v3, -inf }
 0x869   : > { %v14204_v35 = vsel %vm1584_vm2, %v5952_v13, -1e+30  ;;  %v10823_v13 = vpop.eup %10822 }
 0x86a   : > { %v10181_v18 = vpop.f32.mrf.mxu1  ;;  %v6407_v21 = vsel %vm2090_vm3, %v14204_v35, -inf }
 0x86b   : > { %v5693_v18 = vmul.f32 %v10823_v13, %v14142_v29 }
 0x86c   : > { %v10188_v26 = vpop.f32.mrf.mxu0  ;;  %v5955_v4 = vpop.f32.mrf.mxu1 }
 0x86d   : > { %v14220_v14 = vsel %vm1584_vm2, %v10188_v26, -1e+30  ;;  %v14232_v25 = vsel %vm1584_vm2, %v5955_v4, -1e+30 }
 0x86e   : > { %v14188_v44 = vpop.f32.mrf.mxu0  ;;  %v6422_v63 = vsel %vm2090_vm3, %v14220_v14, -inf  ;;  %v6410_v49 = vsel %vm2090_vm3, %v14232_v25, -inf }
 0x870   : > { %v10189_v20 = vpop.f32.mrf.mxu0  ;;  %6405 = vmax.xlane.f32.xlu0 %v6404_v0  ;;  %v14255_v0 = vpop.xlane.xlu0 %5114 }
 0x871   : > { %v14257_v20 = vpop.xlane.xlu1 %5117 }
 0x872   : > { %v6023_v51 = vpop.f32.mrf.mxu0 }
 0x873   : > { %v14228_v34 = vsel %vm1584_vm2, %v6023_v51, -1e+30 }
 0x874   : > { %6399 = vmax.xlane.f32.xlu0 %v6398_v56  ;;  %v6419_v60 = vsel %vm2090_vm3, %v14228_v34, -inf  ;;  %v14259_v4 = vpop.xlane.xlu0 %5138 }
 0x876   : > { %v14210_v57 = vpop.f32.mrf.mxu1 }
 0x877   : > { %6402 = vmax.xlane.f32.xlu1 %v6401_v12  ;;  %v14261_v12 = vpop.xlane.xlu1 %5129 }
 0x878   : > { %v6088_v54 = vpop.f32.mrf.mxu1  ;;  %6408 = vmax.xlane.f32.xlu0 %v6407_v21  ;;  %v14263_v21 = vpop.xlane.xlu0 %5126 }
 0x87a   : > { %v10197_v1 = vpop.f32.mrf.mxu1 }
 0x87b   : > { %6414 = vmax.xlane.f32.xlu1 %v6413_v15  ;;  %v14265_v51 = vpop.xlane.xlu1 %5123 }
 0x87c   : > { %v10204_v27 = vpop.f32.mrf.mxu0  ;;  %6423 = vmax.xlane.f32.xlu0 %v6422_v63  ;;  %v6091_v55 = vpop.f32.mrf.mxu1  ;;  %v14277_v63 = vsel %vm1584_vm2, %v6088_v54, -1e+30 }
 0x87d   : > { %v14267_v15 = vpop.xlane.xlu0 %5132 }
 0x87e   : > { %v6156_v41 = vpop.f32.mrf.mxu0 }
 0x87f   : > { %6420 = vmax.xlane.f32.xlu1 %v6419_v60  ;;  %v14269_v29 = vpop.xlane.xlu1 %5135  ;;  %v14282_v60 = vsel %vm1584_vm2, %v14188_v44, -1e+30  ;;  %v14290_v59 = vsel %vm1584_vm2, %v6156_v41, -1e+30  ;;  %v14298_v44 = vsel %vm1584_vm2, %v14210_v57, -1e+30 }
 0x880   : > { %v10205_v53 = vpop.f32.mrf.mxu0  ;;  %6411 = vmax.xlane.f32.xlu0 %v6410_v49  ;;  %v6425_v49 = vsel %vm2090_vm3, %v14277_v63, -inf  ;;  %v6431_v13 = vsel %vm2090_vm3, %v14298_v44, -inf }
 0x881   : > { %v14271_v1 = vpop.xlane.xlu0 %5144 }
 0x882   : > { %v14239_v31 = vpop.f32.mrf.mxu0 }
 0x883   : > { %v14273_v28 = vpop.xlane.xlu1 %5147 }
 0x886   : > { %v10212_v19 = vpop.f32.mrf.mxu1 }
 0x887   : > { %v14293_v54 = vpop.xlane.xlu1 %5141  ;;  %v14306_v41 = vsel %vm1584_vm2, %v10212_v19, -1e+30 }
 0x888   : > { %v6224_v23 = vpop.f32.mrf.mxu1 }
 0x889   : > { %v14320_v19 = vsel %vm1584_vm2, %v6224_v23, -1e+30 }
 0x88a   : > { %v10213_v11 = vpop.f32.mrf.mxu1 }
 0x88b   : > { %v6416_v11 = vsel %vm2090_vm3, %v14282_v60, -inf }
 0x88c   : > { %v14243_v48 = vpop.f32.mrf.mxu0  ;;  %v14249_v17 = vpop.f32.mrf.mxu1 }
 0x88e   : > { %v6292_v40 = vpop.f32.mrf.mxu0 }
 0x88f   : > { %v14333_v23 = vsel %vm1584_vm2, %v6292_v40, -1e+30 }
 0x890   : > { %v10221_v43 = vpop.f32.mrf.mxu0  ;;  %5751 = vrot.lane.b32.xlu1 %v5694_v36, %s11278_s30  ;;  %v6434_v36 = vsel %vm2090_vm3, %v14290_v59, -inf }
 0x896   : > { %v14252_v26 = vpop.f32.mrf.mxu1  ;;  %5749 = vrot.lane.b32.xlu0 %v5693_v18, %s11278_s30  ;;  %v14311_v18 = vsel %vm1584_vm2, %v10204_v27, -1e+30 }
 0x898   : > { %v6360_v56 = vpop.f32.mrf.mxu1 }
 0x89a   : > { %v10229_v52 = vpop.f32.mrf.mxu1 }
 0x89b   : > { %v6449_v52 = vsel %vm2090_vm3, %v14306_v41, -inf }
 0x8b3   : > { %v5738_v53 = vpop.permute.xlu0 %5737 }
 0x8b4   : > { %5808 = vst.msk [vmem:[#allocation3 + $0x10] sm:$0xff] %vm5805_vm5, %v5738_v53  ;;  %6426 = vmax.xlane.f32.xlu1 %v6425_v49  ;;  %v6440_v49 = vsel %vm2090_vm3, %v14311_v18, -inf  ;;  %v14324_v53 = vsel %vm1584_vm2, %v6091_v55, -1e+30  ;;  %v14339_v55 = vsel %vm1584_vm2, %v14239_v31, -1e+30 }
 0x8b5   : > { %6417 = vmax.xlane.f32.xlu0 %v6416_v11  ;;  %v6443_v11 = vsel %vm2090_vm3, %v14320_v19, -inf  ;;  %v6437_v40 = vsel %vm2090_vm3, %v14339_v55, -inf  ;;  %v14354_v31 = vsel %vm1584_vm2, %v14243_v48, -1e+30  ;;  %v6295_v48 = vpop.f32.mrf.mxu0 }
 0x8b6   : > { %v14371_v58 = vsel %vm1584_vm2, %v6295_v48, -1e+30 }
 0x8b7   : > { %v5734_v43 = vpop.permute.xlu0 %5733 }
 0x8b8   : > { %5806 = vst.msk [vmem:[#allocation3] sm:$0xff] %vm5805_vm5, %v5734_v43  ;;  %6435 = vmax.xlane.f32.xlu1 %v6434_v36  ;;  %v6428_v43 = vsel %vm2090_vm3, %v14324_v53, -inf }
 0x8b9   : > { %v5736_v57 = vpop.permute.xlu1 %5735  ;;  %6432 = vmax.xlane.f32.xlu0 %v6431_v13 }
 0x8ba   : > { %5807 = vst.msk [vmem:[#allocation3 + $0x8] sm:$0xff] %vm5805_vm5, %v5736_v57  ;;  %v6452_v57 = vsel %vm2090_vm3, %v14333_v23, -inf }
 0x8bc   : > { %6450 = vmax.xlane.f32.xlu1 %v6449_v52 }
 0x8bd   : > { %v5744_v27 = vpop.permute.xlu1 %5743  ;;  %6441 = vmax.xlane.f32.xlu0 %v6440_v49  ;;  %v14348_v49 = vsel %vm1584_vm2, %v6360_v56, -1e+30  ;;  %v6458_v56 = vsel %vm2090_vm3, %v14354_v31, -inf }
 0x8be   : > { %5811 = vst.msk [vmem:[#allocation3 + $0x28] sm:$0xff] %vm5805_vm5, %v5744_v27 }
 0x8bf   : > { %v5742_v36 = vpop.permute.xlu0 %5741 }
 0x8c0   : > { %5810 = vst.msk [vmem:[#allocation3 + $0x20] sm:$0xff] %vm5805_vm5, %v5742_v36  ;;  %6444 = vmax.xlane.f32.xlu1 %v6443_v11  ;;  %v6461_v11 = vsel %vm2090_vm3, %v14348_v49, -inf  ;;  %v14365_v36 = vsel %vm1584_vm2, %v14249_v17, -1e+30  ;;  %v6363_v17 = vpop.f32.mrf.mxu1 }
 0x8c1   : > { %v5740_v13 = vpop.permute.xlu1 %5739  ;;  %6429 = vmax.xlane.f32.xlu0 %v6428_v43  ;;  %v6446_v43 = vsel %vm2090_vm3, %v14365_v36, -inf }
 0x8c2   : > { %5809 = vst.msk [vmem:[#allocation3 + $0x18] sm:$0xff] %vm5805_vm5, %v5740_v13  ;;  %v6455_v13 = vsel %vm2090_vm3, %v14371_v58, -inf }
 0x8c3   : > { %v5746_v52 = vpop.permute.xlu0 %5745 }
 0x8c4   : > { %5812 = vst.msk [vmem:[#allocation3 + $0x30] sm:$0xff] %vm5805_vm5, %v5746_v52  ;;  %6453 = vmax.xlane.f32.xlu1 %v6452_v57  ;;  %v14378_v57 = vsel %vm1584_vm2, %v14252_v26, -1e+30  ;;  %v10825_v52 = vpop.eup %10824 }
 0x8c5   : > { %v5748_v27 = vpop.permute.xlu1 %5747  ;;  %6438 = vmax.xlane.f32.xlu0 %v6437_v40  ;;  %v6467_v40 = vsel %vm2090_vm3, %v14378_v57, -inf  ;;  %v10827_v26 = vpop.eup %10826 }
 0x8c6   : > { %5813 = vst.msk [vmem:[#allocation3 + $0x38] sm:$0xff] %vm5805_vm5, %v5748_v27  ;;  %v14384_v27 = vsel %vm1584_vm2, %v6363_v17, -1e+30  ;;  %v5695_v48 = vmul.f32 %v10827_v26, %v14155_v10  ;;  %v2292_v10 = vsel %vm2090_vm3, %v15944_v47, 0.0 }
 0x8c8   : > { %6462 = vmax.xlane.f32.xlu1 %v6461_v11  ;;  %v5696_v11 = vmul.f32 %v10825_v52, %v14146_v50 }
 0x8c9   : > { %6459 = vmax.xlane.f32.xlu0 %v6458_v56  ;;  %v6464_v56 = vsel %vm2090_vm3, %v14384_v27, -inf }
 0x8cd   : > { %6447 = vmax.xlane.f32.xlu0 %v6446_v43 }
 0x8d1   : > { %6456 = vmax.xlane.f32.xlu0 %v6455_v13  ;;  %v15942_v13 = vld [vmem:[#allocation18_spill] sm:$0xff] }
 0x8d2   : > { %v2286_v17 = vsel %vm2090_vm3, %v15942_v13, 0.0 }
 0x8d5   : > { %6468 = vmax.xlane.f32.xlu0 %v6467_v40 }
 0x8d9   : > { %5755 = vrot.lane.b32.xlu1 %v5696_v11, %s11278_s30  ;;  %6465 = vmax.xlane.f32.xlu0 %v6464_v56  ;;  %v15943_v11 = vld [vmem:[#allocation20_spill] sm:$0xff] }
 0x8da   : > { %10828 = vrcp.f32 %v15943_v11 }
 0x8ef   : > { %5753 = vrot.lane.b32.xlu0 %v5695_v48, %s11278_s30 }
 0x8f9   : > { %v6406_v43 = vpop.xlane.xlu0 %6405 }
 0x8fa   : > { %v6472_v9 = vsub.f32 %v14186_v16, %v6406_v43  ;;  %v15945_v16 = vld [vmem:[#allocation44_spill] sm:$0xff] }
 0x8fb   : > { %10830 = vrcp.f32 %v15945_v16  ;;  %v15948_v16 = vld [vmem:[#allocation19_spill] sm:$0xff] }
 0x8fc   : > { %v6498_v40 = vmul.f32 1.442695, %v6472_v9 }
 0x8fd   : > { %2287 = vadd.xlane.f32.xlu1 %v2286_v17  ;;  %v6400_v50 = vpop.xlane.xlu0 %6399 }
 0x8fe   : > { %v6470_v52 = vsub.f32 %v14194_v62, %v6400_v50  ;;  %10832 = vpow2.f32 %v6498_v40 }
 0x900   : > { %v6494_v56 = vmul.f32 1.442695, %v6470_v52  ;;  %v6403_v39 = vpop.xlane.xlu1 %6402 }
 0x901   : > { %v6471_v26 = vsub.f32 %v14200_v33, %v6403_v39  ;;  %2293 = vadd.xlane.f32.xlu1 %v2292_v10  ;;  %v6409_v48 = vpop.xlane.xlu0 %6408  ;;  %v15946_v39 = vld [vmem:[#allocation16_spill] sm:$0xff] }
 0x902   : > { %10834 = vpow2.f32 %v6494_v56  ;;  %v6473_v13 = vsub.f32 %v14204_v35, %v6409_v48  ;;  %v10829_v56 = vpop.eup %10828 }
 0x903   : > { %v6496_v43 = vmul.f32 1.442695, %v6471_v26 }
 0x904   : > { %v6415_v62 = vpop.xlane.xlu1 %6414  ;;  %v6500_v47 = vmul.f32 1.442695, %v6473_v13 }
 0x905   : > { %10836 = vpow2.f32 %v6496_v43  ;;  %v6475_v9 = vsub.f32 %v14214_v3, %v6415_v62  ;;  %v14404_v17 = vpop.xlane.xlu0 %6423  ;;  %v2289_v43 = vsel %vm2090_vm3, %v15948_v16, 0.0 }
 0x906   : > { %10838 = vrcp.f32 %v14257_v20  ;;  %v2283_v20 = vsel %vm2090_vm3, %v15946_v39, 0.0 }
 0x907   : > { %v6504_v33 = vmul.f32 1.442695, %v6475_v9  ;;  %10840 = vrcp.f32 %v14265_v51 }
 0x908   : > { %v14407_v50 = vpop.xlane.xlu1 %6420  ;;  %10842 = vpow2.f32 %v6500_v47  ;;  %v10831_v10 = vpop.eup %10830  ;;  %v15949_v47 = vld [vmem:[#allocation42_spill] sm:$0xff] }
 0x909   : > { %v6412_v52 = vpop.xlane.xlu0 %6411  ;;  %10844 = vpow2.f32 %v6504_v33  ;;  %v4235_v33 = vmul.f32 %v10831_v10, %v15949_v47  ;;  %v15952_v10 = vld [vmem:[#allocation37_spill] sm:$0xff] }
 0x90a   : > { %v6474_v11 = vsub.f32 %v14232_v25, %v6412_v52  ;;  %v15947_v25 = vld [vmem:[#allocation46_spill] sm:$0xff] }
 0x90b   : > { %v14415_v26 = vpop.eup %10832  ;;  %v4233_v51 = vmul.f32 %v10829_v56, %v15947_v25  ;;  %v15951_v56 = vld [vmem:[#allocation91_spill] sm:$0xff] }
 0x90c   : > { %v6502_v40 = vmul.f32 1.442695, %v6474_v11  ;;  %v5752_v35 = vpop.permute.xlu1 %5751  ;;  %v6615_v9 = vpack.c.bf16 %v14415_v26, %v14415_v26  ;;  %v15950_v11 = vld [vmem:[#allocation53_spill] sm:$0xff] }
 0x90d   : > { %5815 = vst.msk [vmem:[#allocation3 + $0x48] sm:$0xff] %vm5805_vm5, %v5752_v35  ;;  %v5750_v3 = vpop.permute.xlu0 %5749 }
 0x90e   : > { %10846 = vpow2.f32 %v6502_v40  ;;  %5814 = vst.msk [vmem:[#allocation3 + $0x40] sm:$0xff] %vm5805_vm5, %v5750_v3  ;;  %2284 = vadd.xlane.f32.xlu0 %v2283_v20  ;;  %v6766_v40 = vsel %vm2329_vm1, %v15932_v8, 0 }
 0x90f   : > { %v14418_v48 = vpop.eup %10834  ;;  %10848 = vrcp.f32 %v15950_v11 }
 0x910   : > { %10850 = vrcp.f32 %v15952_v10 }
 0x911   : > { %10852 = vrcp.f32 %v14255_v0  ;;  %v15956_v0 = vld [vmem:[#allocation96_spill] sm:$0xff] }
 0x912   : > { %v14422_v13 = vpop.eup %10836  ;;  %4294 = vrot.lane.b32.xlu1 %v4233_v51, %s11279_s16  ;;  %2290 = vadd.xlane.f32.xlu0 %v2289_v43  ;;  %v15953_v51 = vld [vmem:[#allocation38_spill] sm:$0xff]  ;;  %v6828_v43 = vsel %vm2329_vm1, %v15935_v22, 0  ;;  %10854 = vrcp.f32 %v14241_v61 }
 0x913   : > { %v6614_v62 = vpack.c.bf16 %v14422_v13, %v14418_v48  ;;  %v10839_v52 = vpop.eup %10838 }
 0x914   : > { %v10841_v35 = vpop.eup %10840  ;;  %v5698_v3 = vmul.f32 %v10839_v52, %v14163_v37  ;;  %v15957_v52 = vld [vmem:[#allocation33_spill] sm:$0xff] }
 0x915   : > { %10234 = vmatprep.mubr.msk.bf16.mxu0 %vm2090_vm3, %v6614_v62  ;;  %v14438_v39 = vpop.eup %10842  ;;  %v5700_v8 = vmul.f32 %v10841_v35, %v14161_v30  ;;  %v15954_v62 = vld [vmem:[#allocation93_spill] sm:$0xff] }
 0x916   : > { %4298 = vrot.lane.b32.xlu1 %v4235_v33, %s11279_s16  ;;  %10235 = vmatmul.mubr.msk.bf16.vlgmr.msra.gmra.mxu0 %vm2090_vm3, %v6615_v9  ;;  %v10845_v20 = vpop.eup %10844  ;;  %v15955_v9 = vld [vmem:[#allocation40_spill] sm:$0xff] }
 0x917   : > { %10247 = vmatpush3.bf16.msra.mxu0 %v6766_v40  ;;  %v6617_v37 = vpack.c.bf16 %v10845_v20, %v10845_v20 }
 0x918   : > { %10248 = vmatprep.subr.bf16.mxu0 %v15951_v56 }
 0x91a   : > { %5759 = vrot.lane.b32.xlu1 %v5698_v3, %s11278_s30  ;;  %v6478_v3 = vsub.f32 %v14220_v14, %v14404_v17 }
 0x91b   : > { %v14442_v25 = vpop.eup %10846  ;;  %10249 = vmatpush3.bf16.msra.mxu0 %v15951_v56  ;;  %v6477_v56 = vsub.f32 %v14228_v34, %v14407_v50 }
 0x91c   : > { %10442 = vmatprep.subr.msk.bf16.mxu0 %vm2329_vm1, %v15953_v51  ;;  %v6616_v16 = vpack.c.bf16 %v14442_v25, %v14438_v39  ;;  %v10849_v30 = vpop.eup %10848 }
 0x91d   : > { %v4232_v47 = vmul.f32 %v10849_v30, %v15956_v0  ;;  %v10851_v33 = vpop.eup %10850  ;;  %v6508_v10 = vmul.f32 1.442695, %v6477_v56 }
 0x91e   : > { %5763 = vrot.lane.b32.xlu1 %v5700_v8, %s11278_s30  ;;  %10242 = vmatprep.mubr.msk.bf16.mxu1 %vm2090_vm3, %v6616_v16  ;;  %v4234_v11 = vmul.f32 %v10851_v33, %v15957_v52  ;;  %v10853_v40 = vpop.eup %10852  ;;  %v6510_v16 = vmul.f32 1.442695, %v6478_v3 }
 0x91f   : > { %10243 = vmatmul.mubr.msk.bf16.vlgmr.msra.gmra.mxu1 %vm2090_vm3, %v6617_v37  ;;  %v5697_v22 = vmul.f32 %v10853_v40, %v14152_v24  ;;  %v10855_v35 = vpop.eup %10854  ;;  %10856 = vpow2.f32 %v6508_v10 }
 0x920   : > { %10255 = vmatpush3.bf16.msra.mxu1 %v6828_v43  ;;  %v5699_v61 = vmul.f32 %v10855_v35, %v14150_v42  ;;  %v15958_v42 = vld [vmem:[#allocation26_spill] sm:$0xff]  ;;  %10858 = vpow2.f32 %v6510_v16 }
 0x921   : > { %10256 = vmatprep.subr.bf16.mxu1 %v15954_v62  ;;  %v2298_v0 = vsel %vm2090_vm3, %v15958_v42, 0.0 }
 0x924   : > { %10257 = vmatpush3.bf16.msra.mxu1 %v15954_v62 }
 0x925   : > { %10443 = vmatprep.subr.msk.bf16.mxu1 %vm2329_vm1, %v15955_v9 }
 0x928   : > { %4292 = vrot.lane.b32.xlu0 %v4232_v47, %s11279_s16 }
 0x92c   : > { %4296 = vrot.lane.b32.xlu0 %v4234_v11, %s11279_s16  ;;  %v6557_v11 = vsel %vm2090_vm3, %v10845_v20, 0.0  ;;  %v10857_v3 = vpop.eup %10856 }
 0x92d   : > { %v10859_v16 = vpop.eup %10858 }
 0x930   : > { %5757 = vrot.lane.b32.xlu0 %v5697_v22, %s11278_s30 }
 0x934   : > { %5761 = vrot.lane.b32.xlu0 %v5699_v61, %s11278_s30 }
 0x93d   : > { %v6427_v8 = vpop.xlane.xlu1 %6426 }
 0x93e   : > { %v6418_v37 = vpop.xlane.xlu0 %6417  ;;  %v6479_v24 = vsub.f32 %v14277_v63, %v6427_v8 }
 0x93f   : > { %v6476_v43 = vsub.f32 %v14282_v60, %v6418_v37  ;;  %v6545_v60 = vsel %vm2090_vm3, %v14422_v13, 0.0  ;;  %v6551_v13 = vsel %vm2090_vm3, %v14438_v39, 0.0  ;;  %v15959_v37 = vld [vmem:[#allocation36_spill] sm:$0xff]  ;;  %v6563_v39 = vsel %vm2090_vm3, %v10857_v3, 0.0 }
 0x940   : > { %v6512_v17 = vmul.f32 1.442695, %v6479_v24 }
 0x941   : > { %v6506_v62 = vmul.f32 1.442695, %v6476_v43  ;;  %v6436_v30 = vpop.xlane.xlu1 %6435 }
 0x942   : > { %2299 = vadd.xlane.f32.xlu1 %v2298_v0  ;;  %v6433_v34 = vpop.xlane.xlu0 %6432  ;;  %v6482_v63 = vsub.f32 %v14290_v59, %v6436_v30 }
 0x943   : > { %10860 = vpow2.f32 %v6506_v62  ;;  %v6481_v14 = vsub.f32 %v14298_v44, %v6433_v34  ;;  %v6619_v62 = vpack.c.bf16 %v10859_v16, %v10859_v16  ;;  %v6890_v34 = vsel %vm2329_vm1, %v15953_v51, 0 }
 0x944   : > { %v6518_v35 = vmul.f32 1.442695, %v6482_v63  ;;  %v6548_v51 = vsel %vm2090_vm3, %v14415_v26, 0.0 }
 0x945   : > { %v6516_v50 = vmul.f32 1.442695, %v6481_v14  ;;  %v6451_v47 = vpop.xlane.xlu1 %6450 }
 0x946   : > { %6546 = vadd.xlane.f32.xlu1 %v6545_v60  ;;  %v6442_v33 = vpop.xlane.xlu0 %6441  ;;  %v6487_v10 = vsub.f32 %v14306_v41, %v6451_v47 }
 0x947   : > { %10862 = vpow2.f32 %v6516_v50  ;;  %v6484_v40 = vsub.f32 %v14311_v18, %v6442_v33  ;;  %v15960_v33 = vld [vmem:[#allocation43_spill] sm:$0xff] }
 0x948   : > { %10864 = vpow2.f32 %v6512_v17  ;;  %v6528_v30 = vmul.f32 1.442695, %v6487_v10 }
 0x949   : > { %v6445_v52 = vpop.xlane.xlu1 %6444  ;;  %v6522_v8 = vmul.f32 1.442695, %v6484_v40 }
 0x94a   : > { %6558 = vadd.xlane.f32.xlu1 %v6557_v11  ;;  %v6430_v22 = vpop.xlane.xlu0 %6429  ;;  %v6485_v42 = vsub.f32 %v14320_v19, %v6445_v52 }
 0x94b   : > { %v6480_v44 = vsub.f32 %v14324_v53, %v6430_v22  ;;  %v2295_v53 = vsel %vm2090_vm3, %v15959_v37, 0.0  ;;  %v15961_v22 = vld [vmem:[#allocation41_spill] sm:$0xff]  ;;  %v6952_v37 = vsel %vm2329_vm1, %v15955_v9, 0 }
 0x94c   : > { %v6524_v19 = vmul.f32 1.442695, %v6485_v42  ;;  %v7014_v9 = vsel %vm2329_vm1, %v15961_v22, 0 }
 0x94d   : > { %v6514_v61 = vmul.f32 1.442695, %v6480_v44  ;;  %v6454_v56 = vpop.xlane.xlu1 %6453 }
 0x94e   : > { %6552 = vadd.xlane.f32.xlu1 %v6551_v13  ;;  %v6439_v59 = vpop.xlane.xlu0 %6438  ;;  %v6488_v14 = vsub.f32 %v14333_v23, %v6454_v56 }
 0x94f   : > { %10866 = vpow2.f32 %v6514_v61  ;;  %v6483_v18 = vsub.f32 %v14339_v55, %v6439_v59 }
 0x950   : > { %v14488_v20 = vpop.eup %10860  ;;  %10868 = vpow2.f32 %v6518_v35  ;;  %v6530_v52 = vmul.f32 1.442695, %v6488_v14  ;;  %v6542_v35 = vsel %vm2090_vm3, %v14418_v48, 0.0  ;;  %v6566_v48 = vsel %vm2090_vm3, %v10859_v16, 0.0 }
 0x951   : > { %v6520_v43 = vmul.f32 1.442695, %v6483_v18  ;;  %v14492_v24 = vpop.xlane.xlu1 %6462  ;;  %v6618_v41 = vpack.c.bf16 %v10857_v3, %v14488_v20  ;;  %10870 = vpow2.f32 %v6522_v8 }
 0x952   : > { %6564 = vadd.xlane.f32.xlu1 %v6563_v39  ;;  %v6460_v55 = vpop.xlane.xlu0 %6459  ;;  %v6491_v10 = vsub.f32 %v14348_v49, %v14492_v24  ;;  %v15962_v39 = vld [vmem:[#allocation98_spill] sm:$0xff] }
 0x953   : > { %10872 = vpow2.f32 %v6520_v43  ;;  %2296 = vadd.xlane.f32.xlu0 %v2295_v53  ;;  %10250 = vmatprep.mubr.msk.bf16.mxu0 %vm2090_vm3, %v6618_v41  ;;  %v6490_v60 = vsub.f32 %v14354_v31, %v6460_v55  ;;  %v6554_v41 = vsel %vm2090_vm3, %v14442_v25, 0.0  ;;  %v15963_v55 = vld [vmem:[#allocation100_spill] sm:$0xff] }
 0x954   : > { %v10863_v0 = vpop.eup %10862  ;;  %10251 = vmatmul.mubr.msk.bf16.vlgmr.msra.gmra.mxu0 %vm2090_vm3, %v6619_v62  ;;  %10874 = vpow2.f32 %v6528_v30  ;;  %v6536_v24 = vmul.f32 1.442695, %v6491_v10  ;;  %v15964_v25 = vld [vmem:[#allocation104_spill] sm:$0xff] }
 0x955   : > { %10263 = vmatpush3.bf16.msra.mxu0 %v6890_v34  ;;  %v5756_v17 = vpop.permute.xlu1 %5755  ;;  %v6575_v50 = vsel %vm2090_vm3, %v10863_v0, 0.0  ;;  %v10865_v47 = vpop.eup %10864  ;;  %10876 = vpow2.f32 %v6524_v19  ;;  %v6534_v31 = vmul.f32 1.442695, %v6490_v60  ;;  %v6621_v3 = vpack.c.bf16 %v10863_v0, %v10863_v0 }
 0x956   : > { %5817 = vst.msk [vmem:[#allocation3 + $0x58] sm:$0xff] %vm5805_vm5, %v5756_v17  ;;  %10264 = vmatprep.subr.bf16.mxu0 %v15960_v33  ;;  %6576 = vadd.xlane.f32.xlu1 %v6575_v50  ;;  %v6448_v63 = vpop.xlane.xlu0 %6447  ;;  %v6569_v40 = vsel %vm2090_vm3, %v10865_v47, 0.0  ;;  %v6560_v34 = vsel %vm2090_vm3, %v14488_v20, 0.0 }
 0x957   : > { %v6486_v23 = vsub.f32 %v14365_v36, %v6448_v63  ;;  %6549 = vadd.xlane.f32.xlu0 %v6548_v51  ;;  %v7076_v51 = vsel %vm2329_vm1, %v15964_v25, 0 }
 0x959   : > { %v6526_v11 = vmul.f32 1.442695, %v6486_v23  ;;  %10265 = vmatpush3.bf16.msra.mxu0 %v15960_v33 }
 0x95a   : > { %10444 = vmatprep.subr.msk.bf16.mxu0 %vm2329_vm1, %v15961_v22  ;;  %6570 = vadd.xlane.f32.xlu1 %v6569_v40  ;;  %v6457_v44 = vpop.xlane.xlu0 %6456  ;;  %v15965_v40 = vld [vmem:[#allocation27_spill] sm:$0xff] }
 0x95b   : > { %10878 = vpow2.f32 %v6526_v11  ;;  %v6489_v36 = vsub.f32 %v14371_v58, %v6457_v44  ;;  %6543 = vadd.xlane.f32.xlu0 %v6542_v35 }
 0x95c   : > { %v14516_v26 = vpop.eup %10866  ;;  %10880 = vpow2.f32 %v6530_v52 }
 0x95d   : > { %v6532_v61 = vmul.f32 1.442695, %v6489_v36  ;;  %v6620_v56 = vpack.c.bf16 %v14516_v26, %v10865_v47  ;;  %v14519_v13 = vpop.eup %10868  ;;  %10882 = vpow2.f32 %v6534_v31  ;;  %v6572_v31 = vsel %vm2090_vm3, %v14516_v26, 0.0 }
 0x95e   : > { %v6469_v8 = vpop.xlane.xlu0 %6468  ;;  %v10871_v59 = vpop.eup %10870  ;;  %v6578_v36 = vsel %vm2090_vm3, %v14519_v13, 0.0 }
 0x95f   : > { %10884 = vpow2.f32 %v6532_v61  ;;  %v6493_v58 = vsub.f32 %v14378_v57, %v6469_v8  ;;  %6567 = vadd.xlane.f32.xlu0 %v6566_v48  ;;  %10258 = vmatprep.mubr.msk.bf16.mxu1 %vm2090_vm3, %v6620_v56  ;;  %v6623_v16 = vpack.c.bf16 %v10871_v59, %v10871_v59  ;;  %v6584_v60 = vsel %vm2090_vm3, %v10871_v59, 0.0 }
 0x960   : > { %v10873_v18 = vpop.eup %10872  ;;  %10259 = vmatmul.mubr.msk.bf16.vlgmr.msra.gmra.mxu1 %vm2090_vm3, %v6621_v3  ;;  %v15966_v8 = vmov 0  }
 0x961   : > { %v6540_v53 = vmul.f32 1.442695, %v6493_v58  ;;  %10271 = vmatpush3.bf16.msra.mxu1 %v6952_v37  ;;  %v6581_v49 = vsel %vm2090_vm3, %v10873_v18, 0.0  ;;  %v6622_v43 = vpack.c.bf16 %v10873_v18, %v14519_v13  ;;  %v10875_v62 = vpop.eup %10874 }
 0x962   : > { %10272 = vmatprep.subr.bf16.mxu1 %v15962_v39  ;;  %6582 = vadd.xlane.f32.xlu1 %v6581_v49  ;;  %v6466_v57 = vpop.xlane.xlu0 %6465  ;;  %v10877_v14 = vpop.eup %10876  ;;  %v6625_v63 = vpack.c.bf16 %v10875_v62, %v10875_v62 }
 0x963   : > { %10886 = vpow2.f32 %v6540_v53  ;;  %v6492_v30 = vsub.f32 %v14384_v27, %v6466_v57  ;;  %6555 = vadd.xlane.f32.xlu0 %v6554_v41  ;;  %10266 = vmatprep.mubr.msk.bf16.mxu0 %vm2090_vm3, %v6622_v43  ;;  %v6593_v27 = vsel %vm2090_vm3, %v10875_v62, 0.0  ;;  %v6587_v19 = vsel %vm2090_vm3, %v10877_v14, 0.0  ;;  %v15967_v43 = vld [vmem:[#allocation60_spill] sm:$0xff]  ;;  %v15968_v41 = vld [vmem:[#allocation67_spill] sm:$0xff] }
 0x964   : > { %10267 = vmatmul.mubr.msk.bf16.vlgmr.msra.gmra.mxu0 %vm2090_vm3, %v6623_v16  ;;  %10888 = vpow2.f32 %v6536_v24 }
 0x965   : > { %v6538_v42 = vmul.f32 1.442695, %v6492_v30  ;;  %10273 = vmatpush3.bf16.msra.mxu1 %v15962_v39  ;;  %10279 = vmatpush3.bf16.msra.mxu0 %v7014_v9 }
 0x966   : > { %10280 = vmatprep.subr.bf16.mxu0 %v15963_v55  ;;  %10445 = vmatprep.subr.msk.bf16.mxu1 %vm2329_vm1, %v15964_v25  ;;  %v5754_v0 = vpop.permute.xlu0 %5753 }
 0x967   : > { %10890 = vpow2.f32 %v6538_v42  ;;  %6594 = vadd.xlane.f32.xlu1 %v6593_v27  ;;  %5816 = vst.msk [vmem:[#allocation3 + $0x50] sm:$0xff] %vm5805_vm5, %v5754_v0  ;;  %6561 = vadd.xlane.f32.xlu0 %v6560_v34  ;;  %v15969_v27 = vld [vmem:[#allocation65_spill] sm:$0xff] }
 0x968   : > { %v10879_v17 = vpop.eup %10878 }
 0x969   : > { %10281 = vmatpush3.bf16.msra.mxu0 %v15963_v55  ;;  %v6624_v50 = vpack.c.bf16 %v10879_v17, %v10877_v14  ;;  %v10881_v47 = vpop.eup %10880  ;;  %v6590_v48 = vsel %vm2090_vm3, %v10879_v17, 0.0  ;;  %v15970_v17 = vld [vmem:[#allocation64_spill] sm:$0xff] }
 0x96a   : > { %v10883_v33 = vpop.eup %10882  ;;  %v6596_v13 = vsel %vm2090_vm3, %v10881_v47, 0.0 }
 0x96b   : > { %6588 = vadd.xlane.f32.xlu1 %v6587_v19  ;;  %6585 = vadd.xlane.f32.xlu0 %v6584_v60  ;;  %v6627_v11 = vpack.c.bf16 %v10883_v33, %v10883_v33  ;;  %v6602_v10 = vsel %vm2090_vm3, %v10883_v33, 0.0 }
 0x96c   : > { %v10885_v20 = vpop.eup %10884  ;;  %10274 = vmatprep.mubr.msk.bf16.mxu1 %vm2090_vm3, %v6624_v50 }
 0x96d   : > { %10275 = vmatmul.mubr.msk.bf16.vlgmr.msra.gmra.mxu1 %vm2090_vm3, %v6625_v63  ;;  %v6599_v23 = vsel %vm2090_vm3, %v10885_v20, 0.0  ;;  %v6626_v52 = vpack.c.bf16 %v10885_v20, %v10881_v47  ;;  %v10508_v63 = vld [vmem:[%s11388_s24 + $0x38] sm:$0xff]  }
 0x96e   : > { %10287 = vmatpush3.bf16.msra.mxu1 %v7076_v51  ;;  %10294 = vmatprep.subr.bf16.mxu0 %v10508_v63 }
 0x96f   : > { %10288 = vmatprep.subr.bf16.mxu1 %v15965_v40  ;;  %6600 = vadd.xlane.f32.xlu1 %v6599_v23  ;;  %v10509_v23 = vld [vmem:[%s11388_s24 + $0x30] sm:$0xff]  }
 0x970   : > { %v10887_v22 = vpop.eup %10886  ;;  %6573 = vadd.xlane.f32.xlu0 %v6572_v31  ;;  %10282 = vmatprep.mubr.msk.bf16.mxu0 %vm2090_vm3, %v6626_v52  ;;  %v15971_v31 = vld [vmem:[#allocation68_spill] sm:$0xff] }
 0x971   : > { %10283 = vmatmul.mubr.msk.bf16.vlgmr.msra.gmra.mxu0 %vm2090_vm3, %v6627_v11  ;;  %v6611_v44 = vsel %vm2090_vm3, %v10887_v22, 0.0  ;;  %v10889_v35 = vpop.eup %10888  ;;  %v6629_v3 = vpack.c.bf16 %v10887_v22, %v10887_v22 }
 0x972   : > { %10289 = vmatpush3.bf16.msra.mxu1 %v15965_v40  ;;  %v6605_v26 = vsel %vm2090_vm3, %v10889_v35, 0.0  ;;  %10295 = vmatpush3.bf16.msra.mxu0 %v10508_v63 }
 0x973   : > { %6612 = vadd.xlane.f32.xlu1 %v6611_v44  ;;  %10296 = vmatprep.subr.bf16.mxu0 %v10509_v23  ;;  %v10510_v44 = vld [vmem:[%s11388_s24 + $0x28] sm:$0xff]  }
 0x974   : > { %v10891_v61 = vpop.eup %10890  ;;  %6579 = vadd.xlane.f32.xlu0 %v6578_v36 }
 0x975   : > { %v6628_v56 = vpack.c.bf16 %v10891_v61, %v10889_v35  ;;  %v6608_v59 = vsel %vm2090_vm3, %v10891_v61, 0.0 }
 0x976   : > { %10297 = vmatpush3.bf16.msra.mxu0 %v10509_v23 }
 0x977   : > { %6606 = vadd.xlane.f32.xlu1 %v6605_v26  ;;  %10290 = vmatprep.mubr.msk.bf16.mxu1 %vm2090_vm3, %v6628_v56  ;;  %v10511_v56 = vld [vmem:[%s11388_s24 + $0x20] sm:$0xff]  }
 0x978   : > { %6603 = vadd.xlane.f32.xlu0 %v6602_v10  ;;  %10291 = vmatmul.mubr.msk.bf16.vlgmr.msra.gmra.mxu1 %vm2090_vm3, %v6629_v3 }
 0x979   : > { %8033 = vmatprep.mubr.bf16.mxu1 %v15966_v8  ;;  %10298 = vmatprep.subr.bf16.mxu0 %v10510_v44 }
 0x97a   : > { %10299 = vmatpush3.bf16.msra.mxu0 %v10510_v44 }
 0x97b   : > { %10300 = vmatprep.subr.bf16.mxu0 %v10511_v56 }
 0x97c   : > { %6591 = vadd.xlane.f32.xlu0 %v6590_v48  ;;  %v10512_v48 = vld [vmem:[%s11388_s24 + $0x18] sm:$0xff]  }
 0x97e   : > { %10301 = vmatpush3.bf16.msra.mxu0 %v10511_v56  ;;  %v15976_v56 = vld [vmem:[#allocation45_spill] sm:$0xff] }
 0x97f   : > { %10302 = vmatprep.subr.bf16.mxu0 %v10512_v48 }
 0x980   : > { %6597 = vadd.xlane.f32.xlu0 %v6596_v13 }
 0x982   : > { %10303 = vmatpush3.bf16.msra.mxu0 %v10512_v48 }
 0x984   : > { %6609 = vadd.xlane.f32.xlu0 %v6608_v59 }
 0x986   : > { %v2288_v58 = vpop.xlane.xlu1 %2287 }
 0x987   : > { %10892 = vrcp.f32 %v2288_v58 }
 0x98a   : > { %v2294_v18 = vpop.xlane.xlu1 %2293 }
 0x98b   : > { %10894 = vrcp.f32 %v2294_v18 }
 0x98e   : > { %v4295_v37 = vpop.permute.xlu1 %4294 }
 0x98f   : > { %4354 = vst.msk [vmem:[#allocation3 + $0x68] sm:$0xff] %vm4340_vm4, %v4295_v37 }
 0x992   : > { %v4299_v53 = vpop.permute.xlu1 %4298 }
 0x993   : > { %4356 = vst.msk [vmem:[#allocation3 + $0x78] sm:$0xff] %vm4340_vm4, %v4299_v53  ;;  %v10513_v53 = vld [vmem:[%s11388_s24 + $0x10] sm:$0xff]  }
 0x994   : > { %v10893_v49 = vpop.eup %10892  ;;  %10304 = vmatprep.subr.bf16.mxu0 %v10513_v53 }
 0x995   : > { %v2821_v16 = vmul.f32 %v10893_v49, %v15967_v43  ;;  %10305 = vmatpush3.bf16.msra.mxu0 %v10513_v53 }
 0x996   : > { %v5760_v24 = vpop.permute.xlu1 %5759 }
 0x997   : > { %5819 = vst.msk [vmem:[#allocation3 + $0x68] sm:$0xff] %vm5805_vm5, %v5760_v24  ;;  %v2285_v39 = vpop.xlane.xlu0 %2284 }
 0x998   : > { %2845 = vst.msk [vmem:[#allocation3 + $0x88] sm:$0xff] %vm1585_vm0, %v2821_v16  ;;  %v10895_v57 = vpop.eup %10894  ;;  %10896 = vrcp.f32 %v2285_v39  ;;  %v10514_v16 = vld [vmem:[%s11388_s24 + $0x8] sm:$0xff]   ;;  %v15972_v39 = vld [vmem:[#allocation63_spill] sm:$0xff] }
 0x999   : > { %v2823_v62 = vmul.f32 %v10895_v57, %v15968_v41  ;;  %10306 = vmatprep.subr.bf16.mxu0 %v10514_v16  ;;  %v10515_v41 = vld [vmem:[%s11388_s24] sm:$0xff]  }
 0x99a   : > { %v5764_v30 = vpop.permute.xlu1 %5763  ;;  %10307 = vmatpush3.bf16.msra.mxu0 %v10514_v16 }
 0x99b   : > { %5821 = vst.msk [vmem:[#allocation3 + $0x78] sm:$0xff] %vm5805_vm5, %v5764_v30  ;;  %v2291_v9 = vpop.xlane.xlu0 %2290  ;;  %10308 = vmatprep.subr.bf16.mxu0 %v10515_v41 }
 0x99c   : > { %2847 = vst.msk [vmem:[#allocation3 + $0x98] sm:$0xff] %vm1585_vm0, %v2823_v62  ;;  %10898 = vrcp.f32 %v2291_v9 }
 0x99e   : > { %10309 = vmatpush3.bf16.msra.mxu0 %v10515_v41 }
 0x99f   : > { %v4293_v42 = vpop.permute.xlu0 %4292 }
 0x9a0   : > { %4353 = vst.msk [vmem:[#allocation3 + $0x60] sm:$0xff] %vm4340_vm4, %v4293_v42 }
 0x9a3   : > { %v4297_v55 = vpop.permute.xlu0 %4296 }
 0x9a4   : > { %4355 = vst.msk [vmem:[#allocation3 + $0x70] sm:$0xff] %vm4340_vm4, %v4297_v55 }
 0x9a5   : > { %v10897_v25 = vpop.eup %10896 }
 0x9a6   : > { %v2820_v0 = vmul.f32 %v10897_v25, %v15969_v27 }
 0x9a7   : > { %v5758_v34 = vpop.permute.xlu0 %5757 }
 0x9a8   : > { %5818 = vst.msk [vmem:[#allocation3 + $0x60] sm:$0xff] %vm5805_vm5, %v5758_v34 }
 0x9a9   : > { %2844 = vst.msk [vmem:[#allocation3 + $0x80] sm:$0xff] %vm1585_vm0, %v2820_v0  ;;  %v10899_v14 = vpop.eup %10898  ;;  %v15973_v0 = vld [vmem:[#allocation17_spill] sm:$0xff] }
 0x9aa   : > { %v2822_v50 = vmul.f32 %v10899_v14, %v15970_v17  ;;  %v2304_v34 = vsel %vm2090_vm3, %v15973_v0, 0.0  ;;  %v15974_v17 = vld [vmem:[#allocation28_spill] sm:$0xff] }
 0x9ab   : > { %v5762_v47 = vpop.permute.xlu0 %5761 }
 0x9ac   : > { %5820 = vst.msk [vmem:[#allocation3 + $0x70] sm:$0xff] %vm5805_vm5, %v5762_v47 }
 0x9ad   : > { %2846 = vst.msk [vmem:[#allocation3 + $0x90] sm:$0xff] %vm1585_vm0, %v2822_v50 }
 0x9cb   : > { %v2300_v19 = vpop.xlane.xlu1 %2299 }
 0x9cc   : > { %10900 = vrcp.f32 %v2300_v19 }
 0x9cf   : > { %v6547_v60 = vpop.xlane.xlu1 %6546 }
 0x9d0   : > { %10902 = vrcp.f32 %v6547_v60 }
 0x9d3   : > { %v6559_v33 = vpop.xlane.xlu1 %6558 }
 0x9d4   : > { %10904 = vrcp.f32 %v6559_v33 }
 0x9d6   : > { %v10236_v20 = vpop.f32.mrf.mxu0 }
 0x9d7   : > { %v6553_v51 = vpop.xlane.xlu1 %6552 }
 0x9d8   : > { %10906 = vrcp.f32 %v6553_v51  ;;  %v6678_v52 = vpop.f32.mrf.mxu0 }
 0x9d9   : > { %v10901_v11 = vpop.eup %10900 }
 0x9da   : > { %v10237_v40 = vpop.f32.mrf.mxu0  ;;  %v2825_v22 = vmul.f32 %v10901_v11, %v15971_v31 }
 0x9db   : > { %v6565_v27 = vpop.xlane.xlu1 %6564 }
 0x9dc   : > { %v6681_v35 = vpop.f32.mrf.mxu0  ;;  %v2297_v36 = vpop.xlane.xlu0 %2296  ;;  %2849 = vst.msk [vmem:[#allocation3 + $0xa8] sm:$0xff] %vm1585_vm0, %v2825_v22  ;;  %v15975_v22 = vld [vmem:[#allocation49_spill] sm:$0xff] }
 0x9dd   : > { %v10903_v61 = vpop.eup %10902  ;;  %10908 = vrcp.f32 %v2297_v36 }
 0x9de   : > { %v7151_v3 = vmul.f32 %v10903_v61, %v6681_v35 }
 0x9df   : > { %v10244_v26 = vpop.f32.mrf.mxu1  ;;  %v6577_v50 = vpop.xlane.xlu1 %6576 }
 0x9e0   : > { %7200 = vrot.lane.b32.xlu1 %v7151_v3, %s11277_s18  ;;  %v6550_v10 = vpop.xlane.xlu0 %6549 }
 0x9e1   : > { %v10905_v13 = vpop.eup %10904  ;;  %10910 = vrcp.f32 %v6550_v10  ;;  %v6740_v59 = vpop.f32.mrf.mxu1 }
 0x9e2   : > { %v7155_v58 = vmul.f32 %v10905_v13, %v10244_v26 }
 0x9e3   : > { %v10245_v18 = vpop.f32.mrf.mxu1  ;;  %v6571_v63 = vpop.xlane.xlu1 %6570 }
 0x9e4   : > { %7208 = vrot.lane.b32.xlu1 %v7155_v58, %s11277_s18  ;;  %v6544_v37 = vpop.xlane.xlu0 %6543 }
 0x9e5   : > { %v10907_v49 = vpop.eup %10906  ;;  %10912 = vrcp.f32 %v6544_v37  ;;  %v6743_v51 = vpop.f32.mrf.mxu1 }
 0x9e6   : > { %v7153_v43 = vmul.f32 %v10907_v49, %v6740_v59 }
 0x9e8   : > { %7204 = vrot.lane.b32.xlu1 %v7153_v43, %s11277_s18  ;;  %v6568_v55 = vpop.xlane.xlu0 %6567 }
 0x9e9   : > { %10914 = vrcp.f32 %v6568_v55 }
 0x9ea   : > { %v10909_v24 = vpop.eup %10908 }
 0x9eb   : > { %v2824_v57 = vmul.f32 %v10909_v24, %v15972_v39  ;;  %v6583_v36 = vpop.xlane.xlu1 %6582 }
 0x9ec   : > { %v6556_v25 = vpop.xlane.xlu0 %6555 }
 0x9ed   : > { %2848 = vst.msk [vmem:[#allocation3 + $0xa0] sm:$0xff] %vm1585_vm0, %v2824_v57  ;;  %10916 = vrcp.f32 %v6556_v25 }
 0x9ee   : > { %v10911_v62 = vpop.eup %10910  ;;  %10918 = vrcp.f32 %v6565_v27 }
 0x9ef   : > { %v7152_v30 = vmul.f32 %v10911_v62, %v10236_v20  ;;  %10920 = vrcp.f32 %v15974_v17 }
 0x9f0   : > { %v6562_v14 = vpop.xlane.xlu0 %6561  ;;  %v6595_v13 = vpop.xlane.xlu1 %6594 }
 0x9f1   : > { %7202 = vrot.lane.b32.xlu0 %v7152_v30, %s11277_s18  ;;  %10922 = vrcp.f32 %v6562_v14 }
 0x9f2   : > { %v10913_v9 = vpop.eup %10912  ;;  %10924 = vrcp.f32 %v6577_v50 }
 0x9f3   : > { %v7150_v42 = vmul.f32 %v10913_v9, %v6678_v52  ;;  %10926 = vrcp.f32 %v6571_v63 }
 0x9f4   : > { %10928 = vrcp.f32 %v15975_v22  ;;  %v6589_v16 = vpop.xlane.xlu1 %6588  ;;  %v15980_v22 = vld [vmem:[#allocation56_spill] sm:$0xff] }
 0x9f5   : > { %7198 = vrot.lane.b32.xlu0 %v7150_v42, %s11277_s18  ;;  %10930 = vrcp.f32 %v14261_v12 }
 0x9f6   : > { %v10915_v47 = vpop.eup %10914  ;;  %10932 = vrcp.f32 %v14269_v29  ;;  %v15977_v29 = vld [vmem:[#allocation105_spill] sm:$0xff] }
 0x9f7   : > { %10934 = vrcp.f32 %v6583_v36 }
 0x9f8   : > { %10936 = vrcp.f32 %v6589_v16 }
 0x9f9   : > { %10938 = vrcp.f32 %v6595_v13 }
 0x9fa   : > { %v10917_v33 = vpop.eup %10916  ;;  %10940 = vrcp.f32 %v13773_v5 }
 0x9fb   : > { %v7154_v52 = vmul.f32 %v10917_v33, %v6743_v51  ;;  %v10919_v11 = vpop.eup %10918  ;;  %v6586_v33 = vpop.xlane.xlu0 %6585 }
 0x9fc   : > { %v10921_v31 = vpop.eup %10920 }
 0x9fd   : > { %v4237_v3 = vmul.f32 %v10921_v31, %v15976_v56 }
 0x9fe   : > { %v10923_v35 = vpop.eup %10922 }
 0x9ff   : > { %v10925_v10 = vpop.eup %10924  ;;  %v6574_v31 = vpop.xlane.xlu0 %6573 }
 0xa00   : > { %v10927_v37 = vpop.eup %10926 }
 0xa01   : > { %v10929_v49 = vpop.eup %10928 }
 0xa02   : > { %v4239_v39 = vmul.f32 %v10929_v49, %v15977_v29  ;;  %v10931_v57 = vpop.eup %10930 }
 0xa03   : > { %v5702_v9 = vmul.f32 %v10931_v57, %v14158_v45  ;;  %v10933_v42 = vpop.eup %10932  ;;  %v15978_v45 = vld [vmem:[#allocation106_spill] sm:$0xff]  ;;  %v6580_v56 = vpop.xlane.xlu0 %6579 }
 0xa04   : > { %v5704_v0 = vmul.f32 %v10933_v42, %v14180_v2  ;;  %v10935_v14 = vpop.eup %10934  ;;  %10942 = vrcp.f32 %v15978_v45  ;;  %v15979_v2 = vld [vmem:[#allocation21_spill] sm:$0xff] }
 0xa05   : > { %v2301_v51 = vsel %vm2090_vm3, %v15979_v2, 0.0 }
 0xa0c   : > { %2305 = vadd.xlane.f32.xlu1 %v2304_v34 }
 0xa14   : > { %v10252_v19 = vpop.f32.mrf.mxu0 }
 0xa15   : > { %v7158_v60 = vmul.f32 %v10915_v47, %v10252_v19  ;;  %v10937_v19 = vpop.eup %10936 }
 0xa16   : > { %v6802_v20 = vpop.f32.mrf.mxu0 }
 0xa17   : > { %7214 = vrot.lane.b32.xlu0 %v7158_v60, %s11277_s18  ;;  %v7156_v61 = vmul.f32 %v10923_v35, %v6802_v20  ;;  %v6601_v60 = vpop.xlane.xlu1 %6600 }
 0xa18   : > { %v10253_v23 = vpop.f32.mrf.mxu0  ;;  %10944 = vrcp.f32 %v6601_v60 }
 0xa19   : > { %v10939_v23 = vpop.eup %10938  ;;  %10946 = vrcp.f32 %v14293_v54 }
 0xa1a   : > { %v6805_v40 = vpop.f32.mrf.mxu0  ;;  %10948 = vrcp.f32 %v15980_v22 }
 0xa1b   : > { %v7157_v44 = vmul.f32 %v10919_v11, %v6805_v40  ;;  %7206 = vrot.lane.b32.xlu0 %v7154_v52, %s11277_s18  ;;  %v10941_v11 = vpop.eup %10940  ;;  %v6613_v40 = vpop.xlane.xlu1 %6612  ;;  %10950 = vrcp.f32 %v14273_v28 }
 0xa1c   : > { %v10943_v36 = vpop.eup %10942  ;;  %10952 = vrcp.f32 %v6586_v33  ;;  %v14653_v28 = vpop.xlane.xlu0 %6603 }
 0xa1d   : > { %7212 = vrot.lane.b32.xlu1 %v7157_v44, %s11277_s18  ;;  %v15981_v44 = vld [vmem:[#allocation103_spill] sm:$0xff] }
 0xa1e   : > { %v4241_v35 = vmul.f32 %v10941_v11, %v15981_v44 }
 0xa1f   : > { %7210 = vrot.lane.b32.xlu0 %v7156_v61, %s11277_s18  ;;  %v6607_v61 = vpop.xlane.xlu1 %6606 }
 0xa20   : > { %v10260_v26 = vpop.f32.mrf.mxu1  ;;  %10954 = vrcp.f32 %v6607_v61  ;;  %v6592_v29 = vpop.xlane.xlu0 %6591 }
 0xa21   : > { %4302 = vrot.lane.b32.xlu1 %v4237_v3, %s11279_s16  ;;  %v7161_v59 = vmul.f32 %v10925_v10, %v10260_v26  ;;  %v15982_v3 = vld [vmem:[#allocation102_spill] sm:$0xff]  ;;  %10956 = vrcp.f32 %v6574_v31 }
 0xa22   : > { %v6864_v48 = vpop.f32.mrf.mxu1  ;;  %v4243_v26 = vmul.f32 %v10943_v36, %v15982_v3  ;;  %10958 = vrcp.f32 %v6613_v40 }
 0xa23   : > { %v7159_v53 = vmul.f32 %v10927_v37, %v6864_v48 }
 0xa24   : > { %v10261_v58 = vpop.f32.mrf.mxu1  ;;  %v14617_v18 = vpop.f32.mrf.mxu0 }
 0xa25   : > { %7220 = vrot.lane.b32.xlu1 %v7161_v59, %s11277_s18  ;;  %v10945_v10 = vpop.eup %10944  ;;  %v15983_v59 = vld [vmem:[#allocation48_spill] sm:$0xff] }
 0xa26   : > { %v14620_v12 = vpop.f32.mrf.mxu0  ;;  %v14623_v24 = vpop.f32.mrf.mxu1  ;;  %10960 = vrcp.f32 %v15983_v59 }
 0xa27   : > { %v10947_v13 = vpop.eup %10946  ;;  %10962 = vrcp.f32 %v14263_v21 }
 0xa28   : > { %v10269_v43 = vpop.f32.mrf.mxu0  ;;  %v10949_v58 = vpop.eup %10948  ;;  %v5706_v37 = vmul.f32 %v10947_v13, %v14178_v32  ;;  %10964 = vrcp.f32 %v6580_v56 }
 0xa29   : > { %7216 = vrot.lane.b32.xlu1 %v7159_v53, %s11277_s18  ;;  %v10951_v53 = vpop.eup %10950  ;;  %v15984_v43 = vld [vmem:[#allocation101_spill] sm:$0xff]  ;;  %10966 = vrcp.f32 %v14267_v15  ;;  %v15987_v15 = vld [vmem:[#allocation47_spill] sm:$0xff] }
 0xa2a   : > { %v6929_v62 = vpop.f32.mrf.mxu0  ;;  %v4236_v16 = vmul.f32 %v10949_v58, %v15984_v43  ;;  %v10953_v57 = vpop.eup %10952 }
 0xa2b   : > { %v7163_v50 = vmul.f32 %v10935_v14, %v6929_v62  ;;  %v15986_v14 = vld [vmem:[#allocation99_spill] sm:$0xff] }
 0xa2d   : > { %v10276_v41 = vpop.f32.mrf.mxu1  ;;  %4306 = vrot.lane.b32.xlu1 %v4239_v39, %s11279_s16  ;;  %v5708_v39 = vmul.f32 %v10951_v53, %v14176_v7  ;;  %v10955_v32 = vpop.eup %10954 }
 0xa2e   : > { %v7167_v52 = vmul.f32 %v10939_v23, %v10276_v41  ;;  %v7164_v41 = vmul.f32 %v10953_v57, %v14617_v18  ;;  %v10957_v21 = vpop.eup %10956 }
 0xa2f   : > { %v6988_v30 = vpop.f32.mrf.mxu1  ;;  %v10959_v7 = vpop.eup %10958  ;;  %v7160_v42 = vmul.f32 %v10957_v21, %v14623_v24 }
 0xa30   : > { %v7165_v63 = vmul.f32 %v10937_v19, %v6988_v30 }
 0xa31   : > { %v10277_v55 = vpop.f32.mrf.mxu1  ;;  %v14628_v25 = vpop.f32.mrf.mxu0  ;;  %5767 = vrot.lane.b32.xlu1 %v5702_v9, %s11278_s30 }
 0xa32   : > { %v6598_v9 = vpop.xlane.xlu0 %6597 }
 0xa33   : > { %v14632_v27 = vpop.f32.mrf.mxu0  ;;  %v14636_v17 = vpop.f32.mrf.mxu1 }
 0xa35   : > { %v10285_v34 = vpop.f32.mrf.mxu0  ;;  %5771 = vrot.lane.b32.xlu1 %v5704_v0, %s11278_s30  ;;  %v10961_v0 = vpop.eup %10960 }
 0xa36   : > { %v15985_v34 = vld [vmem:[#allocation24_spill] sm:$0xff]  ;;  %v4238_v45 = vmul.f32 %v10961_v0, %v15986_v14  ;;  %v6610_v19 = vpop.xlane.xlu0 %6609 }
 0xa37   : > { %v7053_v54 = vpop.f32.mrf.mxu0  ;;  %10968 = vrcp.f32 %v15985_v34 }
 0xa38   : > { %v14639_v47 = vpop.f32.mrf.mxu1  ;;  %v7169_v48 = vmul.f32 %v10945_v10, %v7053_v54  ;;  %10970 = vrcp.f32 %v15987_v15 }
 0xa39   : > { %7224 = vrot.lane.b32.xlu1 %v7163_v50, %s11277_s18  ;;  %v7173_v18 = vmul.f32 %v10959_v7, %v14639_v47  ;;  %v10963_v50 = vpop.eup %10962  ;;  %10972 = vrcp.f32 %v6592_v29 }
 0xa3a   : > { %v7112_v5 = vpop.f32.mrf.mxu1  ;;  %v5701_v24 = vmul.f32 %v10963_v50, %v14174_v6  ;;  %v10965_v47 = vpop.eup %10964  ;;  %10974 = vrcp.f32 %v6598_v9  ;;  %v15988_v6 = vld [vmem:[#allocation97_spill] sm:$0xff] }
 0xa3b   : > { %v7171_v30 = vmul.f32 %v10955_v32, %v7112_v5  ;;  %v7162_v5 = vmul.f32 %v10965_v47, %v14620_v12  ;;  %v10967_v33 = vpop.eup %10966  ;;  %10976 = vrcp.f32 %v14259_v4 }
 0xa3c   : > { %v10293_v20 = vpop.f32.mrf.mxu1  ;;  %10978 = vrcp.f32 %v14271_v1 }
 0xa3d   : > { %7228 = vrot.lane.b32.xlu1 %v7165_v63, %s11277_s18  ;;  %v5703_v20 = vmul.f32 %v10967_v33, %v14170_v38  ;;  %v15989_v38 = vld [vmem:[#allocation23_spill] sm:$0xff]  ;;  %10980 = vrcp.f32 %v14653_v28 }
 0xa3e   : > { %2302 = vadd.xlane.f32.xlu0 %v2301_v51  ;;  %10982 = vrcp.f32 %v6610_v19 }
 0xa41   : > { %7232 = vrot.lane.b32.xlu1 %v7167_v52, %s11277_s18 }
 0xa44   : > { %v10969_v2 = vpop.eup %10968 }
 0xa45   : > { %4310 = vrot.lane.b32.xlu1 %v4241_v35, %s11279_s16  ;;  %v4240_v51 = vmul.f32 %v10969_v2, %v15988_v6  ;;  %v10971_v52 = vpop.eup %10970  ;;  %v15992_v2 = vld [vmem:[#allocation69_spill] sm:$0xff] }
 0xa46   : > { %v4242_v44 = vmul.f32 %v10971_v52, %v15989_v38  ;;  %v10973_v4 = vpop.eup %10972 }
 0xa47   : > { %v7166_v35 = vmul.f32 %v10973_v4, %v14636_v17  ;;  %v10975_v36 = vpop.eup %10974 }
 0xa48   : > { %v7168_v61 = vmul.f32 %v10975_v36, %v14632_v27  ;;  %v10977_v56 = vpop.eup %10976 }
 0xa49   : > { %4314 = vrot.lane.b32.xlu1 %v4243_v26, %s11279_s16  ;;  %v5705_v1 = vmul.f32 %v10977_v56, %v14166_v46  ;;  %v10979_v3 = vpop.eup %10978  ;;  %v15990_v26 = vld [vmem:[#allocation51_spill] sm:$0xff] }
 0xa4a   : > { %v5707_v54 = vmul.f32 %v10979_v3, %v15990_v26  ;;  %v10981_v17 = vpop.eup %10980 }
 0xa4b   : > { %v7170_v10 = vmul.f32 %v10981_v17, %v14628_v25  ;;  %v10983_v27 = vpop.eup %10982 }
 0xa4d   : > { %7236 = vrot.lane.b32.xlu1 %v7169_v48, %s11277_s18  ;;  %v7115_v48 = vpop.f32.mrf.mxu1 }
 0xa4e   : > { %v7172_v28 = vmul.f32 %v10983_v27, %v7115_v48 }
 0xa51   : > { %5775 = vrot.lane.b32.xlu1 %v5706_v37, %s11278_s30 }
 0xa52   : > { %v7201_v49 = vpop.permute.xlu1 %7200 }
 0xa53   : > { %7272 = vst.msk [vmem:[#allocation3 + $0x8] sm:$0xff] %vm7270_vm6, %v7201_v49 }
 0xa54   : > { %4300 = vrot.lane.b32.xlu0 %v4236_v16, %s11279_s16 }
 0xa55   : > { %5779 = vrot.lane.b32.xlu1 %v5708_v39, %s11278_s30 }
 0xa56   : > { %v7209_v62 = vpop.permute.xlu1 %7208 }
 0xa57   : > { %7276 = vst.msk [vmem:[#allocation3 + $0x28] sm:$0xff] %vm7270_vm6, %v7209_v62 }
 0xa58   : > { %7226 = vrot.lane.b32.xlu0 %v7164_v41, %s11277_s18  ;;  %v15991_v41 = vld [vmem:[#allocation66_spill] sm:$0xff] }
 0xa59   : > { %7240 = vrot.lane.b32.xlu1 %v7171_v30, %s11277_s18 }
 0xa5a   : > { %v7205_v55 = vpop.permute.xlu1 %7204  ;;  %v7296_v11 = vld [vmem:[#allocation3 + $0x8] sm:$0xff] }
 0xa5b   : > { %7274 = vst.msk [vmem:[#allocation3 + $0x18] sm:$0xff] %vm7270_vm6, %v7205_v55 }
 0xa5c   : > { %7218 = vrot.lane.b32.xlu0 %v7160_v42, %s11277_s18 }
 0xa5d   : > { %7244 = vrot.lane.b32.xlu1 %v7173_v18, %s11277_s18 }
 0xa5e   : > { %v7300_v53 = vld [vmem:[#allocation3 + $0x28] sm:$0xff] }
 0xa60   : > { %4304 = vrot.lane.b32.xlu0 %v4238_v45, %s11279_s16 }
 0xa62   : > { %v7298_v31 = vld [vmem:[#allocation3 + $0x18] sm:$0xff] }
 0xa63   : > { %v7203_v60 = vpop.permute.xlu0 %7202 }
 0xa64   : > { %7273 = vst.msk [vmem:[#allocation3 + $0x10] sm:$0xff] %vm7270_vm6, %v7203_v60  ;;  %5765 = vrot.lane.b32.xlu0 %v5701_v24, %s11278_s30 }
 0xa67   : > { %v7199_v63 = vpop.permute.xlu0 %7198 }
 0xa68   : > { %7271 = vst.msk [vmem:[#allocation3] sm:$0xff] %vm7270_vm6, %v7199_v63  ;;  %7222 = vrot.lane.b32.xlu0 %v7162_v5, %s11277_s18 }
 0xa6b   : > { %v7297_v23 = vld [vmem:[#allocation3 + $0x10] sm:$0xff] }
 0xa6c   : > { %5769 = vrot.lane.b32.xlu0 %v5703_v20, %s11278_s30  ;;  %v7320_v22 = vpack.c.bf16 %v7298_v31, %v7297_v23 }
 0xa6f   : > { %v7295_v12 = vld [vmem:[#allocation3] sm:$0xff] }
 0xa70   : > { %4308 = vrot.lane.b32.xlu0 %v4240_v51, %s11279_s16  ;;  %v7319_v40 = vpack.c.bf16 %v7296_v11, %v7295_v12 }
 0xa72   : > { %10310 = vmatprep.mubr.bf16.mxu0 %v7319_v40 }
 0xa73   : > { %10311 = vmatmul.mubr.bf16.vlgmr.msra.gmra.mxu0 %v7320_v22 }
 0xa74   : > { %4312 = vrot.lane.b32.xlu0 %v4242_v44, %s11279_s16 }
 0xa78   : > { %7230 = vrot.lane.b32.xlu0 %v7166_v35, %s11277_s18 }
 0xa7c   : > { %7234 = vrot.lane.b32.xlu0 %v7168_v61, %s11277_s18 }
 0xa80   : > { %5773 = vrot.lane.b32.xlu0 %v5705_v1, %s11278_s30 }
 0xa84   : > { %5777 = vrot.lane.b32.xlu0 %v5707_v54, %s11278_s30 }
 0xa88   : > { %7238 = vrot.lane.b32.xlu0 %v7170_v10, %s11277_s18 }
 0xa89   : > { %v7215_v13 = vpop.permute.xlu0 %7214 }
 0xa8a   : > { %7279 = vst.msk [vmem:[#allocation3 + $0x40] sm:$0xff] %vm7270_vm6, %v7215_v13 }
 0xa8c   : > { %7242 = vrot.lane.b32.xlu0 %v7172_v28, %s11277_s18 }
 0xa8d   : > { %v7207_v46 = vpop.permute.xlu0 %7206 }
 0xa8e   : > { %7275 = vst.msk [vmem:[#allocation3 + $0x20] sm:$0xff] %vm7270_vm6, %v7207_v46 }
 0xa91   : > { %v7211_v59 = vpop.permute.xlu0 %7210  ;;  %v7303_v7 = vld [vmem:[#allocation3 + $0x40] sm:$0xff] }
 0xa92   : > { %7277 = vst.msk [vmem:[#allocation3 + $0x30] sm:$0xff] %vm7270_vm6, %v7211_v59 }
 0xa95   : > { %v2306_v58 = vpop.xlane.xlu1 %2305  ;;  %v7299_v37 = vld [vmem:[#allocation3 + $0x20] sm:$0xff] }
 0xa96   : > { %10984 = vrcp.f32 %v2306_v58  ;;  %v7321_v25 = vpack.c.bf16 %v7300_v53, %v7299_v37 }
 0xa98   : > { %10314 = vmatprep.mubr.bf16.mxu0 %v7321_v25 }
 0xa99   : > { %v7213_v49 = vpop.permute.xlu1 %7212  ;;  %v7301_v29 = vld [vmem:[#allocation3 + $0x30] sm:$0xff] }
 0xa9a   : > { %7278 = vst.msk [vmem:[#allocation3 + $0x38] sm:$0xff] %vm7270_vm6, %v7213_v49 }
 0xa9d   : > { %v4303_v43 = vpop.permute.xlu1 %4302 }
 0xa9e   : > { %4358 = vst.msk [vmem:[#allocation3 + $0x88] sm:$0xff] %vm4340_vm4, %v4303_v43 }
 0xaa1   : > { %v7221_v16 = vpop.permute.xlu1 %7220  ;;  %v7302_v39 = vld [vmem:[#allocation3 + $0x38] sm:$0xff] }
 0xaa2   : > { %7282 = vst.msk [vmem:[#allocation3 + $0x58] sm:$0xff] %vm7270_vm6, %v7221_v16  ;;  %v7322_v57 = vpack.c.bf16 %v7302_v39, %v7301_v29  ;;  %v14749_v39 = vld [vmem:[%s15993_s17] ss:$0 sm:$0xff] }
 0xaa3   : > { %v10985_v32 = vpop.eup %10984 }
 0xaa4   : > { %10315 = vmatmul.mubr.bf16.gmra.mxu0 %v7322_v57  ;;  %v2827_v62 = vmul.f32 %v10985_v32, %v15991_v41 }
 0xaa5   : > { %v7217_v30 = vpop.permute.xlu1 %7216 }
 0xaa6   : > { %7280 = vst.msk [vmem:[#allocation3 + $0x48] sm:$0xff] %vm7270_vm6, %v7217_v30  ;;  %v11228_v30 = vld [vmem:[#allocation2 + $0xb0] sm:$0xff] }
 0xaa7   : > { %2851 = vst.msk [vmem:[#allocation3 + $0xb8] sm:$0xff] %vm1585_vm0, %v2827_v62 }
 0xaa9   : > { %v4307_v21 = vpop.permute.xlu1 %4306  ;;  %v7306_v11 = vld [vmem:[#allocation3 + $0x58] sm:$0xff] }
 0xaaa   : > { %4360 = vst.msk [vmem:[#allocation3 + $0x98] sm:$0xff] %vm4340_vm4, %v4307_v21 }
 0xaad   : > { %v5768_v9 = vpop.permute.xlu1 %5767  ;;  %v7304_v42 = vld [vmem:[#allocation3 + $0x48] sm:$0xff] }
 0xaae   : > { %5823 = vst.msk [vmem:[#allocation3 + $0x88] sm:$0xff] %vm5805_vm5, %v5768_v9  ;;  %v7323_v55 = vpack.c.bf16 %v7304_v42, %v7303_v7  ;;  %v11229_v42 = vld [vmem:[#allocation2 + $0x10] sm:$0xff] }
 0xab0   : > { %10318 = vmatprep.mubr.bf16.mxu0 %v7323_v55 }
 0xab1   : > { %v5772_v0 = vpop.permute.xlu1 %5771 }
 0xab2   : > { %5825 = vst.msk [vmem:[#allocation3 + $0x98] sm:$0xff] %vm5805_vm5, %v5772_v0 }
 0xab5   : > { %v7225_v18 = vpop.permute.xlu1 %7224 }
 0xab6   : > { %7284 = vst.msk [vmem:[#allocation3 + $0x68] sm:$0xff] %vm7270_vm6, %v7225_v18  ;;  %v11230_v18 = vld [vmem:[#allocation2] sm:$0xff] }
 0xab9   : > { %v7229_v34 = vpop.permute.xlu1 %7228 }
 0xaba   : > { %7286 = vst.msk [vmem:[#allocation3 + $0x78] sm:$0xff] %vm7270_vm6, %v7229_v34 }
 0xabd   : > { %v7233_v14 = vpop.permute.xlu1 %7232  ;;  %v7308_v35 = vld [vmem:[#allocation3 + $0x68] sm:$0xff] }
 0xabe   : > { %7288 = vst.msk [vmem:[#allocation3 + $0x88] sm:$0xff] %vm7270_vm6, %v7233_v14  ;;  %v11231_v14 = vld [vmem:[#allocation2 + $0x48] sm:$0xff] }
 0xac1   : > { %v4311_v45 = vpop.permute.xlu1 %4310  ;;  %v7310_v61 = vld [vmem:[#allocation3 + $0x78] sm:$0xff] }
 0xac2   : > { %4362 = vst.msk [vmem:[#allocation3 + $0xa8] sm:$0xff] %vm4340_vm4, %v4311_v45 }
 0xac5   : > { %v4315_v50 = vpop.permute.xlu1 %4314  ;;  %v7312_v10 = vld [vmem:[#allocation3 + $0x88] sm:$0xff] }
 0xac6   : > { %4364 = vst.msk [vmem:[#allocation3 + $0xb8] sm:$0xff] %vm4340_vm4, %v4315_v50 }
 0xac7   : > { %v2303_v19 = vpop.xlane.xlu0 %2302 }
 0xac8   : > { %10986 = vrcp.f32 %v2303_v19 }
 0xac9   : > { %v7237_v15 = vpop.permute.xlu1 %7236 }
 0xaca   : > { %7290 = vst.msk [vmem:[#allocation3 + $0x98] sm:$0xff] %vm7270_vm6, %v7237_v15 }
 0xacb   : > { %v4301_v24 = vpop.permute.xlu0 %4300 }
 0xacc   : > { %4357 = vst.msk [vmem:[#allocation3 + $0x80] sm:$0xff] %vm4340_vm4, %v4301_v24 }
 0xacd   : > { %v5776_v60 = vpop.permute.xlu1 %5775 }
 0xace   : > { %5827 = vst.msk [vmem:[#allocation3 + $0xa8] sm:$0xff] %vm5805_vm5, %v5776_v60 }
 0xacf   : > { %v7227_v47 = vpop.permute.xlu0 %7226 }
 0xad0   : > { %7285 = vst.msk [vmem:[#allocation3 + $0x70] sm:$0xff] %vm7270_vm6, %v7227_v47  ;;  %v11232_v47 = vld [vmem:[#allocation2 + $0x60] sm:$0xff] }
 0xad1   : > { %v5780_v5 = vpop.permute.xlu1 %5779  ;;  %v7314_v28 = vld [vmem:[#allocation3 + $0x98] sm:$0xff] }
 0xad2   : > { %5829 = vst.msk [vmem:[#allocation3 + $0xb8] sm:$0xff] %vm5805_vm5, %v5780_v5 }
 0xad3   : > { %v7219_v33 = vpop.permute.xlu0 %7218 }
 0xad4   : > { %7281 = vst.msk [vmem:[#allocation3 + $0x50] sm:$0xff] %vm7270_vm6, %v7219_v33 }
 0xad5   : > { %v10987_v63 = vpop.eup %10986  ;;  %v7241_v20 = vpop.permute.xlu1 %7240 }
 0xad6   : > { %7292 = vst.msk [vmem:[#allocation3 + $0xa8] sm:$0xff] %vm7270_vm6, %v7241_v20  ;;  %v2826_v6 = vmul.f32 %v10987_v63, %v15992_v2  ;;  %v11233_v20 = vld [vmem:[#allocation2 + $0x40] sm:$0xff] }
 0xad7   : > { %v4305_v51 = vpop.permute.xlu0 %4304  ;;  %v7309_v38 = vld [vmem:[#allocation3 + $0x70] sm:$0xff] }
 0xad8   : > { %4359 = vst.msk [vmem:[#allocation3 + $0x90] sm:$0xff] %vm4340_vm4, %v4305_v51  ;;  %v7326_v56 = vpack.c.bf16 %v7310_v61, %v7309_v38  ;;  %v11234_v51 = vld [vmem:[#allocation2 + $0x28] sm:$0xff]  ;;  %v11237_v61 = vld [vmem:[#allocation2 + $0x18] sm:$0xff] }
 0xad9   : > { %2850 = vst.msk [vmem:[#allocation3 + $0xb0] sm:$0xff] %vm1585_vm0, %v2826_v6  ;;  %v7245_v23 = vpop.permute.xlu1 %7244 }
 0xada   : > { %7294 = vst.msk [vmem:[#allocation3 + $0xb8] sm:$0xff] %vm7270_vm6, %v7245_v23 }
 0xadb   : > { %v5766_v52 = vpop.permute.xlu0 %5765  ;;  %v7305_v12 = vld [vmem:[#allocation3 + $0x50] sm:$0xff] }
 0xadc   : > { %5822 = vst.msk [vmem:[#allocation3 + $0x80] sm:$0xff] %vm5805_vm5, %v5766_v52  ;;  %v7324_v40 = vpack.c.bf16 %v7306_v11, %v7305_v12  ;;  %v11235_v52 = vld [vmem:[#allocation2 + $0x78] sm:$0xff] }
 0xadd   : > { %v7316_v53 = vld [vmem:[#allocation3 + $0xa8] sm:$0xff] }
 0xade   : > { %10319 = vmatmul.mubr.bf16.gmra.mxu0 %v7324_v40 }
 0xadf   : > { %v7223_v31 = vpop.permute.xlu0 %7222 }
 0xae0   : > { %7283 = vst.msk [vmem:[#allocation3 + $0x60] sm:$0xff] %vm7270_vm6, %v7223_v31 }
 0xae1   : > { %v7318_v43 = vld [vmem:[#allocation3 + $0xb8] sm:$0xff] }
 0xae3   : > { %v5770_v22 = vpop.permute.xlu0 %5769 }
 0xae4   : > { %5824 = vst.msk [vmem:[#allocation3 + $0x90] sm:$0xff] %vm5805_vm5, %v5770_v22 }
 0xae7   : > { %v4309_v44 = vpop.permute.xlu0 %4308  ;;  %v7307_v4 = vld [vmem:[#allocation3 + $0x60] sm:$0xff] }
 0xae8   : > { %4361 = vst.msk [vmem:[#allocation3 + $0xa0] sm:$0xff] %vm4340_vm4, %v4309_v44  ;;  %v7325_v36 = vpack.c.bf16 %v7308_v35, %v7307_v4  ;;  %v11236_v44 = vld [vmem:[#allocation2 + $0x88] sm:$0xff] }
 0xaea   : > { %10322 = vmatprep.mubr.bf16.mxu0 %v7325_v36 }
 0xaeb   : > { %10323 = vmatmul.mubr.bf16.gmra.mxu0 %v7326_v56  ;;  %v4313_v1 = vpop.permute.xlu0 %4312 }
 0xaec   : > { %4363 = vst.msk [vmem:[#allocation3 + $0xb0] sm:$0xff] %vm4340_vm4, %v4313_v1 }
 0xaef   : > { %v7231_v3 = vpop.permute.xlu0 %7230 }
 0xaf0   : > { %7287 = vst.msk [vmem:[#allocation3 + $0x80] sm:$0xff] %vm7270_vm6, %v7231_v3  ;;  %v11238_v3 = vld [vmem:[#allocation2 + $0x90] sm:$0xff] }
 0xaf3   : > { %v7235_v26 = vpop.permute.xlu0 %7234 }
 0xaf4   : > { %7289 = vst.msk [vmem:[#allocation3 + $0x90] sm:$0xff] %vm7270_vm6, %v7235_v26 }
 0xaf7   : > { %v5774_v54 = vpop.permute.xlu0 %5773  ;;  %v7311_v17 = vld [vmem:[#allocation3 + $0x80] sm:$0xff] }
 0xaf8   : > { %5826 = vst.msk [vmem:[#allocation3 + $0xa0] sm:$0xff] %vm5805_vm5, %v5774_v54  ;;  %v7327_v48 = vpack.c.bf16 %v7312_v10, %v7311_v17  ;;  %v11239_v54 = vld [vmem:[#allocation2 + $0x98] sm:$0xff] }
 0xafa   : > { %10326 = vmatprep.mubr.bf16.mxu0 %v7327_v48 }
 0xafb   : > { %v5778_v27 = vpop.permute.xlu0 %5777  ;;  %v7313_v13 = vld [vmem:[#allocation3 + $0x90] sm:$0xff] }
 0xafc   : > { %5828 = vst.msk [vmem:[#allocation3 + $0xb0] sm:$0xff] %vm5805_vm5, %v5778_v27  ;;  %v7328_v46 = vpack.c.bf16 %v7314_v28, %v7313_v13 }
 0xafe   : > { %10327 = vmatmul.mubr.bf16.gmra.mxu0 %v7328_v46  ;;  %v11240_v46 = vld [vmem:[#allocation2 + $0x38] sm:$0xff] }
 0xaff   : > { %v7239_v59 = vpop.permute.xlu0 %7238 }
 0xb00   : > { %7291 = vst.msk [vmem:[#allocation3 + $0xa0] sm:$0xff] %vm7270_vm6, %v7239_v59 }
 0xb03   : > { %v7243_v58 = vpop.permute.xlu0 %7242 }
 0xb04   : > { %7293 = vst.msk [vmem:[#allocation3 + $0xb0] sm:$0xff] %vm7270_vm6, %v7243_v58 }
 0xb07   : > { %v7315_v37 = vld [vmem:[#allocation3 + $0xa0] sm:$0xff] }
 0xb08   : > { %v7329_v25 = vpack.c.bf16 %v7316_v53, %v7315_v37  ;;  %v11241_v53 = vld [vmem:[#allocation2 + $0x70] sm:$0xff] }
 0xb0a   : > { %10330 = vmatprep.mubr.bf16.mxu0 %v7329_v25 }
 0xb0b   : > { %v7317_v49 = vld [vmem:[#allocation3 + $0xb0] sm:$0xff] }
 0xb0c   : > { %v7330_v16 = vpack.c.bf16 %v7318_v43, %v7317_v49  ;;  %v11242_v43 = vld [vmem:[#allocation2 + $0x50] sm:$0xff] }
 0xb0e   : > { %10331 = vmatmul.mubr.bf16.gmra.mxu0 %v7330_v16 }
 0xb33   : > { %v10312_v29 = vpop.f32.mrf.mxu0 }
 0xb34   : > { %v7445_v62 = vadd.f32 %v10312_v29, %v14749_v39  ;;  %v11243_v29 = vld [vmem:[#allocation2 + $0xa0] sm:$0xff] }
 0xb35   : > { %v7436_v57 = vpop.f32.mrf.mxu0 }
 0xb36   : > { %v7437_v32 = vadd.f32 %v14749_v39, %v7436_v57  ;;  %v14757_v55 = vadd.f32 %v11229_v42, %v7445_v62 }
 0xb37   : > { %v10313_v41 = vpop.f32.mrf.mxu0 }
 0xb38   : > { %v14753_v21 = vadd.f32 %v11228_v30, %v7437_v32  ;;  %v7448_v0 = vadd.f32 %v10313_v41, %v14749_v39 }
 0xb39   : > { %v7439_v9 = vpop.f32.mrf.mxu0 }
 0xb3a   : > { %v7440_v7 = vadd.f32 %v14749_v39, %v7439_v9  ;;  %7557 = vadd.xlane.f32.xlu0 %v14753_v21  ;;  %v14764_v45 = vadd.f32 %v11231_v14, %v7448_v0 }
 0xb3c   : > { %v14760_v34 = vadd.f32 %v11230_v18, %v7440_v7  ;;  %v11244_v7 = vld [vmem:[#allocation2 + $0xa8] sm:$0xff] }
 0xb3e   : > { %7559 = vadd.xlane.f32.xlu1 %v14760_v34  ;;  %7561 = vadd.xlane.f32.xlu0 %v14757_v55 }
 0xb42   : > { %7563 = vadd.xlane.f32.xlu0 %v14764_v45 }
 0xb64   : > { %v10316_v50 = vpop.f32.mrf.mxu0 }
 0xb65   : > { %v7461_v60 = vadd.f32 %v10316_v50, %v14749_v39 }
 0xb66   : > { %v7452_v19 = vpop.f32.mrf.mxu0 }
 0xb67   : > { %v7453_v15 = vadd.f32 %v14749_v39, %v7452_v19  ;;  %v14773_v2 = vadd.f32 %v11233_v20, %v7461_v60  ;;  %v11245_v19 = vld [vmem:[#allocation2 + $0x30] sm:$0xff] }
 0xb68   : > { %v10317_v24 = vpop.f32.mrf.mxu0 }
 0xb69   : > { %v14769_v5 = vadd.f32 %v11232_v47, %v7453_v15  ;;  %v7464_v6 = vadd.f32 %v10317_v24, %v14749_v39  ;;  %v11246_v47 = vld [vmem:[#allocation2 + $0x68] sm:$0xff] }
 0xb6a   : > { %v7455_v33 = vpop.f32.mrf.mxu0 }
 0xb6b   : > { %v7456_v63 = vadd.f32 %v14749_v39, %v7455_v33  ;;  %7565 = vadd.xlane.f32.xlu0 %v14769_v5  ;;  %v14780_v12 = vadd.f32 %v11235_v52, %v7464_v6 }
 0xb6d   : > { %v14776_v23 = vadd.f32 %v11234_v51, %v7456_v63  ;;  %v11247_v51 = vld [vmem:[#allocation2 + $0x58] sm:$0xff] }
 0xb6f   : > { %7567 = vadd.xlane.f32.xlu1 %v14776_v23  ;;  %7569 = vadd.xlane.f32.xlu0 %v14773_v2 }
 0xb73   : > { %7571 = vadd.xlane.f32.xlu1 %v14780_v12 }
 0xb9e   : > { %v10320_v11 = vpop.f32.mrf.mxu0 }
 0xb9f   : > { %v7477_v38 = vadd.f32 %v10320_v11, %v14749_v39 }
 0xba0   : > { %v7468_v40 = vpop.f32.mrf.mxu0 }
 0xba1   : > { %v7469_v31 = vadd.f32 %v14749_v39, %v7468_v40  ;;  %v14789_v56 = vadd.f32 %v11237_v61, %v7477_v38 }
 0xba2   : > { %v10321_v22 = vpop.f32.mrf.mxu0 }
 0xba3   : > { %v14785_v4 = vadd.f32 %v11236_v44, %v7469_v31  ;;  %v7480_v1 = vadd.f32 %v10321_v22, %v14749_v39 }
 0xba4   : > { %v7471_v35 = vpop.f32.mrf.mxu0 }
 0xba5   : > { %v7472_v36 = vadd.f32 %v14749_v39, %v7471_v35  ;;  %7573 = vadd.xlane.f32.xlu0 %v14785_v4  ;;  %v14796_v17 = vadd.f32 %v11239_v54, %v7480_v1  ;;  %v11248_v54 = vld [vmem:[#allocation2 + $0x80] sm:$0xff] }
 0xba7   : > { %v14792_v26 = vadd.f32 %v11238_v3, %v7472_v36 }
 0xba9   : > { %7575 = vadd.xlane.f32.xlu1 %v14792_v26  ;;  %7577 = vadd.xlane.f32.xlu0 %v14789_v56 }
 0xbab   : > { %v10324_v10 = vpop.f32.mrf.mxu0 }
 0xbac   : > { %v7493_v28 = vadd.f32 %v10324_v10, %v14749_v39 }
 0xbad   : > { %7579 = vadd.xlane.f32.xlu1 %v14796_v17  ;;  %v7484_v48 = vpop.f32.mrf.mxu0 }
 0xbae   : > { %v7485_v27 = vadd.f32 %v14749_v39, %v7484_v48  ;;  %v14805_v25 = vadd.f32 %v11241_v53, %v7493_v28  ;;  %v10518_v28 = vld [vmem:[%s11416_s3 + $0x74] ss:$8 sps:$4 sm:$0xff]  }
 0xbaf   : > { %v10325_v13 = vpop.f32.mrf.mxu0  ;;  %8001 = vmatprep.subr.bf16.mxu1 %v10518_v28 }
 0xbb0   : > { %v14801_v59 = vadd.f32 %v11240_v46, %v7485_v27  ;;  %v7496_v49 = vadd.f32 %v10325_v13, %v14749_v39  ;;  %v10516_v13 = vld [vmem:[%s11416_s3 + $0x70] ss:$8 sps:$4 sm:$0xff]  }
 0xbb1   : > { %v7487_v58 = vpop.f32.mrf.mxu0  ;;  %8002 = vmatpush1.bf16.msra.mxu1 %v10516_v13 }
 0xbb2   : > { %v7488_v37 = vadd.f32 %v14749_v39, %v7487_v58  ;;  %7581 = vadd.xlane.f32.xlu0 %v14801_v59  ;;  %v14812_v57 = vadd.f32 %v11243_v29, %v7496_v49  ;;  %v10519_v29 = vld [vmem:[%s11416_s3 + $0x60] ss:$8 sps:$4 sm:$0xff]  }
 0xbb4   : > { %v14808_v16 = vadd.f32 %v11242_v43, %v7488_v37  ;;  %v11249_v37 = vld [vmem:[#allocation2 + $0xb8] sm:$0xff]  ;;  %v10521_v43 = vld [vmem:[%s11416_s3 + $0x64] ss:$8 sps:$4 sm:$0xff]  }
 0xbb5   : > { %8003 = vmatprep.subr.bf16.mxu1 %v10521_v43 }
 0xbb6   : > { %7583 = vadd.xlane.f32.xlu1 %v14808_v16  ;;  %7585 = vadd.xlane.f32.xlu0 %v14805_v25 }
 0xbb7   : > { %8004 = vmatpush1.bf16.msra.mxu1 %v10519_v29 }
 0xbba   : > { %7587 = vadd.xlane.f32.xlu1 %v14812_v57 }
 0xbbe   : > { %v10328_v32 = vpop.f32.mrf.mxu0 }
 0xbbf   : > { %v7509_v9 = vadd.f32 %v10328_v32, %v14749_v39  ;;  %v11250_v32 = vld [vmem:[#allocation2 + $0x20] sm:$0xff] }
 0xbc0   : > { %v7500_v41 = vpop.f32.mrf.mxu0 }
 0xbc1   : > { %v7501_v62 = vadd.f32 %v14749_v39, %v7500_v41  ;;  %v14821_v15 = vadd.f32 %v11245_v19, %v7509_v9  ;;  %v10524_v9 = vld [vmem:[%s11416_s3 + $0x54] ss:$8 sps:$4 sm:$0xff]   ;;  %v10528_v19 = vld [vmem:[%s11416_s3 + $0x30] ss:$8 sps:$4 sm:$0xff]  }
 0xbc2   : > { %v10329_v30 = vpop.f32.mrf.mxu0  ;;  %8005 = vmatprep.subr.bf16.mxu1 %v10524_v9 }
 0xbc3   : > { %v14817_v42 = vadd.f32 %v11244_v7, %v7501_v62  ;;  %v7558_v0 = vpop.xlane.xlu0 %7557  ;;  %v7512_v24 = vadd.f32 %v10329_v30, %v14749_v39  ;;  %v10522_v7 = vld [vmem:[%s11416_s3 + $0x50] ss:$8 sps:$4 sm:$0xff]  }
 0xbc4   : > { %v7605_v18 = vmul.f32 0.0078125, %v7558_v0  ;;  %v7503_v14 = vpop.f32.mrf.mxu0  ;;  %v11251_v0 = vld [vmem:[#allocation2 + $0x8] sm:$0xff]  ;;  %8006 = vmatpush1.bf16.msra.mxu1 %v10522_v7 }
 0xbc5   : > { %v7504_v50 = vadd.f32 %v14749_v39, %v7503_v14  ;;  %7589 = vadd.xlane.f32.xlu0 %v14817_v42  ;;  %v14831_v52 = vadd.f32 %v11247_v51, %v7512_v24  ;;  %v10525_v14 = vld [vmem:[%s11416_s3 + $0x40] ss:$8 sps:$4 sm:$0xff]   ;;  %v10533_v24 = vld [vmem:[%s11416_s3 + $0x24] ss:$8 sps:$4 sm:$0xff]  }
 0xbc6   : > { %v14825_v60 = vsub.f32 %v14753_v21, %v7605_v18  ;;  %v10537_v51 = vld [vmem:[%s11416_s3] ss:$8 sps:$4 sm:$0xff]  }
 0xbc7   : > { %v14827_v33 = vadd.f32 %v11246_v47, %v7504_v50  ;;  %v7560_v63 = vpop.xlane.xlu1 %7559  ;;  %v7562_v6 = vpop.xlane.xlu0 %7561  ;;  %v10530_v50 = vld [vmem:[%s11416_s3 + $0x34] ss:$8 sps:$4 sm:$0xff]   ;;  %v10531_v47 = vld [vmem:[%s11416_s3 + $0x20] ss:$8 sps:$4 sm:$0xff]  }
 0xbc8   : > { %v7606_v20 = vmul.f32 0.0078125, %v7560_v63  ;;  %v7653_v40 = vmul.f32 %v14825_v60, %v14825_v60  ;;  %v7607_v22 = vmul.f32 0.0078125, %v7562_v6  ;;  %v10534_v63 = vld [vmem:[%s11416_s3 + $0x10] ss:$8 sps:$4 sm:$0xff]   ;;  %v10539_v6 = vld [vmem:[%s11416_s3 + $0x4] ss:$8 sps:$4 sm:$0xff]  }
 0xbc9   : > { %7591 = vadd.xlane.f32.xlu1 %v14827_v33  ;;  %7593 = vadd.xlane.f32.xlu0 %v14821_v15 }
 0xbca   : > { %v14834_v11 = vsub.f32 %v14760_v34, %v7606_v20  ;;  %v14843_v1 = vsub.f32 %v14757_v55, %v7607_v22  ;;  %v10536_v20 = vld [vmem:[%s11416_s3 + $0x14] ss:$8 sps:$4 sm:$0xff]  }
 0xbcb   : > { %v7564_v44 = vpop.xlane.xlu0 %7563 }
 0xbcc   : > { %v7654_v38 = vmul.f32 %v14834_v11, %v14834_v11  ;;  %v7608_v3 = vmul.f32 0.0078125, %v7564_v44  ;;  %v7655_v49 = vmul.f32 %v14843_v1, %v14843_v1 }
 0xbcd   : > { %7595 = vadd.xlane.f32.xlu1 %v14831_v52  ;;  %7677 = vadd.xlane.f32.xlu0 %v7653_v40 }
 0xbce   : > { %v10332_v31 = vpop.f32.mrf.mxu0  ;;  %v14852_v46 = vsub.f32 %v14764_v45, %v7608_v3 }
 0xbcf   : > { %v7525_v58 = vadd.f32 %v10332_v31, %v14749_v39 }
 0xbd0   : > { %v7516_v35 = vpop.f32.mrf.mxu0  ;;  %v7656_v30 = vmul.f32 %v14852_v46, %v14852_v46 }
 0xbd1   : > { %v7517_v36 = vadd.f32 %v14749_v39, %v7516_v35  ;;  %7679 = vadd.xlane.f32.xlu1 %v7654_v38  ;;  %v14862_v41 = vadd.f32 %v11250_v32, %v7525_v58 }
 0xbd2   : > { %v10333_v61 = vpop.f32.mrf.mxu0 }
 0xbd3   : > { %v14845_v10 = vadd.f32 %v11248_v54, %v7517_v36  ;;  %15995 = vst [vmem:[#allocation52_spill] sm:$0xff] %v14862_v41  ;;  %v7528_v62 = vadd.f32 %v10333_v61, %v14749_v39 }
 0xbd4   : > { %v7519_v48 = vpop.f32.mrf.mxu0 }
 0xbd5   : > { %v7520_v27 = vadd.f32 %v14749_v39, %v7519_v48  ;;  %7597 = vadd.xlane.f32.xlu0 %v14845_v10  ;;  %v14870_v18 = vadd.f32 %v11251_v0, %v7528_v62  ;;  %v10527_v39 = vld [vmem:[%s11416_s3 + $0x44] ss:$8 sps:$4 sm:$0xff]  }
 0xbd6   : > { %8007 = vmatprep.subr.bf16.mxu1 %v10527_v39 }
 0xbd7   : > { %v14855_v53 = vadd.f32 %v11249_v37, %v7520_v27  ;;  %15996 = vst [vmem:[#allocation15_spill] sm:$0xff] %v14870_v18  ;;  %8008 = vmatpush1.bf16.msra.mxu1 %v10525_v14 }
 0xbd8   : > { %8009 = vmatprep.subr.bf16.mxu1 %v10530_v50 }
 0xbd9   : > { %15994 = vst [vmem:[#allocation50_spill] sm:$0xff] %v14855_v53  ;;  %7599 = vadd.xlane.f32.xlu1 %v14855_v53  ;;  %7681 = vadd.xlane.f32.xlu0 %v7655_v49 }
 0xbdb   : > { %8010 = vmatpush1.bf16.msra.mxu1 %v10528_v19 }
 0xbdc   : > { %8011 = vmatprep.subr.bf16.mxu1 %v10533_v24 }
 0xbdd   : > { %7601 = vadd.xlane.f32.xlu0 %v14862_v41  ;;  %7683 = vadd.xlane.f32.xlu1 %v7656_v30 }
 0xbdf   : > { %8012 = vmatpush1.bf16.msra.mxu1 %v10531_v47 }
 0xbe0   : > { %8013 = vmatprep.subr.bf16.mxu1 %v10536_v20 }
 0xbe1   : > { %7603 = vadd.xlane.f32.xlu1 %v14870_v18 }
 0xbe3   : > { %8014 = vmatpush1.bf16.msra.mxu1 %v10534_v63 }
 0xbe4   : > { %8015 = vmatprep.subr.bf16.mxu1 %v10539_v6 }
 0xbe7   : > { %8016 = vmatpush1.bf16.msra.mxu1 %v10537_v51 }
 0xbf4   : > { %v7566_v40 = vpop.xlane.xlu0 %7565 }
 0xbf5   : > { %v7609_v31 = vmul.f32 0.0078125, %v7566_v40 }
 0xbf7   : > { %v14884_v22 = vsub.f32 %v14769_v5, %v7609_v31 }
 0xbf8   : > { %v7568_v38 = vpop.xlane.xlu1 %7567  ;;  %v7570_v44 = vpop.xlane.xlu0 %7569 }
 0xbf9   : > { %v7610_v35 = vmul.f32 0.0078125, %v7568_v38  ;;  %v7611_v36 = vmul.f32 0.0078125, %v7570_v44  ;;  %v7657_v61 = vmul.f32 %v14884_v22, %v14884_v22 }
 0xbfb   : > { %v14889_v3 = vsub.f32 %v14776_v23, %v7610_v35  ;;  %v14892_v54 = vsub.f32 %v14773_v2, %v7611_v36  ;;  %7685 = vadd.xlane.f32.xlu0 %v7657_v61 }
 0xbfc   : > { %v7572_v48 = vpop.xlane.xlu1 %7571 }
 0xbfd   : > { %v7612_v27 = vmul.f32 0.0078125, %v7572_v48  ;;  %v7658_v13 = vmul.f32 %v14889_v3, %v14889_v3  ;;  %v7659_v28 = vmul.f32 %v14892_v54, %v14892_v54 }
 0xbff   : > { %v14899_v58 = vsub.f32 %v14780_v12, %v7612_v27  ;;  %7687 = vadd.xlane.f32.xlu1 %v7658_v13  ;;  %7689 = vadd.xlane.f32.xlu0 %v7659_v28 }
 0xc01   : > { %v7660_v37 = vmul.f32 %v14899_v58, %v14899_v58 }
 0xc03   : > { %7691 = vadd.xlane.f32.xlu1 %v7660_v37 }
 0xc2e   : > { %v7574_v49 = vpop.xlane.xlu0 %7573 }
 0xc2f   : > { %v7613_v43 = vmul.f32 0.0078125, %v7574_v49 }
 0xc31   : > { %v14904_v29 = vsub.f32 %v14785_v4, %v7613_v43 }
 0xc32   : > { %v7576_v32 = vpop.xlane.xlu1 %7575  ;;  %v7578_v62 = vpop.xlane.xlu0 %7577 }
 0xc33   : > { %v7614_v30 = vmul.f32 0.0078125, %v7576_v32  ;;  %v7615_v9 = vmul.f32 0.0078125, %v7578_v62  ;;  %v7661_v7 = vmul.f32 %v14904_v29, %v14904_v29 }
 0xc35   : > { %v14909_v0 = vsub.f32 %v14792_v26, %v7614_v30  ;;  %v14912_v39 = vsub.f32 %v14789_v56, %v7615_v9  ;;  %7693 = vadd.xlane.f32.xlu0 %v7661_v7 }
 0xc36   : > { %v7580_v14 = vpop.xlane.xlu1 %7579 }
 0xc37   : > { %v7616_v50 = vmul.f32 0.0078125, %v7580_v14  ;;  %v7662_v19 = vmul.f32 %v14909_v0, %v14909_v0  ;;  %v7663_v24 = vmul.f32 %v14912_v39, %v14912_v39 }
 0xc39   : > { %v14919_v47 = vsub.f32 %v14796_v17, %v7616_v50  ;;  %7695 = vadd.xlane.f32.xlu1 %v7662_v19  ;;  %7697 = vadd.xlane.f32.xlu0 %v7663_v24 }
 0xc3b   : > { %v7582_v63 = vpop.xlane.xlu0 %7581  ;;  %v7664_v20 = vmul.f32 %v14919_v47, %v14919_v47 }
 0xc3c   : > { %v7617_v6 = vmul.f32 0.0078125, %v7582_v63 }
 0xc3d   : > { %7699 = vadd.xlane.f32.xlu1 %v7664_v20 }
 0xc3e   : > { %v14924_v51 = vsub.f32 %v14801_v59, %v7617_v6 }
 0xc3f   : > { %v7584_v40 = vpop.xlane.xlu1 %7583  ;;  %v7586_v31 = vpop.xlane.xlu0 %7585 }
 0xc40   : > { %v7618_v38 = vmul.f32 0.0078125, %v7584_v40  ;;  %v7619_v44 = vmul.f32 0.0078125, %v7586_v31  ;;  %v7665_v35 = vmul.f32 %v14924_v51, %v14924_v51 }
 0xc42   : > { %v14929_v36 = vsub.f32 %v14808_v16, %v7618_v38  ;;  %v14932_v61 = vsub.f32 %v14805_v25, %v7619_v44  ;;  %7701 = vadd.xlane.f32.xlu0 %v7665_v35 }
 0xc43   : > { %v7588_v48 = vpop.xlane.xlu1 %7587 }
 0xc44   : > { %v7620_v27 = vmul.f32 0.0078125, %v7588_v48  ;;  %v7666_v13 = vmul.f32 %v14929_v36, %v14929_v36  ;;  %v7667_v28 = vmul.f32 %v14932_v61, %v14932_v61 }
 0xc46   : > { %v14939_v37 = vsub.f32 %v14812_v57, %v7620_v27  ;;  %7703 = vadd.xlane.f32.xlu1 %v7666_v13  ;;  %7705 = vadd.xlane.f32.xlu0 %v7667_v28 }
 0xc48   : > { %v7668_v49 = vmul.f32 %v14939_v37, %v14939_v37 }
 0xc4a   : > { %7707 = vadd.xlane.f32.xlu1 %v7668_v49 }
 0xc4e   : > { %v7590_v43 = vpop.xlane.xlu0 %7589 }
 0xc4f   : > { %v7621_v32 = vmul.f32 0.0078125, %v7590_v43 }
 0xc51   : > { %v14944_v62 = vsub.f32 %v14817_v42, %v7621_v32 }
 0xc52   : > { %v7592_v30 = vpop.xlane.xlu1 %7591  ;;  %v7594_v9 = vpop.xlane.xlu0 %7593 }
 0xc53   : > { %v7622_v7 = vmul.f32 0.0078125, %v7592_v30  ;;  %v7623_v14 = vmul.f32 0.0078125, %v7594_v9  ;;  %v7669_v50 = vmul.f32 %v14944_v62, %v14944_v62 }
 0xc55   : > { %v14949_v19 = vsub.f32 %v14827_v33, %v7622_v7  ;;  %v14952_v24 = vsub.f32 %v14821_v15, %v7623_v14  ;;  %7709 = vadd.xlane.f32.xlu0 %v7669_v50 }
 0xc56   : > { %v7596_v63 = vpop.xlane.xlu1 %7595  ;;  %v7678_v20 = vpop.xlane.xlu0 %7677 }
 0xc57   : > { %v7624_v6 = vmul.f32 0.0078125, %v7596_v63  ;;  %v7725_v40 = vmul.f32 0.0078125, %v7678_v20  ;;  %v7670_v31 = vmul.f32 %v14949_v19, %v14949_v19  ;;  %v7671_v38 = vmul.f32 %v14952_v24, %v14952_v24 }
 0xc59   : > { %v14959_v44 = vsub.f32 %v14831_v52, %v7624_v6  ;;  %v7749_v35 = vadd.f32 1e-05, %v7725_v40  ;;  %7711 = vadd.xlane.f32.xlu1 %v7670_v31  ;;  %7713 = vadd.xlane.f32.xlu0 %v7671_v38 }
 0xc5a   : > { %v7680_v48 = vpop.xlane.xlu1 %7679 }
 0xc5b   : > { %10988 = vrsqrt.f32 %v7749_v35  ;;  %v7726_v27 = vmul.f32 0.0078125, %v7680_v48  ;;  %v7672_v13 = vmul.f32 %v14959_v44, %v14959_v44 }
 0xc5d   : > { %v7750_v28 = vadd.f32 1e-05, %v7726_v27  ;;  %7715 = vadd.xlane.f32.xlu1 %v7672_v13 }
 0xc5e   : > { %v7598_v49 = vpop.xlane.xlu0 %7597 }
 0xc5f   : > { %10990 = vrsqrt.f32 %v7750_v28  ;;  %v7625_v43 = vmul.f32 0.0078125, %v7598_v49 }
 0xc61   : > { %v14964_v32 = vsub.f32 %v14845_v10, %v7625_v43  ;;  %v14982_v43 = vld [vmem:[%s631_s22] ss:$0 sm:$0xff] }
 0xc62   : > { %v7600_v30 = vpop.xlane.xlu1 %7599  ;;  %v7682_v9 = vpop.xlane.xlu0 %7681 }
 0xc63   : > { %v7626_v7 = vmul.f32 0.0078125, %v7600_v30  ;;  %v7727_v14 = vmul.f32 0.0078125, %v7682_v9  ;;  %v7673_v50 = vmul.f32 %v14964_v32, %v14964_v32 }
 0xc65   : > { %v14969_v63 = vsub.f32 %v14855_v53, %v7626_v7  ;;  %v7751_v20 = vadd.f32 1e-05, %v7727_v14  ;;  %7717 = vadd.xlane.f32.xlu0 %v7673_v50 }
 0xc66   : > { %v7684_v6 = vpop.xlane.xlu1 %7683  ;;  %v7602_v40 = vpop.xlane.xlu0 %7601 }
 0xc67   : > { %10992 = vrsqrt.f32 %v7751_v20  ;;  %v7728_v31 = vmul.f32 0.0078125, %v7684_v6  ;;  %v7627_v38 = vmul.f32 0.0078125, %v7602_v40  ;;  %v7674_v35 = vmul.f32 %v14969_v63, %v14969_v63  ;;  %v14996_v20 = vld [vmem:[%s15997_s5] ss:$0 sm:$0xff] }
 0xc68   : > { %v10989_v48 = vpop.eup %10988 }
 0xc69   : > { %v7797_v27 = vmul.f32 %v10989_v48, %v14825_v60  ;;  %v7752_v13 = vadd.f32 1e-05, %v7728_v31  ;;  %v14975_v28 = vsub.f32 %v14862_v41, %v7627_v38  ;;  %7719 = vadd.xlane.f32.xlu1 %v7674_v35 }
 0xc6a   : > { %v7604_v49 = vpop.xlane.xlu1 %7603 }
 0xc6b   : > { %10994 = vrsqrt.f32 %v7752_v13  ;;  %v7628_v30 = vmul.f32 0.0078125, %v7604_v49  ;;  %v7675_v9 = vmul.f32 %v14975_v28, %v14975_v28  ;;  %v7827_v50 = vmul.f32 %v14982_v43, %v7797_v27 }
 0xc6c   : > { %v10991_v7 = vpop.eup %10990 }
 0xc6d   : > { %v7798_v60 = vmul.f32 %v10991_v7, %v14834_v11  ;;  %v14988_v14 = vsub.f32 %v14870_v18, %v7628_v30  ;;  %7721 = vadd.xlane.f32.xlu0 %v7675_v9  ;;  %v7857_v11 = vadd.f32 %v14996_v20, %v7827_v50 }
 0xc6f   : > { %v7676_v6 = vmul.f32 %v14988_v14, %v14988_v14  ;;  %v7828_v40 = vmul.f32 %v14982_v43, %v7798_v60 }
 0xc71   : > { %7723 = vadd.xlane.f32.xlu1 %v7676_v6  ;;  %v7858_v31 = vadd.f32 %v14996_v20, %v7828_v40 }
 0xc73   : > { %v7881_v38 = vpack.c.bf16 %v7858_v31, %v7857_v11 }
 0xc74   : > { %v10993_v35 = vpop.eup %10992 }
 0xc75   : > { %8034 = vmatmul.mubr.bf16.vlgmr.msra.gmra.mxu1 %v7881_v38  ;;  %v7799_v48 = vmul.f32 %v10993_v35, %v14843_v1 }
 0xc76   : > { %8043 = vmatprep.mubr.bf16.mxu1 %v15966_v8 }
 0xc77   : > { %v7829_v49 = vmul.f32 %v14982_v43, %v7799_v48 }
 0xc78   : > { %v10995_v27 = vpop.eup %10994 }
 0xc79   : > { %v7800_v13 = vmul.f32 %v10995_v27, %v14852_v46  ;;  %v7859_v9 = vadd.f32 %v14996_v20, %v7829_v49 }
 0xc7b   : > { %v7830_v30 = vmul.f32 %v14982_v43, %v7800_v13 }
 0xc7d   : > { %v7860_v7 = vadd.f32 %v14996_v20, %v7830_v30 }
 0xc7f   : > { %v7882_v60 = vpack.c.bf16 %v7860_v7, %v7859_v9 }
 0xc81   : > { %8044 = vmatmul.mubr.bf16.gmra.mxu1 %v7882_v60 }
 0xc82   : > { %8053 = vmatprep.mubr.bf16.mxu1 %v15966_v8 }
 0xc84   : > { %v7686_v50 = vpop.xlane.xlu0 %7685 }
 0xc85   : > { %v7729_v6 = vmul.f32 0.0078125, %v7686_v50 }
 0xc87   : > { %v7753_v1 = vadd.f32 1e-05, %v7729_v6 }
 0xc88   : > { %v7688_v40 = vpop.xlane.xlu1 %7687  ;;  %v7690_v11 = vpop.xlane.xlu0 %7689 }
 0xc89   : > { %10996 = vrsqrt.f32 %v7753_v1  ;;  %v7730_v31 = vmul.f32 0.0078125, %v7688_v40  ;;  %v7731_v46 = vmul.f32 0.0078125, %v7690_v11 }
 0xc8b   : > { %v7754_v38 = vadd.f32 1e-05, %v7730_v31  ;;  %v7755_v35 = vadd.f32 1e-05, %v7731_v46 }
 0xc8c   : > { %v7692_v48 = vpop.xlane.xlu1 %7691 }
 0xc8d   : > { %10998 = vrsqrt.f32 %v7754_v38  ;;  %v7732_v27 = vmul.f32 0.0078125, %v7692_v48 }
 0xc8e   : > { %11000 = vrsqrt.f32 %v7755_v35 }
 0xc8f   : > { %v7756_v13 = vadd.f32 1e-05, %v7732_v27 }
 0xc91   : > { %11002 = vrsqrt.f32 %v7756_v13 }
 0xc96   : > { %v10997_v49 = vpop.eup %10996 }
 0xc97   : > { %v7801_v30 = vmul.f32 %v10997_v49, %v14884_v22 }
 0xc99   : > { %v7831_v60 = vmul.f32 %v14982_v43, %v7801_v30 }
 0xc9a   : > { %v10999_v9 = vpop.eup %10998 }
 0xc9b   : > { %v7802_v7 = vmul.f32 %v10999_v9, %v14889_v3  ;;  %v11001_v50 = vpop.eup %11000  ;;  %v7861_v40 = vadd.f32 %v14996_v20, %v7831_v60 }
 0xc9c   : > { %v7803_v31 = vmul.f32 %v11001_v50, %v14892_v54 }
 0xc9d   : > { %v7832_v6 = vmul.f32 %v14982_v43, %v7802_v7 }
 0xc9e   : > { %v11003_v1 = vpop.eup %11002  ;;  %v7833_v3 = vmul.f32 %v14982_v43, %v7803_v31 }
 0xc9f   : > { %v7862_v11 = vadd.f32 %v14996_v20, %v7832_v6  ;;  %v7804_v46 = vmul.f32 %v11003_v1, %v14899_v58  ;;  %v10540_v6 = vld [vmem:[%s11427_s2 + $0x78] sm:$0xff]  }
 0xca0   : > { %v7863_v48 = vadd.f32 %v14996_v20, %v7833_v3  ;;  %9654 = vmatprep.subr.bf16.mxu0 %v10540_v6  ;;  %10334 = vmatprep.subr.bf16.mxu1 %v10540_v6 }
 0xca1   : > { %v7883_v38 = vpack.c.bf16 %v7862_v11, %v7861_v40  ;;  %v7834_v22 = vmul.f32 %v14982_v43, %v7804_v46  ;;  %v10541_v40 = vld [vmem:[%s11427_s2 + $0x38] sm:$0xff]   ;;  %v10542_v46 = vld [vmem:[%s11427_s2 + $0x70] sm:$0xff]  }
 0xca2   : > { %9655 = vmatpush3.bf16.msra.mxu0 %v10541_v40  ;;  %10342 = vmatpush3.bf16.msra.mxu1 %v10541_v40 }
 0xca3   : > { %8054 = vmatmul.mubr.bf16.gmra.mxu1 %v7883_v38  ;;  %v7864_v35 = vadd.f32 %v14996_v20, %v7834_v22  ;;  %v10543_v38 = vld [vmem:[%s11427_s2 + $0x30] sm:$0xff]   ;;  %9656 = vmatprep.subr.bf16.mxu0 %v10542_v46 }
 0xca4   : > { %8063 = vmatprep.mubr.bf16.mxu1 %v15966_v8  ;;  %10335 = vmatprep.subr.bf16.mxu1 %v10542_v46 }
 0xca5   : > { %v7884_v27 = vpack.c.bf16 %v7864_v35, %v7863_v48  ;;  %v10544_v35 = vld [vmem:[%s11427_s2 + $0x68] sm:$0xff]  }
 0xca6   : > { %9657 = vmatpush3.bf16.msra.mxu0 %v10543_v38  ;;  %10343 = vmatpush3.bf16.msra.mxu1 %v10543_v38  ;;  %v10548_v38 = vld [vmem:[%s11427_s2 + $0x58] sm:$0xff]  }
 0xca7   : > { %9658 = vmatprep.subr.bf16.mxu0 %v10544_v35  ;;  %10336 = vmatprep.subr.bf16.mxu1 %v10544_v35 }
 0xcab   : > { %8064 = vmatmul.mubr.bf16.gmra.mxu1 %v7884_v27  ;;  %v10545_v27 = vld [vmem:[%s11427_s2 + $0x28] sm:$0xff]  }
 0xcac   : > { %8073 = vmatprep.mubr.bf16.mxu1 %v15966_v8  ;;  %9659 = vmatpush3.bf16.msra.mxu0 %v10545_v27 }
 0xcad   : > { %10344 = vmatpush3.bf16.msra.mxu1 %v10545_v27 }
 0xcbe   : > { %v7694_v54 = vpop.xlane.xlu0 %7693 }
 0xcbf   : > { %v7733_v58 = vmul.f32 0.0078125, %v7694_v54 }
 0xcc1   : > { %v7757_v13 = vadd.f32 1e-05, %v7733_v58 }
 0xcc2   : > { %v7696_v49 = vpop.xlane.xlu1 %7695  ;;  %v7698_v30 = vpop.xlane.xlu0 %7697 }
 0xcc3   : > { %11004 = vrsqrt.f32 %v7757_v13  ;;  %v7734_v9 = vmul.f32 0.0078125, %v7696_v49  ;;  %v7735_v7 = vmul.f32 0.0078125, %v7698_v30 }
 0xcc5   : > { %v7758_v60 = vadd.f32 1e-05, %v7734_v9  ;;  %v7759_v50 = vadd.f32 1e-05, %v7735_v7  ;;  %v10546_v7 = vld [vmem:[%s11427_s2 + $0x60] sm:$0xff]  }
 0xcc6   : > { %v7700_v1 = vpop.xlane.xlu1 %7699  ;;  %9660 = vmatprep.subr.bf16.mxu0 %v10546_v7  ;;  %10337 = vmatprep.subr.bf16.mxu1 %v10546_v7 }
 0xcc7   : > { %11006 = vrsqrt.f32 %v7758_v60  ;;  %v7736_v11 = vmul.f32 0.0078125, %v7700_v1 }
 0xcc8   : > { %11008 = vrsqrt.f32 %v7759_v50  ;;  %v10547_v50 = vld [vmem:[%s11427_s2 + $0x20] sm:$0xff]  }
 0xcc9   : > { %v7760_v31 = vadd.f32 1e-05, %v7736_v11  ;;  %9661 = vmatpush3.bf16.msra.mxu0 %v10547_v50  ;;  %10345 = vmatpush3.bf16.msra.mxu1 %v10547_v50 }
 0xcca   : > { %9662 = vmatprep.subr.bf16.mxu0 %v10548_v38  ;;  %10338 = vmatprep.subr.bf16.mxu1 %v10548_v38  ;;  %v10554_v38 = vld [vmem:[%s11427_s2 + $0x40] sm:$0xff]  }
 0xccb   : > { %11010 = vrsqrt.f32 %v7760_v31  ;;  %v7702_v22 = vpop.xlane.xlu0 %7701 }
 0xccc   : > { %v7737_v3 = vmul.f32 0.0078125, %v7702_v22 }
 0xcce   : > { %v7761_v48 = vadd.f32 1e-05, %v7737_v3  ;;  %v10549_v3 = vld [vmem:[%s11427_s2 + $0x18] sm:$0xff]  }
 0xccf   : > { %v7704_v54 = vpop.xlane.xlu1 %7703  ;;  %v7706_v58 = vpop.xlane.xlu0 %7705  ;;  %9663 = vmatpush3.bf16.msra.mxu0 %v10549_v3  ;;  %10346 = vmatpush3.bf16.msra.mxu1 %v10549_v3 }
 0xcd0   : > { %v11005_v13 = vpop.eup %11004  ;;  %v7738_v49 = vmul.f32 0.0078125, %v7704_v54  ;;  %v7739_v30 = vmul.f32 0.0078125, %v7706_v58  ;;  %11012 = vrsqrt.f32 %v7761_v48 }
 0xcd1   : > { %v7805_v9 = vmul.f32 %v11005_v13, %v14904_v29  ;;  %v10550_v13 = vld [vmem:[%s11427_s2 + $0x50] sm:$0xff]  }
 0xcd2   : > { %v7762_v60 = vadd.f32 1e-05, %v7738_v49  ;;  %v7763_v6 = vadd.f32 1e-05, %v7739_v30  ;;  %v10551_v49 = vld [vmem:[%s11427_s2 + $0x10] sm:$0xff]   ;;  %9664 = vmatprep.subr.bf16.mxu0 %v10550_v13  ;;  %10339 = vmatprep.subr.bf16.mxu1 %v10550_v13 }
 0xcd3   : > { %v7708_v1 = vpop.xlane.xlu1 %7707  ;;  %v7835_v46 = vmul.f32 %v14982_v43, %v7805_v9  ;;  %9665 = vmatpush3.bf16.msra.mxu0 %v10551_v49  ;;  %10347 = vmatpush3.bf16.msra.mxu1 %v10551_v49 }
 0xcd4   : > { %v11007_v40 = vpop.eup %11006  ;;  %11014 = vrsqrt.f32 %v7762_v60  ;;  %v7740_v11 = vmul.f32 0.0078125, %v7708_v1  ;;  %v10552_v60 = vld [vmem:[%s11427_s2 + $0x48] sm:$0xff]  }
 0xcd5   : > { %v7806_v31 = vmul.f32 %v11007_v40, %v14909_v0  ;;  %v11009_v29 = vpop.eup %11008  ;;  %11016 = vrsqrt.f32 %v7763_v6  ;;  %v7865_v0 = vadd.f32 %v14996_v20, %v7835_v46  ;;  %9666 = vmatprep.subr.bf16.mxu0 %v10552_v60  ;;  %10340 = vmatprep.subr.bf16.mxu1 %v10552_v60 }
 0xcd6   : > { %v7764_v22 = vadd.f32 1e-05, %v7740_v11  ;;  %v7807_v54 = vmul.f32 %v11009_v29, %v14912_v39  ;;  %v10553_v39 = vld [vmem:[%s11427_s2 + $0x8] sm:$0xff]  }
 0xcd7   : > { %v7836_v35 = vmul.f32 %v14982_v43, %v7806_v31  ;;  %9667 = vmatpush3.bf16.msra.mxu0 %v10553_v39  ;;  %10348 = vmatpush3.bf16.msra.mxu1 %v10553_v39 }
 0xcd8   : > { %v11011_v48 = vpop.eup %11010  ;;  %11018 = vrsqrt.f32 %v7764_v22  ;;  %v7837_v7 = vmul.f32 %v14982_v43, %v7807_v54  ;;  %9668 = vmatprep.subr.bf16.mxu0 %v10554_v38  ;;  %10341 = vmatprep.subr.bf16.mxu1 %v10554_v38 }
 0xcd9   : > { %v7866_v27 = vadd.f32 %v14996_v20, %v7836_v35  ;;  %v7808_v58 = vmul.f32 %v11011_v48, %v14919_v47  ;;  %v10555_v35 = vld [vmem:[%s11427_s2] sm:$0xff]  }
 0xcda   : > { %v7867_v31 = vadd.f32 %v14996_v20, %v7837_v7 }
 0xcdb   : > { %v7885_v30 = vpack.c.bf16 %v7866_v27, %v7865_v0  ;;  %v7838_v9 = vmul.f32 %v14982_v43, %v7808_v58  ;;  %9669 = vmatpush3.bf16.msra.mxu0 %v10555_v35  ;;  %10349 = vmatpush3.bf16.msra.mxu1 %v10555_v35 }
 0xcdd   : > { %8074 = vmatmul.mubr.bf16.gmra.mxu1 %v7885_v30  ;;  %v11013_v50 = vpop.eup %11012  ;;  %v7868_v1 = vadd.f32 %v14996_v20, %v7838_v9 }
 0xcde   : > { %v7710_v6 = vpop.xlane.xlu0 %7709  ;;  %8083 = vmatprep.mubr.bf16.mxu1 %v15966_v8  ;;  %v7809_v46 = vmul.f32 %v11013_v50, %v14924_v51 }
 0xcdf   : > { %v7741_v47 = vmul.f32 0.0078125, %v7710_v6  ;;  %v7886_v27 = vpack.c.bf16 %v7868_v1, %v7867_v31 }
 0xce0   : > { %v7839_v30 = vmul.f32 %v14982_v43, %v7809_v46 }
 0xce1   : > { %v11015_v40 = vpop.eup %11014  ;;  %v7765_v11 = vadd.f32 1e-05, %v7741_v47 }
 0xce2   : > { %v7712_v29 = vpop.xlane.xlu1 %7711  ;;  %v7714_v22 = vpop.xlane.xlu0 %7713  ;;  %v7810_v3 = vmul.f32 %v11015_v40, %v14929_v36  ;;  %v7869_v6 = vadd.f32 %v14996_v20, %v7839_v30 }
 0xce3   : > { %11020 = vrsqrt.f32 %v7765_v11  ;;  %v7742_v48 = vmul.f32 0.0078125, %v7712_v29  ;;  %v7743_v0 = vmul.f32 0.0078125, %v7714_v22  ;;  %v11017_v54 = vpop.eup %11016 }
 0xce4   : > { %v7840_v58 = vmul.f32 %v14982_v43, %v7810_v3  ;;  %v7811_v39 = vmul.f32 %v11017_v54, %v14932_v61 }
 0xce5   : > { %v11019_v13 = vpop.eup %11018  ;;  %v7766_v49 = vadd.f32 1e-05, %v7742_v48  ;;  %v7767_v51 = vadd.f32 1e-05, %v7743_v0  ;;  %8084 = vmatmul.mubr.bf16.gmra.mxu1 %v7886_v27 }
 0xce6   : > { %v7716_v9 = vpop.xlane.xlu1 %7715  ;;  %8093 = vmatprep.mubr.bf16.mxu1 %v15966_v8  ;;  %v7870_v7 = vadd.f32 %v14996_v20, %v7840_v58  ;;  %v7812_v60 = vmul.f32 %v11019_v13, %v14939_v37  ;;  %v7841_v40 = vmul.f32 %v14982_v43, %v7811_v39 }
 0xce7   : > { %11022 = vrsqrt.f32 %v7766_v49  ;;  %v7744_v36 = vmul.f32 0.0078125, %v7716_v9 }
 0xce8   : > { %11024 = vrsqrt.f32 %v7767_v51  ;;  %v7887_v47 = vpack.c.bf16 %v7870_v7, %v7869_v6  ;;  %v7842_v1 = vmul.f32 %v14982_v43, %v7812_v60  ;;  %v7871_v29 = vadd.f32 %v14996_v20, %v7841_v40 }
 0xce9   : > { %v7768_v50 = vadd.f32 1e-05, %v7744_v36 }
 0xcea   : > { %v7872_v46 = vadd.f32 %v14996_v20, %v7842_v1 }
 0xceb   : > { %11026 = vrsqrt.f32 %v7768_v50 }
 0xcec   : > { %v7888_v35 = vpack.c.bf16 %v7872_v46, %v7871_v29 }
 0xced   : > { %8094 = vmatmul.mubr.bf16.gmra.mxu1 %v7887_v47 }
 0xcee   : > { %v7718_v11 = vpop.xlane.xlu0 %7717  ;;  %8103 = vmatprep.mubr.bf16.mxu1 %v15966_v8 }
 0xcef   : > { %v7745_v31 = vmul.f32 0.0078125, %v7718_v11 }
 0xcf0   : > { %v11021_v37 = vpop.eup %11020 }
 0xcf1   : > { %v7769_v38 = vadd.f32 1e-05, %v7745_v31  ;;  %v7813_v22 = vmul.f32 %v11021_v37, %v14944_v62 }
 0xcf2   : > { %v7720_v61 = vpop.xlane.xlu1 %7719 }
 0xcf3   : > { %11028 = vrsqrt.f32 %v7769_v38  ;;  %v7746_v3 = vmul.f32 0.0078125, %v7720_v61  ;;  %v7843_v0 = vmul.f32 %v14982_v43, %v7813_v22 }
 0xcf4   : > { %v11023_v48 = vpop.eup %11022 }
 0xcf5   : > { %v7770_v27 = vadd.f32 1e-05, %v7746_v3  ;;  %8104 = vmatmul.mubr.bf16.gmra.mxu1 %v7888_v35  ;;  %v7814_v54 = vmul.f32 %v11023_v48, %v14949_v19  ;;  %v11025_v58 = vpop.eup %11024  ;;  %v7873_v30 = vadd.f32 %v14996_v20, %v7843_v0 }
 0xcf6   : > { %v7722_v13 = vpop.xlane.xlu0 %7721  ;;  %8113 = vmatprep.mubr.bf16.mxu1 %v15966_v8  ;;  %v7815_v7 = vmul.f32 %v11025_v58, %v14952_v24 }
 0xcf7   : > { %11030 = vrsqrt.f32 %v7770_v27  ;;  %v7747_v49 = vmul.f32 0.0078125, %v7722_v13  ;;  %v7844_v51 = vmul.f32 %v14982_v43, %v7814_v54 }
 0xcf8   : > { %v11027_v62 = vpop.eup %11026  ;;  %v7845_v1 = vmul.f32 %v14982_v43, %v7815_v7 }
 0xcf9   : > { %v7771_v9 = vadd.f32 1e-05, %v7747_v49  ;;  %v7874_v36 = vadd.f32 %v14996_v20, %v7844_v51  ;;  %v7816_v60 = vmul.f32 %v11027_v62, %v14959_v44  ;;  %v7909_v49 = vld [vmem:[%s11422_s21] sm:$0x3] }
 0xcfa   : > { %v7724_v50 = vpop.xlane.xlu1 %7723  ;;  %v7875_v24 = vadd.f32 %v14996_v20, %v7845_v1  ;;  %v15998_v51 = vld [vmem:[#allocation7_spill] sm:$0xff] }
 0xcfb   : > { %11032 = vrsqrt.f32 %v7771_v9  ;;  %v7748_v19 = vmul.f32 0.0078125, %v7724_v50  ;;  %v7889_v6 = vpack.c.bf16 %v7874_v36, %v7873_v30  ;;  %v7846_v39 = vmul.f32 %v14982_v43, %v7816_v60 }
 0xcfc   : > { %v16000_v30 = vsub.s32 1, %v15998_v51 }
 0xcfd   : > { %v7772_v47 = vadd.f32 1e-05, %v7748_v19  ;;  %8114 = vmatmul.mubr.bf16.gmra.mxu1 %v7889_v6  ;;  %v7876_v40 = vadd.f32 %v14996_v20, %v7846_v39 }
 0xcfe   : > { %8123 = vmatprep.mubr.bf16.mxu1 %v15966_v8 }
 0xcff   : > { %11034 = vrsqrt.f32 %v7772_v47  ;;  %v7890_v31 = vpack.c.bf16 %v7876_v40, %v7875_v24 }
 0xd00   : > { %v11029_v11 = vpop.eup %11028 }
 0xd01   : > { %v7817_v44 = vmul.f32 %v11029_v11, %v14964_v32 }
 0xd03   : > { %v7847_v38 = vmul.f32 %v14982_v43, %v7817_v44 }
 0xd04   : > { %v11031_v46 = vpop.eup %11030 }
 0xd05   : > { %8124 = vmatmul.mubr.bf16.gmra.mxu1 %v7890_v31  ;;  %v7818_v37 = vmul.f32 %v11031_v46, %v14969_v63  ;;  %v7877_v61 = vadd.f32 %v14996_v20, %v7847_v38 }
 0xd06   : > { %8133 = vmatprep.mubr.bf16.mxu1 %v15966_v8 }
 0xd07   : > { %v7848_v29 = vmul.f32 %v14982_v43, %v7818_v37 }
 0xd08   : > { %v11033_v22 = vpop.eup %11032 }
 0xd09   : > { %v7878_v3 = vadd.f32 %v14996_v20, %v7848_v29  ;;  %v7819_v35 = vmul.f32 %v11033_v22, %v14975_v28  ;;  %v15999_v28 = vsub.s32 0, %v15998_v51 }
 0xd0b   : > { %v7891_v32 = vpack.c.bf16 %v7878_v3, %v7877_v61  ;;  %v7849_v63 = vmul.f32 %v14982_v43, %v7819_v35  ;;  %v15099_v62 = vrot.slane %v7909_v49, %v15999_v28 }
 0xd0c   : > { %v11035_v48 = vpop.eup %11034 }
 0xd0d   : > { %8134 = vmatmul.mubr.bf16.gmra.mxu1 %v7891_v32  ;;  %v7820_v0 = vmul.f32 %v11035_v48, %v14988_v14  ;;  %v7879_v54 = vadd.f32 %v14996_v20, %v7849_v63  ;;  %v15103_v14 = vrot.slane %v7909_v49, %v16000_v30 }
 0xd0e   : > { %8143 = vmatprep.mubr.bf16.mxu1 %v15966_v8 }
 0xd0f   : > { %v7850_v27 = vmul.f32 %v14982_v43, %v7820_v0 }
 0xd11   : > { %v7880_v58 = vadd.f32 %v14996_v20, %v7850_v27 }
 0xd13   : > { %v7892_v13 = vpack.c.bf16 %v7880_v58, %v7879_v54 }
 0xd15   : > { %8144 = vmatmul.mubr.bf16.gmra.mxu1 %v7892_v13 }
 0xd35   : > { %v8035_v9 = vpop.f32.mrf.mxu1 }
 0xd36   : > { %v15106_v8 = vadd.f32 %v8035_v9, %v15099_v62 }
 0xd37   : > { %v8037_v43 = vpop.f32.mrf.mxu1 }
 0xd38   : > { %v9286_v36 = vmul.f32 -1.702, %v15106_v8  ;;  %v15110_v20 = vadd.f32 %v8037_v43, %v15103_v14 }
 0xd39   : > { %v8039_v7 = vpop.f32.mrf.mxu1 }
 0xd3a   : > { %v8250_v60 = vmul.f32 1.442695, %v9286_v36  ;;  %v9287_v50 = vmul.f32 -1.702, %v15110_v20  ;;  %v8040_v19 = vadd.f32 %v8039_v7, %v15099_v62 }
 0xd3b   : > { %v8041_v6 = vpop.f32.mrf.mxu1 }
 0xd3c   : > { %v8252_v39 = vmul.f32 1.442695, %v9287_v50  ;;  %v9288_v47 = vmul.f32 -1.702, %v8040_v19  ;;  %v8042_v1 = vadd.f32 %v8041_v6, %v15103_v14  ;;  %11036 = vpow2.f32 %v8250_v60 }
 0xd3e   : > { %11038 = vpow2.f32 %v8252_v39  ;;  %v8254_v40 = vmul.f32 1.442695, %v9288_v47  ;;  %v9289_v11 = vmul.f32 -1.702, %v8042_v1 }
 0xd40   : > { %11040 = vpow2.f32 %v8254_v40  ;;  %v8256_v24 = vmul.f32 1.442695, %v9289_v11 }
 0xd41   : > { %v8045_v44 = vpop.f32.mrf.mxu1 }
 0xd42   : > { %11042 = vpow2.f32 %v8256_v24  ;;  %v15116_v31 = vadd.f32 %v8045_v44, %v15099_v62 }
 0xd43   : > { %v8047_v46 = vpop.f32.mrf.mxu1 }
 0xd44   : > { %v9290_v37 = vmul.f32 -1.702, %v15116_v31  ;;  %v15120_v38 = vadd.f32 %v8047_v46, %v15103_v14 }
 0xd45   : > { %v8049_v29 = vpop.f32.mrf.mxu1 }
 0xd46   : > { %v8258_v22 = vmul.f32 1.442695, %v9290_v37  ;;  %v9291_v61 = vmul.f32 -1.702, %v15120_v38  ;;  %v15124_v3 = vadd.f32 %v8049_v29, %v15099_v62 }
 0xd47   : > { %v8051_v35 = vpop.f32.mrf.mxu1 }
 0xd48   : > { %11044 = vpow2.f32 %v8258_v22  ;;  %v8260_v32 = vmul.f32 1.442695, %v9291_v61  ;;  %v9292_v48 = vmul.f32 -1.702, %v15124_v3  ;;  %v15128_v0 = vadd.f32 %v8051_v35, %v15103_v14 }
 0xd49   : > { %v11037_v63 = vpop.eup %11036 }
 0xd4a   : > { %11046 = vpow2.f32 %v8260_v32  ;;  %v8262_v27 = vmul.f32 1.442695, %v9292_v48  ;;  %v9293_v54 = vmul.f32 -1.702, %v15128_v0  ;;  %v8346_v28 = vadd.f32 1.0, %v11037_v63 }
 0xd4b   : > { %v11039_v58 = vpop.eup %11038 }
 0xd4c   : > { %v8347_v13 = vadd.f32 1.0, %v11039_v58  ;;  %v8264_v49 = vmul.f32 1.442695, %v9293_v54  ;;  %11048 = vpow2.f32 %v8262_v27 }
 0xd4d   : > { %v11041_v51 = vpop.eup %11040 }
 0xd4e   : > { %11050 = vrcp.f32 %v8347_v13  ;;  %v8348_v30 = vadd.f32 1.0, %v11041_v51 }
 0xd4f   : > { %v11043_v9 = vpop.eup %11042  ;;  %11052 = vpow2.f32 %v8264_v49 }
 0xd50   : > { %11054 = vrcp.f32 %v8348_v30  ;;  %v8349_v43 = vadd.f32 1.0, %v11043_v9 }
 0xd51   : > { %11056 = vrcp.f32 %v8346_v28 }
 0xd52   : > { %11058 = vrcp.f32 %v8349_v43 }
 0xd55   : > { %v11045_v36 = vpop.eup %11044 }
 0xd56   : > { %v8350_v60 = vadd.f32 1.0, %v11045_v36 }
 0xd57   : > { %v11047_v7 = vpop.eup %11046 }
 0xd58   : > { %v8351_v50 = vadd.f32 1.0, %v11047_v7  ;;  %11060 = vrcp.f32 %v8350_v60 }
 0xd59   : > { %v11049_v6 = vpop.eup %11048 }
 0xd5a   : > { %v8352_v47 = vadd.f32 1.0, %v11049_v6  ;;  %11062 = vrcp.f32 %v8351_v50 }
 0xd5b   : > { %v11051_v39 = vpop.eup %11050 }
 0xd5c   : > { %v11053_v40 = vpop.eup %11052  ;;  %11064 = vrcp.f32 %v8352_v47  ;;  %v8491_v29 = vmul.f32 %v11051_v39, %v15110_v20 }
 0xd5d   : > { %v11055_v11 = vpop.eup %11054  ;;  %v8353_v24 = vadd.f32 1.0, %v11053_v40 }
 0xd5e   : > { %v11057_v44 = vpop.eup %11056  ;;  %v8492_v37 = vmul.f32 %v11055_v11, %v8040_v19 }
 0xd5f   : > { %v11059_v46 = vpop.eup %11058  ;;  %11066 = vrcp.f32 %v8353_v24  ;;  %v8490_v61 = vmul.f32 %v11057_v44, %v15106_v8 }
 0xd60   : > { %v8493_v22 = vmul.f32 %v11059_v46, %v8042_v1 }
 0xd61   : > { %v8538_v32 = vpack.c.bf16 %v8492_v37, %v8490_v61 }
 0xd62   : > { %v8539_v35 = vpack.c.bf16 %v8493_v22, %v8491_v29 }
 0xd63   : > { %v8055_v48 = vpop.f32.mrf.mxu1 }
 0xd64   : > { %v15134_v63 = vadd.f32 %v8055_v48, %v15099_v62  ;;  %8729 = vmatprep.mubr.bf16.mxu0 %v8539_v35 }
 0xd65   : > { %v8057_v27 = vpop.f32.mrf.mxu1  ;;  %8730 = vmatmul.mubr.bf16.vlgmr.msra.gmra.mxu0 %v8538_v32  ;;  %v11061_v13 = vpop.eup %11060 }
 0xd66   : > { %v9294_v54 = vmul.f32 -1.702, %v15134_v63  ;;  %v15138_v58 = vadd.f32 %v8057_v27, %v15103_v14  ;;  %v8494_v47 = vmul.f32 %v11061_v13, %v15116_v31 }
 0xd67   : > { %v8059_v19 = vpop.f32.mrf.mxu1  ;;  %v11063_v49 = vpop.eup %11062 }
 0xd68   : > { %v8266_v20 = vmul.f32 1.442695, %v9294_v54  ;;  %v9295_v1 = vmul.f32 -1.702, %v15138_v58  ;;  %v15142_v8 = vadd.f32 %v8059_v19, %v15099_v62  ;;  %v8495_v40 = vmul.f32 %v11063_v49, %v15120_v38 }
 0xd69   : > { %v8061_v51 = vpop.f32.mrf.mxu1  ;;  %v11065_v28 = vpop.eup %11064 }
 0xd6a   : > { %v8268_v30 = vmul.f32 1.442695, %v9295_v1  ;;  %v9296_v9 = vmul.f32 -1.702, %v15142_v8  ;;  %v15146_v43 = vadd.f32 %v8061_v51, %v15103_v14  ;;  %v8496_v36 = vmul.f32 %v11065_v28, %v15124_v3 }
 0xd6b   : > { %11068 = vpow2.f32 %v8266_v20  ;;  %v8065_v7 = vpop.f32.mrf.mxu1 }
 0xd6c   : > { %v11067_v60 = vpop.eup %11066  ;;  %11070 = vpow2.f32 %v8268_v30  ;;  %v8270_v50 = vmul.f32 1.442695, %v9296_v9  ;;  %v9297_v6 = vmul.f32 -1.702, %v15146_v43  ;;  %v15151_v39 = vadd.f32 %v8065_v7, %v15099_v62 }
 0xd6d   : > { %v8497_v11 = vmul.f32 %v11067_v60, %v15128_v0  ;;  %v8067_v24 = vpop.f32.mrf.mxu1  ;;  %v8540_v37 = vpack.c.bf16 %v8496_v36, %v8494_v47 }
 0xd6e   : > { %11072 = vpow2.f32 %v8270_v50  ;;  %v8272_v44 = vmul.f32 1.442695, %v9297_v6  ;;  %v9298_v3 = vmul.f32 -1.702, %v15151_v39  ;;  %v8068_v46 = vadd.f32 %v8067_v24, %v15103_v14 }
 0xd6f   : > { %v8069_v29 = vpop.f32.mrf.mxu1  ;;  %v8541_v22 = vpack.c.bf16 %v8497_v11, %v8495_v40 }
 0xd70   : > { %11074 = vpow2.f32 %v8272_v44  ;;  %v8274_v61 = vmul.f32 1.442695, %v9298_v3  ;;  %v9299_v35 = vmul.f32 -1.702, %v8068_v46  ;;  %v8070_v32 = vadd.f32 %v8069_v29, %v15099_v62 }
 0xd71   : > { %8737 = vmatprep.mubr.bf16.mxu0 %v8541_v22  ;;  %v8071_v31 = vpop.f32.mrf.mxu1 }
 0xd72   : > { %v8276_v38 = vmul.f32 1.442695, %v9299_v35  ;;  %v9300_v48 = vmul.f32 -1.702, %v8070_v32  ;;  %v8072_v0 = vadd.f32 %v8071_v31, %v15103_v14  ;;  %8738 = vmatmul.mubr.bf16.gmra.mxu0 %v8540_v37  ;;  %11076 = vpow2.f32 %v8274_v61 }
 0xd74   : > { %11078 = vpow2.f32 %v8276_v38  ;;  %v8278_v27 = vmul.f32 1.442695, %v9300_v48  ;;  %v9301_v54 = vmul.f32 -1.702, %v8072_v0 }
 0xd76   : > { %11080 = vpow2.f32 %v8278_v27  ;;  %v8280_v19 = vmul.f32 1.442695, %v9301_v54 }
 0xd78   : > { %v11069_v13 = vpop.eup %11068  ;;  %11082 = vpow2.f32 %v8280_v19 }
 0xd79   : > { %v11071_v20 = vpop.eup %11070  ;;  %v8354_v51 = vadd.f32 1.0, %v11069_v13 }
 0xd7a   : > { %v8355_v1 = vadd.f32 1.0, %v11071_v20 }
 0xd7b   : > { %v11073_v49 = vpop.eup %11072 }
 0xd7c   : > { %v8356_v28 = vadd.f32 1.0, %v11073_v49  ;;  %11084 = vrcp.f32 %v8355_v1 }
 0xd7d   : > { %v11075_v30 = vpop.eup %11074 }
 0xd7e   : > { %11086 = vrcp.f32 %v8356_v28  ;;  %v8357_v9 = vadd.f32 1.0, %v11075_v30 }
 0xd7f   : > { %11088 = vrcp.f32 %v8354_v51  ;;  %v11077_v36 = vpop.eup %11076 }
 0xd80   : > { %11090 = vrcp.f32 %v8357_v9  ;;  %v8358_v6 = vadd.f32 1.0, %v11077_v36 }
 0xd81   : > { %v11079_v7 = vpop.eup %11078 }
 0xd82   : > { %v8359_v60 = vadd.f32 1.0, %v11079_v7 }
 0xd83   : > { %v11081_v50 = vpop.eup %11080 }
 0xd84   : > { %v8360_v47 = vadd.f32 1.0, %v11081_v50  ;;  %11092 = vrcp.f32 %v8359_v60 }
 0xd85   : > { %v11083_v40 = vpop.eup %11082 }
 0xd86   : > { %11094 = vrcp.f32 %v8360_v47  ;;  %v8361_v11 = vadd.f32 1.0, %v11083_v40 }
 0xd87   : > { %11096 = vrcp.f32 %v8358_v6 }
 0xd88   : > { %11098 = vrcp.f32 %v8361_v11 }
 0xd89   : > { %v11085_v24 = vpop.eup %11084 }
 0xd8a   : > { %v8499_v22 = vmul.f32 %v11085_v24, %v15138_v58 }
 0xd8b   : > { %v11087_v44 = vpop.eup %11086 }
 0xd8c   : > { %v11089_v3 = vpop.eup %11088  ;;  %v8500_v29 = vmul.f32 %v11087_v44, %v15142_v8 }
 0xd8d   : > { %v11091_v37 = vpop.eup %11090  ;;  %v8498_v35 = vmul.f32 %v11089_v3, %v15134_v63 }
 0xd8e   : > { %v8501_v61 = vmul.f32 %v11091_v37, %v15146_v43 }
 0xd8f   : > { %v8542_v38 = vpack.c.bf16 %v8500_v29, %v8498_v35 }
 0xd90   : > { %v8543_v31 = vpack.c.bf16 %v8501_v61, %v8499_v22 }
 0xd91   : > { %v11093_v48 = vpop.eup %11092 }
 0xd92   : > { %8745 = vmatprep.mubr.bf16.mxu0 %v8543_v31  ;;  %v8503_v20 = vmul.f32 %v11093_v48, %v8068_v46 }
 0xd93   : > { %v11095_v27 = vpop.eup %11094  ;;  %8746 = vmatmul.mubr.bf16.gmra.mxu0 %v8542_v38 }
 0xd94   : > { %v11097_v54 = vpop.eup %11096  ;;  %v8504_v13 = vmul.f32 %v11095_v27, %v8070_v32 }
 0xd95   : > { %v11099_v19 = vpop.eup %11098  ;;  %v8502_v49 = vmul.f32 %v11097_v54, %v15151_v39 }
 0xd96   : > { %v8505_v1 = vmul.f32 %v11099_v19, %v8072_v0 }
 0xd97   : > { %v8544_v51 = vpack.c.bf16 %v8504_v13, %v8502_v49 }
 0xd98   : > { %v8545_v8 = vpack.c.bf16 %v8505_v1, %v8503_v20 }
 0xd9a   : > { %8753 = vmatprep.mubr.bf16.mxu0 %v8545_v8 }
 0xd9b   : > { %8754 = vmatmul.mubr.bf16.gmra.mxu0 %v8544_v51 }
 0xd9d   : > { %v8075_v58 = vpop.f32.mrf.mxu1 }
 0xd9e   : > { %v15166_v63 = vadd.f32 %v8075_v58, %v15099_v62 }
 0xd9f   : > { %v8077_v43 = vpop.f32.mrf.mxu1 }
 0xda0   : > { %v9302_v28 = vmul.f32 -1.702, %v15166_v63  ;;  %v15170_v30 = vadd.f32 %v8077_v43, %v15103_v14 }
 0xda1   : > { %v8079_v9 = vpop.f32.mrf.mxu1 }
 0xda2   : > { %v8282_v32 = vmul.f32 1.442695, %v9302_v28  ;;  %v9303_v46 = vmul.f32 -1.702, %v15170_v30  ;;  %v15174_v39 = vadd.f32 %v8079_v9, %v15099_v62 }
 0xda3   : > { %v8081_v0 = vpop.f32.mrf.mxu1 }
 0xda4   : > { %11100 = vpow2.f32 %v8282_v32  ;;  %v8284_v36 = vmul.f32 1.442695, %v9303_v46  ;;  %v9304_v7 = vmul.f32 -1.702, %v15174_v39  ;;  %v15178_v60 = vadd.f32 %v8081_v0, %v15103_v14 }
 0xda5   : > { %v8085_v50 = vpop.f32.mrf.mxu1 }
 0xda6   : > { %11102 = vpow2.f32 %v8284_v36  ;;  %v8286_v6 = vmul.f32 1.442695, %v9304_v7  ;;  %v9305_v47 = vmul.f32 -1.702, %v15178_v60  ;;  %v15182_v40 = vadd.f32 %v8085_v50, %v15099_v62 }
 0xda7   : > { %v8087_v11 = vpop.f32.mrf.mxu1 }
 0xda8   : > { %11104 = vpow2.f32 %v8286_v6  ;;  %v8288_v24 = vmul.f32 1.442695, %v9305_v47  ;;  %v9306_v44 = vmul.f32 -1.702, %v15182_v40  ;;  %v15186_v3 = vadd.f32 %v8087_v11, %v15103_v14 }
 0xda9   : > { %v8089_v37 = vpop.f32.mrf.mxu1 }
 0xdaa   : > { %11106 = vpow2.f32 %v8288_v24  ;;  %v8290_v29 = vmul.f32 1.442695, %v9306_v44  ;;  %v9307_v22 = vmul.f32 -1.702, %v15186_v3  ;;  %v15190_v61 = vadd.f32 %v8089_v37, %v15099_v62 }
 0xdab   : > { %v8091_v35 = vpop.f32.mrf.mxu1 }
 0xdac   : > { %11108 = vpow2.f32 %v8290_v29  ;;  %v8292_v31 = vmul.f32 1.442695, %v9307_v22  ;;  %v9308_v38 = vmul.f32 -1.702, %v15190_v61  ;;  %v15194_v48 = vadd.f32 %v8091_v35, %v15103_v14 }
 0xdad   : > { %v8095_v27 = vpop.f32.mrf.mxu1 }
 0xdae   : > { %11110 = vpow2.f32 %v8292_v31  ;;  %v8294_v54 = vmul.f32 1.442695, %v9308_v38  ;;  %v9309_v19 = vmul.f32 -1.702, %v15194_v48  ;;  %v15198_v13 = vadd.f32 %v8095_v27, %v15099_v62 }
 0xdaf   : > { %v8097_v20 = vpop.f32.mrf.mxu1 }
 0xdb0   : > { %11112 = vpow2.f32 %v8294_v54  ;;  %v8296_v1 = vmul.f32 1.442695, %v9309_v19  ;;  %v9310_v49 = vmul.f32 -1.702, %v15198_v13  ;;  %v15202_v8 = vadd.f32 %v8097_v20, %v15103_v14 }
 0xdb1   : > { %v11101_v51 = vpop.eup %11100  ;;  %v8099_v58 = vpop.f32.mrf.mxu1 }
 0xdb2   : > { %v8362_v43 = vadd.f32 1.0, %v11101_v51  ;;  %11114 = vpow2.f32 %v8296_v1  ;;  %v8298_v28 = vmul.f32 1.442695, %v9310_v49  ;;  %v9311_v9 = vmul.f32 -1.702, %v15202_v8 }
 0xdb3   : > { %v11103_v32 = vpop.eup %11102  ;;  %v15206_v46 = vadd.f32 %v8099_v58, %v15099_v62  ;;  %v8101_v0 = vpop.f32.mrf.mxu1 }
 0xdb4   : > { %11116 = vrcp.f32 %v8362_v43  ;;  %v8363_v36 = vadd.f32 1.0, %v11103_v32  ;;  %v8300_v7 = vmul.f32 1.442695, %v9311_v9  ;;  %v15209_v50 = vadd.f32 %v8101_v0, %v15103_v14 }
 0xdb5   : > { %v11105_v6 = vpop.eup %11104  ;;  %11118 = vpow2.f32 %v8298_v28  ;;  %v9312_v47 = vmul.f32 -1.702, %v15206_v46  ;;  %v8105_v11 = vpop.f32.mrf.mxu1 }
 0xdb6   : > { %11120 = vrcp.f32 %v8363_v36  ;;  %v8364_v24 = vadd.f32 1.0, %v11105_v6  ;;  %v9313_v44 = vmul.f32 -1.702, %v15209_v50  ;;  %v15214_v37 = vadd.f32 %v8105_v11, %v15099_v62 }
 0xdb7   : > { %v11107_v29 = vpop.eup %11106  ;;  %11122 = vpow2.f32 %v8300_v7  ;;  %v8302_v22 = vmul.f32 1.442695, %v9312_v47  ;;  %v8107_v35 = vpop.f32.mrf.mxu1 }
 0xdb8   : > { %11124 = vrcp.f32 %v8364_v24  ;;  %v8365_v31 = vadd.f32 1.0, %v11107_v29  ;;  %v8304_v38 = vmul.f32 1.442695, %v9313_v44  ;;  %v9314_v27 = vmul.f32 -1.702, %v15214_v37 }
 0xdb9   : > { %v11109_v54 = vpop.eup %11108  ;;  %11126 = vpow2.f32 %v8302_v22  ;;  %v15218_v19 = vadd.f32 %v8107_v35, %v15103_v14  ;;  %v8109_v20 = vpop.f32.mrf.mxu1 }
 0xdba   : > { %11128 = vrcp.f32 %v8365_v31  ;;  %v8366_v1 = vadd.f32 1.0, %v11109_v54  ;;  %v8306_v49 = vmul.f32 1.442695, %v9314_v27  ;;  %v15221_v51 = vadd.f32 %v8109_v20, %v15099_v62 }
 0xdbb   : > { %v11111_v58 = vpop.eup %11110  ;;  %11130 = vpow2.f32 %v8304_v38  ;;  %v9315_v43 = vmul.f32 -1.702, %v15218_v19  ;;  %v8111_v28 = vpop.f32.mrf.mxu1 }
 0xdbc   : > { %11132 = vrcp.f32 %v8366_v1  ;;  %v8367_v9 = vadd.f32 1.0, %v11111_v58  ;;  %v9316_v32 = vmul.f32 -1.702, %v15221_v51  ;;  %v15226_v0 = vadd.f32 %v8111_v28, %v15103_v14 }
 0xdbd   : > { %v11113_v36 = vpop.eup %11112  ;;  %11134 = vpow2.f32 %v8306_v49  ;;  %v8308_v7 = vmul.f32 1.442695, %v9315_v43  ;;  %v8115_v6 = vpop.f32.mrf.mxu1 }
 0xdbe   : > { %11136 = vrcp.f32 %v8367_v9  ;;  %v8368_v47 = vadd.f32 1.0, %v11113_v36  ;;  %v8310_v11 = vmul.f32 1.442695, %v9316_v32  ;;  %v9317_v24 = vmul.f32 -1.702, %v15226_v0 }
 0xdbf   : > { %v11115_v44 = vpop.eup %11114  ;;  %11138 = vpow2.f32 %v8308_v7  ;;  %v15230_v29 = vadd.f32 %v8115_v6, %v15099_v62  ;;  %v8117_v22 = vpop.f32.mrf.mxu1 }
 0xdc0   : > { %11140 = vrcp.f32 %v8368_v47  ;;  %v8369_v35 = vadd.f32 1.0, %v11115_v44  ;;  %v8312_v31 = vmul.f32 1.442695, %v9317_v24  ;;  %v15233_v38 = vadd.f32 %v8117_v22, %v15103_v14 }
 0xdc1   : > { %v11117_v27 = vpop.eup %11116  ;;  %11142 = vpow2.f32 %v8310_v11  ;;  %v9318_v54 = vmul.f32 -1.702, %v15230_v29  ;;  %v8119_v20 = vpop.f32.mrf.mxu1 }
 0xdc2   : > { %v11119_v1 = vpop.eup %11118  ;;  %11144 = vrcp.f32 %v8369_v35  ;;  %v9319_v49 = vmul.f32 -1.702, %v15233_v38  ;;  %v15238_v58 = vadd.f32 %v8119_v20, %v15099_v62 }
 0xdc3   : > { %v11121_v43 = vpop.eup %11120  ;;  %v8370_v28 = vadd.f32 1.0, %v11119_v1  ;;  %11146 = vpow2.f32 %v8312_v31  ;;  %v8314_v9 = vmul.f32 1.442695, %v9318_v54  ;;  %v8121_v32 = vpop.f32.mrf.mxu1  ;;  %v8506_v1 = vmul.f32 %v11117_v27, %v15166_v63 }
 0xdc4   : > { %v11123_v36 = vpop.eup %11122  ;;  %v8316_v7 = vmul.f32 1.442695, %v9319_v49  ;;  %v9320_v6 = vmul.f32 -1.702, %v15238_v58  ;;  %v15242_v47 = vadd.f32 %v8121_v32, %v15103_v14 }
 0xdc5   : > { %v11125_v11 = vpop.eup %11124  ;;  %11148 = vrcp.f32 %v8370_v28  ;;  %v8371_v24 = vadd.f32 1.0, %v11123_v36  ;;  %v8125_v44 = vpop.f32.mrf.mxu1  ;;  %v8507_v28 = vmul.f32 %v11121_v43, %v15170_v30 }
 0xdc6   : > { %v11127_v22 = vpop.eup %11126  ;;  %v8508_v35 = vmul.f32 %v11125_v11, %v15174_v39  ;;  %11150 = vpow2.f32 %v8314_v9  ;;  %v8318_v20 = vmul.f32 1.442695, %v9320_v6  ;;  %v9321_v31 = vmul.f32 -1.702, %v15242_v47 }
 0xdc7   : > { %v11129_v54 = vpop.eup %11128  ;;  %11152 = vrcp.f32 %v8371_v24  ;;  %v8372_v49 = vadd.f32 1.0, %v11127_v22  ;;  %v15248_v18 = vadd.f32 %v8125_v44, %v15099_v62  ;;  %v8127_v32 = vpop.f32.mrf.mxu1 }
 0xdc8   : > { %v11131_v41 = vpop.eup %11130  ;;  %v8509_v36 = vmul.f32 %v11129_v54, %v15178_v60  ;;  %11154 = vpow2.f32 %v8316_v7  ;;  %v8320_v39 = vmul.f32 1.442695, %v9321_v31  ;;  %v15254_v63 = vadd.f32 %v8127_v32, %v15103_v14 }
 0xdc9   : > { %v11133_v9 = vpop.eup %11132  ;;  %11156 = vrcp.f32 %v8372_v49  ;;  %v8373_v6 = vadd.f32 1.0, %v11131_v41  ;;  %v9322_v11 = vmul.f32 -1.702, %v15248_v18  ;;  %v8129_v27 = vpop.f32.mrf.mxu1  ;;  %v8546_v44 = vpack.c.bf16 %v8508_v35, %v8506_v1 }
 0xdca   : > { %v11135_v24 = vpop.eup %11134  ;;  %11158 = vpow2.f32 %v8318_v20  ;;  %v15257_v22 = vadd.f32 %v8129_v27, %v15099_v62  ;;  %v8547_v30 = vpack.c.bf16 %v8509_v36, %v8507_v28  ;;  %v9323_v31 = vmul.f32 -1.702, %v15254_v63 }
 0xdcb   : > { %v11137_v43 = vpop.eup %11136  ;;  %11160 = vrcp.f32 %v8373_v6  ;;  %v8374_v60 = vadd.f32 1.0, %v11135_v24  ;;  %v8322_v7 = vmul.f32 1.442695, %v9322_v11  ;;  %v8131_v41 = vpop.f32.mrf.mxu1  ;;  %v8510_v6 = vmul.f32 %v11133_v9, %v15182_v40 }
 0xdcc   : > { %v11139_v54 = vpop.eup %11138  ;;  %11162 = vpow2.f32 %v8320_v39  ;;  %v9324_v49 = vmul.f32 -1.702, %v15257_v22  ;;  %v15262_v32 = vadd.f32 %v8131_v41, %v15103_v14  ;;  %8761 = vmatprep.mubr.bf16.mxu0 %v8547_v30  ;;  %v8324_v1 = vmul.f32 1.442695, %v9323_v31 }
 0xdcd   : > { %v11141_v35 = vpop.eup %11140  ;;  %11164 = vrcp.f32 %v8374_v60  ;;  %v8375_v20 = vadd.f32 1.0, %v11139_v54  ;;  %v8135_v28 = vpop.f32.mrf.mxu1  ;;  %8762 = vmatmul.mubr.bf16.gmra.mxu0 %v8546_v44  ;;  %v8511_v31 = vmul.f32 %v11137_v43, %v15186_v3 }
 0xdce   : > { %v11143_v36 = vpop.eup %11142  ;;  %11166 = vpow2.f32 %v8322_v7  ;;  %v8326_v11 = vmul.f32 1.442695, %v9324_v49  ;;  %v9325_v27 = vmul.f32 -1.702, %v15262_v32  ;;  %v8512_v24 = vmul.f32 %v11141_v35, %v15190_v61 }
 0xdcf   : > { %v11145_v39 = vpop.eup %11144  ;;  %11168 = vrcp.f32 %v8375_v20  ;;  %v8376_v41 = vadd.f32 1.0, %v11143_v36  ;;  %v15268_v30 = vadd.f32 %v8135_v28, %v15099_v62  ;;  %v8137_v60 = vpop.f32.mrf.mxu1 }
 0xdd0   : > { %v11147_v54 = vpop.eup %11146  ;;  %v8513_v44 = vmul.f32 %v11145_v39, %v15194_v48  ;;  %11170 = vpow2.f32 %v8324_v1  ;;  %v8328_v40 = vmul.f32 1.442695, %v9325_v27  ;;  %v15274_v49 = vadd.f32 %v8137_v60, %v15103_v14 }
 0xdd1   : > { %11172 = vrcp.f32 %v8376_v41  ;;  %v8377_v9 = vadd.f32 1.0, %v11147_v54  ;;  %v9326_v7 = vmul.f32 -1.702, %v15268_v30  ;;  %v8139_v61 = vpop.f32.mrf.mxu1  ;;  %v8548_v3 = vpack.c.bf16 %v8512_v24, %v8510_v6 }
 0xdd2   : > { %v11149_v35 = vpop.eup %11148  ;;  %11174 = vpow2.f32 %v8326_v11  ;;  %v15277_v20 = vadd.f32 %v8139_v61, %v15099_v62  ;;  %v8549_v28 = vpack.c.bf16 %v8513_v44, %v8511_v31  ;;  %v9327_v43 = vmul.f32 -1.702, %v15274_v49 }
 0xdd3   : > { %v11151_v36 = vpop.eup %11150  ;;  %11176 = vrcp.f32 %v8377_v9  ;;  %v8330_v48 = vmul.f32 1.442695, %v9326_v7  ;;  %v8141_v1 = vpop.f32.mrf.mxu1 }
 0xdd4   : > { %v11153_v27 = vpop.eup %11152  ;;  %v8378_v39 = vadd.f32 1.0, %v11151_v36  ;;  %11178 = vpow2.f32 %v8328_v40  ;;  %v9328_v41 = vmul.f32 -1.702, %v15277_v20  ;;  %v15282_v60 = vadd.f32 %v8141_v1, %v15103_v14  ;;  %8769 = vmatprep.mubr.bf16.mxu0 %v8549_v28 }
 0xdd5   : > { %v11155_v11 = vpop.eup %11154  ;;  %11180 = vpow2.f32 %v8330_v48  ;;  %v8332_v54 = vmul.f32 1.442695, %v9327_v43  ;;  %v8145_v31 = vpop.f32.mrf.mxu1  ;;  %8770 = vmatmul.mubr.bf16.gmra.mxu0 %v8548_v3  ;;  %v8514_v40 = vmul.f32 %v11149_v35, %v15198_v13 }
 0xdd6   : > { %v11157_v6 = vpop.eup %11156  ;;  %11182 = vrcp.f32 %v8378_v39  ;;  %v8379_v24 = vadd.f32 1.0, %v11155_v11  ;;  %v8334_v44 = vmul.f32 1.442695, %v9328_v41  ;;  %v9329_v9 = vmul.f32 -1.702, %v15282_v60 }
 0xdd7   : > { %v11159_v7 = vpop.eup %11158  ;;  %v8516_v61 = vmul.f32 %v11157_v6, %v15206_v46  ;;  %11184 = vpow2.f32 %v8332_v54  ;;  %v15288_v36 = vadd.f32 %v8145_v31, %v15099_v62  ;;  %v8147_v28 = vpop.f32.mrf.mxu1  ;;  %v8515_v41 = vmul.f32 %v11153_v27, %v15202_v8 }
 0xdd8   : > { %v11161_v48 = vpop.eup %11160  ;;  %11186 = vrcp.f32 %v8379_v24  ;;  %v8380_v43 = vadd.f32 1.0, %v11159_v7  ;;  %v8336_v3 = vmul.f32 1.442695, %v9329_v9  ;;  %v15291_v1 = vadd.f32 %v8147_v28, %v15103_v14 }
 0xdd9   : > { %v11163_v39 = vpop.eup %11162  ;;  %v8517_v11 = vmul.f32 %v11161_v48, %v15209_v50  ;;  %11188 = vpow2.f32 %v8334_v44  ;;  %v9330_v13 = vmul.f32 -1.702, %v15288_v36  ;;  %v8149_v46 = vpop.f32.mrf.mxu1  ;;  %v8550_v9 = vpack.c.bf16 %v8516_v61, %v8514_v40 }
 0xdda   : > { %v11165_v35 = vpop.eup %11164  ;;  %11190 = vrcp.f32 %v8380_v43  ;;  %v8381_v54 = vadd.f32 1.0, %v11163_v39  ;;  %v9331_v31 = vmul.f32 -1.702, %v15291_v1  ;;  %v15298_v6 = vadd.f32 %v8149_v46, %v15099_v62 }
 0xddb   : > { %v11167_v24 = vpop.eup %11166  ;;  %11192 = vpow2.f32 %v8336_v3  ;;  %v8338_v7 = vmul.f32 1.442695, %v9330_v13  ;;  %v8151_v28 = vpop.f32.mrf.mxu1  ;;  %v8551_v8 = vpack.c.bf16 %v8517_v11, %v8515_v41 }
 0xddc   : > { %v11169_v27 = vpop.eup %11168  ;;  %11194 = vrcp.f32 %v8381_v54  ;;  %v8382_v50 = vadd.f32 1.0, %v11167_v24  ;;  %v8340_v44 = vmul.f32 1.442695, %v9331_v31  ;;  %v9332_v48 = vmul.f32 -1.702, %v15298_v6 }
 0xddd   : > { %v11171_v53 = vpop.eup %11170  ;;  %11196 = vpow2.f32 %v8338_v7  ;;  %v15302_v43 = vadd.f32 %v8151_v28, %v15103_v14  ;;  %8777 = vmatprep.mubr.bf16.mxu0 %v8551_v8  ;;  %v8519_v54 = vmul.f32 %v11169_v27, %v15218_v19 }
 0xdde   : > { %v11173_v62 = vpop.eup %11172  ;;  %11198 = vrcp.f32 %v8382_v50  ;;  %v8383_v39 = vadd.f32 1.0, %v11171_v53  ;;  %v8342_v40 = vmul.f32 1.442695, %v9332_v48  ;;  %8778 = vmatmul.mubr.bf16.gmra.mxu0 %v8550_v9  ;;  %v8518_v53 = vmul.f32 %v11165_v35, %v15214_v37 }
 0xddf   : > { %v11175_v61 = vpop.eup %11174  ;;  %11200 = vpow2.f32 %v8340_v44  ;;  %v9333_v3 = vmul.f32 -1.702, %v15302_v43  ;;  %v8520_v11 = vmul.f32 %v11173_v62, %v15221_v51 }
 0xde0   : > { %v11177_v41 = vpop.eup %11176  ;;  %11202 = vrcp.f32 %v8383_v39  ;;  %v8384_v13 = vadd.f32 1.0, %v11175_v61 }
 0xde1   : > { %v11179_v46 = vpop.eup %11178  ;;  %v8521_v14 = vmul.f32 %v11177_v41, %v15226_v0  ;;  %11204 = vpow2.f32 %v8342_v40  ;;  %v8344_v31 = vmul.f32 1.442695, %v9333_v3  ;;  %v8552_v50 = vpack.c.bf16 %v8520_v11, %v8518_v53 }
 0xde2   : > { %v11181_v24 = vpop.eup %11180  ;;  %11206 = vrcp.f32 %v8384_v13  ;;  %v8385_v9 = vadd.f32 1.0, %v11179_v46 }
 0xde3   : > { %v11183_v7 = vpop.eup %11182  ;;  %11208 = vpow2.f32 %v8344_v31  ;;  %v8553_v28 = vpack.c.bf16 %v8521_v14, %v8519_v54  ;;  %v8386_v19 = vadd.f32 1.0, %v11181_v24 }
 0xde4   : > { %v11185_v8 = vpop.eup %11184  ;;  %11210 = vrcp.f32 %v8385_v9  ;;  %v8522_v11 = vmul.f32 %v11183_v7, %v15230_v29 }
 0xde5   : > { %v11187_v51 = vpop.eup %11186  ;;  %v8387_v44 = vadd.f32 1.0, %v11185_v8  ;;  %8785 = vmatprep.mubr.bf16.mxu0 %v8553_v28 }
 0xde6   : > { %v11189_v48 = vpop.eup %11188  ;;  %8786 = vmatmul.mubr.bf16.gmra.mxu0 %v8552_v50  ;;  %v8523_v61 = vmul.f32 %v11187_v51, %v15233_v38 }
 0xde7   : > { %v11191_v0 = vpop.eup %11190  ;;  %v8388_v27 = vadd.f32 1.0, %v11189_v48  ;;  %11212 = vrcp.f32 %v8387_v44 }
 0xde8   : > { %v11193_v62 = vpop.eup %11192  ;;  %v8524_v37 = vmul.f32 %v11191_v0, %v15238_v58 }
 0xde9   : > { %v11195_v39 = vpop.eup %11194  ;;  %11214 = vrcp.f32 %v8388_v27  ;;  %v8389_v35 = vadd.f32 1.0, %v11193_v62 }
 0xdea   : > { %v11197_v40 = vpop.eup %11196  ;;  %v8525_v3 = vmul.f32 %v11195_v39, %v15242_v47  ;;  %11216 = vrcp.f32 %v8386_v19  ;;  %v8554_v14 = vpack.c.bf16 %v8524_v37, %v8522_v11 }
 0xdeb   : > { %v11199_v41 = vpop.eup %11198  ;;  %11218 = vrcp.f32 %v8389_v35  ;;  %v8390_v53 = vadd.f32 1.0, %v11197_v40 }
 0xdec   : > { %v11201_v13 = vpop.eup %11200  ;;  %v8555_v46 = vpack.c.bf16 %v8525_v3, %v8523_v61  ;;  %v8526_v50 = vmul.f32 %v11199_v41, %v15248_v18 }
 0xded   : > { %v11203_v54 = vpop.eup %11202  ;;  %v8391_v31 = vadd.f32 1.0, %v11201_v13  ;;  %v15330_v13 = vld [vmem:[%s651_s23] ss:$0 sm:$0xff] }
 0xdee   : > { %v11205_v24 = vpop.eup %11204  ;;  %8793 = vmatprep.mubr.bf16.mxu0 %v8555_v46  ;;  %v8527_v29 = vmul.f32 %v11203_v54, %v15254_v63 }
 0xdef   : > { %v11207_v58 = vpop.eup %11206  ;;  %v8392_v9 = vadd.f32 1.0, %v11205_v24  ;;  %8794 = vmatmul.mubr.bf16.gmra.mxu0 %v8554_v14  ;;  %11220 = vrcp.f32 %v8391_v31 }
 0xdf0   : > { %v11209_v28 = vpop.eup %11208  ;;  %v8528_v47 = vmul.f32 %v11207_v58, %v15257_v22 }
 0xdf1   : > { %v11211_v38 = vpop.eup %11210  ;;  %11222 = vrcp.f32 %v8392_v9  ;;  %v8393_v8 = vadd.f32 1.0, %v11209_v28 }
 0xdf2   : > { %v8529_v7 = vmul.f32 %v11211_v38, %v15262_v32  ;;  %11224 = vrcp.f32 %v8390_v53  ;;  %v8556_v48 = vpack.c.bf16 %v8528_v47, %v8526_v50 }
 0xdf3   : > { %11226 = vrcp.f32 %v8393_v8 }
 0xdf4   : > { %v8557_v51 = vpack.c.bf16 %v8529_v7, %v8527_v29  ;;  %v11213_v44 = vpop.eup %11212 }
 0xdf5   : > { %v8531_v22 = vmul.f32 %v11213_v44, %v15274_v49 }
 0xdf6   : > { %v11215_v19 = vpop.eup %11214  ;;  %8801 = vmatprep.mubr.bf16.mxu1 %v8557_v51 }
 0xdf7   : > { %v11217_v0 = vpop.eup %11216  ;;  %8802 = vmatmul.mubr.bf16.vlgmr.msra.gmra.mxu1 %v8556_v48  ;;  %v8532_v62 = vmul.f32 %v11215_v19, %v15277_v20 }
 0xdf8   : > { %v11219_v27 = vpop.eup %11218  ;;  %v8530_v32 = vmul.f32 %v11217_v0, %v15268_v30 }
 0xdf9   : > { %v8533_v63 = vmul.f32 %v11219_v27, %v15282_v60 }
 0xdfa   : > { %v8558_v18 = vpack.c.bf16 %v8532_v62, %v8530_v32 }
 0xdfb   : > { %v8559_v39 = vpack.c.bf16 %v8533_v63, %v8531_v22 }
 0xdfc   : > { %v11221_v37 = vpop.eup %11220 }
 0xdfd   : > { %8809 = vmatprep.mubr.bf16.mxu1 %v8559_v39  ;;  %v8535_v3 = vmul.f32 %v11221_v37, %v15291_v1 }
 0xdfe   : > { %v11223_v35 = vpop.eup %11222 }
 0xdff   : > { %v11225_v40 = vpop.eup %11224  ;;  %8810 = vmatmul.mubr.bf16.gmra.mxu1 %v8558_v18  ;;  %v8536_v41 = vmul.f32 %v11223_v35, %v15298_v6 }
 0xe00   : > { %v11227_v61 = vpop.eup %11226  ;;  %v8534_v20 = vmul.f32 %v11225_v40, %v15288_v36 }
 0xe01   : > { %v8537_v49 = vmul.f32 %v11227_v61, %v15302_v43 }
 0xe02   : > { %v8560_v11 = vpack.c.bf16 %v8536_v41, %v8534_v20 }
 0xe03   : > { %v8561_v60 = vpack.c.bf16 %v8537_v49, %v8535_v3 }
 0xe05   : > { %8817 = vmatprep.mubr.bf16.mxu1 %v8561_v60 }
 0xe07   : > { %8818 = vmatmul.mubr.bf16.gmra.mxu1 %v8560_v11 }
 0xe25   : > { %v9670_v30 = vpop.f32.mrf.mxu0 }
 0xe27   : > { %v9671_v46 = vpop.f32.mrf.mxu0 }
 0xe28   : > { %v9672_v54 = vadd.f32 %v9671_v46, %v9670_v30 }
 0xe29   : > { %v9673_v1 = vpop.f32.mrf.mxu0 }
 0xe2a   : > { %v8732_v6 = vadd.f32 %v9672_v54, %v15330_v13 }
 0xe2b   : > { %v9674_v14 = vpop.f32.mrf.mxu0 }
 0xe2c   : > { %v8826_v43 = vadd.f32 %v8732_v6, %v14753_v21  ;;  %v9675_v36 = vadd.f32 %v9674_v14, %v9673_v1 }
 0xe2e   : > { %8850 = vst [vmem:[#allocation2 + $0xb0] sm:$0xff] %v8826_v43  ;;  %8874 = vst [vmem:[%s16001_s14] sm:$0xff] %v8826_v43  ;;  %v8735_v31 = vadd.f32 %v9675_v36, %v15330_v13 }
 0xe30   : > { %v8827_v24 = vadd.f32 %v8735_v31, %v14760_v34 }
 0xe32   : > { %8851 = vst [vmem:[#allocation2] sm:$0xff] %v8827_v24  ;;  %8875 = vst [vmem:[%s16001_s14 + $0x8] sm:$0xff] %v8827_v24  ;;  %v9676_v53 = vpop.f32.mrf.mxu0 }
 0xe34   : > { %v9677_v58 = vpop.f32.mrf.mxu0 }
 0xe35   : > { %v9678_v9 = vadd.f32 %v9677_v58, %v9676_v53 }
 0xe36   : > { %v9679_v28 = vpop.f32.mrf.mxu0 }
 0xe37   : > { %v8740_v21 = vadd.f32 %v9678_v9, %v15330_v13 }
 0xe38   : > { %v9680_v38 = vpop.f32.mrf.mxu0 }
 0xe39   : > { %v8828_v47 = vadd.f32 %v8740_v21, %v14757_v55  ;;  %v9681_v8 = vadd.f32 %v9680_v38, %v9679_v28 }
 0xe3b   : > { %8852 = vst [vmem:[#allocation2 + $0x10] sm:$0xff] %v8828_v47  ;;  %8876 = vst [vmem:[%s16001_s14 + $0x10] sm:$0xff] %v8828_v47  ;;  %v8743_v34 = vadd.f32 %v9681_v8, %v15330_v13 }
 0xe3d   : > { %v8829_v29 = vadd.f32 %v8743_v34, %v14764_v45 }
 0xe3f   : > { %8853 = vst [vmem:[#allocation2 + $0x48] sm:$0xff] %v8829_v29  ;;  %8877 = vst [vmem:[%s16001_s14 + $0x18] sm:$0xff] %v8829_v29 }
 0xe53   : > { %v9682_v7 = vpop.f32.mrf.mxu0 }
 0xe55   : > { %v9683_v50 = vpop.f32.mrf.mxu0 }
 0xe56   : > { %v9684_v51 = vadd.f32 %v9683_v50, %v9682_v7 }
 0xe57   : > { %v9685_v44 = vpop.f32.mrf.mxu0 }
 0xe58   : > { %v8748_v55 = vadd.f32 %v9684_v51, %v15330_v13 }
 0xe59   : > { %v9686_v48 = vpop.f32.mrf.mxu0 }
 0xe5a   : > { %v8830_v19 = vadd.f32 %v8748_v55, %v14769_v5  ;;  %v9687_v0 = vadd.f32 %v9686_v48, %v9685_v44 }
 0xe5b   : > { %v9688_v27 = vpop.f32.mrf.mxu0 }
 0xe5c   : > { %8854 = vst [vmem:[#allocation2 + $0x60] sm:$0xff] %v8830_v19  ;;  %8878 = vst [vmem:[%s16001_s14 + $0x20] sm:$0xff] %v8830_v19  ;;  %v8751_v45 = vadd.f32 %v9687_v0, %v15330_v13 }
 0xe5d   : > { %v9689_v22 = vpop.f32.mrf.mxu0 }
 0xe5e   : > { %v8831_v62 = vadd.f32 %v8751_v45, %v14776_v23  ;;  %v9690_v63 = vadd.f32 %v9689_v22, %v9688_v27 }
 0xe5f   : > { %v9691_v32 = vpop.f32.mrf.mxu0 }
 0xe60   : > { %8855 = vst [vmem:[#allocation2 + $0x28] sm:$0xff] %v8831_v62  ;;  %8879 = vst [vmem:[%s16001_s14 + $0x28] sm:$0xff] %v8831_v62  ;;  %v8756_v5 = vadd.f32 %v9690_v63, %v15330_v13 }
 0xe61   : > { %v9692_v39 = vpop.f32.mrf.mxu0 }
 0xe62   : > { %v8832_v37 = vadd.f32 %v8756_v5, %v14773_v2  ;;  %v9693_v18 = vadd.f32 %v9692_v39, %v9691_v32 }
 0xe64   : > { %8856 = vst [vmem:[#allocation2 + $0x40] sm:$0xff] %v8832_v37  ;;  %8880 = vst [vmem:[%s16001_s14 + $0x30] sm:$0xff] %v8832_v37  ;;  %v8759_v23 = vadd.f32 %v9693_v18, %v15330_v13 }
 0xe66   : > { %v8833_v35 = vadd.f32 %v8759_v23, %v14780_v12 }
 0xe68   : > { %8857 = vst [vmem:[#allocation2 + $0x78] sm:$0xff] %v8833_v35  ;;  %8881 = vst [vmem:[%s16001_s14 + $0x38] sm:$0xff] %v8833_v35 }
 0xe8d   : > { %v9694_v40 = vpop.f32.mrf.mxu0 }
 0xe8f   : > { %v9695_v61 = vpop.f32.mrf.mxu0 }
 0xe90   : > { %v9696_v3 = vadd.f32 %v9695_v61, %v9694_v40 }
 0xe91   : > { %v9697_v41 = vpop.f32.mrf.mxu0 }
 0xe92   : > { %v8764_v2 = vadd.f32 %v9696_v3, %v15330_v13 }
 0xe93   : > { %v9698_v49 = vpop.f32.mrf.mxu0 }
 0xe94   : > { %v8834_v20 = vadd.f32 %v8764_v2, %v14785_v4  ;;  %v9699_v60 = vadd.f32 %v9698_v49, %v9697_v41 }
 0xe95   : > { %v9700_v11 = vpop.f32.mrf.mxu0 }
 0xe96   : > { %8858 = vst [vmem:[#allocation2 + $0x88] sm:$0xff] %v8834_v20  ;;  %8882 = vst [vmem:[%s16001_s14 + $0x40] sm:$0xff] %v8834_v20  ;;  %v8767_v12 = vadd.f32 %v9699_v60, %v15330_v13 }
 0xe97   : > { %v9701_v30 = vpop.f32.mrf.mxu0 }
 0xe98   : > { %v8835_v46 = vadd.f32 %v8767_v12, %v14792_v26  ;;  %v9702_v54 = vadd.f32 %v9701_v30, %v9700_v11  ;;  %v16002_v12 = vld [vmem:[#allocation50_spill] sm:$0xff] }
 0xe99   : > { %v9703_v1 = vpop.f32.mrf.mxu0 }
 0xe9a   : > { %8859 = vst [vmem:[#allocation2 + $0x90] sm:$0xff] %v8835_v46  ;;  %8883 = vst [vmem:[%s16001_s14 + $0x48] sm:$0xff] %v8835_v46  ;;  %v8772_v4 = vadd.f32 %v9702_v54, %v15330_v13 }
 0xe9b   : > { %v9704_v6 = vpop.f32.mrf.mxu0 }
 0xe9c   : > { %v8836_v14 = vadd.f32 %v8772_v4, %v14789_v56  ;;  %v9705_v43 = vadd.f32 %v9704_v6, %v9703_v1  ;;  %v16003_v4 = vld [vmem:[#allocation52_spill] sm:$0xff] }
 0xe9e   : > { %8860 = vst [vmem:[#allocation2 + $0x18] sm:$0xff] %v8836_v14  ;;  %8884 = vst [vmem:[%s16001_s14 + $0x50] sm:$0xff] %v8836_v14  ;;  %v8775_v26 = vadd.f32 %v9705_v43, %v15330_v13  ;;  %v9706_v36 = vpop.f32.mrf.mxu0 }
 0xea0   : > { %v8837_v31 = vadd.f32 %v8775_v26, %v14796_v17  ;;  %v9707_v24 = vpop.f32.mrf.mxu0  ;;  %v16004_v26 = vld [vmem:[#allocation15_spill] sm:$0xff] }
 0xea1   : > { %v9708_v53 = vadd.f32 %v9707_v24, %v9706_v36 }
 0xea2   : > { %8861 = vst [vmem:[#allocation2 + $0x98] sm:$0xff] %v8837_v31  ;;  %8885 = vst [vmem:[%s16001_s14 + $0x58] sm:$0xff] %v8837_v31  ;;  %v9709_v58 = vpop.f32.mrf.mxu0 }
 0xea3   : > { %v8780_v56 = vadd.f32 %v9708_v53, %v15330_v13 }
 0xea4   : > { %v9710_v9 = vpop.f32.mrf.mxu0 }
 0xea5   : > { %v8838_v28 = vadd.f32 %v8780_v56, %v14801_v59  ;;  %v9711_v21 = vadd.f32 %v9710_v9, %v9709_v58 }
 0xea6   : > { %v9712_v38 = vpop.f32.mrf.mxu0 }
 0xea7   : > { %8862 = vst [vmem:[#allocation2 + $0x38] sm:$0xff] %v8838_v28  ;;  %8886 = vst [vmem:[%s16001_s14 + $0x60] sm:$0xff] %v8838_v28  ;;  %v8783_v17 = vadd.f32 %v9711_v21, %v15330_v13 }
 0xea8   : > { %v9713_v47 = vpop.f32.mrf.mxu0 }
 0xea9   : > { %v8839_v8 = vadd.f32 %v8783_v17, %v14808_v16  ;;  %v9714_v34 = vadd.f32 %v9713_v47, %v9712_v38 }
 0xeaa   : > { %v9715_v29 = vpop.f32.mrf.mxu0 }
 0xeab   : > { %8863 = vst [vmem:[#allocation2 + $0x50] sm:$0xff] %v8839_v8  ;;  %8887 = vst [vmem:[%s16001_s14 + $0x68] sm:$0xff] %v8839_v8  ;;  %v8788_v59 = vadd.f32 %v9714_v34, %v15330_v13 }
 0xeac   : > { %v9716_v7 = vpop.f32.mrf.mxu0 }
 0xead   : > { %v8840_v50 = vadd.f32 %v8788_v59, %v14805_v25  ;;  %v9717_v51 = vadd.f32 %v9716_v7, %v9715_v29 }
 0xeaf   : > { %8864 = vst [vmem:[#allocation2 + $0x70] sm:$0xff] %v8840_v50  ;;  %8888 = vst [vmem:[%s16001_s14 + $0x70] sm:$0xff] %v8840_v50  ;;  %v8791_v16 = vadd.f32 %v9717_v51, %v15330_v13  ;;  %v9718_v44 = vpop.f32.mrf.mxu0 }
 0xeb1   : > { %v8841_v55 = vadd.f32 %v8791_v16, %v14812_v57  ;;  %v9719_v48 = vpop.f32.mrf.mxu0 }
 0xeb2   : > { %v9720_v19 = vadd.f32 %v9719_v48, %v9718_v44 }
 0xeb3   : > { %8865 = vst [vmem:[#allocation2 + $0xa0] sm:$0xff] %v8841_v55  ;;  %8889 = vst [vmem:[%s16001_s14 + $0x78] sm:$0xff] %v8841_v55  ;;  %v9721_v0 = vpop.f32.mrf.mxu0 }
 0xeb4   : > { %v8796_v25 = vadd.f32 %v9720_v19, %v15330_v13 }
 0xeb5   : > { %v9722_v27 = vpop.f32.mrf.mxu0 }
 0xeb6   : > { %v8842_v45 = vadd.f32 %v8796_v25, %v14817_v42  ;;  %v9723_v22 = vadd.f32 %v9722_v27, %v9721_v0 }
 0xeb7   : > { %v9724_v62 = vpop.f32.mrf.mxu1 }
 0xeb8   : > { %8866 = vst [vmem:[#allocation2 + $0xa8] sm:$0xff] %v8842_v45  ;;  %8890 = vst [vmem:[%s16001_s14 + $0x80] sm:$0xff] %v8842_v45  ;;  %v8799_v57 = vadd.f32 %v9723_v22, %v15330_v13 }
 0xeb9   : > { %v9725_v63 = vpop.f32.mrf.mxu1 }
 0xeba   : > { %v8843_v32 = vadd.f32 %v8799_v57, %v14827_v33  ;;  %v9726_v5 = vadd.f32 %v9725_v63, %v9724_v62 }
 0xebb   : > { %v9727_v39 = vpop.f32.mrf.mxu1 }
 0xebc   : > { %8867 = vst [vmem:[#allocation2 + $0x68] sm:$0xff] %v8843_v32  ;;  %8891 = vst [vmem:[%s16001_s14 + $0x88] sm:$0xff] %v8843_v32  ;;  %v8804_v42 = vadd.f32 %v9726_v5, %v15330_v13 }
 0xebd   : > { %v9728_v37 = vpop.f32.mrf.mxu1 }
 0xebe   : > { %v8844_v18 = vadd.f32 %v8804_v42, %v14821_v15  ;;  %v9729_v23 = vadd.f32 %v9728_v37, %v9727_v39 }
 0xebf   : > { %v9730_v35 = vpop.f32.mrf.mxu1 }
 0xec0   : > { %8868 = vst [vmem:[#allocation2 + $0x30] sm:$0xff] %v8844_v18  ;;  %8892 = vst [vmem:[%s16001_s14 + $0x90] sm:$0xff] %v8844_v18  ;;  %v8807_v33 = vadd.f32 %v9729_v23, %v15330_v13 }
 0xec1   : > { %v9731_v40 = vpop.f32.mrf.mxu1 }
 0xec2   : > { %v8845_v61 = vadd.f32 %v8807_v33, %v14831_v52  ;;  %v9732_v3 = vadd.f32 %v9731_v40, %v9730_v35 }
 0xec3   : > { %v9733_v41 = vpop.f32.mrf.mxu1 }
 0xec4   : > { %8869 = vst [vmem:[#allocation2 + $0x58] sm:$0xff] %v8845_v61  ;;  %8893 = vst [vmem:[%s16001_s14 + $0x98] sm:$0xff] %v8845_v61  ;;  %v8812_v15 = vadd.f32 %v9732_v3, %v15330_v13 }
 0xec5   : > { %v9734_v2 = vpop.f32.mrf.mxu1 }
 0xec6   : > { %v8846_v49 = vadd.f32 %v8812_v15, %v14845_v10  ;;  %v9735_v20 = vadd.f32 %v9734_v2, %v9733_v41 }
 0xec7   : > { %v9736_v60 = vpop.f32.mrf.mxu1 }
 0xec8   : > { %8870 = vst [vmem:[#allocation2 + $0x80] sm:$0xff] %v8846_v49  ;;  %8894 = vst [vmem:[%s16001_s14 + $0xa0] sm:$0xff] %v8846_v49  ;;  %v8815_v52 = vadd.f32 %v9735_v20, %v15330_v13 }
 0xec9   : > { %v9737_v11 = vpop.f32.mrf.mxu1 }
 0xeca   : > { %v8847_v30 = vadd.f32 %v8815_v52, %v16002_v12  ;;  %v9738_v46 = vadd.f32 %v9737_v11, %v9736_v60 }
 0xecb   : > { %v9739_v54 = vpop.f32.mrf.mxu1 }
 0xecc   : > { %8871 = vst [vmem:[#allocation2 + $0xb8] sm:$0xff] %v8847_v30  ;;  %8895 = vst [vmem:[%s16001_s14 + $0xa8] sm:$0xff] %v8847_v30  ;;  %v8820_v10 = vadd.f32 %v9738_v46, %v15330_v13 }
 0xecd   : > { %v9740_v1 = vpop.f32.mrf.mxu1 }
 0xece   : > { %v8848_v6 = vadd.f32 %v8820_v10, %v16003_v4  ;;  %v9741_v14 = vadd.f32 %v9740_v1, %v9739_v54 }
 0xed0   : > { %8872 = vst [vmem:[#allocation2 + $0x20] sm:$0xff] %v8848_v6  ;;  %8896 = vst [vmem:[%s16001_s14 + $0xb0] sm:$0xff] %v8848_v6  ;;  %v8823_v43 = vadd.f32 %v9741_v14, %v15330_v13 }
 0xed2   : > { %v8849_v36 = vadd.f32 %v8823_v43, %v16004_v26 }
 0xed4   : > { %8873 = vst [vmem:[#allocation2 + $0x8] sm:$0xff] %v8849_v36  ;;  %8897 = vst [vmem:[%s16001_s14 + $0xb8] sm:$0xff] %v8849_v36 }
 0xed5 PF: > { %s16005_s30 = sld [smem:[#allocation5_spill]] }
 0xed6   : > { %s16006_s25 = sld [smem:[#allocation4_spill]] }
 0xed7   : > { %s16007_s26 = sld [smem:[#allocation6_spill]] }
 0xedb   : > { %s23_s27 = sadd.s32 1, %s16005_s30  }
 0xedc   : > { %p20_p6 = scmp.ge.s32.totalorder %s23_s27, 4  }
 0xede   :  { %22 = sbr.rel (!%p20_p6) target bundleno = 5 (0x5), region = 142 }

</bundles_post_ra>
